<compile_context>
chip_gen: v5e
topology: v5e:2x2
jax: 0.10.0
libtpu: 0.0.40
codegen_flags: <defaults>
</compile_context>

<pallas_src>
import functools
import numpy as np
import jax
import jax.numpy as jnp
from jax import lax
from jax.experimental import pallas as pl
from jax.experimental.pallas import tpu as pltpu


# ----------------------------------------------------------------------------
# helpers
# ----------------------------------------------------------------------------
def _round_up(x, m):
    return (x + m - 1) // m * m


def _pick_tile(dim, max_tile, align):
    """Largest tile <= max_tile that divides `dim` (dim is a multiple of align)."""
    if dim <= max_tile:
        return dim
    for t in range(max_tile, 0, -align):
        if dim % t == 0:
            return t
    return align


TM_MAX, TN_MAX, TK_MAX = 256, 512, 512


# ----------------------------------------------------------------------------
# Pallas kernel: fused [LayerNorm ->] matmul + bias [+ quick-GELU] [+ residual]
# (single K-tile path) and a multi-K accumulator fallback.
# ----------------------------------------------------------------------------
def _linear_fused_kernel(*refs, activation, has_ln, has_res, eps):
    x_ref, w_ref, b_ref = refs[0], refs[1], refs[2]
    i = 3
    if has_ln:
        g_ref, lb_ref = refs[i], refs[i + 1]
        i += 2
    if has_res:
        r_ref = refs[i]
        i += 1
    o_ref = refs[i]

    x = x_ref[...].astype(jnp.float32)
    if has_ln:
        mu = jnp.mean(x, axis=-1, keepdims=True)
        xc = x - mu
        var = jnp.mean(xc * xc, axis=-1, keepdims=True)
        x = xc * lax.rsqrt(var + eps) * g_ref[...] + lb_ref[...]

    y = jnp.dot(x.astype(jnp.bfloat16), w_ref[...],
                preferred_element_type=jnp.float32)
    y = y + b_ref[...]
    if activation == "quick_gelu":
        y = y * jax.nn.sigmoid(1.702 * y)
    if has_res:
        y = y + r_ref[...]
    o_ref[...] = y.astype(o_ref.dtype)


def _linear_k_kernel(x_ref, w_ref, b_ref, o_ref, acc_ref, *, activation):
    @pl.when(pl.program_id(2) == 0)
    def _():
        acc_ref[...] = jnp.zeros_like(acc_ref)

    acc_ref[...] += jnp.dot(x_ref[...], w_ref[...],
                            preferred_element_type=jnp.float32)

    @pl.when(pl.program_id(2) == pl.num_programs(2) - 1)
    def _():
        y = acc_ref[...] + b_ref[...]
        if activation == "quick_gelu":
            y = y * jax.nn.sigmoid(1.702 * y)
        o_ref[...] = y.astype(o_ref.dtype)


def linear(x, w, b, n_out, activation=None, ln=None, residual=None, eps=1e-5):
    """y = act(ln(x) @ w + b) [+ residual].

    x        : (M, K) f32
    w        : (Kp, Np) bf16, pre-padded to 128-multiples
    b        : (1, Np) f32, pre-padded
    ln       : optional {'g': (1,K), 'b': (1,K)} fused pre-LayerNorm
    residual : optional (M, n_out) f32 added to the output
    """
    M, K = x.shape
    Kp, Np = w.shape

    Mp = _round_up(max(M, 8), 8)
    tm = _pick_tile(Mp, TM_MAX, 8)
    tn = _pick_tile(Np, TN_MAX, 128)
    tk = _pick_tile(Kp, TK_MAX, 128)
    nk = Kp // tk

    can_fuse_ln = (ln is not None) and (nk == 1) and (Kp == K)
    if (ln is not None) and not can_fuse_ln:
        x = layer_norm(x, ln["g"], ln["b"], eps=eps)
        ln = None

    if nk == 1:
        xp = x
        if (Mp, Kp) != (M, K):
            xp = jnp.pad(xp, ((0, Mp - M), (0, Kp - K)))

        inputs = [xp, w, b]
        in_specs = [
            pl.BlockSpec((tm, Kp), lambda i, j: (i, 0)),
            pl.BlockSpec((Kp, tn), lambda i, j: (0, j)),
            pl.BlockSpec((1, tn), lambda i, j: (0, j)),
        ]
        has_ln = ln is not None
        if has_ln:
            inputs += [ln["g"], ln["b"]]
            in_specs += [pl.BlockSpec((1, Kp), lambda i, j: (0, 0)),
                         pl.BlockSpec((1, Kp), lambda i, j: (0, 0))]
        has_res = residual is not None
        if has_res:
            rp = residual
            if rp.shape != (Mp, Np):
                rp = jnp.pad(rp, ((0, Mp - M), (0, Np - rp.shape[1])))
            inputs.append(rp)
            in_specs.append(pl.BlockSpec((tm, tn), lambda i, j: (i, j)))

        out = pl.pallas_call(
            functools.partial(_linear_fused_kernel, activation=activation,
                              has_ln=has_ln, has_res=has_res, eps=eps),
            out_shape=jax.ShapeDtypeStruct((Mp, Np), jnp.float32),
            grid=(Mp // tm, Np // tn),
            in_specs=in_specs,
            out_specs=pl.BlockSpec((tm, tn), lambda i, j: (i, j)),
            compiler_params=pltpu.CompilerParams(
                dimension_semantics=("parallel", "parallel")),
        )(*inputs)
        return out[:M, :n_out]

    # multi-K fallback (not hit at the default config sizes)
    xp = x.astype(jnp.bfloat16)
    if (Mp, Kp) != (M, K):
        xp = jnp.pad(xp, ((0, Mp - M), (0, Kp - K)))
    out = pl.pallas_call(
        functools.partial(_linear_k_kernel, activation=activation),
        out_shape=jax.ShapeDtypeStruct((Mp, Np), jnp.float32),
        grid=(Mp // tm, Np // tn, nk),
        in_specs=[
            pl.BlockSpec((tm, tk), lambda i, j, k: (i, k)),
            pl.BlockSpec((tk, tn), lambda i, j, k: (k, j)),
            pl.BlockSpec((1, tn), lambda i, j, k: (0, j)),
        ],
        out_specs=pl.BlockSpec((tm, tn), lambda i, j, k: (i, j)),
        scratch_shapes=[pltpu.VMEM((tm, tn), jnp.float32)],
        compiler_params=pltpu.CompilerParams(
            dimension_semantics=("parallel", "parallel", "arbitrary")),
    )(xp, w, b)
    out = out[:M, :n_out]
    if residual is not None:
        out = out + residual
    return out


# ----------------------------------------------------------------------------
# Pallas kernel: fused LayerNorm over the last dim (final LN / fallback)
# ----------------------------------------------------------------------------
def _layernorm_kernel(x_ref, g_ref, b_ref, o_ref, *, eps):
    x = x_ref[...].astype(jnp.float32)
    mu = jnp.mean(x, axis=-1, keepdims=True)
    xc = x - mu
    var = jnp.mean(xc * xc, axis=-1, keepdims=True)
    inv = lax.rsqrt(var + eps)
    o_ref[...] = (xc * inv * g_ref[...] + b_ref[...]).astype(o_ref.dtype)


def layer_norm(x, g, b, eps=1e-5):
    """x:(M,D) f32; g,b:(1,D)."""
    M, D = x.shape
    Mp = _round_up(max(M, 8), 8)
    tm = _pick_tile(Mp, 512, 8)
    xp = jnp.pad(x, ((0, Mp - M), (0, 0))) if Mp != M else x
    out = pl.pallas_call(
        functools.partial(_layernorm_kernel, eps=eps),
        out_shape=jax.ShapeDtypeStruct((Mp, D), jnp.float32),
        grid=(Mp // tm,),
        in_specs=[
            pl.BlockSpec((tm, D), lambda i: (i, 0)),
            pl.BlockSpec((1, D), lambda i: (0, 0)),
            pl.BlockSpec((1, D), lambda i: (0, 0)),
        ],
        out_specs=pl.BlockSpec((tm, D), lambda i: (i, 0)),
        compiler_params=pltpu.CompilerParams(dimension_semantics=("parallel",)),
    )(xp, g, b)
    return out[:M]


# ----------------------------------------------------------------------------
# Pallas kernel: fused causal self-attention, all heads per batch element
# ----------------------------------------------------------------------------
def _attn_kernel(q_ref, k_ref, v_ref, o_ref, *, scale):
    q = q_ref[0]            # (H, Sp, Dh) bf16
    k = k_ref[0]
    v = v_ref[0]
    s = jnp.einsum("hqd,hkd->hqk", q, k,
                   preferred_element_type=jnp.float32) * scale       # (H,Sp,Sp)
    Sp = s.shape[-1]
    row = lax.broadcasted_iota(jnp.int32, (Sp, Sp), 0)
    col = lax.broadcasted_iota(jnp.int32, (Sp, Sp), 1)
    s = jnp.where((col <= row)[None, :, :], s, -1e30)                # causal mask
    m = jnp.max(s, axis=-1, keepdims=True)
    p = jnp.exp(s - m)
    denom = jnp.sum(p, axis=-1, keepdims=True)
    o = jnp.einsum("hqk,hkd->hqd", p.astype(v.dtype), v,
                   preferred_element_type=jnp.float32)
    o_ref[0] = (o * pl.reciprocal(denom, approx=True)).astype(o_ref.dtype)


def attention(q, k, v, scale):
    """q,k,v: (B, H, S, Dh) bf16 -> (B, H, S, Dh) f32."""
    B, H, S, Dh = q.shape
    Sp = _round_up(S, 8)
    if Sp != S:
        pad = ((0, 0), (0, 0), (0, Sp - S), (0, 0))
        # zero-padded key rows sit at col >= S and are removed by the causal
        # mask for all valid query rows; padded query rows are sliced away.
        q, k, v = (jnp.pad(t, pad) for t in (q, k, v))
    out = pl.pallas_call(
        functools.partial(_attn_kernel, scale=scale),
        out_shape=jax.ShapeDtypeStruct((B, H, Sp, Dh), jnp.float32),
        grid=(B,),
        in_specs=[pl.BlockSpec((1, H, Sp, Dh), lambda b: (b, 0, 0, 0))
                  for _ in range(3)],
        out_specs=pl.BlockSpec((1, H, Sp, Dh), lambda b: (b, 0, 0, 0)),
        compiler_params=pltpu.CompilerParams(dimension_semantics=("parallel",)),
    )(q, k, v)
    return out[:, :, :S, :]


# ----------------------------------------------------------------------------
# Deterministic synthetic parameters (pre-padded, bf16 weights)
# ----------------------------------------------------------------------------
def build_params(cfg, seed=0):
    D, Dff = cfg["hidden"], cfg["intermediate"]
    L, V, S = cfg["layers"], cfg["vocab"], cfg["max_length"]
    keys = iter(jax.random.split(jax.random.PRNGKey(seed), 8 * L + 16))

    def lin(k_in, n_out):
        kw, kb = jax.random.split(next(keys))
        w = jax.random.normal(kw, (k_in, n_out), jnp.float32) / np.sqrt(k_in)
        b = 0.01 * jax.random.normal(kb, (n_out,), jnp.float32)
        kp, nop = _round_up(k_in, 128), _round_up(n_out, 128)
        w = jnp.pad(w, ((0, kp - k_in), (0, nop - n_out))).astype(jnp.bfloat16)
        b = jnp.pad(b, (0, nop - n_out)).reshape(1, nop)
        return {"w": w, "b": b}

    def ln():
        kg, kb = jax.random.split(next(keys))
        return {"g": 1.0 + 0.05 * jax.random.normal(kg, (1, D), jnp.float32),
                "b": 0.02 * jax.random.normal(kb, (1, D), jnp.float32)}

    layers = []
    for _ in range(L):
        layers.append({
            "ln1": ln(), "ln2": ln(),
            "qkv": lin(D, 3 * D),     # fused q/k/v projection (one matmul)
            "out": lin(D, D),
            "fc1": lin(D, Dff),
            "fc2": lin(Dff, D),
        })

    return {
        "tok_emb": 0.02 * jax.random.normal(next(keys), (V, D), jnp.float32),
        "pos_emb": 0.01 * jax.random.normal(next(keys), (S, D), jnp.float32),
        "layers": layers,
        "ln_final": ln(),
    }


# ----------------------------------------------------------------------------
# CLIP text transformer forward
# ----------------------------------------------------------------------------
def _encoder_layer(x2d, B, S, p, cfg):
    D, H = cfg["hidden"], cfg["heads"]
    Dh = D // H

    # --- self-attention block (pre-LN fused into the qkv projection) ---
    qkv = linear(x2d, p["qkv"]["w"], p["qkv"]["b"], n_out=3 * D,
                 ln=p["ln1"], eps=cfg["eps"])                        # (B*S, 3D)
    qkv = qkv.reshape(B, S, 3, H, Dh).transpose(2, 0, 3, 1, 4)       # (3,B,H,S,Dh)
    q = qkv[0].astype(jnp.bfloat16)
    k = qkv[1].astype(jnp.bfloat16)
    v = qkv[2].astype(jnp.bfloat16)
    a = attention(q, k, v, scale=float(Dh) ** -0.5)                  # (B,H,S,Dh)
    a = a.transpose(0, 2, 1, 3).reshape(B * S, D)
    # out-projection with residual add fused into the epilogue
    x2d = linear(a, p["out"]["w"], p["out"]["b"], n_out=D, residual=x2d)

    # --- MLP block (pre-LN fused into fc1, residual fused into fc2) ---
    h = linear(x2d, p["fc1"]["w"], p["fc1"]["b"], n_out=cfg["intermediate"],
               activation="quick_gelu", ln=p["ln2"], eps=cfg["eps"])
    x2d = linear(h, p["fc2"]["w"], p["fc2"]["b"], n_out=D, residual=x2d)
    return x2d


def forward(params, tokens, cfg, layer="last", layer_idx=None, return_pooled=False):
    B, S = tokens.shape
    D = cfg["hidden"]

    # TODO(synk): embedding gather is data-dependent; left to XLA (no clean
    # BlockSpec expression for a per-token gather at this tiny size).
    x = jnp.take(params["tok_emb"], tokens, axis=0) + params["pos_emb"][None, :S, :]
    x2d = x.reshape(B * S, D)

    need_hidden = (layer == "hidden")
    hidden_states = [x2d.reshape(B, S, D)] if need_hidden else None
    for p in params["layers"]:
        x2d = _encoder_layer(x2d, B, S, p, cfg)
        if need_hidden:
            hidden_states.append(x2d.reshape(B, S, D))

    last = layer_norm(x2d, params["ln_final"]["g"], params["ln_final"]["b"],
                      eps=cfg["eps"]).reshape(B, S, D)
    # pooler_output: hidden state at the highest-id (EOS) token, CLIP convention
    pooled = last[jnp.arange(B), jnp.argmax(tokens, axis=-1)]

    if layer == "last":
        z = last
    elif layer == "pooled":
        z = pooled[:, None, :]
    else:  # 'hidden'
        z = hidden_states[layer_idx]

    if return_pooled:
        return z, pooled
    return z


class FrozenCLIPEmbedderPallas:
    """Pallas/TPU reimplementation of FrozenCLIPEmbedder (frozen, inference)."""
    LAYERS = ["last", "pooled", "hidden"]

    def __init__(self, max_length=77, layer="last", layer_idx=None,
                 always_return_pooled=False, vocab=1000, hidden=128, heads=4,
                 intermediate=512, num_layers=2, seed=0):
        assert layer in self.LAYERS
        if layer == "hidden":
            assert layer_idx is not None
            assert 0 <= abs(layer_idx) <= num_layers
        self.cfg = dict(vocab=vocab, hidden=hidden, heads=heads,
                        intermediate=intermediate, layers=num_layers,
                        max_length=max_length, eps=1e-5)
        self.params = build_params(self.cfg, seed)
        self._fwd = jax.jit(functools.partial(
            forward, cfg=self.cfg, layer=layer, layer_idx=layer_idx,
            return_pooled=always_return_pooled))

    def __call__(self, tokens):
        # TODO(synk): CLIPTokenizer (text -> ids) is not translatable; takes ids.
        tokens = jnp.asarray(tokens, jnp.int32)
        if tokens.ndim == 1:
            tokens = tokens[None, :]
        S = self.cfg["max_length"]
        tokens = tokens[:, :S]                      # truncation=True
        if tokens.shape[1] < S:                     # padding='max_length' (pad id 0)
            tokens = jnp.pad(tokens, ((0, 0), (0, S - tokens.shape[1])))
        return self._fwd(self.params, tokens)

    def encode(self, tokens):
        return self(tokens)


if __name__ == "__main__":
    key = jax.random.PRNGKey(0)
    model = FrozenCLIPEmbedderPallas(max_length=77, layer="last",
                                     vocab=1000, hidden=128, heads=4,
                                     intermediate=512, num_layers=2, seed=0)
    # deterministic synthetic "sentences": batch=2, 8 real tokens, padded to 77
    tokens = jax.random.randint(key, (2, 8), 1, 1000, dtype=jnp.int32)
    z = jax.block_until_ready(model(tokens))
    assert z.shape == (2, 77, 128), z.shape
    assert np.all(np.isfinite(np.asarray(z)))
    print("KERNEL_OK")
</pallas_src>

<mosaic_0001>
module attributes {stable_mosaic.version = 11 : i64} {
  func.func @_linear_fused_kernel(%arg0: i32, %arg1: i32, %arg2: memref<160x128xf32, #tpu.memory_space<vmem>>, %arg3: memref<128x384xbf16, #tpu.memory_space<vmem>>, %arg4: memref<1x384xf32, #tpu.memory_space<vmem>>, %arg5: memref<1x128xf32, #tpu.memory_space<vmem>>, %arg6: memref<1x128xf32, #tpu.memory_space<vmem>>, %arg7: memref<160x384xf32, #tpu.memory_space<vmem>>) attributes {dimension_semantics = [#tpu.dimension_semantics<parallel>, #tpu.dimension_semantics<parallel>], iteration_bounds = array<i64: 1, 1>, scalar_prefetch = 0 : i64, scratch_operands = 0 : i64, tpu.core_type = #tpu.core_type<tc>, window_params = [{transform_indices = @transform_0, window_bounds = array<i64: 160, 128>}, {transform_indices = @transform_1, window_bounds = array<i64: 128, 384>}, {transform_indices = @transform_2, window_bounds = array<i64: 1, 384>}, {pipeline_mode = #tpu.pipeline_mode<synchronous>, transform_indices = @transform_3, window_bounds = array<i64: 1, 128>}, {pipeline_mode = #tpu.pipeline_mode<synchronous>, transform_indices = @transform_4, window_bounds = array<i64: 1, 128>}, {transform_indices = @transform_5, window_bounds = array<i64: 160, 384>}]} {
    %c0 = arith.constant 0 : index
    %c0_0 = arith.constant 0 : index
    %0 = vector.load %arg2[%c0, %c0_0] : memref<160x128xf32, #tpu.memory_space<vmem>>, vector<160x128xf32>
    %cst = arith.constant dense<0.000000e+00> : vector<160xf32>
    %1 = vector.multi_reduction <add>, %0, %cst [1] : vector<160x128xf32> to vector<160xf32>
    %2 = vector.shape_cast %1 : vector<160xf32> to vector<160x1xf32>
    %cst_1 = arith.constant 1.280000e+02 : f32
    %3 = vector.broadcast %cst_1 : f32 to vector<160x1xf32>
    %4 = arith.divf %2, %3 : vector<160x1xf32>
    %5 = vector.broadcast %4 : vector<160x1xf32> to vector<160x128xf32>
    %6 = arith.subf %0, %5 : vector<160x128xf32>
    %7 = arith.mulf %6, %6 : vector<160x128xf32>
    %cst_2 = arith.constant dense<0.000000e+00> : vector<160xf32>
    %8 = vector.multi_reduction <add>, %7, %cst_2 [1] : vector<160x128xf32> to vector<160xf32>
    %9 = vector.shape_cast %8 : vector<160xf32> to vector<160x1xf32>
    %cst_3 = arith.constant 1.280000e+02 : f32
    %10 = vector.broadcast %cst_3 : f32 to vector<160x1xf32>
    %11 = arith.divf %9, %10 : vector<160x1xf32>
    %cst_4 = arith.constant 9.99999974E-6 : f32
    %12 = vector.broadcast %cst_4 : f32 to vector<160x1xf32>
    %13 = arith.addf %11, %12 : vector<160x1xf32>
    %14 = math.rsqrt %13 : vector<160x1xf32>
    %15 = vector.broadcast %14 : vector<160x1xf32> to vector<160x128xf32>
    %16 = arith.mulf %6, %15 : vector<160x128xf32>
    %c0_5 = arith.constant 0 : index
    %c0_6 = arith.constant 0 : index
    %17 = vector.load %arg5[%c0_5, %c0_6] : memref<1x128xf32, #tpu.memory_space<vmem>>, vector<1x128xf32>
    %18 = vector.broadcast %17 : vector<1x128xf32> to vector<160x128xf32>
    %19 = arith.mulf %16, %18 : vector<160x128xf32>
    %c0_7 = arith.constant 0 : index
    %c0_8 = arith.constant 0 : index
    %20 = vector.load %arg6[%c0_7, %c0_8] : memref<1x128xf32, #tpu.memory_space<vmem>>, vector<1x128xf32>
    %21 = vector.broadcast %20 : vector<1x128xf32> to vector<160x128xf32>
    %22 = arith.addf %19, %21 : vector<160x128xf32>
    %23 = arith.truncf %22 : vector<160x128xf32> to vector<160x128xbf16>
    %c0_9 = arith.constant 0 : index
    %c0_10 = arith.constant 0 : index
    %24 = vector.load %arg3[%c0_9, %c0_10] : memref<128x384xbf16, #tpu.memory_space<vmem>>, vector<128x384xbf16>
    %cst_11 = arith.constant dense<0.000000e+00> : vector<160x384xf32>
    %25 = tpu.matmul %23, %24, %cst_11 {dimension_numbers = #tpu.dot_dimension_numbers<[1], [0], [0], [1], [0, 0, 1, 1], [], []>} : vector<160x128xbf16>, vector<128x384xbf16>, vector<160x384xf32> -> vector<160x384xf32>
    %c0_12 = arith.constant 0 : index
    %c0_13 = arith.constant 0 : index
    %26 = vector.load %arg4[%c0_12, %c0_13] : memref<1x384xf32, #tpu.memory_space<vmem>>, vector<1x384xf32>
    %27 = vector.broadcast %26 : vector<1x384xf32> to vector<160x384xf32>
    %28 = arith.addf %25, %27 : vector<160x384xf32>
    %c0_14 = arith.constant 0 : index
    %c0_15 = arith.constant 0 : index
    %29 = vector.load %arg7[%c0_14, %c0_15] : memref<160x384xf32, #tpu.memory_space<vmem>>, vector<160x384xf32>
    tpu.vector_store %arg7[%c0_14, %c0_15], %28 {strides = array<i32>} : memref<160x384xf32, #tpu.memory_space<vmem>>, vector<160x384xf32>,
    return
  }
  func.func @transform_0(%arg0: i32, %arg1: i32) -> (i32, i32) {
    %c0_i32 = arith.constant 0 : i32
    %c0_i32_0 = arith.constant 0 : i32
    return %arg0, %c0_i32 : i32, i32
  }
  func.func @transform_1(%arg0: i32, %arg1: i32) -> (i32, i32) {
    %c0_i32 = arith.constant 0 : i32
    %c0_i32_0 = arith.constant 0 : i32
    return %c0_i32, %arg1 : i32, i32
  }
  func.func @transform_2(%arg0: i32, %arg1: i32) -> (i32, i32) {
    %c0_i32 = arith.constant 0 : i32
    %c0_i32_0 = arith.constant 0 : i32
    return %c0_i32, %arg1 : i32, i32
  }
  func.func @transform_3(%arg0: i32, %arg1: i32) -> (i32, i32) {
    %c0_i32 = arith.constant 0 : i32
    %c0_i32_0 = arith.constant 0 : i32
    %c0_i32_1 = arith.constant 0 : i32
    return %c0_i32, %c0_i32_0 : i32, i32
  }
  func.func @transform_4(%arg0: i32, %arg1: i32) -> (i32, i32) {
    %c0_i32 = arith.constant 0 : i32
    %c0_i32_0 = arith.constant 0 : i32
    %c0_i32_1 = arith.constant 0 : i32
    return %c0_i32, %c0_i32_0 : i32, i32
  }
  func.func @transform_5(%arg0: i32, %arg1: i32) -> (i32, i32) {
    %c0_i32 = arith.constant 0 : i32
    return %arg0, %arg1 : i32, i32
  }
}

module attributes {stable_mosaic.version = 11 : i64} {
  func.func @_attn_kernel(%arg0: i32, %arg1: memref<1x4x80x32xbf16, #tpu.memory_space<vmem>>, %arg2: memref<1x4x80x32xbf16, #tpu.memory_space<vmem>>, %arg3: memref<1x4x80x32xbf16, #tpu.memory_space<vmem>>, %arg4: memref<1x4x80x32xf32, #tpu.memory_space<vmem>>) attributes {dimension_semantics = [#tpu.dimension_semantics<parallel>], iteration_bounds = array<i64: 2>, scalar_prefetch = 0 : i64, scratch_operands = 0 : i64, tpu.core_type = #tpu.core_type<tc>, window_params = [{transform_indices = @transform_0, window_bounds = array<i64: 1, 4, 80, 32>}, {transform_indices = @transform_1, window_bounds = array<i64: 1, 4, 80, 32>}, {transform_indices = @transform_2, window_bounds = array<i64: 1, 4, 80, 32>}, {transform_indices = @transform_3, window_bounds = array<i64: 1, 4, 80, 32>}]} {
    %c0 = arith.constant 0 : index
    %c0_0 = arith.constant 0 : index
    %c0_1 = arith.constant 0 : index
    %c0_2 = arith.constant 0 : index
    %0 = vector.load %arg1[%c0, %c0_0, %c0_1, %c0_2] : memref<1x4x80x32xbf16, #tpu.memory_space<vmem>>, vector<1x4x80x32xbf16>
    %1 = vector.shape_cast %0 : vector<1x4x80x32xbf16> to vector<4x80x32xbf16>
    %c0_3 = arith.constant 0 : index
    %c0_4 = arith.constant 0 : index
    %c0_5 = arith.constant 0 : index
    %c0_6 = arith.constant 0 : index
    %2 = vector.load %arg2[%c0_3, %c0_4, %c0_5, %c0_6] : memref<1x4x80x32xbf16, #tpu.memory_space<vmem>>, vector<1x4x80x32xbf16>
    %3 = vector.shape_cast %2 : vector<1x4x80x32xbf16> to vector<4x80x32xbf16>
    %c0_7 = arith.constant 0 : index
    %c0_8 = arith.constant 0 : index
    %c0_9 = arith.constant 0 : index
    %c0_10 = arith.constant 0 : index
    %4 = vector.load %arg3[%c0_7, %c0_8, %c0_9, %c0_10] : memref<1x4x80x32xbf16, #tpu.memory_space<vmem>>, vector<1x4x80x32xbf16>
    %5 = vector.shape_cast %4 : vector<1x4x80x32xbf16> to vector<4x80x32xbf16>
    "tpu.trace_start"() <{level = 10 : i32, message = "hqd,hkd->hqk"}> : () -> ()
    %cst = arith.constant dense<0.000000e+00> : vector<4x80x80xf32>
    %6 = tpu.matmul %1, %3, %cst {dimension_numbers = #tpu.dot_dimension_numbers<[2], [2], [1], [1], [0, 0, 0, 1, 1, 1], [0], [0]>} : vector<4x80x32xbf16>, vector<4x80x32xbf16>, vector<4x80x80xf32> -> vector<4x80x80xf32>
    "tpu.trace_stop"() : () -> ()
    %cst_11 = arith.constant 0.176776692 : f32
    %7 = vector.broadcast %cst_11 : f32 to vector<4x80x80xf32>
    %8 = arith.mulf %6, %7 : vector<4x80x80xf32>
    %9 = tpu.iota {dimensions = array<i32: 0>} : vector<80x80xi32>
    %10 = tpu.iota {dimensions = array<i32: 1>} : vector<80x80xi32>
    %11 = arith.cmpi sle, %10, %9 : vector<80x80xi32>
    %12 = vector.shape_cast %11 : vector<80x80xi1> to vector<1x80x80xi1>
    %cst_12 = arith.constant -1.000000e+30 : f32
    %13 = vector.shape_cast %12 : vector<1x80x80xi1> to vector<1x80x80xi1>
    %14 = vector.broadcast %13 : vector<1x80x80xi1> to vector<4x80x80xi1>
    %15 = vector.broadcast %cst_12 : f32 to vector<4x80x80xf32>
    %16 = arith.select %14, %8, %15 : vector<4x80x80xi1>, vector<4x80x80xf32>
    %cst_13 = arith.constant dense<0xFF800000> : vector<4x80xf32>
    %17 = vector.multi_reduction <maximumf>, %16, %cst_13 [2] : vector<4x80x80xf32> to vector<4x80xf32>
    %18 = vector.shape_cast %17 : vector<4x80xf32> to vector<4x80x1xf32>
    %19 = vector.broadcast %18 : vector<4x80x1xf32> to vector<4x80x80xf32>
    %20 = arith.subf %16, %19 : vector<4x80x80xf32>
    %21 = math.exp %20 : vector<4x80x80xf32>
    %cst_14 = arith.constant dense<0.000000e+00> : vector<4x80xf32>
    %22 = vector.multi_reduction <add>, %21, %cst_14 [2] : vector<4x80x80xf32> to vector<4x80xf32>
    %23 = vector.shape_cast %22 : vector<4x80xf32> to vector<4x80x1xf32>
    %24 = arith.truncf %21 : vector<4x80x80xf32> to vector<4x80x80xbf16>
    "tpu.trace_start"() <{level = 10 : i32, message = "hqk,hkd->hqd"}> : () -> ()
    %cst_15 = arith.constant dense<0.000000e+00> : vector<4x80x32xf32>
    %25 = tpu.matmul %24, %5, %cst_15 {dimension_numbers = #tpu.dot_dimension_numbers<[2], [1], [1], [2], [0, 0, 0, 1, 1, 2], [0], [0]>} : vector<4x80x80xbf16>, vector<4x80x32xbf16>, vector<4x80x32xf32> -> vector<4x80x32xf32>
    "tpu.trace_stop"() : () -> ()
    %26 = tpu.reciprocal %23 {approx = true} : vector<4x80x1xf32> -> vector<4x80x1xf32>
    %27 = vector.broadcast %26 : vector<4x80x1xf32> to vector<4x80x32xf32>
    %28 = arith.mulf %25, %27 : vector<4x80x32xf32>
    %c0_16 = arith.constant 0 : index
    %c0_17 = arith.constant 0 : index
    %c0_18 = arith.constant 0 : index
    %c0_19 = arith.constant 0 : index
    %29 = vector.load %arg4[%c0_16, %c0_17, %c0_18, %c0_19] : memref<1x4x80x32xf32, #tpu.memory_space<vmem>>, vector<1x4x80x32xf32>
    %30 = vector.shape_cast %29 : vector<1x4x80x32xf32> to vector<4x80x32xf32>
    %31 = vector.shape_cast %28 : vector<4x80x32xf32> to vector<1x4x80x32xf32>
    tpu.vector_store %arg4[%c0_16, %c0_17, %c0_18, %c0_19], %31 {strides = array<i32>} : memref<1x4x80x32xf32, #tpu.memory_space<vmem>>, vector<1x4x80x32xf32>,
    return
  }
  func.func @transform_0(%arg0: i32) -> (i32, i32, i32, i32) {
    %c0_i32 = arith.constant 0 : i32
    %c0_i32_0 = arith.constant 0 : i32
    %c0_i32_1 = arith.constant 0 : i32
    %c0_i32_2 = arith.constant 0 : i32
    return %arg0, %c0_i32, %c0_i32_0, %c0_i32_1 : i32, i32, i32, i32
  }
  func.func @transform_1(%arg0: i32) -> (i32, i32, i32, i32) {
    %c0_i32 = arith.constant 0 : i32
    %c0_i32_0 = arith.constant 0 : i32
    %c0_i32_1 = arith.constant 0 : i32
    %c0_i32_2 = arith.constant 0 : i32
    return %arg0, %c0_i32, %c0_i32_0, %c0_i32_1 : i32, i32, i32, i32
  }
  func.func @transform_2(%arg0: i32) -> (i32, i32, i32, i32) {
    %c0_i32 = arith.constant 0 : i32
    %c0_i32_0 = arith.constant 0 : i32
    %c0_i32_1 = arith.constant 0 : i32
    %c0_i32_2 = arith.constant 0 : i32
    return %arg0, %c0_i32, %c0_i32_0, %c0_i32_1 : i32, i32, i32, i32
  }
  func.func @transform_3(%arg0: i32) -> (i32, i32, i32, i32) {
    %c0_i32 = arith.constant 0 : i32
    %c0_i32_0 = arith.constant 0 : i32
    %c0_i32_1 = arith.constant 0 : i32
    %c0_i32_2 = arith.constant 0 : i32
    return %arg0, %c0_i32, %c0_i32_0, %c0_i32_1 : i32, i32, i32, i32
  }
}

module attributes {stable_mosaic.version = 11 : i64} {
  func.func @_linear_fused_kernel(%arg0: i32, %arg1: i32, %arg2: memref<160x128xf32, #tpu.memory_space<vmem>>, %arg3: memref<128x128xbf16, #tpu.memory_space<vmem>>, %arg4: memref<1x128xf32, #tpu.memory_space<vmem>>, %arg5: memref<160x128xf32, #tpu.memory_space<vmem>>, %arg6: memref<160x128xf32, #tpu.memory_space<vmem>>) attributes {dimension_semantics = [#tpu.dimension_semantics<parallel>, #tpu.dimension_semantics<parallel>], iteration_bounds = array<i64: 1, 1>, scalar_prefetch = 0 : i64, scratch_operands = 0 : i64, tpu.core_type = #tpu.core_type<tc>, window_params = [{transform_indices = @transform_0, window_bounds = array<i64: 160, 128>}, {transform_indices = @transform_1, window_bounds = array<i64: 128, 128>}, {transform_indices = @transform_2, window_bounds = array<i64: 1, 128>}, {transform_indices = @transform_3, window_bounds = array<i64: 160, 128>}, {transform_indices = @transform_4, window_bounds = array<i64: 160, 128>}]} {
    %c0 = arith.constant 0 : index
    %c0_0 = arith.constant 0 : index
    %0 = vector.load %arg2[%c0, %c0_0] : memref<160x128xf32, #tpu.memory_space<vmem>>, vector<160x128xf32>
    %1 = arith.truncf %0 : vector<160x128xf32> to vector<160x128xbf16>
    %c0_1 = arith.constant 0 : index
    %c0_2 = arith.constant 0 : index
    %2 = vector.load %arg3[%c0_1, %c0_2] : memref<128x128xbf16, #tpu.memory_space<vmem>>, vector<128x128xbf16>
    %cst = arith.constant dense<0.000000e+00> : vector<160x128xf32>
    %3 = tpu.matmul %1, %2, %cst {dimension_numbers = #tpu.dot_dimension_numbers<[1], [0], [0], [1], [0, 0, 1, 1], [], []>} : vector<160x128xbf16>, vector<128x128xbf16>, vector<160x128xf32> -> vector<160x128xf32>
    %c0_3 = arith.constant 0 : index
    %c0_4 = arith.constant 0 : index
    %4 = vector.load %arg4[%c0_3, %c0_4] : memref<1x128xf32, #tpu.memory_space<vmem>>, vector<1x128xf32>
    %5 = vector.broadcast %4 : vector<1x128xf32> to vector<160x128xf32>
    %6 = arith.addf %3, %5 : vector<160x128xf32>
    %c0_5 = arith.constant 0 : index
    %c0_6 = arith.constant 0 : index
    %7 = vector.load %arg5[%c0_5, %c0_6] : memref<160x128xf32, #tpu.memory_space<vmem>>, vector<160x128xf32>
    %8 = arith.addf %6, %7 : vector<160x128xf32>
    %c0_7 = arith.constant 0 : index
    %c0_8 = arith.constant 0 : index
    %9 = vector.load %arg6[%c0_7, %c0_8] : memref<160x128xf32, #tpu.memory_space<vmem>>, vector<160x128xf32>
    tpu.vector_store %arg6[%c0_7, %c0_8], %8 {strides = array<i32>} : memref<160x128xf32, #tpu.memory_space<vmem>>, vector<160x128xf32>,
    return
  }
  func.func @transform_0(%arg0: i32, %arg1: i32) -> (i32, i32) {
    %c0_i32 = arith.constant 0 : i32
    %c0_i32_0 = arith.constant 0 : i32
    return %arg0, %c0_i32 : i32, i32
  }
  func.func @transform_1(%arg0: i32, %arg1: i32) -> (i32, i32) {
    %c0_i32 = arith.constant 0 : i32
    %c0_i32_0 = arith.constant 0 : i32
    return %c0_i32, %arg1 : i32, i32
  }
  func.func @transform_2(%arg0: i32, %arg1: i32) -> (i32, i32) {
    %c0_i32 = arith.constant 0 : i32
    %c0_i32_0 = arith.constant 0 : i32
    return %c0_i32, %arg1 : i32, i32
  }
  func.func @transform_3(%arg0: i32, %arg1: i32) -> (i32, i32) {
    %c0_i32 = arith.constant 0 : i32
    return %arg0, %arg1 : i32, i32
  }
  func.func @transform_4(%arg0: i32, %arg1: i32) -> (i32, i32) {
    %c0_i32 = arith.constant 0 : i32
    return %arg0, %arg1 : i32, i32
  }
}

module attributes {stable_mosaic.version = 11 : i64} {
  func.func @_layernorm_kernel(%arg0: i32, %arg1: memref<160x128xf32, #tpu.memory_space<vmem>>, %arg2: memref<1x128xf32, #tpu.memory_space<vmem>>, %arg3: memref<1x128xf32, #tpu.memory_space<vmem>>, %arg4: memref<160x128xf32, #tpu.memory_space<vmem>>) attributes {dimension_semantics = [#tpu.dimension_semantics<parallel>], iteration_bounds = array<i64: 1>, scalar_prefetch = 0 : i64, scratch_operands = 0 : i64, tpu.core_type = #tpu.core_type<tc>, window_params = [{transform_indices = @transform_0, window_bounds = array<i64: 160, 128>}, {pipeline_mode = #tpu.pipeline_mode<synchronous>, transform_indices = @transform_1, window_bounds = array<i64: 1, 128>}, {pipeline_mode = #tpu.pipeline_mode<synchronous>, transform_indices = @transform_2, window_bounds = array<i64: 1, 128>}, {transform_indices = @transform_3, window_bounds = array<i64: 160, 128>}]} {
    %c0 = arith.constant 0 : index
    %c0_0 = arith.constant 0 : index
    %0 = vector.load %arg1[%c0, %c0_0] : memref<160x128xf32, #tpu.memory_space<vmem>>, vector<160x128xf32>
    %cst = arith.constant dense<0.000000e+00> : vector<160xf32>
    %1 = vector.multi_reduction <add>, %0, %cst [1] : vector<160x128xf32> to vector<160xf32>
    %2 = vector.shape_cast %1 : vector<160xf32> to vector<160x1xf32>
    %cst_1 = arith.constant 1.280000e+02 : f32
    %3 = vector.broadcast %cst_1 : f32 to vector<160x1xf32>
    %4 = arith.divf %2, %3 : vector<160x1xf32>
    %5 = vector.broadcast %4 : vector<160x1xf32> to vector<160x128xf32>
    %6 = arith.subf %0, %5 : vector<160x128xf32>
    %7 = arith.mulf %6, %6 : vector<160x128xf32>
    %cst_2 = arith.constant dense<0.000000e+00> : vector<160xf32>
    %8 = vector.multi_reduction <add>, %7, %cst_2 [1] : vector<160x128xf32> to vector<160xf32>
    %9 = vector.shape_cast %8 : vector<160xf32> to vector<160x1xf32>
    %cst_3 = arith.constant 1.280000e+02 : f32
    %10 = vector.broadcast %cst_3 : f32 to vector<160x1xf32>
    %11 = arith.divf %9, %10 : vector<160x1xf32>
    %cst_4 = arith.constant 9.99999974E-6 : f32
    %12 = vector.broadcast %cst_4 : f32 to vector<160x1xf32>
    %13 = arith.addf %11, %12 : vector<160x1xf32>
    %14 = math.rsqrt %13 : vector<160x1xf32>
    %15 = vector.broadcast %14 : vector<160x1xf32> to vector<160x128xf32>
    %16 = arith.mulf %6, %15 : vector<160x128xf32>
    %c0_5 = arith.constant 0 : index
    %c0_6 = arith.constant 0 : index
    %17 = vector.load %arg2[%c0_5, %c0_6] : memref<1x128xf32, #tpu.memory_space<vmem>>, vector<1x128xf32>
    %18 = vector.broadcast %17 : vector<1x128xf32> to vector<160x128xf32>
    %19 = arith.mulf %16, %18 : vector<160x128xf32>
    %c0_7 = arith.constant 0 : index
    %c0_8 = arith.constant 0 : index
    %20 = vector.load %arg3[%c0_7, %c0_8] : memref<1x128xf32, #tpu.memory_space<vmem>>, vector<1x128xf32>
    %21 = vector.broadcast %20 : vector<1x128xf32> to vector<160x128xf32>
    %22 = arith.addf %19, %21 : vector<160x128xf32>
    %c0_9 = arith.constant 0 : index
    %c0_10 = arith.constant 0 : index
    %23 = vector.load %arg4[%c0_9, %c0_10] : memref<160x128xf32, #tpu.memory_space<vmem>>, vector<160x128xf32>
    tpu.vector_store %arg4[%c0_9, %c0_10], %22 {strides = array<i32>} : memref<160x128xf32, #tpu.memory_space<vmem>>, vector<160x128xf32>,
    return
  }
  func.func @transform_0(%arg0: i32) -> (i32, i32) {
    %c0_i32 = arith.constant 0 : i32
    %c0_i32_0 = arith.constant 0 : i32
    return %arg0, %c0_i32 : i32, i32
  }
  func.func @transform_1(%arg0: i32) -> (i32, i32) {
    %c0_i32 = arith.constant 0 : i32
    %c0_i32_0 = arith.constant 0 : i32
    %c0_i32_1 = arith.constant 0 : i32
    return %c0_i32, %c0_i32_0 : i32, i32
  }
  func.func @transform_2(%arg0: i32) -> (i32, i32) {
    %c0_i32 = arith.constant 0 : i32
    %c0_i32_0 = arith.constant 0 : i32
    %c0_i32_1 = arith.constant 0 : i32
    return %c0_i32, %c0_i32_0 : i32, i32
  }
  func.func @transform_3(%arg0: i32) -> (i32, i32) {
    %c0_i32 = arith.constant 0 : i32
    %c0_i32_0 = arith.constant 0 : i32
    return %arg0, %c0_i32 : i32, i32
  }
}

module attributes {stable_mosaic.version = 11 : i64} {
  func.func @_linear_fused_kernel(%arg0: i32, %arg1: i32, %arg2: memref<160x512xf32, #tpu.memory_space<vmem>>, %arg3: memref<512x128xbf16, #tpu.memory_space<vmem>>, %arg4: memref<1x128xf32, #tpu.memory_space<vmem>>, %arg5: memref<160x128xf32, #tpu.memory_space<vmem>>, %arg6: memref<160x128xf32, #tpu.memory_space<vmem>>) attributes {dimension_semantics = [#tpu.dimension_semantics<parallel>, #tpu.dimension_semantics<parallel>], iteration_bounds = array<i64: 1, 1>, scalar_prefetch = 0 : i64, scratch_operands = 0 : i64, tpu.core_type = #tpu.core_type<tc>, window_params = [{transform_indices = @transform_0, window_bounds = array<i64: 160, 512>}, {transform_indices = @transform_1, window_bounds = array<i64: 512, 128>}, {transform_indices = @transform_2, window_bounds = array<i64: 1, 128>}, {transform_indices = @transform_3, window_bounds = array<i64: 160, 128>}, {transform_indices = @transform_4, window_bounds = array<i64: 160, 128>}]} {
    %c0 = arith.constant 0 : index
    %c0_0 = arith.constant 0 : index
    %0 = vector.load %arg2[%c0, %c0_0] : memref<160x512xf32, #tpu.memory_space<vmem>>, vector<160x512xf32>
    %1 = arith.truncf %0 : vector<160x512xf32> to vector<160x512xbf16>
    %c0_1 = arith.constant 0 : index
    %c0_2 = arith.constant 0 : index
    %2 = vector.load %arg3[%c0_1, %c0_2] : memref<512x128xbf16, #tpu.memory_space<vmem>>, vector<512x128xbf16>
    %cst = arith.constant dense<0.000000e+00> : vector<160x128xf32>
    %3 = tpu.matmul %1, %2, %cst {dimension_numbers = #tpu.dot_dimension_numbers<[1], [0], [0], [1], [0, 0, 1, 1], [], []>} : vector<160x512xbf16>, vector<512x128xbf16>, vector<160x128xf32> -> vector<160x128xf32>
    %c0_3 = arith.constant 0 : index
    %c0_4 = arith.constant 0 : index
    %4 = vector.load %arg4[%c0_3, %c0_4] : memref<1x128xf32, #tpu.memory_space<vmem>>, vector<1x128xf32>
    %5 = vector.broadcast %4 : vector<1x128xf32> to vector<160x128xf32>
    %6 = arith.addf %3, %5 : vector<160x128xf32>
    %c0_5 = arith.constant 0 : index
    %c0_6 = arith.constant 0 : index
    %7 = vector.load %arg5[%c0_5, %c0_6] : memref<160x128xf32, #tpu.memory_space<vmem>>, vector<160x128xf32>
    %8 = arith.addf %6, %7 : vector<160x128xf32>
    %c0_7 = arith.constant 0 : index
    %c0_8 = arith.constant 0 : index
    %9 = vector.load %arg6[%c0_7, %c0_8] : memref<160x128xf32, #tpu.memory_space<vmem>>, vector<160x128xf32>
    tpu.vector_store %arg6[%c0_7, %c0_8], %8 {strides = array<i32>} : memref<160x128xf32, #tpu.memory_space<vmem>>, vector<160x128xf32>,
    return
  }
  func.func @transform_0(%arg0: i32, %arg1: i32) -> (i32, i32) {
    %c0_i32 = arith.constant 0 : i32
    %c0_i32_0 = arith.constant 0 : i32
    return %arg0, %c0_i32 : i32, i32
  }
  func.func @transform_1(%arg0: i32, %arg1: i32) -> (i32, i32) {
    %c0_i32 = arith.constant 0 : i32
    %c0_i32_0 = arith.constant 0 : i32
    return %c0_i32, %arg1 : i32, i32
  }
  func.func @transform_2(%arg0: i32, %arg1: i32) -> (i32, i32) {
    %c0_i32 = arith.constant 0 : i32
    %c0_i32_0 = arith.constant 0 : i32
    return %c0_i32, %arg1 : i32, i32
  }
  func.func @transform_3(%arg0: i32, %arg1: i32) -> (i32, i32) {
    %c0_i32 = arith.constant 0 : i32
    return %arg0, %arg1 : i32, i32
  }
  func.func @transform_4(%arg0: i32, %arg1: i32) -> (i32, i32) {
    %c0_i32 = arith.constant 0 : i32
    return %arg0, %arg1 : i32, i32
  }
}

module attributes {stable_mosaic.version = 11 : i64} {
  func.func @_linear_fused_kernel(%arg0: i32, %arg1: i32, %arg2: memref<160x128xf32, #tpu.memory_space<vmem>>, %arg3: memref<128x512xbf16, #tpu.memory_space<vmem>>, %arg4: memref<1x512xf32, #tpu.memory_space<vmem>>, %arg5: memref<1x128xf32, #tpu.memory_space<vmem>>, %arg6: memref<1x128xf32, #tpu.memory_space<vmem>>, %arg7: memref<160x512xf32, #tpu.memory_space<vmem>>) attributes {dimension_semantics = [#tpu.dimension_semantics<parallel>, #tpu.dimension_semantics<parallel>], iteration_bounds = array<i64: 1, 1>, scalar_prefetch = 0 : i64, scratch_operands = 0 : i64, tpu.core_type = #tpu.core_type<tc>, window_params = [{transform_indices = @transform_0, window_bounds = array<i64: 160, 128>}, {transform_indices = @transform_1, window_bounds = array<i64: 128, 512>}, {transform_indices = @transform_2, window_bounds = array<i64: 1, 512>}, {pipeline_mode = #tpu.pipeline_mode<synchronous>, transform_indices = @transform_3, window_bounds = array<i64: 1, 128>}, {pipeline_mode = #tpu.pipeline_mode<synchronous>, transform_indices = @transform_4, window_bounds = array<i64: 1, 128>}, {transform_indices = @transform_5, window_bounds = array<i64: 160, 512>}]} {
    %c0 = arith.constant 0 : index
    %c0_0 = arith.constant 0 : index
    %0 = vector.load %arg2[%c0, %c0_0] : memref<160x128xf32, #tpu.memory_space<vmem>>, vector<160x128xf32>
    %cst = arith.constant dense<0.000000e+00> : vector<160xf32>
    %1 = vector.multi_reduction <add>, %0, %cst [1] : vector<160x128xf32> to vector<160xf32>
    %2 = vector.shape_cast %1 : vector<160xf32> to vector<160x1xf32>
    %cst_1 = arith.constant 1.280000e+02 : f32
    %3 = vector.broadcast %cst_1 : f32 to vector<160x1xf32>
    %4 = arith.divf %2, %3 : vector<160x1xf32>
    %5 = vector.broadcast %4 : vector<160x1xf32> to vector<160x128xf32>
    %6 = arith.subf %0, %5 : vector<160x128xf32>
    %7 = arith.mulf %6, %6 : vector<160x128xf32>
    %cst_2 = arith.constant dense<0.000000e+00> : vector<160xf32>
    %8 = vector.multi_reduction <add>, %7, %cst_2 [1] : vector<160x128xf32> to vector<160xf32>
    %9 = vector.shape_cast %8 : vector<160xf32> to vector<160x1xf32>
    %cst_3 = arith.constant 1.280000e+02 : f32
    %10 = vector.broadcast %cst_3 : f32 to vector<160x1xf32>
    %11 = arith.divf %9, %10 : vector<160x1xf32>
    %cst_4 = arith.constant 9.99999974E-6 : f32
    %12 = vector.broadcast %cst_4 : f32 to vector<160x1xf32>
    %13 = arith.addf %11, %12 : vector<160x1xf32>
    %14 = math.rsqrt %13 : vector<160x1xf32>
    %15 = vector.broadcast %14 : vector<160x1xf32> to vector<160x128xf32>
    %16 = arith.mulf %6, %15 : vector<160x128xf32>
    %c0_5 = arith.constant 0 : index
    %c0_6 = arith.constant 0 : index
    %17 = vector.load %arg5[%c0_5, %c0_6] : memref<1x128xf32, #tpu.memory_space<vmem>>, vector<1x128xf32>
    %18 = vector.broadcast %17 : vector<1x128xf32> to vector<160x128xf32>
    %19 = arith.mulf %16, %18 : vector<160x128xf32>
    %c0_7 = arith.constant 0 : index
    %c0_8 = arith.constant 0 : index
    %20 = vector.load %arg6[%c0_7, %c0_8] : memref<1x128xf32, #tpu.memory_space<vmem>>, vector<1x128xf32>
    %21 = vector.broadcast %20 : vector<1x128xf32> to vector<160x128xf32>
    %22 = arith.addf %19, %21 : vector<160x128xf32>
    %23 = arith.truncf %22 : vector<160x128xf32> to vector<160x128xbf16>
    %c0_9 = arith.constant 0 : index
    %c0_10 = arith.constant 0 : index
    %24 = vector.load %arg3[%c0_9, %c0_10] : memref<128x512xbf16, #tpu.memory_space<vmem>>, vector<128x512xbf16>
    %cst_11 = arith.constant dense<0.000000e+00> : vector<160x512xf32>
    %25 = tpu.matmul %23, %24, %cst_11 {dimension_numbers = #tpu.dot_dimension_numbers<[1], [0], [0], [1], [0, 0, 1, 1], [], []>} : vector<160x128xbf16>, vector<128x512xbf16>, vector<160x512xf32> -> vector<160x512xf32>
    %c0_12 = arith.constant 0 : index
    %c0_13 = arith.constant 0 : index
    %26 = vector.load %arg4[%c0_12, %c0_13] : memref<1x512xf32, #tpu.memory_space<vmem>>, vector<1x512xf32>
    %27 = vector.broadcast %26 : vector<1x512xf32> to vector<160x512xf32>
    %28 = arith.addf %25, %27 : vector<160x512xf32>
    %cst_14 = arith.constant 1.702000e+00 : f32
    %29 = vector.broadcast %cst_14 : f32 to vector<160x512xf32>
    %30 = arith.mulf %29, %28 : vector<160x512xf32>
    %31 = arith.negf %30 : vector<160x512xf32>
    %32 = math.exp %31 : vector<160x512xf32>
    %cst_15 = arith.constant 1.000000e+00 : f32
    %33 = vector.broadcast %cst_15 : f32 to vector<160x512xf32>
    %34 = arith.addf %33, %32 : vector<160x512xf32>
    %35 = arith.divf %33, %34 : vector<160x512xf32>
    %36 = arith.mulf %28, %35 : vector<160x512xf32>
    %c0_16 = arith.constant 0 : index
    %c0_17 = arith.constant 0 : index
    %37 = vector.load %arg7[%c0_16, %c0_17] : memref<160x512xf32, #tpu.memory_space<vmem>>, vector<160x512xf32>
    tpu.vector_store %arg7[%c0_16, %c0_17], %36 {strides = array<i32>} : memref<160x512xf32, #tpu.memory_space<vmem>>, vector<160x512xf32>,
    return
  }
  func.func @transform_0(%arg0: i32, %arg1: i32) -> (i32, i32) {
    %c0_i32 = arith.constant 0 : i32
    %c0_i32_0 = arith.constant 0 : i32
    return %arg0, %c0_i32 : i32, i32
  }
  func.func @transform_1(%arg0: i32, %arg1: i32) -> (i32, i32) {
    %c0_i32 = arith.constant 0 : i32
    %c0_i32_0 = arith.constant 0 : i32
    return %c0_i32, %arg1 : i32, i32
  }
  func.func @transform_2(%arg0: i32, %arg1: i32) -> (i32, i32) {
    %c0_i32 = arith.constant 0 : i32
    %c0_i32_0 = arith.constant 0 : i32
    return %c0_i32, %arg1 : i32, i32
  }
  func.func @transform_3(%arg0: i32, %arg1: i32) -> (i32, i32) {
    %c0_i32 = arith.constant 0 : i32
    %c0_i32_0 = arith.constant 0 : i32
    %c0_i32_1 = arith.constant 0 : i32
    return %c0_i32, %c0_i32_0 : i32, i32
  }
  func.func @transform_4(%arg0: i32, %arg1: i32) -> (i32, i32) {
    %c0_i32 = arith.constant 0 : i32
    %c0_i32_0 = arith.constant 0 : i32
    %c0_i32_1 = arith.constant 0 : i32
    return %c0_i32, %c0_i32_0 : i32, i32
  }
  func.func @transform_5(%arg0: i32, %arg1: i32) -> (i32, i32) {
    %c0_i32 = arith.constant 0 : i32
    return %arg0, %arg1 : i32, i32
  }
}

</mosaic_0001>

<bundles_post_ra>
// kernel: forward.11
= control target key start
LH: loop header
LB: loop body
LE: loop exit
PB: predicated region body
PF: predicated region fallthrough
CT: control target
= control target key end

     0   :  { %v1103_v11 = vmov 128.0   ;;  %s2061_s0 = inlined_call_operand.vmem [shape: f32[160,128], index: 0, kind: input, shape index: {}]   ;;  %s2062_s3 = inlined_call_operand.vmem [shape: f32[1,128], index: 3, kind: input, shape index: {}]   ;;  %s2063_s4 = inlined_call_operand.vmem [shape: f32[1,128], index: 4, kind: input, shape index: {}]   ;;  %s2064_s1 = inlined_call_operand.vmem [shape: bf16[128,384], index: 1, kind: input, shape index: {}]   ;;  %s2065_s2 = inlined_call_operand.vmem [shape: f32[1,384], index: 2, kind: input, shape index: {}]   ;;  %s2066_s5 = inlined_call_operand.vmem [shape: f32[160,384], index: 5, kind: output, shape index: {}]  }
   0x1   :  { %v1137_v0 = vld [vmem:[%s2061_s0 + $0x20] sm:$0xff]  ;;  %v22_v2 = vld [vmem:[%s2061_s0 + $0x10] sm:$0xff]  ;;  %v25_v3 = vld [vmem:[%s2061_s0 + $0x28] sm:$0xff]  ;;  %1061 = vrcp.f32 %v1103_v11 }
   0x2   :  { %v20_v1 = vld [vmem:[%s2061_s0] sm:$0xff]  ;;  %48 = vadd.xlane.f32.xlu2 %v1137_v0  ;;  %44 = vadd.xlane.f32.xlu1 %v22_v2  ;;  %v21_v4 = vld [vmem:[%s2061_s0 + $0x8] sm:$0xff]  ;;  %v23_v5 = vld [vmem:[%s2061_s0 + $0x18] sm:$0xff] }
   0x3   :  { %40 = vadd.xlane.f32.xlu0 %v20_v1  ;;  %v36_v6 = vld [vmem:[%s2061_s0 + $0x80] sm:$0xff]  ;;  %v1161_v7 = vld [vmem:[%s2061_s0 + $0x88] sm:$0xff]  ;;  %v1167_v8 = vld [vmem:[%s2061_s0 + $0x30] sm:$0xff] }
   0x4   :  { %v1173_v9 = vld [vmem:[%s2061_s0 + $0x98] sm:$0xff]  ;;  %v1179_v10 = vld [vmem:[%s2061_s0 + $0x40] sm:$0xff]  ;;  %v1214_v38 = vld [vmem:[%s2061_s0 + $0x50] sm:$0xff] }
   0x5   :  { %v1199_v31 = vld [vmem:[%s2061_s0 + $0x38] sm:$0xff]  ;;  %v1219_v39 = vld [vmem:[%s2061_s0 + $0x90] sm:$0xff]  ;;  %v1230_v45 = vld [vmem:[%s2061_s0 + $0x48] sm:$0xff] }
   0x6   :  { %v1253_v55 = vld [vmem:[%s2061_s0 + $0x58] sm:$0xff] }
   0x7   :  { %v1062_v12 = vpop.eup %1061 }
   0x8   :  { %v81_v13 = vmul.f32 128.0, %v1062_v12  ;;  %vm85_vm0 = vweird.f32 %v1062_v12 }
   0xa   :  { %50 = vadd.xlane.f32.xlu2 %v25_v3  ;;  %46 = vadd.xlane.f32.xlu1 %v23_v5  ;;  %v82_v14 = vsub.f32 1.0, %v81_v13  ;;  %v1029_v13 = vld [vmem:[%s2064_s1 + $0x98] sm:$0xf0] }
   0xb   :  { %42 = vadd.xlane.f32.xlu0 %v21_v4 }
   0xc   :  { %v83_v15 = vmul.f32 %v1062_v12, %v82_v14  ;;  %v1028_v14 = vld [vmem:[%s2064_s1 + $0x94] sm:$0xf] }
   0xe   :  { %v84_v16 = vadd.f32 %v1062_v12, %v83_v15 }
  0x10   :  { %v1182_v17 = vsel %vm85_vm0, %v1062_v12, %v84_v16  ;;  %v988_v12 = vld [vmem:[%s2064_s1 + $0x90] sm:$0xf]  ;;  %v990_v16 = vld [vmem:[%s2064_s1 + $0x9c] sm:$0xf0] }
  0x11   :  { %v989_v15 = vor.u32 %v1029_v13, %v988_v12  ;;  %v928_v12 = vld [vmem:[%s2064_s1 + $0x18] sm:$0xf]  ;;  %v1014_v13 = vld [vmem:[%s2064_s1 + $0x20] sm:$0xf0] }
  0x12   :  { %74 = vadd.xlane.f32.xlu1 %v1161_v7 }
  0x13   :  { %72 = vadd.xlane.f32.xlu0 %v36_v6 }
  0x1a   :  { %52 = vadd.xlane.f32.xlu1 %v1167_v8 }
  0x22   :  { %78 = vadd.xlane.f32.xlu1 %v1173_v9 }
  0x2a   :  { %56 = vadd.xlane.f32.xlu1 %v1179_v10 }
  0x75   :  { %v49_v18 = vpop.xlane.xlu2 %48  ;;  %v45_v23 = vpop.xlane.xlu1 %44 }
  0x76   :  { %v41_v19 = vpop.xlane.xlu0 %40  ;;  %v89_v30 = vmul.f32 %v1182_v17, %v45_v23  ;;  %v91_v44 = vmul.f32 %v1182_v17, %v49_v18  ;;  %v996_v18 = vld [vmem:[%s2064_s1 + $0x98] sm:$0xf] }
  0x77   :  { %v87_v20 = vmul.f32 %v1182_v17, %v41_v19  ;;  %v1030_v19 = vld [vmem:[%s2064_s1 + $0xa0] sm:$0xf0]  ;;  %v976_v23 = vld [vmem:[%s2064_s1 + $0x78] sm:$0xf] }
  0x78   :  { %v1206_v34 = vsub.f32 %v22_v2, %v89_v30  ;;  %v1238_v48 = vsub.f32 %v1137_v0, %v91_v44  ;;  %v984_v30 = vld [vmem:[%s2064_s1 + $0x80] sm:$0xf]  ;;  %v972_v44 = vld [vmem:[%s2064_s1 + $0x68] sm:$0xf] }
  0x79   :  { %v1185_v21 = vsub.f32 %v20_v1, %v87_v20  ;;  %v1316_v20 = vor.u32 %v1028_v14, %v990_v16  ;;  %v1013_v14 = vld [vmem:[%s2064_s1 + $0x1c] sm:$0xf]  ;;  %v929_v16 = vor.u32 %v1014_v13, %v928_v12 }
  0x7a   :  { %v129_v36 = vmul.f32 %v1206_v34, %v1206_v34  ;;  %v131_v50 = vmul.f32 %v1238_v48, %v1238_v48 }
  0x7b   :  { %v127_v22 = vmul.f32 %v1185_v21, %v1185_v21 }
  0x7d   :  { %147 = vadd.xlane.f32.xlu2 %v127_v22  ;;  %v51_v24 = vpop.xlane.xlu2 %50  ;;  %v47_v35 = vpop.xlane.xlu1 %46  ;;  %v1318_v22 = vor.u32 %v1030_v19, %v996_v18  ;;  %v930_v18 = vld [vmem:[%s2064_s1 + $0x24] sm:$0xf0] }
  0x7e   :  { %v43_v25 = vpop.xlane.xlu0 %42  ;;  %v92_v26 = vmul.f32 %v1182_v17, %v51_v24  ;;  %v90_v37 = vmul.f32 %v1182_v17, %v47_v35  ;;  %v1026_v24 = vld [vmem:[%s2064_s1 + $0x80] sm:$0xf0] }
  0x7f   :  { %v88_v27 = vmul.f32 %v1182_v17, %v43_v25  ;;  %v1025_v25 = vld [vmem:[%s2064_s1 + $0x7c] sm:$0xf] }
  0x80   :  { %v1191_v28 = vsub.f32 %v25_v3, %v92_v26  ;;  %v1223_v40 = vsub.f32 %v23_v5, %v90_v37  ;;  %v1000_v3 = vld [vmem:[%s2064_s1 + $0xa8] sm:$0xf]  ;;  %v1031_v5 = vld [vmem:[%s2064_s1 + $0xac] sm:$0xf]  ;;  %v977_v26 = vor.u32 %v1026_v24, %v976_v23  ;;  %v1436_v23 = vor.u32 %v1013_v14, %v930_v18  ;;  %v936_v24 = vld [vmem:[%s2064_s1 + $0x20] sm:$0xf] }
  0x81   :  { %v1193_v29 = vsub.f32 %v21_v4, %v88_v27  ;;  %v1032_v4 = vld [vmem:[%s2064_s1 + $0xb0] sm:$0xf0]  ;;  %v978_v27 = vld [vmem:[%s2064_s1 + $0x84] sm:$0xf0]  ;;  %v1023_v37 = vld [vmem:[%s2064_s1 + $0x68] sm:$0xf0] }
  0x82   :  { %v132_v32 = vmul.f32 %v1191_v28, %v1191_v28  ;;  %v130_v46 = vmul.f32 %v1223_v40, %v1223_v40 }
  0x83   :  { %v128_v33 = vmul.f32 %v1193_v29, %v1193_v29 }
  0x84   :  { %157 = vadd.xlane.f32.xlu1 %v132_v32  ;;  %v1027_v32 = vld [vmem:[%s2064_s1 + $0x88] sm:$0xf0] }
  0x85   :  { %54 = vadd.xlane.f32.xlu2 %v1199_v31  ;;  %149 = vadd.xlane.f32.xlu0 %v128_v33  ;;  %v75_v43 = vpop.xlane.xlu1 %74  ;;  %v1340_v33 = vor.u32 %v1025_v25, %v978_v27  ;;  %v1342_v35 = vor.u32 %v1027_v32, %v984_v30  ;;  %v1015_v25 = vld [vmem:[%s2064_s1 + $0x28] sm:$0xf0]  ;;  %v916_v30 = vld [vmem:[%s2064_s1] sm:$0xf] }
  0x86   :  { %v73_v41 = vpop.xlane.xlu0 %72  ;;  %v104_v51 = vmul.f32 %v1182_v17, %v75_v43  ;;  %v966_v43 = vld [vmem:[%s2064_s1 + $0x6c] sm:$0xf0]  ;;  %v1445_v27 = vor.u32 %v1015_v25, %v936_v24  ;;  %v1011_v32 = vld [vmem:[%s2064_s1 + $0x8] sm:$0xf0] }
  0x87   :  { %v103_v42 = vmul.f32 %v1182_v17, %v73_v41  ;;  %v1022_v41 = vld [vmem:[%s2064_s1 + $0x64] sm:$0xf] }
  0x88   :  { %v1246_v53 = vsub.f32 %v1161_v7, %v104_v51  ;;  %v1002_v7 = vld [vmem:[%s2064_s1 + $0xb4] sm:$0xf0]  ;;  %v952_v51 = vld [vmem:[%s2064_s1 + $0x48] sm:$0xf] }
  0x89   :  { %v1235_v47 = vsub.f32 %v36_v6, %v103_v42  ;;  %v1001_v6 = vor.u32 %v1032_v4, %v1000_v3  ;;  %v1016_v3 = vld [vmem:[%s2064_s1 + $0x34] sm:$0xf] }
  0x8a   :  { %v144_v54 = vmul.f32 %v1246_v53, %v1246_v53 }
  0x8b   :  { %v143_v49 = vmul.f32 %v1235_v47, %v1235_v47  ;;  %673 = vmatpush.bf16.msra.mxu0 %v1001_v6  ;;  %1034 = vmatpush.bf16.msra.mxu3 %v1001_v6  ;;  %v948_v6 = vld [vmem:[%s2064_s1 + $0x38] sm:$0xf] }
  0x8c   :  { %60 = vadd.xlane.f32.xlu1 %v1214_v38 }
  0x8d   :  { %151 = vadd.xlane.f32.xlu2 %v129_v36  ;;  %76 = vadd.xlane.f32.xlu0 %v1219_v39  ;;  %v53_v52 = vpop.xlane.xlu1 %52  ;;  %v964_v36 = vld [vmem:[%s2064_s1 + $0x60] sm:$0xf] }
  0x8e   :  { %v93_v56 = vmul.f32 %v1182_v17, %v53_v52  ;;  %v965_v42 = vor.u32 %v1023_v37, %v964_v36  ;;  %v1020_v52 = vld [vmem:[%s2064_s1 + $0x50] sm:$0xf0]  ;;  %v1010_v36 = vld [vmem:[%s2064_s1 + $0x4] sm:$0xf] }
  0x8f   :  { %674 = vmatpush.bf16.msra.mxu0 %v989_v15  ;;  %1035 = vmatpush.bf16.msra.mxu3 %v989_v15  ;;  %v1430_v15 = vld [vmem:[%s2061_s0 + $0x78] sm:$0xff] }
  0x90   :  { %v1258_v58 = vsub.f32 %v1167_v8, %v93_v56  ;;  %v1008_v8 = vld [vmem:[%s2064_s1 + $0xb0] sm:$0xf]  ;;  %v953_v56 = vor.u32 %v1020_v52, %v952_v51 }
  0x92   :  { %v133_v59 = vmul.f32 %v1258_v58, %v1258_v58 }
  0x93   :  { %675 = vmatpush.bf16.msra.mxu0 %v977_v26  ;;  %1036 = vmatpush.bf16.msra.mxu3 %v977_v26 }
  0x95   :  { %58 = vadd.xlane.f32.xlu2 %v1230_v45  ;;  %153 = vadd.xlane.f32.xlu0 %v130_v46  ;;  %v79_v57 = vpop.xlane.xlu1 %78  ;;  %v1024_v46 = vld [vmem:[%s2064_s1 + $0x70] sm:$0xf0] }
  0x96   :  { %v106_v60 = vmul.f32 %v1182_v17, %v79_v57  ;;  %v954_v57 = vld [vmem:[%s2064_s1 + $0x54] sm:$0xf0] }
  0x97   :  { %676 = vmatpush.bf16.msra.mxu0 %v965_v42  ;;  %1037 = vmatpush.bf16.msra.mxu3 %v965_v42  ;;  %v918_v42 = vld [vmem:[%s2064_s1 + $0xc] sm:$0xf0] }
  0x98   :  { %v1264_v61 = vsub.f32 %v1173_v9, %v106_v60  ;;  %v1033_v9 = vld [vmem:[%s2064_s1 + $0xb8] sm:$0xf0] }
  0x99   :  { %v1294_v11 = vor.u32 %v1033_v9, %v1008_v8 }
  0x9a   :  { %v146_v63 = vmul.f32 %v1264_v61, %v1264_v61 }
  0x9b   :  { %791 = vmatpush.bf16.msra.mxu2 %v1294_v11  ;;  %677 = vmatpush.bf16.msra.mxu0 %v953_v56 }
  0x9c   :  { %1038 = vmatpush.bf16.msra.mxu3 %v953_v56 }
  0x9d   :  { %179 = vadd.xlane.f32.xlu2 %v143_v49  ;;  %155 = vadd.xlane.f32.xlu0 %v131_v50  ;;  %v57_v62 = vpop.xlane.xlu1 %56  ;;  %v1364_v49 = vor.u32 %v1022_v41, %v966_v43  ;;  %v1366_v50 = vor.u32 %v1024_v46, %v972_v44  ;;  %v917_v41 = vor.u32 %v1011_v32, %v916_v30  ;;  %v924_v43 = vld [vmem:[%s2064_s1 + $0x8] sm:$0xf]  ;;  %v1012_v46 = vld [vmem:[%s2064_s1 + $0x10] sm:$0xf0] }
  0x9e   :  { %v95_v0 = vmul.f32 %v1182_v17, %v57_v62  ;;  %v1021_v62 = vld [vmem:[%s2064_s1 + $0x58] sm:$0xf0]  ;;  %v1464_v44 = vor.u32 %v1010_v36, %v918_v42  ;;  %v1469_v51 = vor.u32 %v1012_v46, %v924_v43 }
  0x9f   :  { %792 = vmatpush.bf16.msra.mxu2 %v1318_v22 }
  0xa0   :  { %v1270_v1 = vsub.f32 %v1179_v10, %v95_v0  ;;  %v1292_v10 = vor.u32 %v1031_v5, %v1002_v7  ;;  %v940_v0 = vld [vmem:[%s2064_s1 + $0x30] sm:$0xf]  ;;  %v942_v5 = vld [vmem:[%s2064_s1 + $0x3c] sm:$0xf0]  ;;  %v1018_v7 = vld [vmem:[%s2064_s1 + $0x40] sm:$0xf0] }
  0xa1   :  { %v1412_v8 = vor.u32 %v1016_v3, %v942_v5  ;;  %v1414_v9 = vor.u32 %v1018_v7, %v948_v6 }
  0xa2   :  { %v135_v2 = vmul.f32 %v1270_v1, %v1270_v1  ;;  %732 = vmatpush.bf16.msra.mxu1 %v1292_v10 }
  0xa3   :  { %793 = vmatpush.bf16.msra.mxu2 %v1342_v35 }
  0xa5   :  { %62 = vadd.xlane.f32.xlu2 %v1253_v55  ;;  %181 = vadd.xlane.f32.xlu0 %v144_v54  ;;  %v1019_v54 = vld [vmem:[%s2064_s1 + $0x4c] sm:$0xf] }
  0xa6   :  { %733 = vmatpush.bf16.msra.mxu1 %v1316_v20  ;;  %v1385_v60 = vor.u32 %v1019_v54, %v954_v57 }
  0xa7   :  { %794 = vmatpush.bf16.msra.mxu2 %v1366_v50 }
  0xaa   :  { %734 = vmatpush.bf16.msra.mxu1 %v1340_v33 }
  0xad   :  { %159 = vadd.xlane.f32.xlu0 %v133_v59  ;;  %v960_v59 = vld [vmem:[%s2064_s1 + $0x50] sm:$0xf] }
  0xae   :  { %735 = vmatpush.bf16.msra.mxu1 %v1364_v49 }
  0xb2   :  { %736 = vmatpush.bf16.msra.mxu1 %v1385_v60 }
  0xb5   :  { %185 = vadd.xlane.f32.xlu0 %v146_v63  ;;  %v1390_v63 = vor.u32 %v1021_v62, %v960_v59 }
  0xb6   :  { %737 = vmatpush.bf16.msra.mxu1 %v1412_v8 }
  0xb7   :  { %795 = vmatpush.bf16.msra.mxu2 %v1390_v63 }
  0xba   :  { %738 = vmatpush.bf16.msra.mxu1 %v1436_v23 }
  0xbb   :  { %796 = vmatpush.bf16.msra.mxu2 %v1414_v9 }
  0xbd   :  { %163 = vadd.xlane.f32.xlu0 %v135_v2  ;;  %v1017_v2 = vld [vmem:[%s2064_s1 + $0x38] sm:$0xf0] }
  0xbe   :  { %v941_v4 = vor.u32 %v1017_v2, %v940_v0  ;;  %739 = vmatpush.bf16.msra.mxu1 %v1464_v44 }
  0xbf   :  { %797 = vmatpush.bf16.msra.mxu2 %v1445_v27 }
  0xc0   :  { %678 = vmatpush.bf16.msra.mxu0 %v941_v4  ;;  %1039 = vmatpush.bf16.msra.mxu3 %v941_v4 }
  0xc3   :  { %798 = vmatpush.bf16.msra.mxu2 %v1469_v51 }
  0xc4   :  { %679 = vmatpush.bf16.msra.mxu0 %v929_v16  ;;  %1040 = vmatpush.bf16.msra.mxu3 %v929_v16 }
  0xc5   :  { %70 = vadd.xlane.f32.xlu0 %v1430_v15 }
  0xc8   :  { %680 = vmatpush.bf16.msra.mxu0 %v917_v41  ;;  %1041 = vmatpush.bf16.msra.mxu3 %v917_v41 }
  0xcc   :  { %1042 = vmatpush.bf16.msrb.mxu3 %v1292_v10 }
  0xd0   :  { %1043 = vmatpush.bf16.msrb.mxu3 %v1316_v20 }
  0xd4   :  { %1044 = vmatpush.bf16.msrb.mxu3 %v1340_v33  ;;  %v1495_v33 = vld [vmem:[%s2061_s0 + $0x60] sm:$0xff] }
  0xd8   :  { %1045 = vmatpush.bf16.msrb.mxu3 %v1364_v49 }
  0xdc   :  { %1046 = vmatpush.bf16.msrb.mxu3 %v1385_v60 }
  0xe0   :  { %1047 = vmatpush.bf16.msrb.mxu3 %v1412_v8  ;;  %v1528_v8 = vld [vmem:[%s2062_s3] ss:$0 sm:$0xff] }
  0xe4   :  { %1048 = vmatpush.bf16.msrb.mxu3 %v1436_v23 }
  0xe8   :  { %1049 = vmatpush.bf16.msrb.mxu3 %v1464_v44 }
  0xf0   :  { %v148_v19 = vpop.xlane.xlu2 %147 }
  0xf1   :  { %v187_v26 = vmul.f32 %v148_v19, %v1182_v17 }
  0xf3   :  { %v207_v37 = vadd.f32 1e-05, %v187_v26 }
  0xf5   :  { %1063 = vrsqrt.f32 %v207_v37  ;;  %vm233_vm2 = vweird.f32 %v207_v37 }
  0xf7   :  { %v158_v4 = vpop.xlane.xlu1 %157 }
  0xf8   :  { %v55_v52 = vpop.xlane.xlu2 %54  ;;  %v150_v56 = vpop.xlane.xlu0 %149 }
  0xf9   :  { %v94_v54 = vmul.f32 %v1182_v17, %v55_v52  ;;  %v188_v57 = vmul.f32 %v150_v56, %v1182_v17 }
  0xfb   :  { %v1064_v59 = vpop.eup %1063  ;;  %v1478_v62 = vsub.f32 %v1199_v31, %v94_v54  ;;  %v208_v2 = vadd.f32 1e-05, %v188_v57  ;;  %v192_v31 = vmul.f32 %v158_v4, %v1182_v17 }
  0xfc   :  { %v228_v0 = vmul.f32 %v1064_v59, %v207_v37  ;;  %vm234_vm1 = vweird.f32 %v1064_v59 }
  0xfd   :  { %v134_v3 = vmul.f32 %v1478_v62, %v1478_v62  ;;  %1065 = vrsqrt.f32 %v208_v2  ;;  %v1498_v25 = vadd.f32 1e-05, %v192_v31  ;;  %vm1504_vm3 = vmor %vm233_vm2, %vm234_vm1  ;;  %vm243_vm5 = vweird.f32 %v208_v2 }
  0xfe   :  { %v229_v10 = vmul.f32 %v1064_v59, %v228_v0 }
  0xff   :  { %161 = vadd.xlane.f32.xlu1 %v134_v3  ;;  %v61_v32 = vpop.xlane.xlu1 %60  ;;  %v1535_v3 = vld [vmem:[%s2061_s0 + $0x68] sm:$0xff]  ;;  %vm283_vm15 = vweird.f32 %v1498_v25 }
 0x100   :  { %v230_v5 = vmul.f32 0.5, %v229_v10  ;;  %v152_v6 = vpop.xlane.xlu2 %151  ;;  %v77_v20 = vpop.xlane.xlu0 %76  ;;  %v97_v54 = vmul.f32 %v1182_v17, %v61_v32 }
 0x101   :  { %v189_v7 = vmul.f32 %v152_v6, %v1182_v17  ;;  %v105_v13 = vmul.f32 %v1182_v17, %v77_v20 }
 0x102   :  { %v231_v12 = vsub.f32 1.5, %v230_v5  ;;  %v1541_v4 = vsub.f32 %v1214_v38, %v97_v54 }
 0x103   :  { %v1487_v14 = vadd.f32 1e-05, %v189_v7  ;;  %v1066_v16 = vpop.eup %1065  ;;  %v1490_v18 = vsub.f32 %v1219_v39, %v105_v13 }
 0x104   :  { %v232_v19 = vmul.f32 %v1064_v59, %v231_v12  ;;  %v238_v24 = vmul.f32 %v1066_v16, %v208_v2  ;;  %vm244_vm4 = vweird.f32 %v1066_v16  ;;  %v1551_v12 = vld [vmem:[%s2063_s4] ss:$0 sm:$0xff] }
 0x105   :  { %1067 = vrsqrt.f32 %v1487_v14  ;;  %v145_v49 = vmul.f32 %v1490_v18, %v1490_v18  ;;  %vm245_vm6 = vmor %vm243_vm5, %vm244_vm4  ;;  %vm253_vm7 = vweird.f32 %v1487_v14 }
 0x106   :  { %v239_v39 = vmul.f32 %v1066_v16, %v238_v24  ;;  %v236_v36 = vsel %vm1504_vm3, %v1064_v59, %v232_v19  ;;  %1069 = vrsqrt.f32 %v1498_v25  ;;  %v137_v19 = vmul.f32 %v1541_v4, %v1541_v4 }
 0x107   :  { %64 = vadd.xlane.f32.xlu1 %v1495_v33  ;;  %183 = vadd.xlane.f32.xlu2 %v145_v49  ;;  %v427_v56 = vmul.f32 %v236_v36, %v1185_v21 }
 0x108   :  { %v59_v30 = vpop.xlane.xlu2 %58  ;;  %v240_v41 = vmul.f32 0.5, %v239_v39  ;;  %v154_v43 = vpop.xlane.xlu0 %153 }
 0x109   :  { %v96_v42 = vmul.f32 %v1182_v17, %v59_v30  ;;  %v190_v60 = vmul.f32 %v154_v43, %v1182_v17  ;;  %v451_v20 = vmul.f32 %v1528_v8, %v427_v56 }
 0x10a   :  { %v241_v46 = vsub.f32 1.5, %v240_v41  ;;  %v1577_v41 = vld [vmem:[%s2061_s0 + $0x70] sm:$0xff] }
 0x10b   :  { %v1514_v37 = vpop.eup %1067  ;;  %v1517_v52 = vsub.f32 %v1230_v45, %v96_v42  ;;  %v1523_v59 = vadd.f32 1e-05, %v190_v60  ;;  %v475_v26 = vadd.f32 %v1551_v12, %v451_v20 }
 0x10c   :  { %v248_v57 = vmul.f32 %v1514_v37, %v1487_v14  ;;  %v242_v0 = vmul.f32 %v1066_v16, %v241_v46  ;;  %v1543_v2 = vpop.eup %1069  ;;  %vm254_vm8 = vweird.f32 %v1514_v37 }
 0x10d   :  { %v136_v45 = vmul.f32 %v1517_v52, %v1517_v52  ;;  %1071 = vrsqrt.f32 %v1523_v59  ;;  %v278_v49 = vmul.f32 %v1543_v2, %v1498_v25  ;;  %vm1570_vm9 = vmor %vm253_vm7, %vm254_vm8  ;;  %vm263_vm10 = vweird.f32 %v1523_v59 }
 0x10e   :  { %v249_v21 = vmul.f32 %v1514_v37, %v248_v57  ;;  %v246_v10 = vsel %vm245_vm6, %v1066_v16, %v242_v0  ;;  %vm284_vm0 = vweird.f32 %v1543_v2 }
 0x10f   :  { %165 = vadd.xlane.f32.xlu1 %v136_v45  ;;  %v428_v5 = vmul.f32 %v246_v10, %v1193_v29  ;;  %66 = vadd.xlane.f32.xlu2 %v1535_v3  ;;  %v279_v43 = vmul.f32 %v1543_v2, %v278_v49  ;;  %vm1609_vm4 = vmor %vm283_vm15, %vm284_vm0 }
 0x110   :  { %v250_v6 = vmul.f32 0.5, %v249_v21  ;;  %v180_v7 = vpop.xlane.xlu2 %179  ;;  %v156_v31 = vpop.xlane.xlu0 %155 }
 0x111   :  { %v203_v23 = vmul.f32 %v180_v7, %v1182_v17  ;;  %v191_v13 = vmul.f32 %v156_v31, %v1182_v17  ;;  %v452_v16 = vmul.f32 %v1528_v8, %v428_v5 }
 0x112   :  { %v251_v38 = vsub.f32 1.5, %v250_v6  ;;  %v280_v6 = vmul.f32 0.5, %v279_v43 }
 0x113   :  { %v1559_v29 = vadd.f32 1e-05, %v203_v23  ;;  %v1072_v24 = vpop.eup %1071  ;;  %v211_v39 = vadd.f32 1e-05, %v191_v13  ;;  %v476_v30 = vadd.f32 %v1551_v12, %v452_v16 }
 0x114   :  { %v252_v44 = vmul.f32 %v1514_v37, %v251_v38  ;;  %v258_v14 = vmul.f32 %v1072_v24, %v1523_v59  ;;  %vm264_vm11 = vweird.f32 %v1072_v24 }
 0x115   :  { %1073 = vrsqrt.f32 %v1559_v29  ;;  %v495_v36 = vpack.c.bf16 %v476_v30, %v475_v26  ;;  %vm265_vm12 = vmor %vm263_vm10, %vm264_vm11  ;;  %vm273_vm13 = vweird.f32 %v211_v39  ;;  %vm393_vm1 = vweird.f32 %v1559_v29 }
 0x116   :  { %1075 = vrsqrt.f32 %v211_v39  ;;  %v259_v42 = vmul.f32 %v1072_v24, %v258_v14  ;;  %v256_v46 = vsel %vm1570_vm9, %v1514_v37, %v252_v44 }
 0x117   :  { %167 = vadd.xlane.f32.xlu1 %v137_v19  ;;  %681 = vmatmul.bf16.vlgmr.msra.gmra.mxu0 %v495_v36  ;;  %v429_v7 = vmul.f32 %v256_v46, %v1206_v34  ;;  %v281_v19 = vsub.f32 1.5, %v280_v6 }
 0x118   :  { %740 = vmatmul.bf16.vlgmr.msra.gmra.mxu1 %v495_v36  ;;  %v63_v60 = vpop.xlane.xlu2 %62  ;;  %v260_v54 = vmul.f32 0.5, %v259_v42  ;;  %799 = vmatmul.bf16.vlgmr.msra.gmra.mxu2 %v495_v36  ;;  %v182_v57 = vpop.xlane.xlu0 %181 }
 0x119   :  { %68 = vadd.xlane.f32.xlu2 %v1577_v41  ;;  %v98_v56 = vmul.f32 %v1182_v17, %v63_v60  ;;  %v204_v0 = vmul.f32 %v182_v57, %v1182_v17  ;;  %v453_v34 = vmul.f32 %v1528_v8, %v429_v7 }
 0x11a   :  { %v261_v21 = vsub.f32 1.5, %v260_v54 }
 0x11b   :  { %v1074_v45 = vpop.eup %1073  ;;  %v1588_v10 = vsub.f32 %v1253_v55, %v98_v56  ;;  %v224_v20 = vadd.f32 1e-05, %v204_v0 }
 0x11c   :  { %v1076_v5 = vpop.eup %1075  ;;  %v388_v37 = vmul.f32 %v1074_v45, %v1559_v29  ;;  %v262_v23 = vmul.f32 %v1072_v24, %v261_v21  ;;  %vm394_vm2 = vweird.f32 %v1074_v45 }
 0x11d   :  { %v268_v31 = vmul.f32 %v1076_v5, %v211_v39  ;;  %v138_v38 = vmul.f32 %v1588_v10, %v1588_v10  ;;  %1077 = vrsqrt.f32 %v224_v20  ;;  %vm274_vm14 = vweird.f32 %v1076_v5  ;;  %vm395_vm5 = vmor %vm393_vm1, %vm394_vm2 }
 0x11e   :  { %v389_v13 = vmul.f32 %v1074_v45, %v388_v37  ;;  %v266_v16 = vsel %vm265_vm12, %v1072_v24, %v262_v23  ;;  %vm1603_vm3 = vmor %vm273_vm13, %vm274_vm14  ;;  %v477_v39 = vadd.f32 %v1551_v12, %v453_v34  ;;  %vm403_vm6 = vweird.f32 %v224_v20 }
 0x11f   :  { %v269_v55 = vmul.f32 %v1076_v5, %v268_v31  ;;  %v430_v49 = vmul.f32 %v266_v16, %v1223_v40  ;;  %v282_v40 = vmul.f32 %v1543_v2, %v281_v19 }
 0x120   :  { %v390_v26 = vmul.f32 0.5, %v389_v13 }
 0x121   :  { %v270_v59 = vmul.f32 0.5, %v269_v55  ;;  %169 = vadd.xlane.f32.xlu2 %v138_v38  ;;  %v454_v44 = vmul.f32 %v1528_v8, %v430_v49  ;;  %v286_v56 = vsel %vm1609_vm4, %v1543_v2, %v282_v40 }
 0x122   :  { %v391_v30 = vsub.f32 1.5, %v390_v26  ;;  %v432_v7 = vmul.f32 %v286_v56, %v1191_v28 }
 0x123   :  { %v271_v24 = vsub.f32 1.5, %v270_v59  ;;  %v1078_v14 = vpop.eup %1077  ;;  %v478_v25 = vadd.f32 %v1551_v12, %v454_v44 }
 0x124   :  { %v392_v42 = vmul.f32 %v1074_v45, %v391_v30  ;;  %v398_v29 = vmul.f32 %v1078_v14, %v224_v20  ;;  %vm404_vm7 = vweird.f32 %v1078_v14 }
 0x125   :  { %v272_v43 = vmul.f32 %v1076_v5, %v271_v24  ;;  %v496_v60 = vpack.c.bf16 %v478_v25, %v477_v39  ;;  %vm405_vm8 = vmor %vm403_vm6, %vm404_vm7 }
 0x126   :  { %v399_v54 = vmul.f32 %v1078_v14, %v398_v29  ;;  %v396_v57 = vsel %vm395_vm5, %v1074_v45, %v392_v42  ;;  %v456_v45 = vmul.f32 %v1528_v8, %v432_v7 }
 0x127   :  { %v276_v46 = vsel %vm1603_vm3, %v1076_v5, %v272_v43  ;;  %686 = vmatmul.bf16.gmra.mxu0 %v496_v60  ;;  %v443_v37 = vmul.f32 %v396_v57, %v1235_v47 }
 0x128   :  { %745 = vmatmul.bf16.gmra.mxu1 %v496_v60  ;;  %v400_v0 = vmul.f32 0.5, %v399_v54  ;;  %804 = vmatmul.bf16.gmra.mxu2 %v496_v60  ;;  %v431_v21 = vmul.f32 %v276_v46, %v1238_v48  ;;  %v480_v13 = vadd.f32 %v1551_v12, %v456_v45 }
 0x129   :  { %v467_v20 = vmul.f32 %v1528_v8, %v443_v37 }
 0x12a   :  { %v401_v6 = vsub.f32 1.5, %v400_v0  ;;  %v455_v23 = vmul.f32 %v1528_v8, %v431_v21 }
 0x12b   :  { %v491_v28 = vadd.f32 %v1551_v12, %v467_v20 }
 0x12c   :  { %v402_v5 = vmul.f32 %v1078_v14, %v401_v6  ;;  %v479_v38 = vadd.f32 %v1551_v12, %v455_v23 }
 0x12e   :  { %v406_v31 = vsel %vm405_vm8, %v1078_v14, %v402_v5  ;;  %v497_v16 = vpack.c.bf16 %v480_v13, %v479_v38 }
 0x12f   :  { %v444_v2 = vmul.f32 %v406_v31, %v1246_v53  ;;  %v160_v53 = vpop.xlane.xlu0 %159 }
 0x130   :  { %v193_v49 = vmul.f32 %v160_v53, %v1182_v17 }
 0x131   :  { %v468_v48 = vmul.f32 %v1528_v8, %v444_v2 }
 0x132   :  { %v213_v26 = vadd.f32 1e-05, %v193_v49 }
 0x133   :  { %v492_v47 = vadd.f32 %v1551_v12, %v468_v48 }
 0x134   :  { %1079 = vrsqrt.f32 %v213_v26  ;;  %vm293_vm9 = vweird.f32 %v213_v26 }
 0x135   :  { %v1630_v55 = vpack.c.bf16 %v492_v47, %v491_v28 }
 0x137   :  { %691 = vmatmul.bf16.gmra.mxu0 %v497_v16  ;;  %721 = vmatmul.bf16.vlgmr.msra.gmra.mxu3 %v1630_v55  ;;  %v186_v19 = vpop.xlane.xlu0 %185 }
 0x138   :  { %750 = vmatmul.bf16.gmra.mxu1 %v497_v16  ;;  %809 = vmatmul.bf16.gmra.mxu2 %v497_v16 }
 0x139   :  { %1050 = vmatpush.bf16.msra.mxu3 %v1294_v11  ;;  %v206_v11 = vmul.f32 %v186_v19, %v1182_v17 }
 0x13d   :  { %1051 = vmatpush.bf16.msra.mxu3 %v1318_v22 }
 0x13f   :  { %v164_v22 = vpop.xlane.xlu0 %163 }
 0x141   :  { %1052 = vmatpush.bf16.msra.mxu3 %v1342_v35  ;;  %v1643_v35 = vadd.f32 1e-05, %v206_v11 }
 0x143   :  { %1081 = vrsqrt.f32 %v1643_v35  ;;  %vm423_vm14 = vweird.f32 %v1643_v35 }
 0x145   :  { %1053 = vmatpush.bf16.msra.mxu3 %v1366_v50  ;;  %v195_v50 = vmul.f32 %v164_v22, %v1182_v17 }
 0x147   :  { %v71_v39 = vpop.xlane.xlu0 %70 }
 0x148   :  { %v102_v56 = vmul.f32 %v1182_v17, %v71_v39 }
 0x149   :  { %1054 = vmatpush.bf16.msra.mxu3 %v1390_v63  ;;  %v1080_v63 = vpop.eup %1079 }
 0x14a   :  { %v1651_v30 = vpop.eup %1081  ;;  %vm294_vm10 = vweird.f32 %v1080_v63 }
 0x14b   :  { %v418_v14 = vmul.f32 %v1651_v30, %v1643_v35  ;;  %vm1671_vm11 = vmor %vm293_vm9, %vm294_vm10  ;;  %vm424_vm15 = vweird.f32 %v1651_v30 }
 0x14c   :  { %vm1696_vm1 = vmor %vm423_vm14, %vm424_vm15 }
 0x14d   :  { %1055 = vmatpush.bf16.msra.mxu3 %v1414_v9  ;;  %v1647_v9 = vadd.f32 1e-05, %v195_v50  ;;  %v419_v36 = vmul.f32 %v1651_v30, %v418_v14 }
 0x14f   :  { %1083 = vrsqrt.f32 %v1647_v9  ;;  %v420_v6 = vmul.f32 0.5, %v419_v36  ;;  %vm313_vm2 = vweird.f32 %v1647_v9 }
 0x151   :  { %1056 = vmatpush.bf16.msra.mxu3 %v1445_v27  ;;  %v288_v27 = vmul.f32 %v1080_v63, %v213_v26  ;;  %v421_v20 = vsub.f32 1.5, %v420_v6 }
 0x153   :  { %v289_v34 = vmul.f32 %v1080_v63, %v288_v27  ;;  %v422_v11 = vmul.f32 %v1651_v30, %v421_v20 }
 0x155   :  { %1057 = vmatpush.bf16.msra.mxu3 %v1469_v51  ;;  %v290_v24 = vmul.f32 0.5, %v289_v34  ;;  %v1655_v40 = vpop.eup %1083 }
 0x156   :  { %v308_v42 = vmul.f32 %v1655_v40, %v1647_v9  ;;  %vm314_vm3 = vweird.f32 %v1655_v40 }
 0x157   :  { %v291_v25 = vsub.f32 1.5, %v290_v24  ;;  %vm1721_vm5 = vmor %vm313_vm2, %vm314_vm3 }
 0x158   :  { %v309_v7 = vmul.f32 %v1655_v40, %v308_v42 }
 0x159   :  { %v292_v21 = vmul.f32 %v1080_v63, %v291_v25 }
 0x15a   :  { %v310_v38 = vmul.f32 0.5, %v309_v7 }
 0x15b   :  { %v296_v45 = vsel %vm1671_vm11, %v1080_v63, %v292_v21 }
 0x15c   :  { %v433_v19 = vmul.f32 %v296_v45, %v1258_v58  ;;  %v311_v50 = vsub.f32 1.5, %v310_v38 }
 0x15e   :  { %v457_v34 = vmul.f32 %v1528_v8, %v433_v19 }
 0x172   :  { %v162_v51 = vpop.xlane.xlu1 %161 }
 0x173   :  { %v194_v59 = vmul.f32 %v162_v51, %v1182_v17 }
 0x175   :  { %v214_v44 = vadd.f32 1e-05, %v194_v59  ;;  %v426_v59 = vsel %vm1696_vm1, %v1651_v30, %v422_v11 }
 0x177   :  { %1085 = vrsqrt.f32 %v214_v44  ;;  %vm303_vm12 = vweird.f32 %v214_v44 }
 0x17a   :  { %v65_v32 = vpop.xlane.xlu1 %64  ;;  %v184_v29 = vpop.xlane.xlu2 %183 }
 0x17b   :  { %v99_v43 = vmul.f32 %v1182_v17, %v65_v32  ;;  %v205_v60 = vmul.f32 %v184_v29, %v1182_v17  ;;  %v446_v29 = vmul.f32 %v426_v59, %v1264_v61 }
 0x17d   :  { %v1086_v46 = vpop.eup %1085  ;;  %v1663_v54 = vsub.f32 %v1495_v33, %v99_v43  ;;  %v1666_v0 = vadd.f32 1e-05, %v205_v60  ;;  %v1677_v33 = vsub.f32 %v1430_v15, %v102_v56  ;;  %v537_v56 = vld [vmem:[%s2065_s2] sm:$0x7] }
 0x17e   :  { %v298_v57 = vmul.f32 %v1086_v46, %v214_v44  ;;  %vm304_vm13 = vweird.f32 %v1086_v46  ;;  %v1741_v5 = vperm.slane %v537_v56, 0 }
 0x17f   :  { %v139_v37 = vmul.f32 %v1663_v54, %v1663_v54  ;;  %1087 = vrsqrt.f32 %v1666_v0  ;;  %v142_v16 = vmul.f32 %v1677_v33, %v1677_v33  ;;  %vm305_vm0 = vmor %vm303_vm12, %vm304_vm13  ;;  %vm413_vm6 = vweird.f32 %v1666_v0 }
 0x180   :  { %v299_v23 = vmul.f32 %v1086_v46, %v298_v57 }
 0x181   :  { %171 = vadd.xlane.f32.xlu0 %v139_v37 }
 0x182   :  { %v300_v31 = vmul.f32 0.5, %v299_v23  ;;  %v166_v2 = vpop.xlane.xlu1 %165  ;;  %v67_v13 = vpop.xlane.xlu2 %66 }
 0x183   :  { %v196_v48 = vmul.f32 %v166_v2, %v1182_v17  ;;  %v100_v47 = vmul.f32 %v1182_v17, %v67_v13 }
 0x184   :  { %v301_v28 = vsub.f32 1.5, %v300_v31 }
 0x185   :  { %v1685_v15 = vadd.f32 1e-05, %v196_v48  ;;  %v1088_v53 = vpop.eup %1087  ;;  %v1691_v26 = vsub.f32 %v1535_v3, %v100_v47 }
 0x186   :  { %v302_v49 = vmul.f32 %v1086_v46, %v301_v28  ;;  %v408_v22 = vmul.f32 %v1088_v53, %v1666_v0  ;;  %vm414_vm4 = vweird.f32 %v1088_v53 }
 0x187   :  { %1089 = vrsqrt.f32 %v1685_v15  ;;  %v140_v58 = vmul.f32 %v1691_v26, %v1691_v26  ;;  %vm415_vm7 = vmor %vm413_vm6, %vm414_vm4  ;;  %vm323_vm8 = vweird.f32 %v1685_v15 }
 0x188   :  { %v306_v63 = vsel %vm305_vm0, %v1086_v46, %v302_v49  ;;  %v409_v3 = vmul.f32 %v1088_v53, %v408_v22  ;;  %v481_v46 = vadd.f32 %v1551_v12, %v457_v34 }
 0x189   :  { %v434_v27 = vmul.f32 %v306_v63, %v1478_v62  ;;  %177 = vadd.xlane.f32.xlu0 %v142_v16  ;;  %173 = vadd.xlane.f32.xlu1 %v140_v58  ;;  %v312_v62 = vmul.f32 %v1655_v40, %v311_v50  ;;  %v1772_v58 = vperm.slane %v537_v56, 2 }
 0x18a   :  { %v168_v51 = vpop.xlane.xlu1 %167  ;;  %v410_v44 = vmul.f32 0.5, %v409_v3 }
 0x18b   :  { %v197_v24 = vmul.f32 %v168_v51, %v1182_v17  ;;  %v458_v14 = vmul.f32 %v1528_v8, %v434_v27  ;;  %v316_v6 = vsel %vm1721_vm5, %v1655_v40, %v312_v62  ;;  %v470_v40 = vmul.f32 %v1528_v8, %v446_v29 }
 0x18c   :  { %v69_v32 = vpop.xlane.xlu2 %68  ;;  %v411_v25 = vsub.f32 1.5, %v410_v44  ;;  %v435_v31 = vmul.f32 %v316_v6, %v1270_v1 }
 0x18d   :  { %v1090_v39 = vpop.eup %1089  ;;  %v1712_v36 = vadd.f32 1e-05, %v197_v24  ;;  %v101_v42 = vmul.f32 %v1182_v17, %v69_v32  ;;  %v482_v43 = vadd.f32 %v1551_v12, %v458_v14  ;;  %v494_v49 = vadd.f32 %v1551_v12, %v470_v40 }
 0x18e   :  { %v318_v60 = vmul.f32 %v1090_v39, %v1685_v15  ;;  %v412_v57 = vmul.f32 %v1088_v53, %v411_v25  ;;  %vm324_vm9 = vweird.f32 %v1090_v39  ;;  %v459_v35 = vmul.f32 %v1528_v8, %v435_v31 }
 0x18f   :  { %1091 = vrsqrt.f32 %v1712_v36  ;;  %v1733_v61 = vsub.f32 %v1577_v41, %v101_v42  ;;  %v498_v21 = vpack.c.bf16 %v482_v43, %v481_v46  ;;  %v1745_v41 = vperm.slane %v537_v56, 1  ;;  %vm1750_vm10 = vmor %vm323_vm8, %vm324_vm9 }
 0x190   :  { %v319_v9 = vmul.f32 %v1090_v39, %v318_v60  ;;  %v416_v7 = vsel %vm415_vm7, %v1088_v53, %v412_v57  ;;  %v483_v24 = vadd.f32 %v1551_v12, %v459_v35  ;;  %vm333_vm11 = vweird.f32 %v1712_v36 }
 0x191   :  { %v141_v37 = vmul.f32 %v1733_v61, %v1733_v61  ;;  %v445_v0 = vmul.f32 %v416_v7, %v1490_v18  ;;  %696 = vmatmul.bf16.gmra.mxu0 %v498_v21  ;;  %755 = vmatmul.bf16.gmra.mxu1 %v498_v21 }
 0x192   :  { %v320_v23 = vmul.f32 0.5, %v319_v9  ;;  %814 = vmatmul.bf16.gmra.mxu2 %v498_v21 }
 0x193   :  { %175 = vadd.xlane.f32.xlu2 %v141_v37  ;;  %v469_v20 = vmul.f32 %v1528_v8, %v445_v0 }
 0x194   :  { %v321_v2 = vsub.f32 1.5, %v320_v23  ;;  %v170_v45 = vpop.xlane.xlu2 %169  ;;  %v682_v13 = vpop.f32.mrf.mxu0 }
 0x195   :  { %v1092_v38 = vpop.eup %1091  ;;  %v198_v48 = vmul.f32 %v170_v45, %v1182_v17  ;;  %v741_v28 = vpop.f32.mrf.mxu1  ;;  %v683_v16 = vadd.f32 %v682_v13, %v1741_v5  ;;  %v493_v19 = vadd.f32 %v1551_v12, %v469_v20 }
 0x196   :  { %v322_v47 = vmul.f32 %v1090_v39, %v321_v2  ;;  %v328_v15 = vmul.f32 %v1092_v38, %v1712_v36  ;;  %v742_v1 = vadd.f32 %v741_v28, %v1745_v41  ;;  %vm334_vm12 = vweird.f32 %v1092_v38 }
 0x197   :  { %v218_v53 = vadd.f32 1e-05, %v198_v48  ;;  %850 = vst [vmem:[%s2066_s5] sm:$0xff] %v683_v16  ;;  %v1770_v63 = vpack.c.bf16 %v494_v49, %v493_v19  ;;  %vm1788_vm13 = vmor %vm333_vm11, %vm334_vm12 }
 0x198   :  { %v326_v11 = vsel %vm1750_vm10, %v1090_v39, %v322_v47  ;;  %v329_v22 = vmul.f32 %v1092_v38, %v328_v15  ;;  %851 = vst [vmem:[%s2066_s5 + $0x8] sm:$0xff] %v742_v1 }
 0x199   :  { %v436_v50 = vmul.f32 %v326_v11, %v1517_v52  ;;  %1093 = vrsqrt.f32 %v218_v53  ;;  %726 = vmatmul.bf16.gmra.mxu3 %v1770_v63  ;;  %vm343_vm14 = vweird.f32 %v218_v53 }
 0x19a   :  { %v330_v27 = vmul.f32 0.5, %v329_v22 }
 0x19b   :  { %v460_v3 = vmul.f32 %v1528_v8, %v436_v50  ;;  %v800_v34 = vpop.f32.mrf.mxu2 }
 0x19c   :  { %v331_v51 = vsub.f32 1.5, %v330_v27  ;;  %v801_v59 = vadd.f32 %v800_v34, %v1772_v58  ;;  %v684_v44 = vpop.f32.mrf.mxu0 }
 0x19d   :  { %v743_v52 = vpop.f32.mrf.mxu1  ;;  %v484_v14 = vadd.f32 %v1551_v12, %v460_v3  ;;  %v685_v62 = vadd.f32 %v684_v44, %v1741_v5 }
 0x19e   :  { %v744_v32 = vadd.f32 %v743_v52, %v1745_v41  ;;  %852 = vst [vmem:[%s2066_s5 + $0x10] sm:$0xff] %v801_v59  ;;  %v332_v42 = vmul.f32 %v1092_v38, %v331_v51 }
 0x19f   :  { %v1094_v39 = vpop.eup %1093  ;;  %v499_v25 = vpack.c.bf16 %v484_v14, %v483_v24  ;;  %853 = vst [vmem:[%s2066_s5 + $0x18] sm:$0xff] %v685_v62 }
 0x1a0   :  { %v338_v43 = vmul.f32 %v1094_v39, %v218_v53  ;;  %854 = vst [vmem:[%s2066_s5 + $0x20] sm:$0xff] %v744_v32  ;;  %v336_v30 = vsel %vm1788_vm13, %v1092_v38, %v332_v42  ;;  %vm344_vm15 = vweird.f32 %v1094_v39 }
 0x1a1   :  { %701 = vmatmul.bf16.gmra.mxu0 %v499_v25  ;;  %760 = vmatmul.bf16.gmra.mxu1 %v499_v25  ;;  %v437_v37 = vmul.f32 %v336_v30, %v1541_v4  ;;  %vm345_vm0 = vmor %vm343_vm14, %vm344_vm15 }
 0x1a2   :  { %v339_v36 = vmul.f32 %v1094_v39, %v338_v43  ;;  %819 = vmatmul.bf16.gmra.mxu2 %v499_v25 }
 0x1a3   :  { %v802_v46 = vpop.f32.mrf.mxu2  ;;  %v461_v4 = vmul.f32 %v1528_v8, %v437_v37 }
 0x1a4   :  { %v340_v60 = vmul.f32 0.5, %v339_v36  ;;  %v803_v56 = vadd.f32 %v802_v46, %v1772_v58  ;;  %v687_v57 = vpop.f32.mrf.mxu0 }
 0x1a5   :  { %v746_v9 = vpop.f32.mrf.mxu1  ;;  %v688_v6 = vadd.f32 %v687_v57, %v1741_v5 }
 0x1a6   :  { %v341_v21 = vsub.f32 1.5, %v340_v60  ;;  %v747_v7 = vadd.f32 %v746_v9, %v1745_v41  ;;  %855 = vst [vmem:[%s2066_s5 + $0x28] sm:$0xff] %v803_v56 }
 0x1a7   :  { %856 = vst [vmem:[%s2066_s5 + $0x30] sm:$0xff] %v688_v6 }
 0x1a8   :  { %v342_v0 = vmul.f32 %v1094_v39, %v341_v21  ;;  %857 = vst [vmem:[%s2066_s5 + $0x38] sm:$0xff] %v747_v7 }
 0x1a9   :  { %780 = vmatmul.bf16.vlgmr.msrb.gmra.mxu3 %v1630_v55 }
 0x1aa   :  { %v346_v23 = vsel %vm345_vm0, %v1094_v39, %v342_v0 }
 0x1ab   :  { %v438_v40 = vmul.f32 %v346_v23, %v1588_v10  ;;  %v805_v31 = vpop.f32.mrf.mxu2  ;;  %v485_v10 = vadd.f32 %v1551_v12, %v461_v4 }
 0x1ac   :  { %v806_v2 = vadd.f32 %v805_v31, %v1772_v58  ;;  %v689_v45 = vpop.f32.mrf.mxu0 }
 0x1ad   :  { %v748_v20 = vpop.f32.mrf.mxu1  ;;  %v462_v38 = vmul.f32 %v1528_v8, %v438_v40  ;;  %v690_v18 = vadd.f32 %v689_v45, %v1741_v5 }
 0x1ae   :  { %v749_v48 = vadd.f32 %v748_v20, %v1745_v41  ;;  %858 = vst [vmem:[%s2066_s5 + $0x40] sm:$0xff] %v806_v2 }
 0x1af   :  { %v486_v13 = vadd.f32 %v1551_v12, %v462_v38  ;;  %859 = vst [vmem:[%s2066_s5 + $0x48] sm:$0xff] %v690_v18 }
 0x1b0   :  { %860 = vst [vmem:[%s2066_s5 + $0x50] sm:$0xff] %v749_v48 }
 0x1b1   :  { %v500_v28 = vpack.c.bf16 %v486_v13, %v485_v10 }
 0x1b3   :  { %706 = vmatmul.bf16.gmra.mxu0 %v500_v28  ;;  %765 = vmatmul.bf16.gmra.mxu1 %v500_v28  ;;  %v807_v47 = vpop.f32.mrf.mxu2 }
 0x1b4   :  { %824 = vmatmul.bf16.gmra.mxu2 %v500_v28  ;;  %v808_v15 = vadd.f32 %v807_v47, %v1772_v58  ;;  %v692_v16 = vpop.f32.mrf.mxu0 }
 0x1b5   :  { %v693_v53 = vadd.f32 %v692_v16, %v1741_v5  ;;  %v751_v1 = vpop.f32.mrf.mxu1 }
 0x1b6   :  { %861 = vst [vmem:[%s2066_s5 + $0x58] sm:$0xff] %v808_v15  ;;  %v752_v19 = vadd.f32 %v751_v1, %v1745_v41 }
 0x1b7   :  { %862 = vst [vmem:[%s2066_s5 + $0x60] sm:$0xff] %v693_v53 }
 0x1b8   :  { %863 = vst [vmem:[%s2066_s5 + $0x68] sm:$0xff] %v752_v19 }
 0x1b9   :  { %785 = vmatmul.bf16.gmra.mxu3 %v1770_v63 }
 0x1ba   :  { %v722_v49 = vpop.f32.mrf.mxu3 }
 0x1bb   :  { %v723_v11 = vadd.f32 %v722_v49, %v1741_v5  ;;  %v810_v22 = vpop.f32.mrf.mxu2 }
 0x1bc   :  { %v811_v35 = vadd.f32 %v810_v22, %v1772_v58  ;;  %v694_v50 = vpop.f32.mrf.mxu0 }
 0x1bd   :  { %898 = vst [vmem:[%s2066_s5 + $0x180] sm:$0xff] %v723_v11  ;;  %v695_v27 = vadd.f32 %v694_v50, %v1741_v5  ;;  %v753_v3 = vpop.f32.mrf.mxu1 }
 0x1be   :  { %864 = vst [vmem:[%s2066_s5 + $0x70] sm:$0xff] %v811_v35  ;;  %v754_v51 = vadd.f32 %v753_v3, %v1745_v41 }
 0x1bf   :  { %865 = vst [vmem:[%s2066_s5 + $0x78] sm:$0xff] %v695_v27 }
 0x1c0   :  { %866 = vst [vmem:[%s2066_s5 + $0x80] sm:$0xff] %v754_v51 }
 0x1c2   :  { %v724_v34 = vpop.f32.mrf.mxu3 }
 0x1c3   :  { %v725_v59 = vadd.f32 %v724_v34, %v1741_v5  ;;  %v812_v44 = vpop.f32.mrf.mxu2 }
 0x1c4   :  { %v813_v52 = vadd.f32 %v812_v44, %v1772_v58 }
 0x1c5   :  { %901 = vst [vmem:[%s2066_s5 + $0x198] sm:$0xff] %v725_v59 }
 0x1c6   :  { %867 = vst [vmem:[%s2066_s5 + $0x88] sm:$0xff] %v813_v52 }
 0x1c9   :  { %839 = vmatmul.bf16.vlgmr.msra.gmra.mxu3 %v1630_v55 }
 0x1d9   :  { %844 = vmatmul.bf16.gmra.mxu3 %v1770_v63 }
 0x1f4   :  { %v172_v24 = vpop.xlane.xlu0 %171 }
 0x1f5   :  { %v199_v14 = vmul.f32 %v172_v24, %v1182_v17 }
 0x1f7   :  { %v219_v62 = vadd.f32 1e-05, %v199_v14 }
 0x1f9   :  { %1095 = vrsqrt.f32 %v219_v62  ;;  %vm353_vm1 = vweird.f32 %v219_v62 }
 0x1fc   :  { %v178_v32 = vpop.xlane.xlu0 %177  ;;  %v174_v39 = vpop.xlane.xlu1 %173 }
 0x1fd   :  { %v202_v25 = vmul.f32 %v178_v32, %v1182_v17  ;;  %v200_v42 = vmul.f32 %v174_v39, %v1182_v17 }
 0x1ff   :  { %v1096_v43 = vpop.eup %1095  ;;  %v222_v29 = vadd.f32 1e-05, %v202_v25  ;;  %v220_v30 = vadd.f32 1e-05, %v200_v42 }
 0x200   :  { %v348_v36 = vmul.f32 %v1096_v43, %v219_v62  ;;  %vm354_vm2 = vweird.f32 %v1096_v43 }
 0x201   :  { %1097 = vrsqrt.f32 %v222_v29  ;;  %vm355_vm3 = vmor %vm353_vm1, %vm354_vm2  ;;  %vm363_vm5 = vweird.f32 %v220_v30  ;;  %vm383_vm7 = vweird.f32 %v222_v29 }
 0x202   :  { %v349_v60 = vmul.f32 %v1096_v43, %v348_v36  ;;  %1099 = vrsqrt.f32 %v220_v30 }
 0x204   :  { %v350_v55 = vmul.f32 0.5, %v349_v60 }
 0x206   :  { %v351_v63 = vsub.f32 1.5, %v350_v55  ;;  %v176_v46 = vpop.xlane.xlu2 %175 }
 0x207   :  { %v1870_v56 = vpop.eup %1097  ;;  %v201_v57 = vmul.f32 %v176_v46, %v1182_v17 }
 0x208   :  { %v1100_v9 = vpop.eup %1099  ;;  %v352_v21 = vmul.f32 %v1096_v43, %v351_v63  ;;  %v378_v7 = vmul.f32 %v1870_v56, %v222_v29  ;;  %vm384_vm8 = vweird.f32 %v1870_v56 }
 0x209   :  { %v358_v6 = vmul.f32 %v1100_v9, %v220_v30  ;;  %v221_v37 = vadd.f32 1e-05, %v201_v57  ;;  %vm364_vm4 = vweird.f32 %v1100_v9  ;;  %vm1900_vm11 = vmor %vm383_vm7, %vm384_vm8 }
 0x20a   :  { %v356_v23 = vsel %vm355_vm3, %v1096_v43, %v352_v21  ;;  %v379_v4 = vmul.f32 %v1870_v56, %v378_v7  ;;  %vm365_vm6 = vmor %vm363_vm5, %vm364_vm4 }
 0x20b   :  { %v359_v0 = vmul.f32 %v1100_v9, %v358_v6  ;;  %1101 = vrsqrt.f32 %v221_v37  ;;  %v439_v31 = vmul.f32 %v356_v23, %v1663_v54  ;;  %vm373_vm9 = vweird.f32 %v221_v37 }
 0x20c   :  { %v380_v10 = vmul.f32 0.5, %v379_v4 }
 0x20d   :  { %v360_v40 = vmul.f32 0.5, %v359_v0  ;;  %v463_v54 = vmul.f32 %v1528_v8, %v439_v31 }
 0x20e   :  { %v697_v17 = vpop.f32.mrf.mxu0  ;;  %v756_v45 = vpop.f32.mrf.mxu1  ;;  %v381_v16 = vsub.f32 1.5, %v380_v10 }
 0x20f   :  { %v361_v2 = vsub.f32 1.5, %v360_v40  ;;  %v698_v20 = vadd.f32 %v697_v17, %v1741_v5  ;;  %v757_v38 = vadd.f32 %v756_v45, %v1745_v41  ;;  %v487_v35 = vadd.f32 %v1551_v12, %v463_v54 }
 0x210   :  { %v382_v51 = vmul.f32 %v1870_v56, %v381_v16 }
 0x211   :  { %v1102_v18 = vpop.eup %1101  ;;  %v362_v48 = vmul.f32 %v1100_v9, %v361_v2  ;;  %868 = vst [vmem:[%s2066_s5 + $0x90] sm:$0xff] %v698_v20 }
 0x212   :  { %v368_v13 = vmul.f32 %v1102_v18, %v221_v37  ;;  %869 = vst [vmem:[%s2066_s5 + $0x98] sm:$0xff] %v757_v38  ;;  %vm374_vm10 = vweird.f32 %v1102_v18  ;;  %v386_v24 = vsel %vm1900_vm11, %v1870_v56, %v382_v51 }
 0x213   :  { %v366_v28 = vsel %vm365_vm6, %v1100_v9, %v362_v48  ;;  %vm375_vm12 = vmor %vm373_vm9, %vm374_vm10  ;;  %v442_v29 = vmul.f32 %v386_v24, %v1677_v33 }
 0x214   :  { %v440_v47 = vmul.f32 %v366_v28, %v1691_v26  ;;  %v369_v15 = vmul.f32 %v1102_v18, %v368_v13 }
 0x215   :  { %v815_v1 = vpop.f32.mrf.mxu2  ;;  %v466_v33 = vmul.f32 %v1528_v8, %v442_v29 }
 0x216   :  { %v370_v53 = vmul.f32 0.5, %v369_v15  ;;  %v464_v19 = vmul.f32 %v1528_v8, %v440_v47  ;;  %v816_v49 = vadd.f32 %v815_v1, %v1772_v58  ;;  %v699_v11 = vpop.f32.mrf.mxu0  ;;  %v758_v22 = vpop.f32.mrf.mxu1 }
 0x217   :  { %v700_v26 = vadd.f32 %v699_v11, %v1741_v5  ;;  %v759_v27 = vadd.f32 %v758_v22, %v1745_v41  ;;  %v490_v7 = vadd.f32 %v1551_v12, %v466_v33 }
 0x218   :  { %v371_v50 = vsub.f32 1.5, %v370_v53  ;;  %v488_v3 = vadd.f32 %v1551_v12, %v464_v19  ;;  %870 = vst [vmem:[%s2066_s5 + $0xa0] sm:$0xff] %v816_v49 }
 0x219   :  { %871 = vst [vmem:[%s2066_s5 + $0xa8] sm:$0xff] %v700_v26 }
 0x21a   :  { %v372_v59 = vmul.f32 %v1102_v18, %v371_v50  ;;  %v501_v44 = vpack.c.bf16 %v488_v3, %v487_v35  ;;  %872 = vst [vmem:[%s2066_s5 + $0xb0] sm:$0xff] %v759_v27 }
 0x21c   :  { %v376_v52 = vsel %vm375_vm12, %v1102_v18, %v372_v59  ;;  %711 = vmatmul.bf16.gmra.mxu0 %v501_v44  ;;  %770 = vmatmul.bf16.gmra.mxu1 %v501_v44  ;;  %v727_v62 = vpop.f32.mrf.mxu3 }
 0x21d   :  { %829 = vmatmul.bf16.gmra.mxu2 %v501_v44  ;;  %v441_v14 = vmul.f32 %v376_v52, %v1733_v61  ;;  %v817_v32 = vpop.f32.mrf.mxu2  ;;  %v728_v39 = vadd.f32 %v727_v62, %v1741_v5 }
 0x21e   :  { %v818_v25 = vadd.f32 %v817_v32, %v1772_v58  ;;  %v702_v42 = vpop.f32.mrf.mxu0  ;;  %v761_v43 = vpop.f32.mrf.mxu1 }
 0x21f   :  { %v703_v36 = vadd.f32 %v702_v42, %v1741_v5  ;;  %v762_v30 = vadd.f32 %v761_v43, %v1745_v41  ;;  %904 = vst [vmem:[%s2066_s5 + $0x1b0] sm:$0xff] %v728_v39  ;;  %v465_v61 = vmul.f32 %v1528_v8, %v441_v14 }
 0x220   :  { %873 = vst [vmem:[%s2066_s5 + $0xb8] sm:$0xff] %v818_v25 }
 0x221   :  { %874 = vst [vmem:[%s2066_s5 + $0xc0] sm:$0xff] %v703_v36  ;;  %v489_v63 = vadd.f32 %v1551_v12, %v465_v61 }
 0x222   :  { %875 = vst [vmem:[%s2066_s5 + $0xc8] sm:$0xff] %v762_v30 }
 0x223   :  { %v502_v8 = vpack.c.bf16 %v490_v7, %v489_v63 }
 0x224   :  { %v729_v60 = vpop.f32.mrf.mxu3 }
 0x225   :  { %v820_v55 = vpop.f32.mrf.mxu2  ;;  %v730_v46 = vadd.f32 %v729_v60, %v1741_v5 }
 0x226   :  { %v821_v56 = vadd.f32 %v820_v55, %v1772_v58  ;;  %v704_v57 = vpop.f32.mrf.mxu0  ;;  %v763_v9 = vpop.f32.mrf.mxu1 }
 0x227   :  { %v705_v21 = vadd.f32 %v704_v57, %v1741_v5  ;;  %v764_v6 = vadd.f32 %v763_v9, %v1745_v41  ;;  %907 = vst [vmem:[%s2066_s5 + $0x1c8] sm:$0xff] %v730_v46 }
 0x228   :  { %876 = vst [vmem:[%s2066_s5 + $0xd0] sm:$0xff] %v821_v56 }
 0x229   :  { %877 = vst [vmem:[%s2066_s5 + $0xd8] sm:$0xff] %v705_v21 }
 0x22a   :  { %878 = vst [vmem:[%s2066_s5 + $0xe0] sm:$0xff] %v764_v6 }
 0x22c   :  { %716 = vmatmul.bf16.gmra.mxu0 %v502_v8  ;;  %775 = vmatmul.bf16.gmra.mxu1 %v502_v8  ;;  %v781_v12 = vpop.f32.mrf.mxu3 }
 0x22d   :  { %834 = vmatmul.bf16.gmra.mxu2 %v502_v8  ;;  %v822_v37 = vpop.f32.mrf.mxu2  ;;  %v782_v0 = vadd.f32 %v781_v12, %v1745_v41 }
 0x22e   :  { %v823_v23 = vadd.f32 %v822_v37, %v1772_v58 }
 0x22f   :  { %899 = vst [vmem:[%s2066_s5 + $0x188] sm:$0xff] %v782_v0 }
 0x230   :  { %v707_v40 = vpop.f32.mrf.mxu0  ;;  %v766_v4 = vpop.f32.mrf.mxu1  ;;  %879 = vst [vmem:[%s2066_s5 + $0xe8] sm:$0xff] %v823_v23 }
 0x231   :  { %v708_v31 = vadd.f32 %v707_v40, %v1741_v5  ;;  %v767_v2 = vadd.f32 %v766_v4, %v1745_v41 }
 0x233   :  { %880 = vst [vmem:[%s2066_s5 + $0xf0] sm:$0xff] %v708_v31 }
 0x234   :  { %881 = vst [vmem:[%s2066_s5 + $0xf8] sm:$0xff] %v767_v2  ;;  %v783_v17 = vpop.f32.mrf.mxu3 }
 0x235   :  { %v784_v45 = vadd.f32 %v783_v17, %v1745_v41 }
 0x237   :  { %v825_v20 = vpop.f32.mrf.mxu2  ;;  %902 = vst [vmem:[%s2066_s5 + $0x1a0] sm:$0xff] %v784_v45 }
 0x238   :  { %v826_v38 = vadd.f32 %v825_v20, %v1772_v58  ;;  %v709_v18 = vpop.f32.mrf.mxu0  ;;  %v768_v48 = vpop.f32.mrf.mxu1 }
 0x239   :  { %v710_v10 = vadd.f32 %v709_v18, %v1741_v5  ;;  %v769_v13 = vadd.f32 %v768_v48, %v1745_v41 }
 0x23a   :  { %882 = vst [vmem:[%s2066_s5 + $0x100] sm:$0xff] %v826_v38 }
 0x23b   :  { %883 = vst [vmem:[%s2066_s5 + $0x108] sm:$0xff] %v710_v10 }
 0x23c   :  { %884 = vst [vmem:[%s2066_s5 + $0x110] sm:$0xff] %v769_v13  ;;  %v786_v28 = vpop.f32.mrf.mxu3 }
 0x23d   :  { %v787_v54 = vadd.f32 %v786_v28, %v1745_v41 }
 0x23f   :  { %v827_v47 = vpop.f32.mrf.mxu2  ;;  %905 = vst [vmem:[%s2066_s5 + $0x1b8] sm:$0xff] %v787_v54 }
 0x240   :  { %v828_v15 = vadd.f32 %v827_v47, %v1772_v58 }
 0x242   :  { %885 = vst [vmem:[%s2066_s5 + $0x118] sm:$0xff] %v828_v15 }
 0x244   :  { %v788_v16 = vpop.f32.mrf.mxu3 }
 0x245   :  { %v789_v53 = vadd.f32 %v788_v16, %v1745_v41 }
 0x247   :  { %908 = vst [vmem:[%s2066_s5 + $0x1d0] sm:$0xff] %v789_v53 }
 0x24c   :  { %v840_v1 = vpop.f32.mrf.mxu3 }
 0x24d   :  { %v841_v19 = vadd.f32 %v840_v1, %v1772_v58 }
 0x24f   :  { %900 = vst [vmem:[%s2066_s5 + $0x190] sm:$0xff] %v841_v19 }
 0x254   :  { %v842_v49 = vpop.f32.mrf.mxu3 }
 0x255   :  { %v843_v11 = vadd.f32 %v842_v49, %v1772_v58 }
 0x257   :  { %903 = vst [vmem:[%s2066_s5 + $0x1a8] sm:$0xff] %v843_v11 }
 0x25c   :  { %v845_v22 = vpop.f32.mrf.mxu3 }
 0x25d   :  { %v846_v35 = vadd.f32 %v845_v22, %v1772_v58 }
 0x25f   :  { %906 = vst [vmem:[%s2066_s5 + $0x1c0] sm:$0xff] %v846_v35 }
 0x264   :  { %v847_v50 = vpop.f32.mrf.mxu3 }
 0x265   :  { %v848_v26 = vadd.f32 %v847_v50, %v1772_v58 }
 0x267   :  { %909 = vst [vmem:[%s2066_s5 + $0x1d8] sm:$0xff] %v848_v26 }
 0x299   :  { %v712_v27 = vpop.f32.mrf.mxu0  ;;  %v771_v3 = vpop.f32.mrf.mxu1 }
 0x29a   :  { %v713_v51 = vadd.f32 %v712_v27, %v1741_v5  ;;  %v772_v34 = vadd.f32 %v771_v3, %v1745_v41 }
 0x29c   :  { %886 = vst [vmem:[%s2066_s5 + $0x120] sm:$0xff] %v713_v51 }
 0x29d   :  { %887 = vst [vmem:[%s2066_s5 + $0x128] sm:$0xff] %v772_v34 }
 0x2a0   :  { %v830_v59 = vpop.f32.mrf.mxu2 }
 0x2a1   :  { %v831_v44 = vadd.f32 %v830_v59, %v1772_v58  ;;  %v714_v52 = vpop.f32.mrf.mxu0  ;;  %v773_v24 = vpop.f32.mrf.mxu1 }
 0x2a2   :  { %v715_v14 = vadd.f32 %v714_v52, %v1741_v5  ;;  %v774_v62 = vadd.f32 %v773_v24, %v1745_v41 }
 0x2a3   :  { %888 = vst [vmem:[%s2066_s5 + $0x130] sm:$0xff] %v831_v44 }
 0x2a4   :  { %889 = vst [vmem:[%s2066_s5 + $0x138] sm:$0xff] %v715_v14 }
 0x2a5   :  { %890 = vst [vmem:[%s2066_s5 + $0x140] sm:$0xff] %v774_v62 }
 0x2a8   :  { %v832_v32 = vpop.f32.mrf.mxu2 }
 0x2a9   :  { %v833_v39 = vadd.f32 %v832_v32, %v1772_v58  ;;  %v717_v25 = vpop.f32.mrf.mxu0  ;;  %v776_v42 = vpop.f32.mrf.mxu1 }
 0x2aa   :  { %v718_v43 = vadd.f32 %v717_v25, %v1741_v5  ;;  %v777_v29 = vadd.f32 %v776_v42, %v1745_v41 }
 0x2ab   :  { %891 = vst [vmem:[%s2066_s5 + $0x148] sm:$0xff] %v833_v39 }
 0x2ac   :  { %892 = vst [vmem:[%s2066_s5 + $0x150] sm:$0xff] %v718_v43 }
 0x2ad   :  { %893 = vst [vmem:[%s2066_s5 + $0x158] sm:$0xff] %v777_v29 }
 0x2b0   :  { %v835_v36 = vpop.f32.mrf.mxu2 }
 0x2b1   :  { %v836_v30 = vadd.f32 %v835_v36, %v1772_v58  ;;  %v719_v61 = vpop.f32.mrf.mxu0  ;;  %v778_v33 = vpop.f32.mrf.mxu1 }
 0x2b2   :  { %v720_v60 = vadd.f32 %v719_v61, %v1741_v5  ;;  %v779_v55 = vadd.f32 %v778_v33, %v1745_v41 }
 0x2b3   :  { %894 = vst [vmem:[%s2066_s5 + $0x160] sm:$0xff] %v836_v30 }
 0x2b4   :  { %895 = vst [vmem:[%s2066_s5 + $0x168] sm:$0xff] %v720_v60 }
 0x2b5   :  { %896 = vst [vmem:[%s2066_s5 + $0x170] sm:$0xff] %v779_v55 }
 0x2b8   :  { %v837_v63 = vpop.f32.mrf.mxu2 }
 0x2b9   :  { %v838_v46 = vadd.f32 %v837_v63, %v1772_v58 }
 0x2bb   :  { %897 = vst [vmem:[%s2066_s5 + $0x178] sm:$0xff] %v838_v46 }

// kernel: forward.13
= control target key start
LH: loop header
LB: loop body
LE: loop exit
PB: predicated region body
PF: predicated region fallthrough
CT: control target
= control target key end

     0   :  { %s557_s1 = inlined_call_operand.vmem [shape: bf16[128,128], index: 1, kind: input, shape index: {}]   ;;  %s558_s2 = inlined_call_operand.vmem [shape: f32[1,128], index: 2, kind: input, shape index: {}]   ;;  %s559_s0 = inlined_call_operand.vmem [shape: f32[160,128], index: 0, kind: input, shape index: {}]   ;;  %s560_s3 = inlined_call_operand.vmem [shape: f32[160,128], index: 3, kind: input, shape index: {}]   ;;  %s561_s4 = inlined_call_operand.vmem [shape: f32[160,128], index: 4, kind: output, shape index: {}]  }
   0x1   :  { %v277_v0 = vld [vmem:[%s557_s1 + $0x38] sm:$0xff]  ;;  %v276_v1 = vld [vmem:[%s557_s1 + $0x30] sm:$0xff]  ;;  %v275_v2 = vld [vmem:[%s557_s1 + $0x28] sm:$0xff] }
   0x2   :  { %279 = vmatpush.bf16.msra.mxu2 %v277_v0  ;;  %280 = vmatpush.bf16.msra.mxu3 %v277_v0  ;;  %v274_v3 = vld [vmem:[%s557_s1 + $0x20] sm:$0xff]  ;;  %v273_v4 = vld [vmem:[%s557_s1 + $0x18] sm:$0xff]  ;;  %v272_v5 = vld [vmem:[%s557_s1 + $0x10] sm:$0xff] }
   0x3   :  { %115 = vmatpush.bf16.msra.mxu0 %v277_v0  ;;  %278 = vmatpush.bf16.msra.mxu1 %v277_v0  ;;  %v271_v6 = vld [vmem:[%s557_s1 + $0x8] sm:$0xff]  ;;  %v270_v7 = vld [vmem:[%s557_s1] sm:$0xff]  ;;  %v31_v10 = vld [vmem:[%s559_s0 + $0x70] sm:$0xff] }
   0x4   :  { %v25_v8 = vld [vmem:[%s559_s0 + $0x40] sm:$0xff]  ;;  %v26_v9 = vld [vmem:[%s559_s0 + $0x48] sm:$0xff]  ;;  %v32_v11 = vld [vmem:[%s559_s0 + $0x78] sm:$0xff] }
   0x5   :  { %v17_v12 = vld [vmem:[%s559_s0] sm:$0xff]  ;;  %v18_v13 = vld [vmem:[%s559_s0 + $0x8] sm:$0xff]  ;;  %v41_v16 = vpack.c.bf16 %v26_v9, %v25_v8  ;;  %v44_v17 = vpack.c.bf16 %v32_v11, %v31_v10  ;;  %v27_v20 = vld [vmem:[%s559_s0 + $0x50] sm:$0xff] }
   0x6   :  { %282 = vmatpush.bf16.msra.mxu2 %v276_v1  ;;  %283 = vmatpush.bf16.msra.mxu3 %v276_v1  ;;  %v21_v14 = vld [vmem:[%s559_s0 + $0x20] sm:$0xff]  ;;  %v22_v15 = vld [vmem:[%s559_s0 + $0x28] sm:$0xff]  ;;  %v37_v18 = vpack.c.bf16 %v18_v13, %v17_v12  ;;  %v28_v21 = vld [vmem:[%s559_s0 + $0x58] sm:$0xff] }
   0x7   :  { %116 = vmatpush.bf16.msra.mxu0 %v276_v1  ;;  %281 = vmatpush.bf16.msra.mxu1 %v276_v1  ;;  %v39_v19 = vpack.c.bf16 %v22_v15, %v21_v14  ;;  %v33_v22 = vld [vmem:[%s559_s0 + $0x80] sm:$0xff]  ;;  %v34_v23 = vld [vmem:[%s559_s0 + $0x88] sm:$0xff]  ;;  %v19_v24 = vld [vmem:[%s559_s0 + $0x10] sm:$0xff]  ;;  %v42_v28 = vpack.c.bf16 %v28_v21, %v27_v20 }
   0x8   :  { %v20_v25 = vld [vmem:[%s559_s0 + $0x18] sm:$0xff]  ;;  %v23_v26 = vld [vmem:[%s559_s0 + $0x30] sm:$0xff]  ;;  %v45_v29 = vpack.c.bf16 %v34_v23, %v33_v22  ;;  %v29_v32 = vld [vmem:[%s559_s0 + $0x60] sm:$0xff] }
   0x9   :  { %v24_v27 = vld [vmem:[%s559_s0 + $0x38] sm:$0xff]  ;;  %v38_v30 = vpack.c.bf16 %v20_v25, %v19_v24  ;;  %v30_v33 = vld [vmem:[%s559_s0 + $0x68] sm:$0xff]  ;;  %v35_v34 = vld [vmem:[%s559_s0 + $0x90] sm:$0xff] }
   0xa   :  { %285 = vmatpush.bf16.msra.mxu2 %v275_v2  ;;  %286 = vmatpush.bf16.msra.mxu3 %v275_v2  ;;  %v40_v31 = vpack.c.bf16 %v24_v27, %v23_v26  ;;  %v36_v35 = vld [vmem:[%s559_s0 + $0x98] sm:$0xff]  ;;  %v43_v36 = vpack.c.bf16 %v30_v33, %v29_v32  ;;  %v415_v38 = vld [vmem:[%s558_s2] ss:$0 sm:$0xff]  ;;  %v188_v50 = vld [vmem:[%s560_s3 + $0x70] sm:$0xff] }
   0xb   :  { %117 = vmatpush.bf16.msra.mxu0 %v275_v2  ;;  %284 = vmatpush.bf16.msra.mxu1 %v275_v2  ;;  %v46_v37 = vpack.c.bf16 %v36_v35, %v35_v34  ;;  %v174_v40 = vld [vmem:[%s560_s3] sm:$0xff]  ;;  %v175_v56 = vld [vmem:[%s560_s3 + $0x8] sm:$0xff]  ;;  %v189_v2 = vld [vmem:[%s560_s3 + $0x78] sm:$0xff] }
   0xc   :  { %v178_v42 = vld [vmem:[%s560_s3 + $0x20] sm:$0xff]  ;;  %v179_v58 = vld [vmem:[%s560_s3 + $0x28] sm:$0xff]  ;;  %v176_v8 = vld [vmem:[%s560_s3 + $0x10] sm:$0xff] }
   0xd   :  { %v182_v48 = vld [vmem:[%s560_s3 + $0x40] sm:$0xff]  ;;  %v183_v0 = vld [vmem:[%s560_s3 + $0x48] sm:$0xff]  ;;  %v180_v10 = vld [vmem:[%s560_s3 + $0x30] sm:$0xff] }
   0xe   :  { %288 = vmatpush.bf16.msra.mxu2 %v274_v3  ;;  %289 = vmatpush.bf16.msra.mxu3 %v274_v3  ;;  %v177_v24 = vld [vmem:[%s560_s3 + $0x18] sm:$0xff]  ;;  %v191_v34 = vld [vmem:[%s560_s3 + $0x88] sm:$0xff] }
   0xf   :  { %118 = vmatpush.bf16.msra.mxu0 %v274_v3  ;;  %287 = vmatpush.bf16.msra.mxu1 %v274_v3  ;;  %v181_v26 = vld [vmem:[%s560_s3 + $0x38] sm:$0xff] }
  0x10   :  { %v185_v32 = vld [vmem:[%s560_s3 + $0x58] sm:$0xff] }
  0x12   :  { %291 = vmatpush.bf16.msra.mxu2 %v273_v4  ;;  %292 = vmatpush.bf16.msra.mxu3 %v273_v4 }
  0x13   :  { %119 = vmatpush.bf16.msra.mxu0 %v273_v4  ;;  %290 = vmatpush.bf16.msra.mxu1 %v273_v4 }
  0x16   :  { %294 = vmatpush.bf16.msra.mxu2 %v272_v5  ;;  %295 = vmatpush.bf16.msra.mxu3 %v272_v5 }
  0x17   :  { %120 = vmatpush.bf16.msra.mxu0 %v272_v5  ;;  %293 = vmatpush.bf16.msra.mxu1 %v272_v5 }
  0x1a   :  { %297 = vmatpush.bf16.msra.mxu2 %v271_v6  ;;  %298 = vmatpush.bf16.msra.mxu3 %v271_v6 }
  0x1b   :  { %121 = vmatpush.bf16.msra.mxu0 %v271_v6  ;;  %296 = vmatpush.bf16.msra.mxu1 %v271_v6 }
  0x1e   :  { %300 = vmatpush.bf16.msra.mxu2 %v270_v7  ;;  %301 = vmatpush.bf16.msra.mxu3 %v270_v7 }
  0x1f   :  { %122 = vmatpush.bf16.msra.mxu0 %v270_v7  ;;  %299 = vmatpush.bf16.msra.mxu1 %v270_v7 }
  0x21   :  { %143 = vmatmul.bf16.vlgmr.msra.gmra.mxu2 %v41_v16  ;;  %158 = vmatmul.bf16.vlgmr.msra.gmra.mxu3 %v44_v17  ;;  %v184_v16 = vld [vmem:[%s560_s3 + $0x50] sm:$0xff] }
  0x22   :  { %123 = vmatmul.bf16.vlgmr.msra.gmra.mxu0 %v37_v18  ;;  %133 = vmatmul.bf16.vlgmr.msra.gmra.mxu1 %v39_v19  ;;  %v190_v18 = vld [vmem:[%s560_s3 + $0x80] sm:$0xff] }
  0x31   :  { %148 = vmatmul.bf16.gmra.mxu2 %v42_v28  ;;  %163 = vmatmul.bf16.gmra.mxu3 %v45_v29 }
  0x32   :  { %128 = vmatmul.bf16.gmra.mxu0 %v38_v30  ;;  %138 = vmatmul.bf16.gmra.mxu1 %v40_v31 }
  0x41   :  { %153 = vmatmul.bf16.gmra.mxu2 %v43_v36  ;;  %168 = vmatmul.bf16.gmra.mxu3 %v46_v37 }
  0x9f   :  { %v124_v39 = vpop.f32.mrf.mxu0  ;;  %v134_v41 = vpop.f32.mrf.mxu1 }
  0xa0   :  { %v125_v43 = vadd.f32 %v415_v38, %v124_v39  ;;  %v135_v44 = vadd.f32 %v415_v38, %v134_v41  ;;  %v186_v41 = vld [vmem:[%s560_s3 + $0x60] sm:$0xff] }
  0xa2   :  { %v194_v45 = vadd.f32 %v174_v40, %v125_v43  ;;  %v198_v46 = vadd.f32 %v178_v42, %v135_v44  ;;  %v192_v43 = vld [vmem:[%s560_s3 + $0x90] sm:$0xff] }
  0xa4   :  { %v144_v47 = vpop.f32.mrf.mxu2  ;;  %v159_v49 = vpop.f32.mrf.mxu3  ;;  %214 = vst [vmem:[%s561_s4] sm:$0xff] %v194_v45 }
  0xa5   :  { %v145_v51 = vadd.f32 %v415_v38, %v144_v47  ;;  %v160_v52 = vadd.f32 %v415_v38, %v159_v49  ;;  %218 = vst [vmem:[%s561_s4 + $0x20] sm:$0xff] %v198_v46  ;;  %v187_v49 = vld [vmem:[%s560_s3 + $0x68] sm:$0xff] }
  0xa7   :  { %v202_v53 = vadd.f32 %v182_v48, %v145_v51  ;;  %v208_v54 = vadd.f32 %v188_v50, %v160_v52  ;;  %v126_v55 = vpop.f32.mrf.mxu0  ;;  %v136_v57 = vpop.f32.mrf.mxu1  ;;  %v193_v51 = vld [vmem:[%s560_s3 + $0x98] sm:$0xff] }
  0xa8   :  { %v127_v59 = vadd.f32 %v415_v38, %v126_v55  ;;  %v137_v60 = vadd.f32 %v415_v38, %v136_v57 }
  0xa9   :  { %222 = vst [vmem:[%s561_s4 + $0x40] sm:$0xff] %v202_v53 }
  0xaa   :  { %228 = vst [vmem:[%s561_s4 + $0x70] sm:$0xff] %v208_v54  ;;  %v195_v61 = vadd.f32 %v175_v56, %v127_v59  ;;  %v199_v62 = vadd.f32 %v179_v58, %v137_v60 }
  0xac   :  { %v146_v63 = vpop.f32.mrf.mxu2  ;;  %v161_v1 = vpop.f32.mrf.mxu3  ;;  %215 = vst [vmem:[%s561_s4 + $0x8] sm:$0xff] %v195_v61 }
  0xad   :  { %v147_v3 = vadd.f32 %v415_v38, %v146_v63  ;;  %v162_v4 = vadd.f32 %v415_v38, %v161_v1  ;;  %219 = vst [vmem:[%s561_s4 + $0x28] sm:$0xff] %v199_v62 }
  0xaf   :  { %v203_v5 = vadd.f32 %v183_v0, %v147_v3  ;;  %v209_v6 = vadd.f32 %v189_v2, %v162_v4  ;;  %v129_v7 = vpop.f32.mrf.mxu0  ;;  %v139_v9 = vpop.f32.mrf.mxu1 }
  0xb0   :  { %v130_v11 = vadd.f32 %v415_v38, %v129_v7  ;;  %v140_v12 = vadd.f32 %v415_v38, %v139_v9 }
  0xb1   :  { %223 = vst [vmem:[%s561_s4 + $0x48] sm:$0xff] %v203_v5 }
  0xb2   :  { %229 = vst [vmem:[%s561_s4 + $0x78] sm:$0xff] %v209_v6  ;;  %v196_v13 = vadd.f32 %v176_v8, %v130_v11  ;;  %v200_v14 = vadd.f32 %v180_v10, %v140_v12 }
  0xb4   :  { %v149_v15 = vpop.f32.mrf.mxu2  ;;  %v164_v17 = vpop.f32.mrf.mxu3  ;;  %216 = vst [vmem:[%s561_s4 + $0x10] sm:$0xff] %v196_v13 }
  0xb5   :  { %v150_v19 = vadd.f32 %v415_v38, %v149_v15  ;;  %v165_v20 = vadd.f32 %v415_v38, %v164_v17  ;;  %220 = vst [vmem:[%s561_s4 + $0x30] sm:$0xff] %v200_v14 }
  0xb7   :  { %v204_v21 = vadd.f32 %v184_v16, %v150_v19  ;;  %v210_v22 = vadd.f32 %v190_v18, %v165_v20  ;;  %v131_v23 = vpop.f32.mrf.mxu0  ;;  %v141_v25 = vpop.f32.mrf.mxu1 }
  0xb8   :  { %v132_v27 = vadd.f32 %v415_v38, %v131_v23  ;;  %v142_v28 = vadd.f32 %v415_v38, %v141_v25 }
  0xb9   :  { %224 = vst [vmem:[%s561_s4 + $0x50] sm:$0xff] %v204_v21 }
  0xba   :  { %230 = vst [vmem:[%s561_s4 + $0x80] sm:$0xff] %v210_v22  ;;  %v197_v29 = vadd.f32 %v177_v24, %v132_v27  ;;  %v201_v30 = vadd.f32 %v181_v26, %v142_v28 }
  0xbc   :  { %v151_v31 = vpop.f32.mrf.mxu2  ;;  %v166_v33 = vpop.f32.mrf.mxu3  ;;  %217 = vst [vmem:[%s561_s4 + $0x18] sm:$0xff] %v197_v29 }
  0xbd   :  { %v152_v35 = vadd.f32 %v415_v38, %v151_v31  ;;  %v167_v36 = vadd.f32 %v415_v38, %v166_v33  ;;  %221 = vst [vmem:[%s561_s4 + $0x38] sm:$0xff] %v201_v30 }
  0xbf   :  { %v205_v37 = vadd.f32 %v185_v32, %v152_v35  ;;  %v211_v39 = vadd.f32 %v191_v34, %v167_v36 }
  0xc1   :  { %225 = vst [vmem:[%s561_s4 + $0x58] sm:$0xff] %v205_v37 }
  0xc2   :  { %231 = vst [vmem:[%s561_s4 + $0x88] sm:$0xff] %v211_v39 }
  0xc4   :  { %v154_v40 = vpop.f32.mrf.mxu2  ;;  %v169_v42 = vpop.f32.mrf.mxu3 }
  0xc5   :  { %v155_v44 = vadd.f32 %v415_v38, %v154_v40  ;;  %v170_v45 = vadd.f32 %v415_v38, %v169_v42 }
  0xc7   :  { %v206_v46 = vadd.f32 %v186_v41, %v155_v44  ;;  %v212_v47 = vadd.f32 %v192_v43, %v170_v45 }
  0xc9   :  { %226 = vst [vmem:[%s561_s4 + $0x60] sm:$0xff] %v206_v46 }
  0xca   :  { %232 = vst [vmem:[%s561_s4 + $0x90] sm:$0xff] %v212_v47 }
  0xcc   :  { %v156_v48 = vpop.f32.mrf.mxu2  ;;  %v171_v50 = vpop.f32.mrf.mxu3 }
  0xcd   :  { %v157_v52 = vadd.f32 %v415_v38, %v156_v48  ;;  %v172_v53 = vadd.f32 %v415_v38, %v171_v50 }
  0xcf   :  { %v207_v54 = vadd.f32 %v187_v49, %v157_v52  ;;  %v213_v55 = vadd.f32 %v193_v51, %v172_v53 }
  0xd1   :  { %227 = vst [vmem:[%s561_s4 + $0x68] sm:$0xff] %v207_v54 }
  0xd2   :  { %233 = vst [vmem:[%s561_s4 + $0x98] sm:$0xff] %v213_v55 }

// kernel: forward.12
= control target key start
LH: loop header
LB: loop body
LE: loop exit
PB: predicated region body
PF: predicated region fallthrough
CT: control target
= control target key end

     0   :  { %s2477_s12 = smov 0   ;;  %s3085_s0 = inlined_call_operand.vmem [shape: bf16[2,4,80,32], index: 0, kind: input, shape index: {}]   ;;  %s3086_s1 = inlined_call_operand.vmem [shape: bf16[2,4,80,32], index: 1, kind: input, shape index: {}]   ;;  %s3087_s2 = inlined_call_operand.vmem [shape: bf16[2,4,80,32], index: 2, kind: input, shape index: {}]   ;;  %s3088_s3 = inlined_call_operand.vmem [shape: f32[2,4,80,32], index: 3, kind: output, shape index: {}]  }
   0x1 LB: > { %s1928_s13 = sadd.s32 4294967295, %s2455_s12   ;;  %p1932_p0 = scmp.ge.s32.totalorder %s2455_s12, 1  ;;  %s2455_s12 = sphi %s2477_s12, %s13_s12  }
   0x2   : > { %p157_p1 = scmp.lt.s32.totalorder %s2455_s12, 3 }
   0x4   : > { %p158_p2 = pnand %p1932_p0, %p157_p1 }
   0x5   : > { %p191_p3 = scmp.lt.s32.totalorder (!%p158_p2), %s1928_s13, 1 }
   0x6   : > { %161 = sbr.rel (%p158_p2) target bundleno = 561 (0x231), region = 32 }
   0xb   : > { %s3090_s13 = smov (!%p191_p3, %s1928_s13), 1  ;;  %vm382_vm0 = vcmask 261120   ;;  %v829_v60 = vlaneseq  ;;  %vm912_vm2 = vcmask 654336  }
   0xc   : > { %s2488_s14 = smul.u32 160, %s3090_s13 }
   0xd   : > { %v2582_v61 = vshrl.u32 %v829_v60, 7  ;;  %v2584_v62 = vand.u32 127, %v829_v60  ;;  %s2280_s24 = smul.u32 320, %s3090_s13 }
   0xe   : > { %s2494_s17 = scalar_lea.vmem %s3086_s1, %s2488_s14  ;;  %s2540_s20 = scalar_lea.vmem %s3085_s0, %s2488_s14 }
   0xf   : > { %v2243_v0 = vld [vmem:[%s2494_s17 + $0x20] sm:$0xff]  ;;  %v2248_v1 = vld [vmem:[%s2494_s17 + $0x48] sm:$0xff]  ;;  %v2253_v2 = vld [vmem:[%s2494_s17 + $0x70] sm:$0xff]  ;;  %vm842_vm1 = vcmp.le.s32.totalorder %v2584_v62, %v2582_v61  ;;  %s2743_s23 = scalar_lea.vmem %s3087_s2, %s2488_s14  ;;  %s3000_s27 = scalar_lea.vmem %s3088_s3, %s2280_s24 }
  0x10   : > { %v2258_v3 = vld [vmem:[%s2494_s17 + $0x98] sm:$0xff]  ;;  %v411_v4 = vsel %vm382_vm0, %v2243_v0, 0  ;;  %v525_v5 = vsel %vm382_vm0, %v2248_v1, 0  ;;  %v639_v6 = vsel %vm382_vm0, %v2253_v2, 0  ;;  %v2247_v9 = vld [vmem:[%s2494_s17 + $0x40] sm:$0xff]  ;;  %v2252_v10 = vld [vmem:[%s2494_s17 + $0x68] sm:$0xff] }
  0x11   : > { %416 = vmatpush.bf16.xpose.msra.mxu0 %v411_v4  ;;  %530 = vmatpush.bf16.xpose.msra.mxu1 %v525_v5  ;;  %v753_v7 = vsel %vm382_vm0, %v2258_v3, 0  ;;  %v2242_v8 = vld [vmem:[%s2494_s17 + $0x18] sm:$0xff]  ;;  %v2257_v11 = vld [vmem:[%s2494_s17 + $0x90] sm:$0xff]  ;;  %v522_v13 = vsel %vm382_vm0, %v2247_v9, 0  ;;  %v636_v14 = vsel %vm382_vm0, %v2252_v10, 0  ;;  %v2251_v18 = vld [vmem:[%s2494_s17 + $0x60] sm:$0xff] }
  0x12   : > { %644 = vmatpush.bf16.xpose.msra.mxu2 %v639_v6  ;;  %758 = vmatpush.bf16.xpose.msra.mxu3 %v753_v7  ;;  %v408_v12 = vsel %vm382_vm0, %v2242_v8, 0  ;;  %v750_v15 = vsel %vm382_vm0, %v2257_v11, 0  ;;  %v2241_v16 = vld [vmem:[%s2494_s17 + $0x10] sm:$0xff]  ;;  %v2246_v17 = vld [vmem:[%s2494_s17 + $0x38] sm:$0xff]  ;;  %v2256_v19 = vld [vmem:[%s2494_s17 + $0x88] sm:$0xff]  ;;  %v633_v22 = vsel %vm382_vm0, %v2251_v18, 0 }
  0x13   : > { %v405_v20 = vsel %vm382_vm0, %v2241_v16, 0  ;;  %v519_v21 = vsel %vm382_vm0, %v2246_v17, 0  ;;  %v747_v23 = vsel %vm382_vm0, %v2256_v19, 0  ;;  %v2240_v24 = vld [vmem:[%s2494_s17 + $0x8] sm:$0xff]  ;;  %v2245_v25 = vld [vmem:[%s2494_s17 + $0x30] sm:$0xff]  ;;  %v2250_v26 = vld [vmem:[%s2494_s17 + $0x58] sm:$0xff] }
  0x14   : > { %v2255_v27 = vld [vmem:[%s2494_s17 + $0x80] sm:$0xff]  ;;  %v402_v28 = vsel %vm382_vm0, %v2240_v24, 0  ;;  %v516_v29 = vsel %vm382_vm0, %v2245_v25, 0  ;;  %v630_v30 = vsel %vm382_vm0, %v2250_v26, 0  ;;  %v2244_v33 = vld [vmem:[%s2494_s17 + $0x28] sm:$0xff]  ;;  %v2249_v34 = vld [vmem:[%s2494_s17 + $0x50] sm:$0xff] }
  0x15   : > { %v744_v31 = vsel %vm382_vm0, %v2255_v27, 0  ;;  %v2239_v32 = vld [vmem:[%s2494_s17] sm:$0xff]  ;;  %v2254_v35 = vld [vmem:[%s2494_s17 + $0x78] sm:$0xff]  ;;  %v513_v37 = vsel %vm382_vm0, %v2244_v33, 0  ;;  %v627_v38 = vsel %vm382_vm0, %v2249_v34, 0  ;;  %v2224_v41 = vld [vmem:[%s2540_s20 + $0x28] sm:$0xff] }
  0x16   : > { %v399_v36 = vsel %vm382_vm0, %v2239_v32, 0  ;;  %v741_v39 = vsel %vm382_vm0, %v2254_v35, 0  ;;  %v2219_v40 = vld [vmem:[%s2540_s20] sm:$0xff]  ;;  %v2229_v42 = vld [vmem:[%s2540_s20 + $0x50] sm:$0xff]  ;;  %v2234_v43 = vld [vmem:[%s2540_s20 + $0x78] sm:$0xff]  ;;  %v831_v7 = vadd.s32 8, %v2582_v61 }
  0x17   : > { %v2220_v44 = vld [vmem:[%s2540_s20 + $0x8] sm:$0xff]  ;;  %v2225_v45 = vld [vmem:[%s2540_s20 + $0x30] sm:$0xff]  ;;  %v2230_v46 = vld [vmem:[%s2540_s20 + $0x58] sm:$0xff] }
  0x18   : > { %v2235_v47 = vld [vmem:[%s2540_s20 + $0x80] sm:$0xff]  ;;  %v2221_v48 = vld [vmem:[%s2540_s20 + $0x10] sm:$0xff]  ;;  %v2226_v49 = vld [vmem:[%s2540_s20 + $0x38] sm:$0xff]  ;;  %vm843_vm3 = vcmp.le.s32.totalorder %v2584_v62, %v831_v7 }
  0x19   : > { %417 = vmatpush.bf16.xpose.msra.mxu0 %v408_v12  ;;  %531 = vmatpush.bf16.xpose.msra.mxu1 %v522_v13  ;;  %v2236_v50 = vld [vmem:[%s2540_s20 + $0x88] sm:$0xff]  ;;  %v2231_v51 = vld [vmem:[%s2540_s20 + $0x60] sm:$0xff]  ;;  %v2222_v53 = vld [vmem:[%s2540_s20 + $0x18] sm:$0xff] }
  0x1a   : > { %645 = vmatpush.bf16.xpose.msra.mxu2 %v636_v14  ;;  %759 = vmatpush.bf16.xpose.msra.mxu3 %v750_v15  ;;  %v2227_v52 = vld [vmem:[%s2540_s20 + $0x40] sm:$0xff]  ;;  %v2232_v54 = vld [vmem:[%s2540_s20 + $0x68] sm:$0xff]  ;;  %v2237_v55 = vld [vmem:[%s2540_s20 + $0x90] sm:$0xff] }
  0x1b   : > { %v2223_v56 = vld [vmem:[%s2540_s20 + $0x20] sm:$0xff]  ;;  %v2228_v57 = vld [vmem:[%s2540_s20 + $0x48] sm:$0xff]  ;;  %v2233_v58 = vld [vmem:[%s2540_s20 + $0x70] sm:$0xff] }
  0x1c   : > { %v2238_v59 = vld [vmem:[%s2540_s20 + $0x98] sm:$0xff] }
  0x21   : > { %418 = vmatpush.bf16.xpose.msra.mxu0 %v405_v20  ;;  %532 = vmatpush.bf16.xpose.msra.mxu1 %v519_v21 }
  0x22   : > { %646 = vmatpush.bf16.xpose.msra.mxu2 %v633_v22  ;;  %760 = vmatpush.bf16.xpose.msra.mxu3 %v747_v23  ;;  %v832_v22 = vadd.s32 16, %v2582_v61 }
  0x24   : > { %vm844_vm4 = vcmp.le.s32.totalorder %v2584_v62, %v832_v22 }
  0x29   : > { %419 = vmatpush.bf16.xpose.msra.mxu0 %v402_v28  ;;  %533 = vmatpush.bf16.xpose.msra.mxu1 %v516_v29 }
  0x2a   : > { %647 = vmatpush.bf16.xpose.msra.mxu2 %v630_v30  ;;  %761 = vmatpush.bf16.xpose.msra.mxu3 %v744_v31 }
  0x31   : > { %420 = vmatpush.bf16.xpose.msra.mxu0 %v399_v36  ;;  %534 = vmatpush.bf16.xpose.msra.mxu1 %v513_v37 }
  0x32   : > { %648 = vmatpush.bf16.xpose.msra.mxu2 %v627_v38  ;;  %762 = vmatpush.bf16.xpose.msra.mxu3 %v741_v39 }
  0x38   : > { %1977 = vmatmul.msk.bf16.vlgmr.msra.gmra.mxu0 %vm382_vm0, %v2219_v40  ;;  %2022 = vmatmul.msk.bf16.vlgmr.msra.gmra.mxu1 %vm382_vm0, %v2224_v41 }
  0x39   : > { %2067 = vmatmul.msk.bf16.vlgmr.msra.gmra.mxu2 %vm382_vm0, %v2229_v42  ;;  %2112 = vmatmul.msk.bf16.vlgmr.msra.gmra.mxu3 %vm382_vm0, %v2234_v43 }
  0x48   : > { %1978 = vmatmul.msk.bf16.gmra.mxu0 %vm382_vm0, %v2220_v44  ;;  %2023 = vmatmul.msk.bf16.gmra.mxu1 %vm382_vm0, %v2225_v45 }
  0x49   : > { %2068 = vmatmul.msk.bf16.gmra.mxu2 %vm382_vm0, %v2230_v46  ;;  %2113 = vmatmul.msk.bf16.gmra.mxu3 %vm382_vm0, %v2235_v47  ;;  %v833_v47 = vadd.s32 24, %v2582_v61 }
  0x4b   : > { %vm845_vm5 = vcmp.le.s32.totalorder %v2584_v62, %v833_v47 }
  0x58   : > { %1979 = vmatmul.msk.bf16.gmra.mxu0 %vm382_vm0, %v2221_v48  ;;  %2024 = vmatmul.msk.bf16.gmra.mxu1 %vm382_vm0, %v2226_v49 }
  0x59   : > { %2114 = vmatmul.msk.bf16.gmra.mxu3 %vm382_vm0, %v2236_v50  ;;  %2069 = vmatmul.msk.bf16.gmra.mxu2 %vm382_vm0, %v2231_v51 }
  0x68   : > { %2025 = vmatmul.msk.bf16.gmra.mxu1 %vm382_vm0, %v2227_v52  ;;  %1980 = vmatmul.msk.bf16.gmra.mxu0 %vm382_vm0, %v2222_v53 }
  0x69   : > { %2070 = vmatmul.msk.bf16.gmra.mxu2 %vm382_vm0, %v2232_v54  ;;  %2115 = vmatmul.msk.bf16.gmra.mxu3 %vm382_vm0, %v2237_v55 }
  0x78   : > { %1981 = vmatmul.msk.bf16.gmra.mxu0 %vm382_vm0, %v2223_v56  ;;  %2026 = vmatmul.msk.bf16.gmra.mxu1 %vm382_vm0, %v2228_v57  ;;  %v834_v57 = vadd.s32 32, %v2582_v61 }
  0x79   : > { %2071 = vmatmul.msk.bf16.gmra.mxu2 %vm382_vm0, %v2233_v58  ;;  %2116 = vmatmul.msk.bf16.gmra.mxu3 %vm382_vm0, %v2238_v59 }
  0x7a   : > { %vm846_vm6 = vcmp.le.s32.totalorder %v2584_v62, %v834_v57  ;;  %v2263_v57 = vld [vmem:[%s2743_s23 + $0x20] sm:$0xff] }
  0x7b   : > { %1386 = vmatpush.bf16.msrb.mxu0 %v2263_v57 }
  0xb5   : > { %v422_v63 = vpop.f32.mrf.mxu0  ;;  %v536_v0 = vpop.f32.mrf.mxu1 }
  0xb6   : > { %v789_v1 = vmul.f32 0.17677669, %v422_v63  ;;  %v799_v2 = vmul.f32 0.17677669, %v536_v0 }
  0xb8   : > { %v2591_v3 = vsel %vm842_vm1, %v799_v2, -1e+30  ;;  %v2596_v4 = vsel %vm842_vm1, %v789_v1, -1e+30 }
  0xb9   : > { %v943_v5 = vsel %vm912_vm2, %v2591_v3, -inf  ;;  %v913_v6 = vsel %vm912_vm2, %v2596_v4, -inf }
  0xba   : > { %944 = vmax.xlane.f32.xlu0 %v943_v5  ;;  %914 = vmax.xlane.f32.xlu2 %v913_v6 }
  0xbc   : > { %v650_v8 = vpop.f32.mrf.mxu2  ;;  %v764_v9 = vpop.f32.mrf.mxu3 }
  0xbd   : > { %v809_v10 = vmul.f32 0.17677669, %v650_v8  ;;  %v819_v11 = vmul.f32 0.17677669, %v764_v9  ;;  %v424_v12 = vpop.f32.mrf.mxu0  ;;  %v538_v13 = vpop.f32.mrf.mxu1 }
  0xbe   : > { %v790_v14 = vmul.f32 0.17677669, %v424_v12  ;;  %v800_v20 = vmul.f32 0.17677669, %v538_v13 }
  0xbf   : > { %v2607_v15 = vsel %vm842_vm1, %v819_v11, -1e+30  ;;  %v2612_v16 = vsel %vm842_vm1, %v809_v10, -1e+30  ;;  %v835_v11 = vadd.s32 40, %v2582_v61 }
  0xc0   : > { %v1003_v17 = vsel %vm912_vm2, %v2607_v15, -inf  ;;  %v973_v18 = vsel %vm912_vm2, %v2612_v16, -inf  ;;  %v2620_v19 = vsel %vm843_vm3, %v790_v14, -1e+30  ;;  %v2627_v28 = vsel %vm843_vm3, %v800_v20, -1e+30 }
  0xc1   : > { %1004 = vmax.xlane.f32.xlu1 %v1003_v17  ;;  %v916_v21 = vsel %vm912_vm2, %v2620_v19, -inf  ;;  %v946_v32 = vsel %vm912_vm2, %v2627_v28, -inf  ;;  %vm847_vm7 = vcmp.le.s32.totalorder %v2584_v62, %v835_v11 }
  0xc2   : > { %974 = vmax.xlane.f32.xlu0 %v973_v18  ;;  %917 = vmax.xlane.f32.xlu2 %v916_v21 }
  0xc4   : > { %v652_v23 = vpop.f32.mrf.mxu2  ;;  %v766_v24 = vpop.f32.mrf.mxu3 }
  0xc5   : > { %v810_v25 = vmul.f32 0.17677669, %v652_v23  ;;  %v427_v26 = vpop.f32.mrf.mxu0  ;;  %v541_v27 = vpop.f32.mrf.mxu1  ;;  %v820_v34 = vmul.f32 0.17677669, %v766_v24 }
  0xc6   : > { %v801_v29 = vmul.f32 0.17677669, %v541_v27  ;;  %v791_v31 = vmul.f32 0.17677669, %v427_v26 }
  0xc7   : > { %v2632_v30 = vsel %vm843_vm3, %v810_v25, -1e+30  ;;  %v2650_v43 = vsel %vm843_vm3, %v820_v34, -1e+30 }
  0xc8   : > { %v2638_v33 = vsel %vm844_vm4, %v801_v29, -1e+30  ;;  %v976_v35 = vsel %vm912_vm2, %v2632_v30, -inf  ;;  %v2646_v39 = vsel %vm844_vm4, %v791_v31, -1e+30  ;;  %v1006_v48 = vsel %vm912_vm2, %v2650_v43, -inf }
  0xc9   : > { %947 = vmax.xlane.f32.xlu1 %v946_v32  ;;  %v949_v36 = vsel %vm912_vm2, %v2638_v33, -inf  ;;  %v919_v46 = vsel %vm912_vm2, %v2646_v39, -inf }
  0xca   : > { %977 = vmax.xlane.f32.xlu0 %v976_v35  ;;  %950 = vmax.xlane.f32.xlu2 %v949_v36 }
  0xcc   : > { %v655_v37 = vpop.f32.mrf.mxu2  ;;  %v769_v38 = vpop.f32.mrf.mxu3 }
  0xcd   : > { %v429_v40 = vpop.f32.mrf.mxu0  ;;  %v543_v41 = vpop.f32.mrf.mxu1  ;;  %v811_v42 = vmul.f32 0.17677669, %v655_v37  ;;  %v821_v44 = vmul.f32 0.17677669, %v769_v38 }
  0xce   : > { %v802_v50 = vmul.f32 0.17677669, %v543_v41  ;;  %v792_v1 = vmul.f32 0.17677669, %v429_v40 }
  0xcf   : > { %v2654_v45 = vsel %vm844_vm4, %v811_v42, -1e+30  ;;  %v2665_v51 = vsel %vm844_vm4, %v821_v44, -1e+30  ;;  %v836_v44 = vadd.s32 48, %v2582_v61 }
  0xd0   : > { %v979_v49 = vsel %vm912_vm2, %v2654_v45, -inf  ;;  %v1009_v58 = vsel %vm912_vm2, %v2665_v51, -inf  ;;  %v2673_v59 = vsel %vm845_vm5, %v802_v50, -1e+30  ;;  %v2690_v9 = vsel %vm845_vm5, %v792_v1, -1e+30 }
  0xd1   : > { %1007 = vmax.xlane.f32.xlu1 %v1006_v48  ;;  %v952_v2 = vsel %vm912_vm2, %v2673_v59, -inf  ;;  %v922_v18 = vsel %vm912_vm2, %v2690_v9, -inf  ;;  %vm848_vm8 = vcmp.le.s32.totalorder %v2584_v62, %v836_v44  ;;  %v2262_v44 = vld [vmem:[%s2743_s23 + $0x18] sm:$0xff] }
  0xd2   : > { %980 = vmax.xlane.f32.xlu2 %v979_v49  ;;  %920 = vmax.xlane.f32.xlu0 %v919_v46 }
  0xd3   : > { %1387 = vmatpush.bf16.msrb.mxu0 %v2262_v44 }
  0xd4   : > { %v657_v52 = vpop.f32.mrf.mxu2  ;;  %v771_v53 = vpop.f32.mrf.mxu3 }
  0xd5   : > { %v822_v54 = vmul.f32 0.17677669, %v771_v53  ;;  %v432_v55 = vpop.f32.mrf.mxu0  ;;  %v546_v56 = vpop.f32.mrf.mxu1  ;;  %v812_v5 = vmul.f32 0.17677669, %v657_v52 }
  0xd6   : > { %v793_v0 = vmul.f32 0.17677669, %v432_v55  ;;  %v803_v13 = vmul.f32 0.17677669, %v546_v56  ;;  %v2273_v55 = vld [vmem:[%s2743_s23 + $0x70] sm:$0xff]  ;;  %v2278_v56 = vld [vmem:[%s2743_s23 + $0x98] sm:$0xff] }
  0xd7   : > { %v2677_v60 = vsel %vm845_vm5, %v822_v54, -1e+30  ;;  %v2695_v12 = vsel %vm845_vm5, %v812_v5, -1e+30  ;;  %1594 = vmatpush.bf16.msrb.mxu2 %v2273_v55  ;;  %1698 = vmatpush.bf16.msrb.mxu3 %v2278_v56 }
  0xd8   : > { %v1012_v63 = vsel %vm912_vm2, %v2677_v60, -inf  ;;  %v2686_v7 = vsel %vm846_vm6, %v793_v0, -1e+30  ;;  %v982_v21 = vsel %vm912_vm2, %v2695_v12, -inf  ;;  %v2706_v23 = vsel %vm846_vm6, %v803_v13, -1e+30 }
  0xd9   : > { %1010 = vmax.xlane.f32.xlu1 %v1009_v58  ;;  %v925_v14 = vsel %vm912_vm2, %v2686_v7, -inf  ;;  %v955_v29 = vsel %vm912_vm2, %v2706_v23, -inf  ;;  %v2268_v58 = vld [vmem:[%s2743_s23 + $0x48] sm:$0xff] }
  0xda   : > { %1013 = vmax.xlane.f32.xlu2 %v1012_v63  ;;  %953 = vmax.xlane.f32.xlu0 %v952_v2 }
  0xdb   : > { %1490 = vmatpush.bf16.msrb.mxu1 %v2268_v58 }
  0xdc   : > { %v774_v6 = vpop.f32.mrf.mxu3  ;;  %v660_v8 = vpop.f32.mrf.mxu2 }
  0xdd   : > { %v548_v10 = vpop.f32.mrf.mxu1  ;;  %v823_v17 = vmul.f32 0.17677669, %v774_v6  ;;  %v434_v22 = vpop.f32.mrf.mxu0  ;;  %v813_v31 = vmul.f32 0.17677669, %v660_v8 }
  0xde   : > { %v804_v20 = vmul.f32 0.17677669, %v548_v10  ;;  %v794_v36 = vmul.f32 0.17677669, %v434_v22 }
  0xdf   : > { %v2710_v25 = vsel %vm846_vm6, %v823_v17, -1e+30  ;;  %v2724_v37 = vsel %vm846_vm6, %v813_v31, -1e+30 }
  0xe0   : > { %v2714_v26 = vsel %vm847_vm7, %v804_v20, -1e+30  ;;  %v1015_v32 = vsel %vm912_vm2, %v2710_v25, -inf  ;;  %v985_v46 = vsel %vm912_vm2, %v2724_v37, -inf  ;;  %v2735_v47 = vsel %vm847_vm7, %v794_v36, -1e+30 }
  0xe1   : > { %923 = vmax.xlane.f32.xlu1 %v922_v18  ;;  %v958_v34 = vsel %vm912_vm2, %v2714_v26, -inf  ;;  %v928_v54 = vsel %vm912_vm2, %v2735_v47, -inf }
  0xe2   : > { %983 = vmax.xlane.f32.xlu0 %v982_v21  ;;  %926 = vmax.xlane.f32.xlu2 %v925_v14  ;;  %v837_v14 = vadd.s32 56, %v2582_v61 }
  0xe4   : > { %v776_v24 = vpop.f32.mrf.mxu3  ;;  %v662_v27 = vpop.f32.mrf.mxu2  ;;  %vm849_vm9 = vcmp.le.s32.totalorder %v2584_v62, %v837_v14 }
  0xe5   : > { %v814_v35 = vmul.f32 0.17677669, %v662_v27  ;;  %v437_v38 = vpop.f32.mrf.mxu0  ;;  %v551_v48 = vpop.f32.mrf.mxu1  ;;  %v824_v53 = vmul.f32 0.17677669, %v776_v24 }
  0xe6   : > { %v805_v50 = vmul.f32 0.17677669, %v551_v48  ;;  %v795_v8 = vmul.f32 0.17677669, %v437_v38  ;;  %v2272_v38 = vld [vmem:[%s2743_s23 + $0x68] sm:$0xff] }
  0xe7   : > { %v2728_v40 = vsel %vm847_vm7, %v814_v35, -1e+30  ;;  %v2762_v5 = vsel %vm847_vm7, %v824_v53, -1e+30  ;;  %1595 = vmatpush.bf16.msrb.mxu2 %v2272_v38  ;;  %v839_v53 = vadd.s32 72, %v2582_v61 }
  0xe8   : > { %v988_v49 = vsel %vm912_vm2, %v2728_v40, -inf  ;;  %v2758_v0 = vsel %vm848_vm8, %v805_v50, -1e+30  ;;  %v1018_v18 = vsel %vm912_vm2, %v2762_v5, -inf  ;;  %v2773_v11 = vsel %vm848_vm8, %v795_v8, -1e+30 }
  0xe9   : > { %956 = vmax.xlane.f32.xlu1 %v955_v29  ;;  %v961_v13 = vsel %vm912_vm2, %v2758_v0, -inf  ;;  %v838_v29 = vadd.s32 64, %v2582_v61  ;;  %v931_v31 = vsel %vm912_vm2, %v2773_v11, -inf  ;;  %vm851_vm11 = vcmp.le.s32.totalorder %v2584_v62, %v839_v53  ;;  %v2265_v53 = vld [vmem:[%s2743_s23 + $0x30] sm:$0xff] }
  0xea   : > { %1016 = vmax.xlane.f32.xlu0 %v1015_v32  ;;  %959 = vmax.xlane.f32.xlu2 %v958_v34 }
  0xeb   : > { %vm850_vm10 = vcmp.le.s32.totalorder %v2584_v62, %v838_v29  ;;  %v2259_v62 = vld [vmem:[%s2743_s23] sm:$0xff] }
  0xec   : > { %v665_v41 = vpop.f32.mrf.mxu2  ;;  %v779_v42 = vpop.f32.mrf.mxu3 }
  0xed   : > { %v825_v52 = vmul.f32 0.17677669, %v779_v42  ;;  %v439_v6 = vpop.f32.mrf.mxu0  ;;  %v815_v17 = vmul.f32 0.17677669, %v665_v41  ;;  %v2277_v41 = vld [vmem:[%s2743_s23 + $0x90] sm:$0xff] }
  0xee   : > { %v796_v20 = vmul.f32 0.17677669, %v439_v6  ;;  %1699 = vmatpush.bf16.msrb.mxu3 %v2277_v41 }
  0xef   : > { %v2754_v63 = vsel %vm848_vm8, %v825_v52, -1e+30  ;;  %v2778_v21 = vsel %vm848_vm8, %v815_v17, -1e+30 }
  0xf0   : > { %v1021_v10 = vsel %vm912_vm2, %v2754_v63, -inf  ;;  %v2782_v22 = vsel %vm849_vm9, %v796_v20, -1e+30  ;;  %v991_v32 = vsel %vm912_vm2, %v2778_v21, -inf }
  0xf1   : > { %986 = vmax.xlane.f32.xlu1 %v985_v46  ;;  %v934_v34 = vsel %vm912_vm2, %v2782_v22, -inf  ;;  %v2267_v46 = vld [vmem:[%s2743_s23 + $0x40] sm:$0xff] }
  0xf2   : > { %989 = vmax.xlane.f32.xlu2 %v988_v49  ;;  %929 = vmax.xlane.f32.xlu0 %v928_v54  ;;  %v553_v49 = vpop.f32.mrf.mxu1 }
  0xf3   : > { %1491 = vmatpush.bf16.msrb.mxu1 %v2267_v46 }
  0xf4   : > { %v667_v1 = vpop.f32.mrf.mxu2  ;;  %v781_v2 = vpop.f32.mrf.mxu3 }
  0xf5   : > { %v816_v36 = vmul.f32 0.17677669, %v667_v1  ;;  %v826_v42 = vmul.f32 0.17677669, %v781_v2  ;;  %v442_v55 = vpop.f32.mrf.mxu0  ;;  %v806_v2 = vmul.f32 0.17677669, %v553_v49 }
  0xf6   : > { %v797_v57 = vmul.f32 0.17677669, %v442_v55  ;;  %v2261_v49 = vld [vmem:[%s2743_s23 + $0x10] sm:$0xff]  ;;  %v2276_v55 = vld [vmem:[%s2743_s23 + $0x88] sm:$0xff] }
  0xf7   : > { %v2802_v50 = vsel %vm849_vm9, %v816_v36, -1e+30  ;;  %v2807_v54 = vsel %vm849_vm9, %v826_v42, -1e+30  ;;  %1388 = vmatpush.bf16.msrb.mxu0 %v2261_v49  ;;  %1700 = vmatpush.bf16.msrb.mxu3 %v2276_v55 }
  0xf8   : > { %v994_v58 = vsel %vm912_vm2, %v2802_v50, -inf  ;;  %v1024_v6 = vsel %vm912_vm2, %v2807_v54, -inf  ;;  %v2822_v8 = vsel %vm850_vm10, %v797_v57, -1e+30 }
  0xf9   : > { %1019 = vmax.xlane.f32.xlu1 %v1018_v18  ;;  %v937_v20 = vsel %vm912_vm2, %v2822_v8, -inf }
  0xfa   : > { %1022 = vmax.xlane.f32.xlu2 %v1021_v10  ;;  %962 = vmax.xlane.f32.xlu0 %v961_v13  ;;  %v556_v10 = vpop.f32.mrf.mxu1  ;;  %v2826_v13 = vsel %vm849_vm9, %v806_v2, -1e+30 }
  0xfc   : > { %v784_v24 = vpop.f32.mrf.mxu3  ;;  %v670_v27 = vpop.f32.mrf.mxu2 }
  0xfd   : > { %v817_v35 = vmul.f32 0.17677669, %v670_v27  ;;  %v807_v27 = vmul.f32 0.17677669, %v556_v10  ;;  %v444_v36 = vpop.f32.mrf.mxu0  ;;  %v2270_v10 = vld [vmem:[%s2743_s23 + $0x58] sm:$0xff] }
  0xfe   : > { %v798_v44 = vmul.f32 0.17677669, %v444_v36 }
  0xff   : > { %v2798_v48 = vsel %vm850_vm10, %v817_v35, -1e+30  ;;  %v2836_v14 = vsel %vm850_vm10, %v807_v27, -1e+30 }
 0x100   : > { %v997_v56 = vsel %vm912_vm2, %v2798_v48, -inf  ;;  %v967_v41 = vsel %vm912_vm2, %v2836_v14, -inf }
 0x101   : > { %932 = vmax.xlane.f32.xlu1 %v931_v31  ;;  %v964_v31 = vsel %vm912_vm2, %v2826_v13, -inf }
 0x102   : > { %992 = vmax.xlane.f32.xlu0 %v991_v32  ;;  %935 = vmax.xlane.f32.xlu2 %v934_v34  ;;  %v827_v32 = vmul.f32 0.17677669, %v784_v24  ;;  %v558_v24 = vpop.f32.mrf.mxu1 }
 0x103   : > { %v808_v46 = vmul.f32 0.17677669, %v558_v24 }
 0x104   : > { %v786_v52 = vpop.f32.mrf.mxu3  ;;  %v672_v17 = vpop.f32.mrf.mxu2  ;;  %v2840_v35 = vsel %vm850_vm10, %v827_v32, -1e+30 }
 0x105   : > { %v828_v1 = vmul.f32 0.17677669, %v786_v52  ;;  %v818_v34 = vmul.f32 0.17677669, %v672_v17  ;;  %v1027_v42 = vsel %vm912_vm2, %v2840_v35, -inf  ;;  %v2271_v52 = vld [vmem:[%s2743_s23 + $0x60] sm:$0xff] }
 0x106   : > { %v2861_v57 = vsel %vm851_vm11, %v808_v46, -1e+30  ;;  %1596 = vmatpush.bf16.msrb.mxu2 %v2271_v52  ;;  %v2264_v17 = vld [vmem:[%s2743_s23 + $0x28] sm:$0xff] }
 0x107   : > { %v2818_v61 = vsel %vm851_vm11, %v828_v1, -1e+30  ;;  %v2844_v38 = vsel %vm851_vm11, %v818_v34, -1e+30  ;;  %v970_v2 = vsel %vm912_vm2, %v2861_v57, -inf }
 0x108   : > { %v1030_v18 = vsel %vm912_vm2, %v2818_v61, -inf  ;;  %v1000_v29 = vsel %vm912_vm2, %v2844_v38, -inf }
 0x109   : > { %995 = vmax.xlane.f32.xlu1 %v994_v58  ;;  %v2260_v58 = vld [vmem:[%s2743_s23 + $0x8] sm:$0xff] }
 0x10a   : > { %1025 = vmax.xlane.f32.xlu0 %v1024_v6  ;;  %998 = vmax.xlane.f32.xlu2 %v997_v56  ;;  %v2857_v56 = vsel %vm851_vm11, %v798_v44, -1e+30  ;;  %v2266_v6 = vld [vmem:[%s2743_s23 + $0x38] sm:$0xff] }
 0x10b   : > { %v940_v1 = vsel %vm912_vm2, %v2857_v56, -inf  ;;  %1389 = vmatpush.bf16.msrb.mxu0 %v2260_v58  ;;  %1492 = vmatpush.bf16.msrb.mxu1 %v2266_v6 }
 0x10c   : > { %1597 = vmatpush.bf16.msrb.mxu2 %v2270_v10 }
 0x10f   : > { %1390 = vmatpush.bf16.msrb.mxu0 %v2259_v62  ;;  %1493 = vmatpush.bf16.msrb.mxu1 %v2265_v53 }
 0x111   : > { %965 = vmax.xlane.f32.xlu1 %v964_v31 }
 0x112   : > { %1031 = vmax.xlane.f32.xlu2 %v1030_v18  ;;  %938 = vmax.xlane.f32.xlu0 %v937_v20  ;;  %v2275_v18 = vld [vmem:[%s2743_s23 + $0x80] sm:$0xff]  ;;  %v2269_v20 = vld [vmem:[%s2743_s23 + $0x50] sm:$0xff] }
 0x113   : > { %1494 = vmatpush.bf16.msrb.mxu1 %v2264_v17  ;;  %1701 = vmatpush.bf16.msrb.mxu3 %v2275_v18 }
 0x114   : > { %1598 = vmatpush.bf16.msrb.mxu2 %v2269_v20 }
 0x119   : > { %1028 = vmax.xlane.f32.xlu1 %v1027_v42 }
 0x11a   : > { %968 = vmax.xlane.f32.xlu2 %v967_v41  ;;  %1001 = vmax.xlane.f32.xlu0 %v1000_v29  ;;  %v2274_v41 = vld [vmem:[%s2743_s23 + $0x78] sm:$0xff] }
 0x11b   : > { %1702 = vmatpush.bf16.msrb.mxu3 %v2274_v41 }
 0x121   : > { %941 = vmax.xlane.f32.xlu1 %v940_v1 }
 0x122   : > { %971 = vmax.xlane.f32.xlu0 %v970_v2 }
 0x12d   : > { %v945_v27 = vpop.xlane.xlu0 %944  ;;  %v915_v31 = vpop.xlane.xlu2 %914 }
 0x12e   : > { %v1043_v32 = vsub.f32 %v2591_v3, %v945_v27  ;;  %v1033_v34 = vsub.f32 %v2596_v4, %v915_v31 }
 0x130   : > { %v1093_v36 = vmul.f32 1.442695, %v1043_v32  ;;  %v1073_v24 = vmul.f32 1.442695, %v1033_v34 }
 0x132   : > { %2289 = vpow2.f32 %v1093_v36 }
 0x133   : > { %2291 = vpow2.f32 %v1073_v24 }
 0x134   : > { %v1005_v42 = vpop.xlane.xlu1 %1004 }
 0x135   : > { %v1063_v44 = vsub.f32 %v2607_v15, %v1005_v42  ;;  %v975_v29 = vpop.xlane.xlu0 %974  ;;  %v918_v46 = vpop.xlane.xlu2 %917 }
 0x136   : > { %v1053_v49 = vsub.f32 %v2612_v16, %v975_v29  ;;  %v1034_v52 = vsub.f32 %v2620_v19, %v918_v46 }
 0x137   : > { %v1133_v55 = vmul.f32 1.442695, %v1063_v44 }
 0x138   : > { %v2290_v58 = vpop.eup %2289  ;;  %v1113_v3 = vmul.f32 1.442695, %v1053_v49  ;;  %v1075_v1 = vmul.f32 1.442695, %v1034_v52 }
 0x139   : > { %v2292_v4 = vpop.eup %2291  ;;  %2293 = vpow2.f32 %v1133_v55  ;;  %v1183_v2 = vsel %vm912_vm2, %v2290_v58, 0.0  ;;  %v1283_v49 = vpack.c.bf16 %v2290_v58, %v2290_v58 }
 0x13a   : > { %2295 = vpow2.f32 %v1113_v3  ;;  %1184 = vadd.xlane.f32.xlu2 %v1183_v2  ;;  %v1153_v6 = vsel %vm912_vm2, %v2292_v4, 0.0  ;;  %v1273_v20 = vpack.c.bf16 %v2292_v4, %v2292_v4 }
 0x13b   : > { %2297 = vpow2.f32 %v1075_v1  ;;  %1154 = vadd.xlane.f32.xlu1 %v1153_v6 }
 0x13c   : > { %v948_v15 = vpop.xlane.xlu1 %947  ;;  %v1323_v24 = vunpack.c.l.b16 %v1273_v20 }
 0x13d   : > { %v1044_v62 = vsub.f32 %v2627_v28, %v948_v15  ;;  %v978_v16 = vpop.xlane.xlu0 %977  ;;  %v951_v53 = vpop.xlane.xlu2 %950 }
 0x13e   : > { %v1054_v19 = vsub.f32 %v2632_v30, %v978_v16  ;;  %v1045_v31 = vsub.f32 %v2638_v33, %v951_v53  ;;  %v1427_v53 = vunpack.c.l.b16 %v1283_v49 }
 0x13f   : > { %v2885_v10 = vpop.eup %2293  ;;  %v1095_v17 = vmul.f32 1.442695, %v1044_v62 }
 0x140   : > { %v2296_v18 = vpop.eup %2295  ;;  %v1115_v27 = vmul.f32 1.442695, %v1054_v19  ;;  %v1243_v30 = vsel %vm912_vm2, %v2885_v10, 0.0  ;;  %v1097_v42 = vmul.f32 1.442695, %v1045_v31 }
 0x141   : > { %v2298_v32 = vpop.eup %2297  ;;  %2299 = vpow2.f32 %v1095_v17  ;;  %v1213_v34 = vsel %vm912_vm2, %v2296_v18, 0.0  ;;  %v1293_v1 = vpack.c.bf16 %v2296_v18, %v2296_v18 }
 0x142   : > { %v1274_v36 = vpack.c.bf16 %v2298_v32, %v2298_v32  ;;  %2301 = vpow2.f32 %v1115_v27  ;;  %v1156_v28 = vsel %vm912_vm2, %v2298_v32, 0.0  ;;  %1214 = vadd.xlane.f32.xlu0 %v1213_v34  ;;  %v1303_v27 = vpack.c.bf16 %v2885_v10, %v2885_v10 }
 0x143   : > { %1157 = vadd.xlane.f32.xlu2 %v1156_v28  ;;  %1244 = vadd.xlane.f32.xlu1 %v1243_v30  ;;  %2303 = vpow2.f32 %v1097_v42  ;;  %v1531_v19 = vunpack.c.l.b16 %v1293_v1 }
 0x144   : > { %v1324_v41 = vunpack.c.l.b16 %v1274_v36  ;;  %v1008_v44 = vpop.xlane.xlu1 %1007 }
 0x145   : > { %v1064_v33 = vsub.f32 %v2650_v43, %v1008_v44  ;;  %v981_v29 = vpop.xlane.xlu2 %980  ;;  %v921_v46 = vpop.xlane.xlu0 %920 }
 0x146   : > { %v1035_v52 = vsub.f32 %v2646_v39, %v921_v46  ;;  %v1333_v55 = vpack.c.b16 %v1324_v41, %v1323_v24  ;;  %v1055_v2 = vsub.f32 %v2654_v45, %v981_v29  ;;  %v1635_v46 = vunpack.c.l.b16 %v1303_v27 }
 0x147   : > { %v2300_v3 = vpop.eup %2299  ;;  %v1135_v4 = vmul.f32 1.442695, %v1064_v33 }
 0x148   : > { %v2302_v6 = vpop.eup %2301  ;;  %v1284_v15 = vpack.c.bf16 %v2300_v3, %v2300_v3  ;;  %v1077_v62 = vmul.f32 1.442695, %v1035_v52  ;;  %2137 = vmatmul.msk.bf16.vlgmr.msrb.gmra.mxu0 %vm912_vm2, %v1333_v55  ;;  %v1186_v43 = vsel %vm912_vm2, %v2300_v3, 0.0  ;;  %v1117_v18 = vmul.f32 1.442695, %v1055_v2 }
 0x149   : > { %v1294_v16 = vpack.c.bf16 %v2302_v6, %v2302_v6  ;;  %2305 = vpow2.f32 %v1135_v4  ;;  %v1216_v58 = vsel %vm912_vm2, %v2302_v6, 0.0  ;;  %v2304_v28 = vpop.eup %2303 }
 0x14a   : > { %v1428_v39 = vunpack.c.l.b16 %v1284_v15  ;;  %1187 = vadd.xlane.f32.xlu0 %v1186_v43  ;;  %2307 = vpow2.f32 %v1077_v62 }
 0x14b   : > { %v1532_v17 = vunpack.c.l.b16 %v1294_v16  ;;  %1217 = vadd.xlane.f32.xlu1 %v1216_v58  ;;  %2309 = vpow2.f32 %v1117_v18 }
 0x14c   : > { %v1011_v45 = vpop.xlane.xlu1 %1010  ;;  %v1437_v20 = vpack.c.b16 %v1428_v39, %v1427_v53  ;;  %v1285_v39 = vpack.c.bf16 %v2304_v28, %v2304_v28 }
 0x14d   : > { %v1065_v31 = vsub.f32 %v2665_v51, %v1011_v45  ;;  %v1014_v32 = vpop.xlane.xlu2 %1013  ;;  %v954_v34 = vpop.xlane.xlu0 %953  ;;  %v1541_v36 = vpack.c.b16 %v1532_v17, %v1531_v19 }
 0x14e   : > { %2162 = vmatmul.msk.bf16.vlgmr.msrb.gmra.mxu1 %vm912_vm2, %v1437_v20  ;;  %v1066_v30 = vsub.f32 %v2677_v60, %v1014_v32  ;;  %v1046_v24 = vsub.f32 %v2673_v59, %v954_v34  ;;  %v1189_v59 = vsel %vm912_vm2, %v2304_v28, 0.0  ;;  %v1429_v45 = vunpack.c.l.b16 %v1285_v39 }
 0x14f   : > { %v2306_v41 = vpop.eup %2305  ;;  %v1137_v42 = vmul.f32 1.442695, %v1065_v31  ;;  %2187 = vmatmul.msk.bf16.vlgmr.msrb.gmra.mxu2 %vm912_vm2, %v1541_v36 }
 0x150   : > { %v1304_v44 = vpack.c.bf16 %v2306_v41, %v2306_v41  ;;  %v1139_v33 = vmul.f32 1.442695, %v1066_v30  ;;  %v1099_v10 = vmul.f32 1.442695, %v1046_v24  ;;  %v1246_v51 = vsel %vm912_vm2, %v2306_v41, 0.0  ;;  %v2308_v29 = vpop.eup %2307 }
 0x151   : > { %2311 = vpow2.f32 %v1137_v42  ;;  %1247 = vadd.xlane.f32.xlu2 %v1246_v51  ;;  %v1159_v60 = vsel %vm912_vm2, %v2308_v29, 0.0  ;;  %v2310_v3 = vpop.eup %2309  ;;  %v1275_v30 = vpack.c.bf16 %v2308_v29, %v2308_v29 }
 0x152   : > { %v1636_v49 = vunpack.c.l.b16 %v1304_v44  ;;  %2313 = vpow2.f32 %v1139_v33  ;;  %1160 = vadd.xlane.f32.xlu0 %v1159_v60  ;;  %v1219_v53 = vsel %vm912_vm2, %v2310_v3, 0.0  ;;  %v1295_v34 = vpack.c.bf16 %v2310_v3, %v2310_v3 }
 0x153   : > { %2315 = vpow2.f32 %v1099_v10  ;;  %1190 = vadd.xlane.f32.xlu1 %v1189_v59  ;;  %v1325_v60 = vunpack.c.l.b16 %v1275_v30 }
 0x154   : > { %v924_v52 = vpop.xlane.xlu1 %923  ;;  %v1645_v55 = vpack.c.b16 %v1636_v49, %v1635_v46 }
 0x155   : > { %v1036_v1 = vsub.f32 %v2690_v9, %v924_v52  ;;  %v984_v4 = vpop.xlane.xlu0 %983  ;;  %v927_v2 = vpop.xlane.xlu2 %926 }
 0x156   : > { %2212 = vmatmul.msk.bf16.vlgmr.msrb.gmra.mxu3 %vm912_vm2, %v1645_v55  ;;  %v1056_v6 = vsub.f32 %v2695_v12, %v984_v4  ;;  %v1037_v16 = vsub.f32 %v2686_v7, %v927_v2  ;;  %v1533_v55 = vunpack.c.l.b16 %v1295_v34 }
 0x157   : > { %v2312_v15 = vpop.eup %2311  ;;  %v1079_v62 = vmul.f32 1.442695, %v1036_v1 }
 0x158   : > { %v2912_v43 = vpop.eup %2313  ;;  %v1119_v58 = vmul.f32 1.442695, %v1056_v6  ;;  %v1249_v9 = vsel %vm912_vm2, %v2312_v15, 0.0  ;;  %v1081_v18 = vmul.f32 1.442695, %v1037_v16  ;;  %v1305_v24 = vpack.c.bf16 %v2312_v15, %v2312_v15 }
 0x159   : > { %v2316_v19 = vpop.eup %2315  ;;  %2317 = vpow2.f32 %v1079_v62  ;;  %1220 = vadd.xlane.f32.xlu2 %v1219_v53  ;;  %v1306_v7 = vpack.c.bf16 %v2912_v43, %v2912_v43 }
 0x15a   : > { %2319 = vpow2.f32 %v1119_v58  ;;  %v1286_v17 = vpack.c.bf16 %v2316_v19, %v2316_v19  ;;  %1250 = vadd.xlane.f32.xlu0 %v1249_v9  ;;  %v1192_v33 = vsel %vm912_vm2, %v2316_v19, 0.0  ;;  %v1637_v52 = vunpack.c.l.b16 %v1305_v24 }
 0x15b   : > { %2321 = vpow2.f32 %v1081_v18  ;;  %v1638_v49 = vunpack.c.l.b16 %v1306_v7 }
 0x15c   : > { %v957_v12 = vpop.xlane.xlu1 %956  ;;  %v1430_v20 = vunpack.c.l.b16 %v1286_v17  ;;  %v1252_v17 = vsel %vm912_vm2, %v2912_v43, 0.0 }
 0x15d   : > { %v1047_v27 = vsub.f32 %v2706_v23, %v957_v12  ;;  %v1017_v31 = vpop.xlane.xlu0 %1016  ;;  %v960_v32 = vpop.xlane.xlu2 %959  ;;  %v1646_v2 = vpack.c.b16 %v1638_v49, %v1637_v52 }
 0x15e   : > { %v1048_v36 = vsub.f32 %v2714_v26, %v960_v32  ;;  %v1438_v28 = vpack.c.b16 %v1430_v20, %v1429_v45  ;;  %v1067_v44 = vsub.f32 %v2710_v25, %v1017_v31 }
 0x15f   : > { %v2318_v41 = vpop.eup %2317  ;;  %v1101_v42 = vmul.f32 1.442695, %v1047_v27 }
 0x160   : > { %v2320_v10 = vpop.eup %2319  ;;  %v1103_v51 = vmul.f32 1.442695, %v1048_v36  ;;  %2163 = vmatmul.msk.bf16.gmra.mxu1 %vm912_vm2, %v1438_v28  ;;  %v1162_v23 = vsel %vm912_vm2, %v2318_v41, 0.0  ;;  %v1276_v46 = vpack.c.bf16 %v2318_v41, %v2318_v41  ;;  %v1141_v25 = vmul.f32 1.442695, %v1067_v44 }
 0x161   : > { %2323 = vpow2.f32 %v1101_v42  ;;  %1193 = vadd.xlane.f32.xlu2 %v1192_v33  ;;  %1163 = vadd.xlane.f32.xlu1 %v1162_v23  ;;  %v1222_v26 = vsel %vm912_vm2, %v2320_v10, 0.0  ;;  %v1296_v29 = vpack.c.bf16 %v2320_v10, %v2320_v10  ;;  %v2322_v6 = vpop.eup %2321 }
 0x162   : > { %v1326_v59 = vunpack.c.l.b16 %v1276_v46  ;;  %2325 = vpow2.f32 %v1103_v51  ;;  %1223 = vadd.xlane.f32.xlu0 %v1222_v26  ;;  %v1165_v12 = vsel %vm912_vm2, %v2322_v6, 0.0  ;;  %v1277_v10 = vpack.c.bf16 %v2322_v6, %v2322_v6 }
 0x163   : > { %v1534_v3 = vunpack.c.l.b16 %v1296_v29  ;;  %2327 = vpow2.f32 %v1141_v25 }
 0x164   : > { %v987_v1 = vpop.xlane.xlu1 %986  ;;  %v1334_v4 = vpack.c.b16 %v1326_v59, %v1325_v60  ;;  %v1327_v59 = vunpack.c.l.b16 %v1277_v10 }
 0x165   : > { %v1057_v15 = vsub.f32 %v2724_v37, %v987_v1  ;;  %v990_v62 = vpop.xlane.xlu2 %989  ;;  %v930_v16 = vpop.xlane.xlu0 %929  ;;  %v1542_v58 = vpack.c.b16 %v1534_v3, %v1533_v55 }
 0x166   : > { %2138 = vmatmul.msk.bf16.gmra.mxu0 %vm912_vm2, %v1334_v4  ;;  %2213 = vmatmul.msk.bf16.gmra.mxu3 %vm912_vm2, %v1646_v2  ;;  %v1058_v53 = vsub.f32 %v2728_v40, %v990_v62  ;;  %v1038_v39 = vsub.f32 %v2735_v47, %v930_v16 }
 0x167   : > { %v2324_v19 = vpop.eup %2323  ;;  %v1121_v9 = vmul.f32 1.442695, %v1057_v15  ;;  %2188 = vmatmul.msk.bf16.gmra.mxu2 %vm912_vm2, %v1542_v58 }
 0x168   : > { %v1123_v37 = vmul.f32 1.442695, %v1058_v53  ;;  %v1083_v18 = vmul.f32 1.442695, %v1038_v39  ;;  %v1287_v45 = vpack.c.bf16 %v2324_v19, %v2324_v19  ;;  %v2326_v20 = vpop.eup %2325  ;;  %v1195_v40 = vsel %vm912_vm2, %v2324_v19, 0.0 }
 0x169   : > { %2329 = vpow2.f32 %v1121_v9  ;;  %1166 = vadd.xlane.f32.xlu2 %v1165_v12  ;;  %1253 = vadd.xlane.f32.xlu1 %v1252_v17  ;;  %v1288_v47 = vpack.c.bf16 %v2326_v20, %v2326_v20  ;;  %v2328_v32 = vpop.eup %2327  ;;  %v1198_v53 = vsel %vm912_vm2, %v2326_v20, 0.0 }
 0x16a   : > { %2331 = vpow2.f32 %v1123_v37  ;;  %1196 = vadd.xlane.f32.xlu0 %v1195_v40  ;;  %v1431_v27 = vunpack.c.l.b16 %v1287_v45  ;;  %v1255_v44 = vsel %vm912_vm2, %v2328_v32, 0.0  ;;  %v1307_v4 = vpack.c.bf16 %v2328_v32, %v2328_v32 }
 0x16b   : > { %2333 = vpow2.f32 %v1083_v18  ;;  %v1432_v31 = vunpack.c.l.b16 %v1288_v47 }
 0x16c   : > { %v1020_v7 = vpop.xlane.xlu1 %1019 }
 0x16d   : > { %v1068_v43 = vsub.f32 %v2762_v5, %v1020_v7  ;;  %v1023_v34 = vpop.xlane.xlu2 %1022  ;;  %v963_v36 = vpop.xlane.xlu0 %962  ;;  %v1439_v28 = vpack.c.b16 %v1432_v31, %v1431_v27 }
 0x16e   : > { %v1049_v41 = vsub.f32 %v2758_v0, %v963_v36  ;;  %v1069_v2 = vsub.f32 %v2754_v63, %v1023_v34  ;;  %v1639_v63 = vunpack.c.l.b16 %v1307_v4 }
 0x16f   : > { %v2330_v30 = vpop.eup %2329  ;;  %v1143_v24 = vmul.f32 1.442695, %v1068_v43 }
 0x170   : > { %v2332_v42 = vpop.eup %2331  ;;  %2164 = vmatmul.msk.bf16.gmra.mxu1 %vm912_vm2, %v1439_v28  ;;  %v1225_v33 = vsel %vm912_vm2, %v2330_v30, 0.0  ;;  %v1297_v51 = vpack.c.bf16 %v2330_v30, %v2330_v30  ;;  %v1105_v26 = vmul.f32 1.442695, %v1049_v41 }
 0x171   : > { %v2334_v23 = vpop.eup %2333  ;;  %2335 = vpow2.f32 %v1143_v24  ;;  %1256 = vadd.xlane.f32.xlu2 %v1255_v44  ;;  %1226 = vadd.xlane.f32.xlu1 %v1225_v33  ;;  %v1298_v5 = vpack.c.bf16 %v2332_v42, %v2332_v42  ;;  %v1228_v19 = vsel %vm912_vm2, %v2332_v42, 0.0 }
 0x172   : > { %v1168_v46 = vsel %vm912_vm2, %v2334_v23, 0.0  ;;  %v1278_v49 = vpack.c.bf16 %v2334_v23, %v2334_v23  ;;  %v1535_v0 = vunpack.c.l.b16 %v1297_v51  ;;  %2337 = vpow2.f32 %v1105_v26 }
 0x173   : > { %1169 = vadd.xlane.f32.xlu0 %v1168_v46  ;;  %v1536_v29 = vunpack.c.l.b16 %v1298_v5 }
 0x174   : > { %v933_v60 = vpop.xlane.xlu1 %932  ;;  %v1328_v52 = vunpack.c.l.b16 %v1278_v49 }
 0x175   : > { %v1039_v25 = vsub.f32 %v2773_v11, %v933_v60  ;;  %v993_v55 = vpop.xlane.xlu0 %992  ;;  %v936_v3 = vpop.xlane.xlu2 %935  ;;  %v1543_v1 = vpack.c.b16 %v1536_v29, %v1535_v0 }
 0x176   : > { %v1059_v6 = vsub.f32 %v2778_v21, %v993_v55  ;;  %v1040_v15 = vsub.f32 %v2782_v22, %v936_v3  ;;  %v1335_v62 = vpack.c.b16 %v1328_v52, %v1327_v59  ;;  %v1145_v21 = vmul.f32 1.442695, %v1069_v2 }
 0x177   : > { %v2336_v16 = vpop.eup %2335  ;;  %v1085_v58 = vmul.f32 1.442695, %v1039_v25  ;;  %2189 = vmatmul.msk.bf16.gmra.mxu2 %vm912_vm2, %v1543_v1 }
 0x178   : > { %v1125_v39 = vmul.f32 1.442695, %v1059_v6  ;;  %v1087_v11 = vmul.f32 1.442695, %v1040_v15  ;;  %2139 = vmatmul.msk.bf16.gmra.mxu0 %vm912_vm2, %v1335_v62  ;;  %v1308_v9 = vpack.c.bf16 %v2336_v16, %v2336_v16  ;;  %v1258_v22 = vsel %vm912_vm2, %v2336_v16, 0.0  ;;  %v2950_v12 = vpop.eup %2337 }
 0x179   : > { %2339 = vpow2.f32 %v1085_v58  ;;  %1229 = vadd.xlane.f32.xlu2 %v1228_v19  ;;  %1199 = vadd.xlane.f32.xlu1 %v1198_v53  ;;  %v1201_v34 = vsel %vm912_vm2, %v2950_v12, 0.0  ;;  %v1289_v19 = vpack.c.bf16 %v2950_v12, %v2950_v12 }
 0x17a   : > { %2341 = vpow2.f32 %v1125_v39  ;;  %v1640_v17 = vunpack.c.l.b16 %v1308_v9 }
 0x17b   : > { %2343 = vpow2.f32 %v1087_v11  ;;  %1259 = vadd.xlane.f32.xlu0 %v1258_v22 }
 0x17c   : > { %v996_v37 = vpop.xlane.xlu1 %995  ;;  %v1647_v18 = vpack.c.b16 %v1640_v17, %v1639_v63  ;;  %2345 = vpow2.f32 %v1145_v21 }
 0x17d   : > { %v1060_v45 = vsub.f32 %v2802_v50, %v996_v37  ;;  %v1026_v20 = vpop.xlane.xlu0 %1025  ;;  %v999_v40 = vpop.xlane.xlu2 %998 }
 0x17e   : > { %2214 = vmatmul.msk.bf16.gmra.mxu3 %vm912_vm2, %v1647_v18  ;;  %v1070_v47 = vsub.f32 %v2807_v54, %v1026_v20  ;;  %v1061_v7 = vsub.f32 %v2798_v48, %v999_v40 }
 0x17f   : > { %v2340_v27 = vpop.eup %2339  ;;  %v1127_v31 = vmul.f32 1.442695, %v1060_v45 }
 0x180   : > { %v2342_v32 = vpop.eup %2341  ;;  %v1147_v43 = vmul.f32 1.442695, %v1070_v47  ;;  %v1171_v36 = vsel %vm912_vm2, %v2340_v27, 0.0  ;;  %v1279_v28 = vpack.c.bf16 %v2340_v27, %v2340_v27  ;;  %v1129_v54 = vmul.f32 1.442695, %v1061_v7 }
 0x181   : > { %v2344_v50 = vpop.eup %2343  ;;  %2347 = vpow2.f32 %v1127_v31  ;;  %1202 = vadd.xlane.f32.xlu2 %v1201_v34  ;;  %1172 = vadd.xlane.f32.xlu1 %v1171_v36  ;;  %v1231_v30 = vsel %vm912_vm2, %v2342_v32, 0.0  ;;  %v1299_v46 = vpack.c.bf16 %v2342_v32, %v2342_v32 }
 0x182   : > { %2349 = vpow2.f32 %v1147_v43  ;;  %v1280_v24 = vpack.c.bf16 %v2344_v50, %v2344_v50  ;;  %v2346_v48 = vpop.eup %2345  ;;  %v1329_v42 = vunpack.c.l.b16 %v1279_v28  ;;  %v1174_v59 = vsel %vm912_vm2, %v2344_v50, 0.0 }
 0x183   : > { %1232 = vadd.xlane.f32.xlu0 %v1231_v30  ;;  %2351 = vpow2.f32 %v1129_v54  ;;  %v1309_v29 = vpack.c.bf16 %v2346_v48, %v2346_v48  ;;  %v1537_v55 = vunpack.c.l.b16 %v1299_v46 }
 0x184   : > { %v966_v41 = vpop.xlane.xlu1 %965  ;;  %v1330_v44 = vunpack.c.l.b16 %v1280_v24 }
 0x185   : > { %v1050_v33 = vsub.f32 %v2826_v13, %v966_v41  ;;  %v1032_v10 = vpop.xlane.xlu2 %1031  ;;  %v939_v51 = vpop.xlane.xlu0 %938  ;;  %v1261_v13 = vsel %vm912_vm2, %v2346_v48, 0.0  ;;  %v1641_v1 = vunpack.c.l.b16 %v1309_v29 }
 0x186   : > { %v1072_v23 = vsub.f32 %v2818_v61, %v1032_v10  ;;  %v1336_v5 = vpack.c.b16 %v1330_v44, %v1329_v42  ;;  %v1041_v0 = vsub.f32 %v2822_v8, %v939_v51 }
 0x187   : > { %v2348_v49 = vpop.eup %2347  ;;  %v1107_v26 = vmul.f32 1.442695, %v1050_v33 }
 0x188   : > { %v2963_v60 = vpop.eup %2349  ;;  %2140 = vmatmul.msk.bf16.gmra.mxu0 %vm912_vm2, %v1336_v5  ;;  %v1300_v52 = vpack.c.bf16 %v2348_v49, %v2348_v49  ;;  %v1151_v25 = vmul.f32 1.442695, %v1072_v23  ;;  %v1089_v8 = vmul.f32 1.442695, %v1041_v0 }
 0x189   : > { %2353 = vpow2.f32 %v1107_v26  ;;  %1175 = vadd.xlane.f32.xlu2 %v1174_v59  ;;  %1262 = vadd.xlane.f32.xlu1 %v1261_v13  ;;  %v1310_v61 = vpack.c.bf16 %v2963_v60, %v2963_v60  ;;  %v2352_v2 = vpop.eup %2351 }
 0x18a   : > { %v1538_v3 = vunpack.c.l.b16 %v1300_v52  ;;  %2355 = vpow2.f32 %v1151_v25  ;;  %v1301_v50 = vpack.c.bf16 %v2352_v2, %v2352_v2 }
 0x18b   : > { %v1642_v4 = vunpack.c.l.b16 %v1310_v61  ;;  %2357 = vpow2.f32 %v1089_v8  ;;  %v1264_v8 = vsel %vm912_vm2, %v2963_v60, 0.0 }
 0x18c   : > { %v1029_v6 = vpop.xlane.xlu1 %1028  ;;  %v1544_v15 = vpack.c.b16 %v1538_v3, %v1537_v55 }
 0x18d   : > { %v1071_v62 = vsub.f32 %v2840_v35, %v1029_v6  ;;  %v969_v16 = vpop.xlane.xlu2 %968  ;;  %v1002_v58 = vpop.xlane.xlu0 %1001  ;;  %v1648_v53 = vpack.c.b16 %v1642_v4, %v1641_v1  ;;  %v1237_v35 = vsel %vm912_vm2, %v2352_v2, 0.0 }
 0x18e   : > { %2190 = vmatmul.msk.bf16.gmra.mxu2 %vm912_vm2, %v1544_v15  ;;  %v1051_v39 = vsub.f32 %v2836_v14, %v969_v16  ;;  %v1062_v11 = vsub.f32 %v2844_v38, %v1002_v58  ;;  %v1234_v14 = vsel %vm912_vm2, %v2348_v49, 0.0  ;;  %v1433_v38 = vunpack.c.l.b16 %v1289_v19 }
 0x18f   : > { %v2354_v9 = vpop.eup %2353  ;;  %v1149_v63 = vmul.f32 1.442695, %v1071_v62  ;;  %2215 = vmatmul.msk.bf16.gmra.mxu3 %vm912_vm2, %v1648_v53 }
 0x190   : > { %v1109_v21 = vmul.f32 1.442695, %v1051_v39  ;;  %v1131_v22 = vmul.f32 1.442695, %v1062_v11  ;;  %v1204_v17 = vsel %vm912_vm2, %v2354_v9, 0.0  ;;  %v1290_v37 = vpack.c.bf16 %v2354_v9, %v2354_v9  ;;  %v2356_v12 = vpop.eup %2355 }
 0x191   : > { %2359 = vpow2.f32 %v1149_v63  ;;  %1238 = vadd.xlane.f32.xlu2 %v1237_v35  ;;  %1205 = vadd.xlane.f32.xlu0 %v1204_v17  ;;  %v2358_v40 = vpop.eup %2357  ;;  %v1312_v43 = vpack.c.bf16 %v2356_v12, %v2356_v12  ;;  %v1270_v1 = vsel %vm912_vm2, %v2356_v12, 0.0 }
 0x192   : > { %2361 = vpow2.f32 %v1109_v21  ;;  %1235 = vadd.xlane.f32.xlu1 %v1234_v14  ;;  %v1434_v18 = vunpack.c.l.b16 %v1290_v37  ;;  %v1177_v28 = vsel %vm912_vm2, %v2358_v40, 0.0  ;;  %v1281_v10 = vpack.c.bf16 %v2358_v40, %v2358_v40 }
 0x193   : > { %2363 = vpow2.f32 %v1131_v22  ;;  %v1644_v41 = vunpack.c.l.b16 %v1312_v43 }
 0x194   : > { %v942_v45 = vpop.xlane.xlu1 %941  ;;  %v1440_v20 = vpack.c.b16 %v1434_v18, %v1433_v38  ;;  %v1331_v59 = vunpack.c.l.b16 %v1281_v10 }
 0x195   : > { %v1042_v47 = vsub.f32 %v2857_v56, %v942_v45  ;;  %v972_v7 = vpop.xlane.xlu0 %971 }
 0x196   : > { %2165 = vmatmul.msk.bf16.gmra.mxu1 %vm912_vm2, %v1440_v20  ;;  %v1052_v27 = vsub.f32 %v2861_v57, %v972_v7  ;;  %v1539_v57 = vunpack.c.l.b16 %v1301_v50 }
 0x197   : > { %v2360_v31 = vpop.eup %2359  ;;  %v1091_v32 = vmul.f32 1.442695, %v1042_v47 }
 0x198   : > { %v2362_v34 = vpop.eup %2361  ;;  %v1111_v36 = vmul.f32 1.442695, %v1052_v27  ;;  %v1311_v30 = vpack.c.bf16 %v2360_v31, %v2360_v31  ;;  %v1267_v3 = vsel %vm912_vm2, %v2360_v31, 0.0 }
 0x199   : > { %v2364_v54 = vpop.eup %2363  ;;  %2365 = vpow2.f32 %v1091_v32  ;;  %1178 = vadd.xlane.f32.xlu0 %v1177_v28  ;;  %v1207_v24 = vsel %vm912_vm2, %v2362_v34, 0.0  ;;  %v1291_v23 = vpack.c.bf16 %v2362_v34, %v2362_v34 }
 0x19a   : > { %2367 = vpow2.f32 %v1111_v36  ;;  %1208 = vadd.xlane.f32.xlu1 %v1207_v24  ;;  %v1302_v56 = vpack.c.bf16 %v2364_v54, %v2364_v54  ;;  %v1643_v48 = vunpack.c.l.b16 %v1311_v30  ;;  %v1240_v46 = vsel %vm912_vm2, %v2364_v54, 0.0 }
 0x19b   : > { %v1435_v52 = vunpack.c.l.b16 %v1291_v23 }
 0x19c   : > { %v1540_v42 = vunpack.c.l.b16 %v1302_v56  ;;  %v1649_v44 = vpack.c.b16 %v1644_v41, %v1643_v48 }
 0x19e   : > { %v1545_v33 = vpack.c.b16 %v1540_v42, %v1539_v57 }
 0x19f   : > { %v2366_v51 = vpop.eup %2365  ;;  %2216 = vmatmul.msk.bf16.gmra.mxu3 %vm912_vm2, %v1649_v44 }
 0x1a0   : > { %v2368_v5 = vpop.eup %2367  ;;  %2191 = vmatmul.msk.bf16.gmra.mxu2 %vm912_vm2, %v1545_v33  ;;  %v1282_v49 = vpack.c.bf16 %v2366_v51, %v2366_v51  ;;  %v1180_v0 = vsel %vm912_vm2, %v2366_v51, 0.0 }
 0x1a1   : > { %1241 = vadd.xlane.f32.xlu0 %v1240_v46  ;;  %v1210_v26 = vsel %vm912_vm2, %v2368_v5, 0.0  ;;  %v1292_v29 = vpack.c.bf16 %v2368_v5, %v2368_v5 }
 0x1a2   : > { %1211 = vadd.xlane.f32.xlu2 %v1210_v26  ;;  %1181 = vadd.xlane.f32.xlu1 %v1180_v0  ;;  %v1332_v13 = vunpack.c.l.b16 %v1282_v49 }
 0x1a3   : > { %v1436_v61 = vunpack.c.l.b16 %v1292_v29 }
 0x1a4   : > { %v1337_v25 = vpack.c.b16 %v1332_v13, %v1331_v59 }
 0x1a5   : > { %v1441_v55 = vpack.c.b16 %v1436_v61, %v1435_v52 }
 0x1a6   : > { %2141 = vmatmul.msk.bf16.gmra.mxu0 %vm912_vm2, %v1337_v25 }
 0x1a7   : > { %2166 = vmatmul.msk.bf16.gmra.mxu1 %vm912_vm2, %v1441_v55 }
 0x1a9   : > { %1268 = vadd.xlane.f32.xlu0 %v1267_v3 }
 0x1aa   : > { %1265 = vadd.xlane.f32.xlu2 %v1264_v8  ;;  %1271 = vadd.xlane.f32.xlu1 %v1270_v1 }
 0x1ad   : > { %v1185_v2 = vpop.xlane.xlu2 %1184 }
 0x1ae   : > { %v1155_v4 = vpop.xlane.xlu1 %1154 }
 0x1af   : > { %2369 = vrcp.f32 %v1155_v4 }
 0x1b0   : > { %2371 = vrcp.f32 %v1185_v2 }
 0x1b5   : > { %v1215_v6 = vpop.xlane.xlu0 %1214  ;;  %v2370_v39 = vpop.eup %2369 }
 0x1b6   : > { %v1245_v15 = vpop.xlane.xlu1 %1244  ;;  %v1158_v62 = vpop.xlane.xlu2 %1157 }
 0x1b7   : > { %2373 = vrcp.f32 %v1158_v62  ;;  %v2372_v9 = vpop.eup %2371 }
 0x1b8   : > { %2375 = vrcp.f32 %v1215_v6 }
 0x1bd   : > { %v1188_v16 = vpop.xlane.xlu0 %1187  ;;  %v2374_v17 = vpop.eup %2373 }
 0x1be   : > { %v1218_v58 = vpop.xlane.xlu1 %1217  ;;  %2377 = vrcp.f32 %v1188_v16  ;;  %v2376_v18 = vpop.eup %2375 }
 0x1bf   : > { %2379 = vrcp.f32 %v1245_v15 }
 0x1c0   : > { %2381 = vrcp.f32 %v1218_v58 }
 0x1c4   : > { %v1248_v53 = vpop.xlane.xlu2 %1247  ;;  %v2378_v45 = vpop.eup %2377 }
 0x1c5   : > { %v1392_v60 = vpop.f32.mrf.mxu0  ;;  %v1161_v19 = vpop.xlane.xlu0 %1160 }
 0x1c6   : > { %v1769_v11 = vmul.f32 %v2370_v39, %v1392_v60  ;;  %v1191_v35 = vpop.xlane.xlu1 %1190  ;;  %v2380_v32 = vpop.eup %2379 }
 0x1c7   : > { %2383 = vrcp.f32 %v1191_v35  ;;  %v2382_v34 = vpop.eup %2381 }
 0x1c8   : > { %1809 = vst.msk [vmem:[%s3000_s27] sm:$0xff] %vm382_vm0, %v1769_v11  ;;  %2385 = vrcp.f32 %v1248_v53 }
 0x1c9   : > { %2387 = vrcp.f32 %v1161_v19 }
 0x1cb   : > { %v1496_v63 = vpop.f32.mrf.mxu1 }
 0x1cc   : > { %v1779_v21 = vmul.f32 %v2372_v9, %v1496_v63  ;;  %v1221_v22 = vpop.xlane.xlu2 %1220 }
 0x1cd   : > { %v1394_v37 = vpop.f32.mrf.mxu0  ;;  %v1251_v38 = vpop.xlane.xlu0 %1250 }
 0x1ce   : > { %1819 = vst.msk [vmem:[%s3000_s27 + $0x50] sm:$0xff] %vm382_vm0, %v1779_v21  ;;  %v1770_v14 = vmul.f32 %v2374_v17, %v1394_v37  ;;  %v2384_v24 = vpop.eup %2383 }
 0x1cf   : > { %v2386_v57 = vpop.eup %2385 }
 0x1d0   : > { %1810 = vst.msk [vmem:[%s3000_s27 + $0x8] sm:$0xff] %vm382_vm0, %v1770_v14  ;;  %v2388_v33 = vpop.eup %2387 }
 0x1d2   : > { %v1600_v12 = vpop.f32.mrf.mxu2 }
 0x1d3   : > { %v1498_v20 = vpop.f32.mrf.mxu1  ;;  %v1789_v40 = vmul.f32 %v2376_v18, %v1600_v12 }
 0x1d4   : > { %v1780_v47 = vmul.f32 %v2378_v45, %v1498_v20  ;;  %v1194_v7 = vpop.xlane.xlu2 %1193  ;;  %v1164_v27 = vpop.xlane.xlu1 %1163 }
 0x1d5   : > { %1829 = vst.msk [vmem:[%s3000_s27 + $0xa0] sm:$0xff] %vm382_vm0, %v1789_v40  ;;  %v1224_v31 = vpop.xlane.xlu0 %1223  ;;  %2389 = vrcp.f32 %v1194_v7 }
 0x1d6   : > { %1820 = vst.msk [vmem:[%s3000_s27 + $0x58] sm:$0xff] %vm382_vm0, %v1780_v47  ;;  %2391 = vrcp.f32 %v1251_v38 }
 0x1d7   : > { %2393 = vrcp.f32 %v1221_v22 }
 0x1d8   : > { %2395 = vrcp.f32 %v1164_v27 }
 0x1d9   : > { %v1704_v43 = vpop.f32.mrf.mxu3 }
 0x1da   : > { %v1799_v36 = vmul.f32 %v2380_v32, %v1704_v43  ;;  %v1602_v28 = vpop.f32.mrf.mxu2 }
 0x1db   : > { %v1790_v50 = vmul.f32 %v2382_v34, %v1602_v28  ;;  %v2390_v46 = vpop.eup %2389 }
 0x1dc   : > { %1839 = vst.msk [vmem:[%s3000_s27 + $0xf0] sm:$0xff] %vm382_vm0, %v1799_v36  ;;  %v1167_v30 = vpop.xlane.xlu2 %1166  ;;  %v1254_v54 = vpop.xlane.xlu1 %1253 }
 0x1dd   : > { %1830 = vst.msk [vmem:[%s3000_s27 + $0xa8] sm:$0xff] %vm382_vm0, %v1790_v50  ;;  %v1501_v56 = vpop.f32.mrf.mxu1  ;;  %v1197_v41 = vpop.xlane.xlu0 %1196 }
 0x1de   : > { %v1781_v48 = vmul.f32 %v2384_v24, %v1501_v56  ;;  %2397 = vrcp.f32 %v1197_v41  ;;  %v2392_v29 = vpop.eup %2391 }
 0x1df   : > { %v2394_v13 = vpop.eup %2393  ;;  %2399 = vrcp.f32 %v1254_v54 }
 0x1e0   : > { %1821 = vst.msk [vmem:[%s3000_s27 + $0x60] sm:$0xff] %vm382_vm0, %v1781_v48  ;;  %v2396_v25 = vpop.eup %2395  ;;  %2401 = vrcp.f32 %v1224_v31 }
 0x1e1   : > { %v1706_v42 = vpop.f32.mrf.mxu3  ;;  %2403 = vrcp.f32 %v1167_v30 }
 0x1e2   : > { %v1800_v44 = vmul.f32 %v2386_v57, %v1706_v42 }
 0x1e3   : > { %v1397_v10 = vpop.f32.mrf.mxu0 }
 0x1e4   : > { %1840 = vst.msk [vmem:[%s3000_s27 + $0xf8] sm:$0xff] %vm382_vm0, %v1800_v44  ;;  %v1771_v51 = vmul.f32 %v2388_v33, %v1397_v10  ;;  %v1257_v23 = vpop.xlane.xlu2 %1256  ;;  %v1227_v5 = vpop.xlane.xlu1 %1226 }
 0x1e5   : > { %v1503_v49 = vpop.f32.mrf.mxu1  ;;  %v2398_v4 = vpop.eup %2397 }
 0x1e6   : > { %1811 = vst.msk [vmem:[%s3000_s27 + $0x10] sm:$0xff] %vm382_vm0, %v1771_v51  ;;  %v1782_v26 = vmul.f32 %v2390_v46, %v1503_v49  ;;  %v1170_v0 = vpop.xlane.xlu0 %1169  ;;  %v2400_v62 = vpop.eup %2399 }
 0x1e7   : > { %v2402_v58 = vpop.eup %2401 }
 0x1e8   : > { %1822 = vst.msk [vmem:[%s3000_s27 + $0x68] sm:$0xff] %vm382_vm0, %v1782_v26  ;;  %v2404_v19 = vpop.eup %2403 }
 0x1e9   : > { %v1709_v59 = vpop.f32.mrf.mxu3 }
 0x1ea   : > { %v1801_v52 = vmul.f32 %v2392_v29, %v1709_v59  ;;  %v1605_v61 = vpop.f32.mrf.mxu2 }
 0x1eb   : > { %v1399_v55 = vpop.f32.mrf.mxu0  ;;  %v1791_v3 = vmul.f32 %v2394_v13, %v1605_v61 }
 0x1ec   : > { %1841 = vst.msk [vmem:[%s3000_s27 + $0x100] sm:$0xff] %vm382_vm0, %v1801_v52  ;;  %v1772_v8 = vmul.f32 %v2396_v25, %v1399_v55  ;;  %v1200_v1 = vpop.xlane.xlu1 %1199  ;;  %v1230_v6 = vpop.xlane.xlu2 %1229 }
 0x1ed   : > { %1831 = vst.msk [vmem:[%s3000_s27 + $0xb0] sm:$0xff] %vm382_vm0, %v1791_v3  ;;  %v1506_v2 = vpop.f32.mrf.mxu1  ;;  %2405 = vrcp.f32 %v1200_v1 }
 0x1ee   : > { %1812 = vst.msk [vmem:[%s3000_s27 + $0x18] sm:$0xff] %vm382_vm0, %v1772_v8  ;;  %v1783_v15 = vmul.f32 %v2398_v4, %v1506_v2  ;;  %v1260_v53 = vpop.xlane.xlu0 %1259  ;;  %2407 = vrcp.f32 %v1227_v5 }
 0x1ef   : > { %2409 = vrcp.f32 %v1170_v0 }
 0x1f0   : > { %1823 = vst.msk [vmem:[%s3000_s27 + $0x70] sm:$0xff] %vm382_vm0, %v1783_v15  ;;  %2411 = vrcp.f32 %v1257_v23 }
 0x1f1   : > { %v1711_v16 = vpop.f32.mrf.mxu3  ;;  %2413 = vrcp.f32 %v1230_v6 }
 0x1f2   : > { %v1802_v39 = vmul.f32 %v2400_v62, %v1711_v16  ;;  %v1607_v60 = vpop.f32.mrf.mxu2 }
 0x1f3   : > { %v1792_v11 = vmul.f32 %v2402_v58, %v1607_v60  ;;  %v2406_v63 = vpop.eup %2405 }
 0x1f4   : > { %1842 = vst.msk [vmem:[%s3000_s27 + $0x108] sm:$0xff] %vm382_vm0, %v1802_v39  ;;  %v1173_v9 = vpop.xlane.xlu1 %1172  ;;  %v1203_v37 = vpop.xlane.xlu2 %1202 }
 0x1f5   : > { %1832 = vst.msk [vmem:[%s3000_s27 + $0xb8] sm:$0xff] %vm382_vm0, %v1792_v11  ;;  %v1402_v35 = vpop.f32.mrf.mxu0  ;;  %v1508_v21 = vpop.f32.mrf.mxu1  ;;  %2415 = vrcp.f32 %v1173_v9 }
 0x1f6   : > { %v1773_v22 = vmul.f32 %v2404_v19, %v1402_v35  ;;  %v1784_v17 = vmul.f32 %v2406_v63, %v1508_v21  ;;  %v2408_v14 = vpop.eup %2407  ;;  %v1233_v12 = vpop.xlane.xlu0 %1232  ;;  %2417 = vrcp.f32 %v1260_v53 }
 0x1f7   : > { %v2410_v20 = vpop.eup %2409 }
 0x1f8   : > { %1813 = vst.msk [vmem:[%s3000_s27 + $0x20] sm:$0xff] %vm382_vm0, %v1773_v22  ;;  %v2412_v7 = vpop.eup %2411 }
 0x1f9   : > { %1824 = vst.msk [vmem:[%s3000_s27 + $0x78] sm:$0xff] %vm382_vm0, %v1784_v17  ;;  %v2414_v31 = vpop.eup %2413 }
 0x1fa   : > { %v1610_v38 = vpop.f32.mrf.mxu2 }
 0x1fb   : > { %v1793_v18 = vmul.f32 %v2408_v14, %v1610_v38  ;;  %v2416_v50 = vpop.eup %2415 }
 0x1fc   : > { %v1263_v45 = vpop.xlane.xlu1 %1262  ;;  %v1176_v32 = vpop.xlane.xlu2 %1175 }
 0x1fd   : > { %1833 = vst.msk [vmem:[%s3000_s27 + $0xc0] sm:$0xff] %vm382_vm0, %v1793_v18  ;;  %v1404_v40 = vpop.f32.mrf.mxu0  ;;  %2419 = vrcp.f32 %v1176_v32  ;;  %v2418_v56 = vpop.eup %2417 }
 0x1fe   : > { %v1774_v47 = vmul.f32 %v2410_v20, %v1404_v40  ;;  %2421 = vrcp.f32 %v1233_v12 }
 0x1ff   : > { %2423 = vrcp.f32 %v1263_v45 }
 0x200   : > { %1814 = vst.msk [vmem:[%s3000_s27 + $0x28] sm:$0xff] %vm382_vm0, %v1774_v47  ;;  %2425 = vrcp.f32 %v1203_v37 }
 0x201   : > { %v1714_v27 = vpop.f32.mrf.mxu3 }
 0x202   : > { %v1803_v43 = vmul.f32 %v2412_v7, %v1714_v27  ;;  %v1612_v34 = vpop.f32.mrf.mxu2 }
 0x203   : > { %v1794_v36 = vmul.f32 %v2414_v31, %v1612_v34  ;;  %v2420_v44 = vpop.eup %2419 }
 0x204   : > { %1843 = vst.msk [vmem:[%s3000_s27 + $0x110] sm:$0xff] %vm382_vm0, %v1803_v43  ;;  %v1206_v28 = vpop.xlane.xlu0 %1205  ;;  %v1239_v57 = vpop.xlane.xlu2 %1238 }
 0x205   : > { %1834 = vst.msk [vmem:[%s3000_s27 + $0xc8] sm:$0xff] %vm382_vm0, %v1794_v36  ;;  %v1236_v30 = vpop.xlane.xlu1 %1235  ;;  %v1407_v54 = vpop.f32.mrf.mxu0 }
 0x206   : > { %v1775_v24 = vmul.f32 %v2416_v50, %v1407_v54  ;;  %v2422_v23 = vpop.eup %2421  ;;  %2427 = vrcp.f32 %v1236_v30 }
 0x207   : > { %v2424_v46 = vpop.eup %2423  ;;  %2429 = vrcp.f32 %v1206_v28 }
 0x208   : > { %1815 = vst.msk [vmem:[%s3000_s27 + $0x30] sm:$0xff] %vm382_vm0, %v1775_v24  ;;  %v2426_v0 = vpop.eup %2425  ;;  %2431 = vrcp.f32 %v1239_v57 }
 0x209   : > { %v1716_v48 = vpop.f32.mrf.mxu3 }
 0x20a   : > { %v1804_v41 = vmul.f32 %v2418_v56, %v1716_v48 }
 0x20c   : > { %1844 = vst.msk [vmem:[%s3000_s27 + $0x118] sm:$0xff] %vm382_vm0, %v1804_v41  ;;  %v1179_v42 = vpop.xlane.xlu0 %1178  ;;  %v2428_v55 = vpop.eup %2427 }
 0x20d   : > { %v1409_v33 = vpop.f32.mrf.mxu0  ;;  %v1209_v10 = vpop.xlane.xlu1 %1208  ;;  %2433 = vrcp.f32 %v1179_v42 }
 0x20e   : > { %v1776_v51 = vmul.f32 %v2420_v44, %v1409_v33  ;;  %v2430_v4 = vpop.eup %2429 }
 0x20f   : > { %v2432_v16 = vpop.eup %2431 }
 0x210   : > { %1816 = vst.msk [vmem:[%s3000_s27 + $0x38] sm:$0xff] %vm382_vm0, %v1776_v51 }
 0x211   : > { %v1615_v5 = vpop.f32.mrf.mxu2 }
 0x212   : > { %v1795_v49 = vmul.f32 %v2422_v23, %v1615_v5  ;;  %v1719_v26 = vpop.f32.mrf.mxu3 }
 0x213   : > { %v1511_v29 = vpop.f32.mrf.mxu1  ;;  %v1805_v59 = vmul.f32 %v2424_v46, %v1719_v26  ;;  %v2434_v53 = vpop.eup %2433 }
 0x214   : > { %1835 = vst.msk [vmem:[%s3000_s27 + $0xd0] sm:$0xff] %vm382_vm0, %v1795_v49  ;;  %v1785_v13 = vmul.f32 %v2426_v0, %v1511_v29  ;;  %v1242_v52 = vpop.xlane.xlu0 %1241 }
 0x215   : > { %1845 = vst.msk [vmem:[%s3000_s27 + $0x120] sm:$0xff] %vm382_vm0, %v1805_v59  ;;  %v1212_v61 = vpop.xlane.xlu2 %1211  ;;  %v1182_v25 = vpop.xlane.xlu1 %1181 }
 0x216   : > { %1825 = vst.msk [vmem:[%s3000_s27 + $0x80] sm:$0xff] %vm382_vm0, %v1785_v13 }
 0x219   : > { %v1617_v3 = vpop.f32.mrf.mxu2 }
 0x21a   : > { %v1796_v8 = vmul.f32 %v2428_v55, %v1617_v3  ;;  %v1721_v1 = vpop.f32.mrf.mxu3 }
 0x21b   : > { %v1513_v2 = vpop.f32.mrf.mxu1 }
 0x21c   : > { %1836 = vst.msk [vmem:[%s3000_s27 + $0xd8] sm:$0xff] %vm382_vm0, %v1796_v8  ;;  %v1786_v6 = vmul.f32 %v2430_v4, %v1513_v2  ;;  %v1269_v15 = vpop.xlane.xlu0 %1268 }
 0x21d   : > { %2435 = vrcp.f32 %v1269_v15  ;;  %v1266_v62 = vpop.xlane.xlu2 %1265  ;;  %v1272_v58 = vpop.xlane.xlu1 %1271 }
 0x21e   : > { %1826 = vst.msk [vmem:[%s3000_s27 + $0x88] sm:$0xff] %vm382_vm0, %v1786_v6  ;;  %2437 = vrcp.f32 %v1266_v62 }
 0x21f   : > { %2439 = vrcp.f32 %v1209_v10 }
 0x220   : > { %2441 = vrcp.f32 %v1242_v52 }
 0x221   : > { %2443 = vrcp.f32 %v1272_v58 }
 0x222   : > { %v1724_v39 = vpop.f32.mrf.mxu3  ;;  %2445 = vrcp.f32 %v1182_v25 }
 0x223   : > { %v2436_v60 = vpop.eup %2435  ;;  %v1412_v11 = vpop.f32.mrf.mxu0  ;;  %2447 = vrcp.f32 %v1212_v61 }
 0x224   : > { %v1620_v19 = vpop.f32.mrf.mxu2  ;;  %v2438_v9 = vpop.eup %2437  ;;  %v1777_v63 = vmul.f32 %v2434_v53, %v1412_v11  ;;  %v1807_v37 = vmul.f32 %v2436_v60, %v1724_v39 }
 0x225   : > { %v1797_v35 = vmul.f32 %v2432_v16, %v1620_v19  ;;  %v1516_v21 = vpop.f32.mrf.mxu1  ;;  %v2440_v22 = vpop.eup %2439  ;;  %v1806_v17 = vmul.f32 %v2438_v9, %v1721_v1 }
 0x226   : > { %1817 = vst.msk [vmem:[%s3000_s27 + $0x40] sm:$0xff] %vm382_vm0, %v1777_v63  ;;  %v1787_v14 = vmul.f32 %v2440_v22, %v1516_v21  ;;  %v2442_v38 = vpop.eup %2441 }
 0x227   : > { %1846 = vst.msk [vmem:[%s3000_s27 + $0x128] sm:$0xff] %vm382_vm0, %v1806_v17  ;;  %v2444_v18 = vpop.eup %2443 }
 0x228   : > { %1837 = vst.msk [vmem:[%s3000_s27 + $0xe0] sm:$0xff] %vm382_vm0, %v1797_v35  ;;  %v2446_v45 = vpop.eup %2445 }
 0x229   : > { %1847 = vst.msk [vmem:[%s3000_s27 + $0x130] sm:$0xff] %vm382_vm0, %v1807_v37  ;;  %v2448_v7 = vpop.eup %2447 }
 0x22a   : > { %1827 = vst.msk [vmem:[%s3000_s27 + $0x90] sm:$0xff] %vm382_vm0, %v1787_v14  ;;  %v1726_v12 = vpop.f32.mrf.mxu3 }
 0x22b   : > { %v1414_v20 = vpop.f32.mrf.mxu0  ;;  %v1808_v47 = vmul.f32 %v2444_v18, %v1726_v12 }
 0x22c   : > { %v1622_v40 = vpop.f32.mrf.mxu2  ;;  %v1778_v27 = vmul.f32 %v2446_v45, %v1414_v20 }
 0x22d   : > { %v1798_v31 = vmul.f32 %v2442_v38, %v1622_v40  ;;  %v1518_v32 = vpop.f32.mrf.mxu1  ;;  %1848 = vst.msk [vmem:[%s3000_s27 + $0x138] sm:$0xff] %vm382_vm0, %v1808_v47 }
 0x22e   : > { %v1788_v43 = vmul.f32 %v2448_v7, %v1518_v32  ;;  %1818 = vst.msk [vmem:[%s3000_s27 + $0x48] sm:$0xff] %vm382_vm0, %v1778_v27 }
 0x22f   : > { %1838 = vst.msk [vmem:[%s3000_s27 + $0xe8] sm:$0xff] %vm382_vm0, %v1798_v31 }
 0x230   : > { %1828 = vst.msk [vmem:[%s3000_s27 + $0x98] sm:$0xff] %vm382_vm0, %v1788_v43 }
 0x231 PF: > { %s13_s12 = sadd.s32 1, %s2455_s12  }
 0x232   : > { %p10_p4 = scmp.ge.s32.totalorder %s13_s12, 4  }
 0x234   :  { %12 = sbr.rel (!%p10_p4) target bundleno = 1 (0x1), region = 68 }

// kernel: forward.21
= control target key start
LH: loop header
LB: loop body
LE: loop exit
PB: predicated region body
PF: predicated region fallthrough
CT: control target
= control target key end

     0   :  { %v558_v20 = vmov 128.0   ;;  %s1196_s0 = inlined_call_operand.vmem [shape: f32[160,128], index: 0, kind: input, shape index: {}]   ;;  %s1197_s1 = inlined_call_operand.vmem [shape: f32[1,128], index: 1, kind: input, shape index: {}]   ;;  %s1198_s2 = inlined_call_operand.vmem [shape: f32[1,128], index: 2, kind: input, shape index: {}]   ;;  %s1199_s3 = inlined_call_operand.vmem [shape: f32[160,128], index: 3, kind: output, shape index: {}]  }
   0x1   :  { %v582_v0 = vld [vmem:[%s1196_s0 + $0x20] sm:$0xff]  ;;  %v16_v1 = vld [vmem:[%s1196_s0 + $0x10] sm:$0xff]  ;;  %v19_v3 = vld [vmem:[%s1196_s0 + $0x28] sm:$0xff]  ;;  %516 = vrcp.f32 %v558_v20 }
   0x2   :  { %v14_v2 = vld [vmem:[%s1196_s0] sm:$0xff]  ;;  %42 = vadd.xlane.f32.xlu2 %v582_v0  ;;  %38 = vadd.xlane.f32.xlu1 %v16_v1  ;;  %v17_v4 = vld [vmem:[%s1196_s0 + $0x18] sm:$0xff]  ;;  %v600_v5 = vld [vmem:[%s1196_s0 + $0x8] sm:$0xff] }
   0x3   :  { %34 = vadd.xlane.f32.xlu0 %v14_v2  ;;  %v606_v6 = vld [vmem:[%s1196_s0 + $0x40] sm:$0xff]  ;;  %v611_v7 = vld [vmem:[%s1196_s0 + $0x38] sm:$0xff]  ;;  %v616_v8 = vld [vmem:[%s1196_s0 + $0x30] sm:$0xff] }
   0x4   :  { %v624_v9 = vld [vmem:[%s1196_s0 + $0x58] sm:$0xff]  ;;  %v629_v10 = vld [vmem:[%s1196_s0 + $0x50] sm:$0xff]  ;;  %v634_v11 = vld [vmem:[%s1196_s0 + $0x48] sm:$0xff] }
   0x5   :  { %v642_v12 = vld [vmem:[%s1196_s0 + $0x70] sm:$0xff]  ;;  %v647_v13 = vld [vmem:[%s1196_s0 + $0x68] sm:$0xff]  ;;  %v652_v14 = vld [vmem:[%s1196_s0 + $0x60] sm:$0xff] }
   0x6   :  { %v660_v15 = vld [vmem:[%s1196_s0 + $0x88] sm:$0xff]  ;;  %v665_v16 = vld [vmem:[%s1196_s0 + $0x80] sm:$0xff]  ;;  %v670_v17 = vld [vmem:[%s1196_s0 + $0x78] sm:$0xff] }
   0x7   :  { %v678_v18 = vld [vmem:[%s1196_s0 + $0x98] sm:$0xff]  ;;  %v683_v19 = vld [vmem:[%s1196_s0 + $0x90] sm:$0xff]  ;;  %v517_v21 = vpop.eup %516 }
   0x8   :  { %v75_v22 = vmul.f32 128.0, %v517_v21  ;;  %vm79_vm0 = vweird.f32 %v517_v21 }
   0xa   :  { %44 = vadd.xlane.f32.xlu2 %v19_v3  ;;  %40 = vadd.xlane.f32.xlu1 %v17_v4  ;;  %v76_v23 = vsub.f32 1.0, %v75_v22 }
   0xb   :  { %36 = vadd.xlane.f32.xlu0 %v600_v5 }
   0xc   :  { %v77_v24 = vmul.f32 %v517_v21, %v76_v23 }
   0xe   :  { %v78_v25 = vadd.f32 %v517_v21, %v77_v24 }
  0x10   :  { %v687_v26 = vsel %vm79_vm0, %v517_v21, %v78_v25 }
  0x12   :  { %50 = vadd.xlane.f32.xlu2 %v606_v6  ;;  %48 = vadd.xlane.f32.xlu1 %v611_v7 }
  0x13   :  { %46 = vadd.xlane.f32.xlu0 %v616_v8 }
  0x1a   :  { %56 = vadd.xlane.f32.xlu2 %v624_v9  ;;  %54 = vadd.xlane.f32.xlu1 %v629_v10 }
  0x1b   :  { %52 = vadd.xlane.f32.xlu0 %v634_v11 }
  0x22   :  { %62 = vadd.xlane.f32.xlu2 %v642_v12  ;;  %60 = vadd.xlane.f32.xlu1 %v647_v13 }
  0x23   :  { %58 = vadd.xlane.f32.xlu0 %v652_v14 }
  0x2a   :  { %68 = vadd.xlane.f32.xlu2 %v660_v15  ;;  %66 = vadd.xlane.f32.xlu1 %v665_v16 }
  0x2b   :  { %64 = vadd.xlane.f32.xlu0 %v670_v17 }
  0x32   :  { %72 = vadd.xlane.f32.xlu1 %v678_v18 }
  0x33   :  { %70 = vadd.xlane.f32.xlu0 %v683_v19 }
  0x75   :  { %v43_v27 = vpop.xlane.xlu2 %42  ;;  %v39_v28 = vpop.xlane.xlu1 %38 }
  0x76   :  { %v83_v29 = vmul.f32 %v687_v26, %v39_v28  ;;  %v35_v30 = vpop.xlane.xlu0 %34  ;;  %v85_v44 = vmul.f32 %v687_v26, %v43_v27 }
  0x77   :  { %v81_v31 = vmul.f32 %v687_v26, %v35_v30 }
  0x78   :  { %v691_v32 = vsub.f32 %v16_v1, %v83_v29  ;;  %v717_v49 = vsub.f32 %v582_v0, %v85_v44 }
  0x79   :  { %v693_v33 = vsub.f32 %v14_v2, %v81_v31 }
  0x7a   :  { %v123_v34 = vmul.f32 %v691_v32, %v691_v32  ;;  %v125_v57 = vmul.f32 %v717_v49, %v717_v49 }
  0x7b   :  { %v121_v35 = vmul.f32 %v693_v33, %v693_v33 }
  0x7c   :  { %145 = vadd.xlane.f32.xlu1 %v123_v34 }
  0x7d   :  { %141 = vadd.xlane.f32.xlu2 %v121_v35  ;;  %v45_v36 = vpop.xlane.xlu2 %44  ;;  %v41_v37 = vpop.xlane.xlu1 %40 }
  0x7e   :  { %v86_v38 = vmul.f32 %v687_v26, %v45_v36  ;;  %v84_v39 = vmul.f32 %v687_v26, %v41_v37  ;;  %v37_v40 = vpop.xlane.xlu0 %36 }
  0x7f   :  { %v82_v41 = vmul.f32 %v687_v26, %v37_v40 }
  0x80   :  { %v702_v42 = vsub.f32 %v19_v3, %v86_v38  ;;  %v704_v43 = vsub.f32 %v17_v4, %v84_v39 }
  0x81   :  { %v708_v45 = vsub.f32 %v600_v5, %v82_v41 }
  0x82   :  { %v126_v46 = vmul.f32 %v702_v42, %v702_v42  ;;  %v124_v47 = vmul.f32 %v704_v43, %v704_v43 }
  0x83   :  { %v122_v48 = vmul.f32 %v708_v45, %v708_v45 }
  0x84   :  { %151 = vadd.xlane.f32.xlu1 %v126_v46 }
  0x85   :  { %147 = vadd.xlane.f32.xlu2 %v124_v47  ;;  %143 = vadd.xlane.f32.xlu0 %v122_v48  ;;  %v51_v50 = vpop.xlane.xlu2 %50  ;;  %v49_v51 = vpop.xlane.xlu1 %48 }
  0x86   :  { %v89_v52 = vmul.f32 %v687_v26, %v51_v50  ;;  %v47_v53 = vpop.xlane.xlu0 %46  ;;  %v88_v58 = vmul.f32 %v687_v26, %v49_v51 }
  0x87   :  { %v87_v54 = vmul.f32 %v687_v26, %v47_v53 }
  0x88   :  { %v722_v55 = vsub.f32 %v606_v6, %v89_v52  ;;  %v735_v62 = vsub.f32 %v611_v7, %v88_v58 }
  0x89   :  { %v725_v56 = vsub.f32 %v616_v8, %v87_v54 }
  0x8a   :  { %v129_v59 = vmul.f32 %v722_v55, %v722_v55  ;;  %v128_v5 = vmul.f32 %v735_v62, %v735_v62 }
  0x8b   :  { %v127_v60 = vmul.f32 %v725_v56, %v725_v56 }
  0x8c   :  { %157 = vadd.xlane.f32.xlu1 %v129_v59 }
  0x8d   :  { %149 = vadd.xlane.f32.xlu0 %v125_v57  ;;  %153 = vadd.xlane.f32.xlu2 %v127_v60  ;;  %v57_v61 = vpop.xlane.xlu2 %56  ;;  %v55_v63 = vpop.xlane.xlu1 %54 }
  0x8e   :  { %v92_v0 = vmul.f32 %v687_v26, %v57_v61  ;;  %v53_v1 = vpop.xlane.xlu0 %52  ;;  %v91_v6 = vmul.f32 %v687_v26, %v55_v63 }
  0x8f   :  { %v90_v2 = vmul.f32 %v687_v26, %v53_v1 }
  0x90   :  { %v740_v3 = vsub.f32 %v624_v9, %v92_v0  ;;  %v753_v9 = vsub.f32 %v629_v10, %v91_v6 }
  0x91   :  { %v743_v4 = vsub.f32 %v634_v11, %v90_v2 }
  0x92   :  { %v132_v7 = vmul.f32 %v740_v3, %v740_v3  ;;  %v131_v27 = vmul.f32 %v753_v9, %v753_v9 }
  0x93   :  { %v130_v8 = vmul.f32 %v743_v4, %v743_v4 }
  0x94   :  { %163 = vadd.xlane.f32.xlu1 %v132_v7 }
  0x95   :  { %155 = vadd.xlane.f32.xlu0 %v128_v5  ;;  %159 = vadd.xlane.f32.xlu2 %v130_v8  ;;  %v63_v20 = vpop.xlane.xlu2 %62  ;;  %v61_v11 = vpop.xlane.xlu1 %60 }
  0x96   :  { %v95_v21 = vmul.f32 %v687_v26, %v63_v20  ;;  %v59_v22 = vpop.xlane.xlu0 %58  ;;  %v94_v28 = vmul.f32 %v687_v26, %v61_v11 }
  0x97   :  { %v93_v23 = vmul.f32 %v687_v26, %v59_v22 }
  0x98   :  { %v758_v24 = vsub.f32 %v642_v12, %v95_v21  ;;  %v771_v12 = vsub.f32 %v647_v13, %v94_v28 }
  0x99   :  { %v761_v25 = vsub.f32 %v652_v14, %v93_v23 }
  0x9a   :  { %v135_v10 = vmul.f32 %v758_v24, %v758_v24  ;;  %v134_v38 = vmul.f32 %v771_v12, %v771_v12 }
  0x9b   :  { %v133_v29 = vmul.f32 %v761_v25, %v761_v25 }
  0x9c   :  { %169 = vadd.xlane.f32.xlu1 %v135_v10 }
  0x9d   :  { %161 = vadd.xlane.f32.xlu0 %v131_v27  ;;  %165 = vadd.xlane.f32.xlu2 %v133_v29  ;;  %v69_v30 = vpop.xlane.xlu2 %68  ;;  %v67_v14 = vpop.xlane.xlu1 %66 }
  0x9e   :  { %v98_v31 = vmul.f32 %v687_v26, %v69_v30  ;;  %v65_v34 = vpop.xlane.xlu0 %64  ;;  %v97_v39 = vmul.f32 %v687_v26, %v67_v14 }
  0x9f   :  { %v96_v35 = vmul.f32 %v687_v26, %v65_v34 }
  0xa0   :  { %v776_v36 = vsub.f32 %v660_v15, %v98_v31  ;;  %v789_v15 = vsub.f32 %v665_v16, %v97_v39 }
  0xa1   :  { %v779_v37 = vsub.f32 %v670_v17, %v96_v35 }
  0xa2   :  { %v138_v13 = vmul.f32 %v776_v36, %v776_v36  ;;  %v137_v47 = vmul.f32 %v789_v15, %v789_v15 }
  0xa3   :  { %v136_v40 = vmul.f32 %v779_v37, %v779_v37 }
  0xa4   :  { %175 = vadd.xlane.f32.xlu1 %v138_v13 }
  0xa5   :  { %167 = vadd.xlane.f32.xlu0 %v134_v38  ;;  %171 = vadd.xlane.f32.xlu2 %v136_v40  ;;  %v73_v17 = vpop.xlane.xlu1 %72 }
  0xa6   :  { %v71_v41 = vpop.xlane.xlu0 %70  ;;  %v100_v48 = vmul.f32 %v687_v26, %v73_v17  ;;  %v838_v17 = vld [vmem:[%s1197_s1] ss:$0 sm:$0xff] }
  0xa7   :  { %v99_v44 = vmul.f32 %v687_v26, %v71_v41 }
  0xa8   :  { %v801_v16 = vsub.f32 %v678_v18, %v100_v48 }
  0xa9   :  { %v793_v46 = vsub.f32 %v683_v19, %v99_v44 }
  0xaa   :  { %v140_v51 = vmul.f32 %v801_v16, %v801_v16 }
  0xab   :  { %v139_v50 = vmul.f32 %v793_v46, %v793_v46 }
  0xad   :  { %173 = vadd.xlane.f32.xlu0 %v137_v47  ;;  %177 = vadd.xlane.f32.xlu2 %v139_v50 }
  0xb5   :  { %179 = vadd.xlane.f32.xlu0 %v140_v51 }
  0xef   :  { %v146_v52 = vpop.xlane.xlu1 %145 }
  0xf0   :  { %v183_v19 = vmul.f32 %v146_v52, %v687_v26  ;;  %v142_v53 = vpop.xlane.xlu2 %141 }
  0xf1   :  { %v181_v54 = vmul.f32 %v142_v53, %v687_v26 }
  0xf2   :  { %v203_v57 = vadd.f32 1e-05, %v183_v19  ;;  %v855_v19 = vld [vmem:[%s1198_s2] ss:$0 sm:$0xff] }
  0xf3   :  { %v201_v58 = vadd.f32 1e-05, %v181_v54 }
  0xf4   :  { %518 = vrsqrt.f32 %v203_v57  ;;  %vm247_vm1 = vweird.f32 %v203_v57 }
  0xf5   :  { %520 = vrsqrt.f32 %v201_v58  ;;  %vm227_vm3 = vweird.f32 %v201_v58 }
  0xf7   :  { %v152_v59 = vpop.xlane.xlu1 %151 }
  0xf8   :  { %v186_v60 = vmul.f32 %v152_v59, %v687_v26  ;;  %v148_v61 = vpop.xlane.xlu2 %147  ;;  %v144_v18 = vpop.xlane.xlu0 %143 }
  0xf9   :  { %v184_v63 = vmul.f32 %v148_v61, %v687_v26  ;;  %v182_v0 = vmul.f32 %v144_v18, %v687_v26 }
  0xfa   :  { %v519_v1 = vpop.eup %518  ;;  %v810_v2 = vadd.f32 1e-05, %v186_v60 }
  0xfb   :  { %v521_v5 = vpop.eup %520  ;;  %v242_v6 = vmul.f32 %v519_v1, %v203_v57  ;;  %v812_v7 = vadd.f32 1e-05, %v184_v63  ;;  %v814_v8 = vadd.f32 1e-05, %v182_v0  ;;  %vm248_vm2 = vweird.f32 %v519_v1 }
  0xfc   :  { %v222_v20 = vmul.f32 %v521_v5, %v201_v58  ;;  %522 = vrsqrt.f32 %v810_v2  ;;  %vm228_vm4 = vweird.f32 %v521_v5  ;;  %vm277_vm5 = vweird.f32 %v810_v2  ;;  %vm249_vm7 = vmor %vm247_vm1, %vm248_vm2 }
  0xfd   :  { %v243_v11 = vmul.f32 %v519_v1, %v242_v6  ;;  %524 = vrsqrt.f32 %v812_v7  ;;  %vm257_vm6 = vweird.f32 %v812_v7  ;;  %vm229_vm8 = vmor %vm227_vm3, %vm228_vm4  ;;  %vm237_vm9 = vweird.f32 %v814_v8 }
  0xfe   :  { %v223_v21 = vmul.f32 %v521_v5, %v222_v20  ;;  %526 = vrsqrt.f32 %v814_v8 }
  0xff   :  { %v244_v22 = vmul.f32 0.5, %v243_v11  ;;  %v158_v23 = vpop.xlane.xlu1 %157 }
 0x100   :  { %v224_v27 = vmul.f32 0.5, %v223_v21  ;;  %v189_v28 = vmul.f32 %v158_v23, %v687_v26  ;;  %v154_v10 = vpop.xlane.xlu2 %153  ;;  %v150_v29 = vpop.xlane.xlu0 %149 }
 0x101   :  { %v245_v30 = vsub.f32 1.5, %v244_v22  ;;  %v187_v14 = vmul.f32 %v154_v10, %v687_v26  ;;  %v185_v48 = vmul.f32 %v150_v29, %v687_v26 }
 0x102   :  { %v821_v31 = vpop.eup %522  ;;  %v225_v34 = vsub.f32 1.5, %v224_v27  ;;  %v824_v35 = vadd.f32 1e-05, %v189_v28 }
 0x103   :  { %v826_v38 = vpop.eup %524  ;;  %v246_v39 = vmul.f32 %v519_v1, %v245_v30  ;;  %v272_v13 = vmul.f32 %v821_v31, %v810_v2  ;;  %v831_v40 = vadd.f32 1e-05, %v187_v14  ;;  %vm278_vm10 = vweird.f32 %v821_v31 }
 0x104   :  { %v833_v41 = vpop.eup %526  ;;  %v226_v44 = vmul.f32 %v521_v5, %v225_v34  ;;  %v252_v47 = vmul.f32 %v826_v38, %v812_v7  ;;  %528 = vrsqrt.f32 %v824_v35  ;;  %vm258_vm11 = vweird.f32 %v826_v38  ;;  %vm876_vm12 = vmor %vm277_vm5, %vm278_vm10 }
 0x105   :  { %v250_v50 = vsel %vm249_vm7, %v519_v1, %v246_v39  ;;  %v273_v51 = vmul.f32 %v821_v31, %v272_v13  ;;  %v232_v52 = vmul.f32 %v833_v41, %v814_v8  ;;  %530 = vrsqrt.f32 %v831_v40  ;;  %vm259_vm0 = vmor %vm257_vm6, %vm258_vm11 }
 0x106   :  { %v423_v53 = vmul.f32 %v250_v50, %v691_v32  ;;  %v230_v54 = vsel %vm229_vm8, %v521_v5, %v226_v44  ;;  %v253_v57 = vmul.f32 %v826_v38, %v252_v47  ;;  %v865_v0 = vadd.f32 1e-05, %v185_v48 }
 0x107   :  { %v421_v58 = vmul.f32 %v230_v54, %v693_v33  ;;  %v274_v59 = vmul.f32 0.5, %v273_v51  ;;  %v233_v60 = vmul.f32 %v833_v41, %v232_v52  ;;  %v164_v61 = vpop.xlane.xlu1 %163  ;;  %vm238_vm13 = vweird.f32 %v833_v41 }
 0x108   :  { %v447_v18 = vmul.f32 %v838_v17, %v423_v53  ;;  %v254_v63 = vmul.f32 0.5, %v253_v57  ;;  %v160_v32 = vpop.xlane.xlu2 %159  ;;  %v156_v1 = vpop.xlane.xlu0 %155  ;;  %v192_v33 = vmul.f32 %v164_v61, %v687_v26  ;;  %532 = vrsqrt.f32 %v865_v0  ;;  %vm239_vm1 = vmor %vm237_vm9, %vm238_vm13 }
 0x109   :  { %v445_v5 = vmul.f32 %v838_v17, %v421_v58  ;;  %v275_v6 = vsub.f32 1.5, %v274_v59  ;;  %v234_v20 = vmul.f32 0.5, %v233_v60  ;;  %vm307_vm14 = vweird.f32 %v824_v35 }
 0x10a   :  { %v869_v11 = vpop.eup %528  ;;  %v471_v21 = vadd.f32 %v855_v19, %v447_v18  ;;  %v255_v23 = vsub.f32 1.5, %v254_v63  ;;  %v892_v30 = vadd.f32 1e-05, %v192_v33  ;;  %v190_v44 = vmul.f32 %v160_v32, %v687_v26 }
 0x10b   :  { %v469_v27 = vadd.f32 %v855_v19, %v445_v5  ;;  %v276_v28 = vmul.f32 %v821_v31, %v275_v6  ;;  %v235_v10 = vsub.f32 1.5, %v234_v20  ;;  %v302_v29 = vmul.f32 %v869_v11, %v824_v35  ;;  %v894_v14 = vpop.eup %530 }
 0x10c   :  { %491 = vst [vmem:[%s1199_s3 + $0x10] sm:$0xff] %v471_v21  ;;  %v256_v2 = vmul.f32 %v826_v38, %v255_v23  ;;  %vm308_vm15 = vweird.f32 %v869_v11  ;;  %v188_v7 = vmul.f32 %v156_v1, %v687_v26  ;;  %534 = vrsqrt.f32 %v892_v30 }
 0x10d   :  { %489 = vst [vmem:[%s1199_s3] sm:$0xff] %v469_v27  ;;  %v280_v34 = vsel %vm876_vm12, %v821_v31, %v276_v28  ;;  %v236_v39 = vmul.f32 %v833_v41, %v235_v10  ;;  %v303_v13 = vmul.f32 %v869_v11, %v302_v29  ;;  %v282_v31 = vmul.f32 %v894_v14, %v831_v40  ;;  %vm936_vm3 = vmor %vm307_vm14, %vm308_vm15 }
 0x10e   :  { %v426_v47 = vmul.f32 %v280_v34, %v702_v42  ;;  %v260_v48 = vsel %vm259_vm0, %v826_v38, %v256_v2  ;;  %v921_v53 = vpop.eup %532  ;;  %vm287_vm2 = vweird.f32 %v831_v40  ;;  %v940_v63 = vadd.f32 1e-05, %v190_v44 }
 0x10f   :  { %v424_v50 = vmul.f32 %v260_v48, %v704_v43  ;;  %v240_v51 = vsel %vm239_vm1, %v833_v41, %v236_v39  ;;  %v304_v52 = vmul.f32 0.5, %v303_v13  ;;  %v170_v42 = vpop.xlane.xlu1 %169  ;;  %v283_v54 = vmul.f32 %v894_v14, %v282_v31 }
 0x110   :  { %v450_v38 = vmul.f32 %v838_v17, %v426_v47  ;;  %v422_v8 = vmul.f32 %v240_v51, %v708_v45  ;;  %v166_v57 = vpop.xlane.xlu2 %165  ;;  %v162_v58 = vpop.xlane.xlu0 %161  ;;  %v262_v43 = vmul.f32 %v921_v53, %v865_v0  ;;  %v945_v6 = vadd.f32 1e-05, %v188_v7 }
 0x111   :  { %v448_v59 = vmul.f32 %v838_v17, %v424_v50  ;;  %v305_v60 = vsub.f32 1.5, %v304_v52  ;;  %v284_v18 = vmul.f32 0.5, %v283_v54  ;;  %vm288_vm4 = vweird.f32 %v894_v14 }
 0x112   :  { %v474_v41 = vadd.f32 %v855_v19, %v450_v38  ;;  %v446_v61 = vmul.f32 %v838_v17, %v422_v8  ;;  %v263_v5 = vmul.f32 %v921_v53, %v262_v43  ;;  %536 = vrsqrt.f32 %v940_v63  ;;  %v535_v33 = vpop.eup %534  ;;  %vm289_vm7 = vmor %vm287_vm2, %vm288_vm4 }
 0x113   :  { %v472_v32 = vadd.f32 %v855_v19, %v448_v59  ;;  %v306_v1 = vmul.f32 %v869_v11, %v305_v60  ;;  %v285_v20 = vsub.f32 1.5, %v284_v18  ;;  %vm267_vm5 = vweird.f32 %v865_v0 }
 0x114   :  { %494 = vst [vmem:[%s1199_s3 + $0x28] sm:$0xff] %v474_v41  ;;  %v470_v35 = vadd.f32 %v855_v19, %v446_v61  ;;  %v264_v22 = vmul.f32 0.5, %v263_v5  ;;  %538 = vrsqrt.f32 %v945_v6  ;;  %vm268_vm6 = vweird.f32 %v921_v53 }
 0x115   :  { %492 = vst [vmem:[%s1199_s3 + $0x18] sm:$0xff] %v472_v32  ;;  %v310_v21 = vsel %vm936_vm3, %v869_v11, %v306_v1  ;;  %v286_v27 = vmul.f32 %v894_v14, %v285_v20  ;;  %v332_v28 = vmul.f32 %v535_v33, %v892_v30  ;;  %v195_v10 = vmul.f32 %v170_v42, %v687_v26  ;;  %vm269_vm9 = vmor %vm267_vm5, %vm268_vm6 }
 0x116   :  { %490 = vst [vmem:[%s1199_s3 + $0x8] sm:$0xff] %v470_v35  ;;  %v429_v23 = vmul.f32 %v310_v21, %v722_v55  ;;  %v265_v11 = vsub.f32 1.5, %v264_v22  ;;  %v193_v29 = vmul.f32 %v166_v57, %v687_v26  ;;  %v191_v2 = vmul.f32 %v162_v58, %v687_v26 }
 0x117   :  { %v176_v34 = vpop.xlane.xlu1 %175  ;;  %v290_v55 = vsel %vm289_vm7, %v894_v14, %v286_v27  ;;  %v333_v13 = vmul.f32 %v535_v33, %v332_v28  ;;  %vm337_vm8 = vweird.f32 %v892_v30  ;;  %v979_v7 = vadd.f32 1e-05, %v195_v10 }
 0x118   :  { %v453_v39 = vmul.f32 %v838_v17, %v429_v23  ;;  %v198_v44 = vmul.f32 %v176_v34, %v687_v26  ;;  %v172_v47 = vpop.xlane.xlu2 %171  ;;  %v168_v48 = vpop.xlane.xlu0 %167  ;;  %v427_v40 = vmul.f32 %v290_v55, %v725_v56  ;;  %v266_v31 = vmul.f32 %v921_v53, %v265_v11 }
 0x119   :  { %v981_v50 = vpop.eup %536  ;;  %v334_v14 = vmul.f32 0.5, %v333_v13  ;;  %vm338_vm10 = vweird.f32 %v535_v33  ;;  %v988_v52 = vadd.f32 1e-05, %v193_v29  ;;  %v996_v54 = vadd.f32 1e-05, %v191_v2 }
 0x11a   :  { %v477_v51 = vadd.f32 %v855_v19, %v453_v39  ;;  %v990_v56 = vpop.eup %538  ;;  %v451_v42 = vmul.f32 %v838_v17, %v427_v40  ;;  %v270_v38 = vsel %vm269_vm9, %v921_v53, %v266_v31  ;;  %v312_v8 = vmul.f32 %v981_v50, %v940_v63  ;;  %vm1009_vm11 = vmor %vm337_vm8, %vm338_vm10 }
 0x11b   :  { %v425_v0 = vmul.f32 %v270_v38, %v717_v49  ;;  %v335_v57 = vsub.f32 1.5, %v334_v14  ;;  %v292_v58 = vmul.f32 %v990_v56, %v945_v6  ;;  %v1004_v59 = vadd.f32 1e-05, %v198_v44 }
 0x11c   :  { %497 = vst [vmem:[%s1199_s3 + $0x40] sm:$0xff] %v477_v51  ;;  %v475_v60 = vadd.f32 %v855_v19, %v451_v42  ;;  %v313_v43 = vmul.f32 %v981_v50, %v312_v8  ;;  %540 = vrsqrt.f32 %v979_v7  ;;  %vm317_vm12 = vweird.f32 %v940_v63 }
 0x11d   :  { %v449_v49 = vmul.f32 %v838_v17, %v425_v0  ;;  %v336_v41 = vmul.f32 %v535_v33, %v335_v57  ;;  %v293_v61 = vmul.f32 %v990_v56, %v292_v58  ;;  %542 = vrsqrt.f32 %v988_v52 }
 0x11e   :  { %495 = vst [vmem:[%s1199_s3 + $0x30] sm:$0xff] %v475_v60  ;;  %v314_v30 = vmul.f32 0.5, %v313_v43  ;;  %vm297_vm13 = vweird.f32 %v945_v6  ;;  %544 = vrsqrt.f32 %v996_v54  ;;  %vm318_vm14 = vweird.f32 %v981_v50 }
 0x11f   :  { %v473_v45 = vadd.f32 %v855_v19, %v449_v49  ;;  %v340_v18 = vsel %vm1009_vm11, %v535_v33, %v336_v41  ;;  %v294_v32 = vmul.f32 0.5, %v293_v61  ;;  %546 = vrsqrt.f32 %v1004_v59  ;;  %vm319_vm3 = vmor %vm317_vm12, %vm318_vm14 }
 0x120   :  { %v178_v1 = vpop.xlane.xlu2 %177  ;;  %v432_v5 = vmul.f32 %v340_v18, %v740_v3  ;;  %v315_v35 = vsub.f32 1.5, %v314_v30  ;;  %v196_v20 = vmul.f32 %v172_v47, %v687_v26  ;;  %v174_v21 = vpop.xlane.xlu0 %173  ;;  %vm298_vm15 = vweird.f32 %v990_v56 }
 0x121   :  { %493 = vst [vmem:[%s1199_s3 + $0x20] sm:$0xff] %v473_v45  ;;  %v295_v22 = vsub.f32 1.5, %v294_v32  ;;  %vm367_vm0 = vweird.f32 %v979_v7  ;;  %vm347_vm1 = vweird.f32 %v988_v52  ;;  %vm397_vm2 = vweird.f32 %v1004_v59  ;;  %vm299_vm4 = vmor %vm297_vm13, %vm298_vm15 }
 0x122   :  { %v1037_v33 = vpop.eup %540  ;;  %v456_v3 = vmul.f32 %v838_v17, %v432_v5  ;;  %v316_v23 = vmul.f32 %v981_v50, %v315_v35  ;;  %v194_v27 = vmul.f32 %v168_v48, %v687_v26  ;;  %v199_v28 = vmul.f32 %v178_v1, %v687_v26 }
 0x123   :  { %v1044_v11 = vpop.eup %542  ;;  %v296_v10 = vmul.f32 %v990_v56, %v295_v22  ;;  %v362_v29 = vmul.f32 %v1037_v33, %v979_v7  ;;  %v1053_v2 = vadd.f32 1e-05, %v196_v20  ;;  %v197_v34 = vmul.f32 %v174_v21, %v687_v26 }
 0x124   :  { %v545_v39 = vpop.eup %544  ;;  %v480_v55 = vadd.f32 %v855_v19, %v456_v3  ;;  %v320_v13 = vsel %vm319_vm3, %v981_v50, %v316_v23  ;;  %vm368_vm5 = vweird.f32 %v1037_v33  ;;  %v342_v63 = vmul.f32 %v1044_v11, %v988_v52 }
 0x125   :  { %v547_v44 = vpop.eup %546  ;;  %v430_v47 = vmul.f32 %v320_v13, %v743_v4  ;;  %v300_v48 = vsel %vm299_vm4, %v990_v56, %v296_v10  ;;  %v363_v40 = vmul.f32 %v1037_v33, %v362_v29  ;;  %v322_v31 = vmul.f32 %v545_v39, %v996_v54  ;;  %vm1087_vm8 = vmor %vm367_vm0, %vm368_vm5 }
 0x126   :  { %500 = vst [vmem:[%s1199_s3 + $0x58] sm:$0xff] %v480_v55  ;;  %v428_v6 = vmul.f32 %v300_v48, %v735_v62  ;;  %v343_v50 = vmul.f32 %v1044_v11, %v342_v63  ;;  %v392_v51 = vmul.f32 %v547_v44, %v1004_v59  ;;  %v1075_v14 = vadd.f32 1e-05, %v194_v27 }
 0x127   :  { %v454_v4 = vmul.f32 %v838_v17, %v430_v47  ;;  %v364_v42 = vmul.f32 0.5, %v363_v40  ;;  %vm348_vm6 = vweird.f32 %v1044_v11  ;;  %v323_v56 = vmul.f32 %v545_v39, %v322_v31 }
 0x128   :  { %v452_v38 = vmul.f32 %v838_v17, %v428_v6  ;;  %v344_v8 = vmul.f32 0.5, %v343_v50  ;;  %v393_v0 = vmul.f32 %v547_v44, %v392_v51  ;;  %548 = vrsqrt.f32 %v1053_v2  ;;  %v180_v41 = vpop.xlane.xlu0 %179  ;;  %vm349_vm10 = vmor %vm347_vm1, %vm348_vm6 }
 0x129   :  { %v478_v62 = vadd.f32 %v855_v19, %v454_v4  ;;  %v365_v57 = vsub.f32 1.5, %v364_v42  ;;  %v324_v58 = vmul.f32 0.5, %v323_v56  ;;  %vm398_vm7 = vweird.f32 %v547_v44 }
 0x12a   :  { %v476_v60 = vadd.f32 %v855_v19, %v452_v38  ;;  %v345_v43 = vsub.f32 1.5, %v344_v8  ;;  %v394_v49 = vmul.f32 0.5, %v393_v0  ;;  %550 = vrsqrt.f32 %v1075_v14  ;;  %vm1115_vm12 = vmor %vm397_vm2, %vm398_vm7 }
 0x12b   :  { %498 = vst [vmem:[%s1199_s3 + $0x48] sm:$0xff] %v478_v62  ;;  %v366_v61 = vmul.f32 %v1037_v33, %v365_v57  ;;  %v325_v30 = vsub.f32 1.5, %v324_v58  ;;  %vm328_vm9 = vweird.f32 %v545_v39  ;;  %v1096_v45 = vadd.f32 1e-05, %v199_v28 }
 0x12c   :  { %496 = vst [vmem:[%s1199_s3 + $0x38] sm:$0xff] %v476_v60  ;;  %v346_v7 = vmul.f32 %v1044_v11, %v345_v43  ;;  %vm327_vm11 = vweird.f32 %v996_v54  ;;  %v395_v18 = vsub.f32 1.5, %v394_v49  ;;  %v1107_v32 = vadd.f32 1e-05, %v197_v34 }
 0x12d   :  { %v370_v1 = vsel %vm1087_vm8, %v1037_v33, %v366_v61  ;;  %v326_v5 = vmul.f32 %v545_v39, %v325_v30  ;;  %552 = vrsqrt.f32 %v1096_v45  ;;  %v200_v52 = vmul.f32 %v180_v41, %v687_v26  ;;  %vm329_vm13 = vmor %vm327_vm11, %vm328_vm9 }
 0x12e   :  { %v549_v54 = vpop.eup %548  ;;  %v435_v20 = vmul.f32 %v370_v1, %v758_v24  ;;  %v350_v21 = vsel %vm349_vm10, %v1044_v11, %v346_v7  ;;  %v396_v22 = vmul.f32 %v547_v44, %v395_v18  ;;  %554 = vrsqrt.f32 %v1107_v32 }
 0x12f   :  { %v433_v59 = vmul.f32 %v350_v21, %v761_v25  ;;  %v330_v33 = vsel %vm329_vm13, %v545_v39, %v326_v5  ;;  %v372_v3 = vmul.f32 %v549_v54, %v1053_v2  ;;  %vm377_vm14 = vweird.f32 %v1053_v2 }
 0x130   :  { %v551_v23 = vpop.eup %550  ;;  %v459_v27 = vmul.f32 %v838_v17, %v435_v20  ;;  %v431_v26 = vmul.f32 %v330_v33, %v753_v9  ;;  %v400_v24 = vsel %vm1115_vm12, %v547_v44, %v396_v22  ;;  %v1137_v39 = vadd.f32 1e-05, %v200_v52 }
 0x131   :  { %v457_v28 = vmul.f32 %v838_v17, %v433_v59  ;;  %v438_v11 = vmul.f32 %v400_v24, %v776_v36  ;;  %v373_v10 = vmul.f32 %v549_v54, %v372_v3  ;;  %v352_v29 = vmul.f32 %v551_v23, %v1075_v14 }
 0x132   :  { %v483_v25 = vadd.f32 %v855_v19, %v459_v27  ;;  %v455_v34 = vmul.f32 %v838_v17, %v431_v26  ;;  %vm378_vm15 = vweird.f32 %v549_v54  ;;  %556 = vrsqrt.f32 %v1137_v39 }
 0x133   :  { %v553_v55 = vpop.eup %552  ;;  %v481_v9 = vadd.f32 %v855_v19, %v457_v28  ;;  %v462_v13 = vmul.f32 %v838_v17, %v438_v11  ;;  %v374_v63 = vmul.f32 0.5, %v373_v10  ;;  %v353_v44 = vmul.f32 %v551_v23, %v352_v29  ;;  %vm379_vm1 = vmor %vm377_vm14, %vm378_vm15 }
 0x134   :  { %v555_v47 = vpop.eup %554  ;;  %503 = vst [vmem:[%s1199_s3 + $0x70] sm:$0xff] %v483_v25  ;;  %v479_v36 = vadd.f32 %v855_v19, %v455_v34  ;;  %v402_v48 = vmul.f32 %v553_v55, %v1096_v45  ;;  %vm358_vm0 = vweird.f32 %v551_v23  ;;  %vm357_vm2 = vweird.f32 %v1075_v14 }
 0x135   :  { %501 = vst [vmem:[%s1199_s3 + $0x60] sm:$0xff] %v481_v9  ;;  %v486_v40 = vadd.f32 %v855_v19, %v462_v13  ;;  %v375_v31 = vsub.f32 1.5, %v374_v63  ;;  %v354_v6 = vmul.f32 0.5, %v353_v44  ;;  %v382_v50 = vmul.f32 %v555_v47, %v1107_v32  ;;  %vm359_vm3 = vmor %vm357_vm2, %vm358_vm0 }
 0x136   :  { %499 = vst [vmem:[%s1199_s3 + $0x50] sm:$0xff] %v479_v36  ;;  %v403_v51 = vmul.f32 %v553_v55, %v402_v48  ;;  %vm407_vm4 = vweird.f32 %v1096_v45  ;;  %vm408_vm5 = vweird.f32 %v553_v55  ;;  %vm388_vm6 = vweird.f32 %v555_v47 }
 0x137   :  { %506 = vst [vmem:[%s1199_s3 + $0x88] sm:$0xff] %v486_v40  ;;  %v376_v4 = vmul.f32 %v549_v54, %v375_v31  ;;  %v355_v42 = vsub.f32 1.5, %v354_v6  ;;  %v383_v56 = vmul.f32 %v555_v47, %v382_v50  ;;  %vm409_vm7 = vmor %vm407_vm4, %vm408_vm5  ;;  %vm387_vm8 = vweird.f32 %v1107_v32 }
 0x138   :  { %v404_v38 = vmul.f32 0.5, %v403_v51  ;;  %v557_v57 = vpop.eup %556  ;;  %vm389_vm9 = vmor %vm387_vm8, %vm388_vm6  ;;  %vm417_vm11 = vweird.f32 %v1137_v39 }
 0x139   :  { %v380_v8 = vsel %vm379_vm1, %v549_v54, %v376_v4  ;;  %v356_v0 = vmul.f32 %v551_v23, %v355_v42  ;;  %v384_v62 = vmul.f32 0.5, %v383_v56  ;;  %v412_v2 = vmul.f32 %v557_v57, %v1137_v39 }
 0x13a   :  { %v436_v58 = vmul.f32 %v380_v8, %v779_v37  ;;  %v405_v60 = vsub.f32 1.5, %v404_v38  ;;  %vm418_vm10 = vweird.f32 %v557_v57 }
 0x13b   :  { %v360_v53 = vsel %vm359_vm3, %v551_v23, %v356_v0  ;;  %v385_v43 = vsub.f32 1.5, %v384_v62  ;;  %v413_v37 = vmul.f32 %v557_v57, %v412_v2  ;;  %vm419_vm12 = vmor %vm417_vm11, %vm418_vm10 }
 0x13c   :  { %v460_v49 = vmul.f32 %v838_v17, %v436_v58  ;;  %v434_v41 = vmul.f32 %v360_v53, %v771_v12  ;;  %v406_v61 = vmul.f32 %v553_v55, %v405_v60 }
 0x13d   :  { %v386_v14 = vmul.f32 %v555_v47, %v385_v43  ;;  %v414_v5 = vmul.f32 0.5, %v413_v37 }
 0x13e   :  { %v484_v30 = vadd.f32 %v855_v19, %v460_v49  ;;  %v458_v45 = vmul.f32 %v838_v17, %v434_v41  ;;  %v410_v7 = vsel %vm409_vm7, %v553_v55, %v406_v61 }
 0x13f   :  { %v439_v18 = vmul.f32 %v410_v7, %v793_v46  ;;  %v390_v1 = vsel %vm389_vm9, %v555_v47, %v386_v14  ;;  %v415_v52 = vsub.f32 1.5, %v414_v5 }
 0x140   :  { %504 = vst [vmem:[%s1199_s3 + $0x78] sm:$0xff] %v484_v30  ;;  %v482_v12 = vadd.f32 %v855_v19, %v458_v45  ;;  %v437_v35 = vmul.f32 %v390_v1, %v789_v15 }
 0x141   :  { %v463_v32 = vmul.f32 %v838_v17, %v439_v18  ;;  %v416_v20 = vmul.f32 %v557_v57, %v415_v52 }
 0x142   :  { %502 = vst [vmem:[%s1199_s3 + $0x68] sm:$0xff] %v482_v12  ;;  %v461_v46 = vmul.f32 %v838_v17, %v437_v35 }
 0x143   :  { %v487_v54 = vadd.f32 %v855_v19, %v463_v32  ;;  %v420_v15 = vsel %vm419_vm12, %v557_v57, %v416_v20 }
 0x144   :  { %v485_v21 = vadd.f32 %v855_v19, %v461_v46  ;;  %v440_v22 = vmul.f32 %v420_v15, %v801_v16 }
 0x145   :  { %507 = vst [vmem:[%s1199_s3 + $0x90] sm:$0xff] %v487_v54 }
 0x146   :  { %505 = vst [vmem:[%s1199_s3 + $0x80] sm:$0xff] %v485_v21  ;;  %v464_v59 = vmul.f32 %v838_v17, %v440_v22 }
 0x148   :  { %v488_v33 = vadd.f32 %v855_v19, %v464_v59 }
 0x14a   :  { %508 = vst [vmem:[%s1199_s3 + $0x98] sm:$0xff] %v488_v33 }

// kernel: forward.15
= control target key start
LH: loop header
LB: loop body
LE: loop exit
PB: predicated region body
PF: predicated region fallthrough
CT: control target
= control target key end

     0   :  { %s1364_s1 = inlined_call_operand.vmem [shape: bf16[512,128], index: 1, kind: input, shape index: {}]   ;;  %s1365_s2 = inlined_call_operand.vmem [shape: f32[1,128], index: 2, kind: input, shape index: {}]   ;;  %s1366_s0 = inlined_call_operand.vmem [shape: f32[160,512], index: 0, kind: input, shape index: {}]   ;;  %s1367_s3 = inlined_call_operand.vmem [shape: f32[160,128], index: 3, kind: input, shape index: {}]   ;;  %s1368_s4 = inlined_call_operand.vmem [shape: f32[160,128], index: 4, kind: output, shape index: {}]  }
   0x1   :  { %v832_v0 = vld [vmem:[%s1364_s1 + $0x38] sm:$0xff]  ;;  %v831_v4 = vld [vmem:[%s1364_s1 + $0x30] sm:$0xff]  ;;  %v830_v8 = vld [vmem:[%s1364_s1 + $0x28] sm:$0xff] }
   0x2   :  { %v840_v1 = vld [vmem:[%s1364_s1 + $0x78] sm:$0xff]  ;;  %397 = vmatpush.bf16.msra.mxu0 %v832_v0  ;;  %v839_v5 = vld [vmem:[%s1364_s1 + $0x70] sm:$0xff]  ;;  %v838_v9 = vld [vmem:[%s1364_s1 + $0x68] sm:$0xff] }
   0x3   :  { %v848_v2 = vld [vmem:[%s1364_s1 + $0xb8] sm:$0xff]  ;;  %456 = vmatpush.bf16.msra.mxu1 %v840_v1  ;;  %v847_v6 = vld [vmem:[%s1364_s1 + $0xb0] sm:$0xff]  ;;  %v846_v10 = vld [vmem:[%s1364_s1 + $0xa8] sm:$0xff] }
   0x4   :  { %v856_v3 = vld [vmem:[%s1364_s1 + $0xf8] sm:$0xff]  ;;  %515 = vmatpush.bf16.msra.mxu2 %v848_v2  ;;  %v855_v7 = vld [vmem:[%s1364_s1 + $0xf0] sm:$0xff]  ;;  %v854_v11 = vld [vmem:[%s1364_s1 + $0xe8] sm:$0xff] }
   0x5   :  { %574 = vmatpush.bf16.msra.mxu3 %v856_v3  ;;  %v829_v12 = vld [vmem:[%s1364_s1 + $0x20] sm:$0xff]  ;;  %v828_v16 = vld [vmem:[%s1364_s1 + $0x18] sm:$0xff]  ;;  %v827_v20 = vld [vmem:[%s1364_s1 + $0x10] sm:$0xff] }
   0x6   :  { %398 = vmatpush.bf16.msra.mxu0 %v831_v4  ;;  %v837_v13 = vld [vmem:[%s1364_s1 + $0x60] sm:$0xff]  ;;  %v836_v17 = vld [vmem:[%s1364_s1 + $0x58] sm:$0xff]  ;;  %v835_v21 = vld [vmem:[%s1364_s1 + $0x50] sm:$0xff] }
   0x7   :  { %457 = vmatpush.bf16.msra.mxu1 %v839_v5  ;;  %v845_v14 = vld [vmem:[%s1364_s1 + $0xa0] sm:$0xff]  ;;  %v844_v18 = vld [vmem:[%s1364_s1 + $0x98] sm:$0xff]  ;;  %v843_v22 = vld [vmem:[%s1364_s1 + $0x90] sm:$0xff] }
   0x8   :  { %516 = vmatpush.bf16.msra.mxu2 %v847_v6  ;;  %v853_v15 = vld [vmem:[%s1364_s1 + $0xe0] sm:$0xff]  ;;  %v852_v19 = vld [vmem:[%s1364_s1 + $0xd8] sm:$0xff]  ;;  %v851_v23 = vld [vmem:[%s1364_s1 + $0xd0] sm:$0xff] }
   0x9   :  { %575 = vmatpush.bf16.msra.mxu3 %v855_v7  ;;  %v826_v24 = vld [vmem:[%s1364_s1 + $0x8] sm:$0xff]  ;;  %v825_v28 = vld [vmem:[%s1364_s1] sm:$0xff]  ;;  %v19_v36 = vld [vmem:[%s1366_s0 + $0x10] sm:$0xff] }
   0xa   :  { %399 = vmatpush.bf16.msra.mxu0 %v830_v8  ;;  %v834_v25 = vld [vmem:[%s1364_s1 + $0x48] sm:$0xff]  ;;  %v833_v29 = vld [vmem:[%s1364_s1 + $0x40] sm:$0xff]  ;;  %v23_v37 = vld [vmem:[%s1366_s0 + $0x30] sm:$0xff] }
   0xb   :  { %458 = vmatpush.bf16.msra.mxu1 %v838_v9  ;;  %v842_v26 = vld [vmem:[%s1364_s1 + $0x88] sm:$0xff]  ;;  %v841_v30 = vld [vmem:[%s1364_s1 + $0x80] sm:$0xff]  ;;  %v20_v38 = vld [vmem:[%s1366_s0 + $0x18] sm:$0xff]  ;;  %v99_v42 = vpack.c.bf16 %v23_v37, %v19_v36 }
   0xc   :  { %517 = vmatpush.bf16.msra.mxu2 %v846_v10  ;;  %v850_v27 = vld [vmem:[%s1364_s1 + $0xc8] sm:$0xff]  ;;  %v849_v31 = vld [vmem:[%s1364_s1 + $0xc0] sm:$0xff]  ;;  %v24_v39 = vld [vmem:[%s1366_s0 + $0x38] sm:$0xff] }
   0xd   :  { %576 = vmatpush.bf16.msra.mxu3 %v854_v11  ;;  %v17_v32 = vld [vmem:[%s1366_s0] sm:$0xff]  ;;  %v18_v34 = vld [vmem:[%s1366_s0 + $0x8] sm:$0xff]  ;;  %v100_v43 = vpack.c.bf16 %v24_v39, %v20_v38  ;;  %v27_v48 = vld [vmem:[%s1366_s0 + $0x50] sm:$0xff] }
   0xe   :  { %400 = vmatpush.bf16.msra.mxu0 %v829_v12  ;;  %v21_v33 = vld [vmem:[%s1366_s0 + $0x20] sm:$0xff]  ;;  %v22_v35 = vld [vmem:[%s1366_s0 + $0x28] sm:$0xff]  ;;  %v31_v49 = vld [vmem:[%s1366_s0 + $0x70] sm:$0xff] }
   0xf   :  { %459 = vmatpush.bf16.msra.mxu1 %v837_v13  ;;  %v97_v40 = vpack.c.bf16 %v21_v33, %v17_v32  ;;  %v98_v41 = vpack.c.bf16 %v22_v35, %v18_v34  ;;  %v25_v44 = vld [vmem:[%s1366_s0 + $0x40] sm:$0xff]  ;;  %v26_v46 = vld [vmem:[%s1366_s0 + $0x48] sm:$0xff]  ;;  %v28_v50 = vld [vmem:[%s1366_s0 + $0x58] sm:$0xff]  ;;  %v103_v54 = vpack.c.bf16 %v31_v49, %v27_v48 }
  0x10   :  { %518 = vmatpush.bf16.msra.mxu2 %v845_v14  ;;  %v29_v45 = vld [vmem:[%s1366_s0 + $0x60] sm:$0xff]  ;;  %v30_v47 = vld [vmem:[%s1366_s0 + $0x68] sm:$0xff]  ;;  %v32_v51 = vld [vmem:[%s1366_s0 + $0x78] sm:$0xff] }
  0x11   :  { %577 = vmatpush.bf16.msra.mxu3 %v853_v15  ;;  %v101_v52 = vpack.c.bf16 %v29_v45, %v25_v44  ;;  %v102_v53 = vpack.c.bf16 %v30_v47, %v26_v46  ;;  %v104_v55 = vpack.c.bf16 %v32_v51, %v28_v50  ;;  %v33_v56 = vld [vmem:[%s1366_s0 + $0x80] sm:$0xff]  ;;  %v34_v58 = vld [vmem:[%s1366_s0 + $0x88] sm:$0xff]  ;;  %v35_v60 = vld [vmem:[%s1366_s0 + $0x90] sm:$0xff] }
  0x12   :  { %401 = vmatpush.bf16.msra.mxu0 %v828_v16  ;;  %v37_v57 = vld [vmem:[%s1366_s0 + $0xa0] sm:$0xff]  ;;  %v38_v59 = vld [vmem:[%s1366_s0 + $0xa8] sm:$0xff]  ;;  %v39_v61 = vld [vmem:[%s1366_s0 + $0xb0] sm:$0xff] }
  0x13   :  { %460 = vmatpush.bf16.msra.mxu1 %v836_v17  ;;  %v36_v62 = vld [vmem:[%s1366_s0 + $0x98] sm:$0xff]  ;;  %v105_v0 = vpack.c.bf16 %v37_v57, %v33_v56  ;;  %v106_v1 = vpack.c.bf16 %v38_v59, %v34_v58  ;;  %v107_v2 = vpack.c.bf16 %v39_v61, %v35_v60  ;;  %v41_v4 = vld [vmem:[%s1366_s0 + $0xc0] sm:$0xff]  ;;  %v42_v6 = vld [vmem:[%s1366_s0 + $0xc8] sm:$0xff] }
  0x14   :  { %519 = vmatpush.bf16.msra.mxu2 %v844_v18  ;;  %v40_v63 = vld [vmem:[%s1366_s0 + $0xb8] sm:$0xff]  ;;  %v45_v5 = vld [vmem:[%s1366_s0 + $0xe0] sm:$0xff]  ;;  %v46_v7 = vld [vmem:[%s1366_s0 + $0xe8] sm:$0xff] }
  0x15   :  { %578 = vmatpush.bf16.msra.mxu3 %v852_v19  ;;  %v108_v3 = vpack.c.bf16 %v40_v63, %v36_v62  ;;  %v43_v8 = vld [vmem:[%s1366_s0 + $0xd0] sm:$0xff]  ;;  %v44_v10 = vld [vmem:[%s1366_s0 + $0xd8] sm:$0xff]  ;;  %v109_v12 = vpack.c.bf16 %v45_v5, %v41_v4  ;;  %v110_v13 = vpack.c.bf16 %v46_v7, %v42_v6  ;;  %v49_v16 = vld [vmem:[%s1366_s0 + $0x100] sm:$0xff] }
  0x16   :  { %402 = vmatpush.bf16.msra.mxu0 %v827_v20  ;;  %v47_v9 = vld [vmem:[%s1366_s0 + $0xf0] sm:$0xff]  ;;  %v48_v11 = vld [vmem:[%s1366_s0 + $0xf8] sm:$0xff]  ;;  %v53_v17 = vld [vmem:[%s1366_s0 + $0x120] sm:$0xff] }
  0x17   :  { %461 = vmatpush.bf16.msra.mxu1 %v835_v21  ;;  %v111_v14 = vpack.c.bf16 %v47_v9, %v43_v8  ;;  %v112_v15 = vpack.c.bf16 %v48_v11, %v44_v10  ;;  %v50_v18 = vld [vmem:[%s1366_s0 + $0x108] sm:$0xff]  ;;  %v51_v20 = vld [vmem:[%s1366_s0 + $0x110] sm:$0xff]  ;;  %v60_v34 = vld [vmem:[%s1366_s0 + $0x158] sm:$0xff] }
  0x18   :  { %520 = vmatpush.bf16.msra.mxu2 %v843_v22  ;;  %v54_v19 = vld [vmem:[%s1366_s0 + $0x128] sm:$0xff]  ;;  %v55_v21 = vld [vmem:[%s1366_s0 + $0x130] sm:$0xff]  ;;  %v52_v22 = vld [vmem:[%s1366_s0 + $0x118] sm:$0xff] }
  0x19   :  { %579 = vmatpush.bf16.msra.mxu3 %v851_v23  ;;  %v56_v23 = vld [vmem:[%s1366_s0 + $0x138] sm:$0xff]  ;;  %v59_v32 = vld [vmem:[%s1366_s0 + $0x150] sm:$0xff]  ;;  %v86_v4 = vld [vmem:[%s1366_s0 + $0x228] sm:$0xff] }
  0x1a   :  { %403 = vmatpush.bf16.msra.mxu0 %v826_v24  ;;  %v113_v24 = vpack.c.bf16 %v53_v17, %v49_v16  ;;  %v63_v33 = vld [vmem:[%s1366_s0 + $0x170] sm:$0xff]  ;;  %v64_v35 = vld [vmem:[%s1366_s0 + $0x178] sm:$0xff] }
  0x1b   :  { %462 = vmatpush.bf16.msra.mxu1 %v834_v25  ;;  %v114_v25 = vpack.c.bf16 %v54_v19, %v50_v18  ;;  %v119_v38 = vpack.c.bf16 %v63_v33, %v59_v32  ;;  %v120_v39 = vpack.c.bf16 %v64_v35, %v60_v34  ;;  %v67_v44 = vld [vmem:[%s1366_s0 + $0x190] sm:$0xff]  ;;  %v68_v46 = vld [vmem:[%s1366_s0 + $0x198] sm:$0xff] }
  0x1c   :  { %521 = vmatpush.bf16.msra.mxu2 %v842_v26  ;;  %v115_v26 = vpack.c.bf16 %v55_v21, %v51_v20  ;;  %v71_v45 = vld [vmem:[%s1366_s0 + $0x1b0] sm:$0xff]  ;;  %v72_v47 = vld [vmem:[%s1366_s0 + $0x1b8] sm:$0xff] }
  0x1d   :  { %580 = vmatpush.bf16.msra.mxu3 %v850_v27  ;;  %v116_v27 = vpack.c.bf16 %v56_v23, %v52_v22  ;;  %v123_v50 = vpack.c.bf16 %v71_v45, %v67_v44  ;;  %v124_v51 = vpack.c.bf16 %v72_v47, %v68_v46  ;;  %v75_v56 = vld [vmem:[%s1366_s0 + $0x1d0] sm:$0xff]  ;;  %v76_v58 = vld [vmem:[%s1366_s0 + $0x1d8] sm:$0xff]  ;;  %v633_v22 = vld [vmem:[%s1367_s3] sm:$0xff] }
  0x1e   :  { %404 = vmatpush.bf16.msra.mxu0 %v825_v28  ;;  %v57_v28 = vld [vmem:[%s1366_s0 + $0x140] sm:$0xff]  ;;  %v79_v57 = vld [vmem:[%s1366_s0 + $0x1f0] sm:$0xff]  ;;  %v80_v59 = vld [vmem:[%s1366_s0 + $0x1f8] sm:$0xff] }
  0x1f   :  { %463 = vmatpush.bf16.msra.mxu1 %v833_v29  ;;  %v61_v29 = vld [vmem:[%s1366_s0 + $0x160] sm:$0xff]  ;;  %v127_v62 = vpack.c.bf16 %v79_v57, %v75_v56  ;;  %v128_v63 = vpack.c.bf16 %v80_v59, %v76_v58  ;;  %v83_v5 = vld [vmem:[%s1366_s0 + $0x210] sm:$0xff]  ;;  %v84_v7 = vld [vmem:[%s1366_s0 + $0x218] sm:$0xff] }
  0x20   :  { %522 = vmatpush.bf16.msra.mxu2 %v841_v30  ;;  %v58_v30 = vld [vmem:[%s1366_s0 + $0x148] sm:$0xff]  ;;  %v117_v36 = vpack.c.bf16 %v61_v29, %v57_v28  ;;  %v87_v6 = vld [vmem:[%s1366_s0 + $0x230] sm:$0xff]  ;;  %v88_v8 = vld [vmem:[%s1366_s0 + $0x238] sm:$0xff] }
  0x21   :  { %581 = vmatpush.bf16.msra.mxu3 %v849_v31  ;;  %405 = vmatmul.bf16.vlgmr.msra.gmra.mxu0 %v97_v40  ;;  %v62_v31 = vld [vmem:[%s1366_s0 + $0x168] sm:$0xff]  ;;  %v65_v40 = vld [vmem:[%s1366_s0 + $0x180] sm:$0xff]  ;;  %v92_v32 = vld [vmem:[%s1366_s0 + $0x258] sm:$0xff] }
  0x22   :  { %464 = vmatmul.bf16.vlgmr.msra.gmra.mxu1 %v98_v41  ;;  %v118_v37 = vpack.c.bf16 %v62_v31, %v58_v30  ;;  %v69_v41 = vld [vmem:[%s1366_s0 + $0x1a0] sm:$0xff]  ;;  %v90_v28 = vld [vmem:[%s1366_s0 + $0x248] sm:$0xff]  ;;  %v91_v30 = vld [vmem:[%s1366_s0 + $0x250] sm:$0xff] }
  0x23   :  { %523 = vmatmul.bf16.vlgmr.msra.gmra.mxu2 %v99_v42  ;;  %v66_v42 = vld [vmem:[%s1366_s0 + $0x188] sm:$0xff]  ;;  %v121_v48 = vpack.c.bf16 %v69_v41, %v65_v40  ;;  %v95_v31 = vld [vmem:[%s1366_s0 + $0x270] sm:$0xff]  ;;  %v96_v33 = vld [vmem:[%s1366_s0 + $0x278] sm:$0xff] }
  0x24   :  { %582 = vmatmul.bf16.vlgmr.msra.gmra.mxu3 %v100_v43  ;;  %v70_v43 = vld [vmem:[%s1366_s0 + $0x1a8] sm:$0xff] }
  0x25   :  { %v122_v49 = vpack.c.bf16 %v70_v43, %v66_v42  ;;  %v94_v29 = vld [vmem:[%s1366_s0 + $0x268] sm:$0xff]  ;;  %v135_v42 = vpack.c.bf16 %v95_v31, %v91_v30  ;;  %v136_v43 = vpack.c.bf16 %v96_v33, %v92_v32  ;;  %v639_v31 = vld [vmem:[%s1367_s3 + $0x30] sm:$0xff] }
  0x26   :  { %v634_v44 = vld [vmem:[%s1367_s3 + $0x8] sm:$0xff] }
  0x31   :  { %410 = vmatmul.bf16.gmra.mxu0 %v101_v52  ;;  %v73_v52 = vld [vmem:[%s1366_s0 + $0x1c0] sm:$0xff] }
  0x32   :  { %469 = vmatmul.bf16.gmra.mxu1 %v102_v53  ;;  %v77_v53 = vld [vmem:[%s1366_s0 + $0x1e0] sm:$0xff] }
  0x33   :  { %528 = vmatmul.bf16.gmra.mxu2 %v103_v54  ;;  %v74_v54 = vld [vmem:[%s1366_s0 + $0x1c8] sm:$0xff]  ;;  %v125_v60 = vpack.c.bf16 %v77_v53, %v73_v52 }
  0x34   :  { %587 = vmatmul.bf16.gmra.mxu3 %v104_v55  ;;  %v78_v55 = vld [vmem:[%s1366_s0 + $0x1e8] sm:$0xff] }
  0x35   :  { %v126_v61 = vpack.c.bf16 %v78_v55, %v74_v54  ;;  %v635_v54 = vld [vmem:[%s1367_s3 + $0x10] sm:$0xff] }
  0x41   :  { %415 = vmatmul.bf16.gmra.mxu0 %v105_v0  ;;  %v1174_v0 = vld [vmem:[%s1365_s2] ss:$0 sm:$0xff] }
  0x42   :  { %474 = vmatmul.bf16.gmra.mxu1 %v106_v1  ;;  %v81_v1 = vld [vmem:[%s1366_s0 + $0x200] sm:$0xff] }
  0x43   :  { %533 = vmatmul.bf16.gmra.mxu2 %v107_v2  ;;  %v85_v2 = vld [vmem:[%s1366_s0 + $0x220] sm:$0xff] }
  0x44   :  { %592 = vmatmul.bf16.gmra.mxu3 %v108_v3  ;;  %v82_v3 = vld [vmem:[%s1366_s0 + $0x208] sm:$0xff]  ;;  %v129_v9 = vpack.c.bf16 %v85_v2, %v81_v1  ;;  %v636_v1 = vld [vmem:[%s1367_s3 + $0x18] sm:$0xff] }
  0x45   :  { %v130_v10 = vpack.c.bf16 %v86_v4, %v82_v3 }
  0x51   :  { %420 = vmatmul.bf16.gmra.mxu0 %v109_v12 }
  0x52   :  { %479 = vmatmul.bf16.gmra.mxu1 %v110_v13  ;;  %v131_v13 = vpack.c.bf16 %v87_v6, %v83_v5 }
  0x53   :  { %538 = vmatmul.bf16.gmra.mxu2 %v111_v14  ;;  %v132_v14 = vpack.c.bf16 %v88_v8, %v84_v7 }
  0x54   :  { %597 = vmatmul.bf16.gmra.mxu3 %v112_v15 }
  0x61   :  { %425 = vmatmul.bf16.gmra.mxu0 %v113_v24 }
  0x62   :  { %484 = vmatmul.bf16.gmra.mxu1 %v114_v25  ;;  %v89_v25 = vld [vmem:[%s1366_s0 + $0x240] sm:$0xff] }
  0x63   :  { %543 = vmatmul.bf16.gmra.mxu2 %v115_v26  ;;  %v93_v26 = vld [vmem:[%s1366_s0 + $0x260] sm:$0xff] }
  0x64   :  { %602 = vmatmul.bf16.gmra.mxu3 %v116_v27 }
  0x71   :  { %430 = vmatmul.bf16.gmra.mxu0 %v117_v36 }
  0x72   :  { %489 = vmatmul.bf16.gmra.mxu1 %v118_v37  ;;  %v133_v37 = vpack.c.bf16 %v93_v26, %v89_v25 }
  0x73   :  { %548 = vmatmul.bf16.gmra.mxu2 %v119_v38  ;;  %v134_v38 = vpack.c.bf16 %v94_v29, %v90_v28 }
  0x74   :  { %607 = vmatmul.bf16.gmra.mxu3 %v120_v39 }
  0x81   :  { %435 = vmatmul.bf16.gmra.mxu0 %v121_v48 }
  0x82   :  { %494 = vmatmul.bf16.gmra.mxu1 %v122_v49 }
  0x83   :  { %553 = vmatmul.bf16.gmra.mxu2 %v123_v50 }
  0x84   :  { %612 = vmatmul.bf16.gmra.mxu3 %v124_v51 }
  0x91   :  { %440 = vmatmul.bf16.gmra.mxu0 %v125_v60 }
  0x92   :  { %499 = vmatmul.bf16.gmra.mxu1 %v126_v61 }
  0x93   :  { %558 = vmatmul.bf16.gmra.mxu2 %v127_v62 }
  0x94   :  { %617 = vmatmul.bf16.gmra.mxu3 %v128_v63 }
  0x9e   :  { %v406_v11 = vpop.f32.mrf.mxu0 }
  0x9f   :  { %v465_v12 = vpop.f32.mrf.mxu1  ;;  %v407_v15 = vadd.f32 %v1174_v0, %v406_v11  ;;  %v637_v11 = vld [vmem:[%s1367_s3 + $0x20] sm:$0xff] }
  0xa1   :  { %445 = vmatmul.bf16.gmra.mxu0 %v129_v9  ;;  %v466_v16 = vadd.f32 %v465_v12, %v407_v15 }
  0xa2   :  { %504 = vmatmul.bf16.gmra.mxu1 %v130_v10 }
  0xa3   :  { %563 = vmatmul.bf16.gmra.mxu2 %v131_v13 }
  0xa4   :  { %622 = vmatmul.bf16.gmra.mxu3 %v132_v14 }
  0xa6   :  { %v524_v17 = vpop.f32.mrf.mxu2  ;;  %v408_v20 = vpop.f32.mrf.mxu0 }
  0xa7   :  { %v583_v18 = vpop.f32.mrf.mxu3  ;;  %v525_v19 = vadd.f32 %v524_v17, %v466_v16  ;;  %v467_v21 = vpop.f32.mrf.mxu1  ;;  %v409_v24 = vadd.f32 %v1174_v0, %v408_v20 }
  0xa9   :  { %v584_v23 = vadd.f32 %v583_v18, %v525_v19  ;;  %v468_v34 = vadd.f32 %v467_v21, %v409_v24  ;;  %v638_v21 = vld [vmem:[%s1367_s3 + $0x28] sm:$0xff] }
  0xab   :  { %v653_v27 = vadd.f32 %v633_v22, %v584_v23 }
  0xad   :  { %673 = vst [vmem:[%s1368_s4] sm:$0xff] %v653_v27 }
  0xae   :  { %v526_v35 = vpop.f32.mrf.mxu2  ;;  %v411_v40 = vpop.f32.mrf.mxu0 }
  0xaf   :  { %v585_v36 = vpop.f32.mrf.mxu3  ;;  %v527_v39 = vadd.f32 %v526_v35, %v468_v34  ;;  %v470_v41 = vpop.f32.mrf.mxu1  ;;  %v412_v45 = vadd.f32 %v1174_v0, %v411_v40 }
  0xb1   :  { %v586_v46 = vadd.f32 %v585_v36, %v527_v39  ;;  %450 = vmatmul.bf16.gmra.mxu0 %v133_v37  ;;  %v471_v48 = vadd.f32 %v470_v41, %v412_v45  ;;  %v640_v41 = vld [vmem:[%s1367_s3 + $0x38] sm:$0xff] }
  0xb2   :  { %509 = vmatmul.bf16.gmra.mxu1 %v134_v38 }
  0xb3   :  { %v654_v47 = vadd.f32 %v634_v44, %v586_v46  ;;  %568 = vmatmul.bf16.gmra.mxu2 %v135_v42 }
  0xb4   :  { %627 = vmatmul.bf16.gmra.mxu3 %v136_v43 }
  0xb5   :  { %674 = vst [vmem:[%s1368_s4 + $0x8] sm:$0xff] %v654_v47 }
  0xb6   :  { %v529_v49 = vpop.f32.mrf.mxu2  ;;  %v413_v52 = vpop.f32.mrf.mxu0 }
  0xb7   :  { %v588_v50 = vpop.f32.mrf.mxu3  ;;  %v530_v51 = vadd.f32 %v529_v49, %v471_v48  ;;  %v472_v53 = vpop.f32.mrf.mxu1  ;;  %v414_v56 = vadd.f32 %v1174_v0, %v413_v52 }
  0xb9   :  { %v589_v55 = vadd.f32 %v588_v50, %v530_v51  ;;  %v473_v58 = vadd.f32 %v472_v53, %v414_v56  ;;  %v641_v51 = vld [vmem:[%s1367_s3 + $0x40] sm:$0xff] }
  0xbb   :  { %v655_v57 = vadd.f32 %v635_v54, %v589_v55 }
  0xbd   :  { %675 = vst [vmem:[%s1368_s4 + $0x10] sm:$0xff] %v655_v57 }
  0xbe   :  { %v531_v59 = vpop.f32.mrf.mxu2  ;;  %v416_v62 = vpop.f32.mrf.mxu0 }
  0xbf   :  { %v590_v60 = vpop.f32.mrf.mxu3  ;;  %v532_v61 = vadd.f32 %v531_v59, %v473_v58  ;;  %v475_v63 = vpop.f32.mrf.mxu1  ;;  %v417_v2 = vadd.f32 %v1174_v0, %v416_v62 }
  0xc1   :  { %v591_v3 = vadd.f32 %v590_v60, %v532_v61  ;;  %v476_v5 = vadd.f32 %v475_v63, %v417_v2  ;;  %v642_v61 = vld [vmem:[%s1367_s3 + $0x48] sm:$0xff] }
  0xc3   :  { %v656_v4 = vadd.f32 %v636_v1, %v591_v3 }
  0xc5   :  { %676 = vst [vmem:[%s1368_s4 + $0x18] sm:$0xff] %v656_v4 }
  0xc6   :  { %v534_v6 = vpop.f32.mrf.mxu2  ;;  %v418_v9 = vpop.f32.mrf.mxu0 }
  0xc7   :  { %v593_v7 = vpop.f32.mrf.mxu3  ;;  %v535_v8 = vadd.f32 %v534_v6, %v476_v5  ;;  %v477_v10 = vpop.f32.mrf.mxu1  ;;  %v419_v13 = vadd.f32 %v1174_v0, %v418_v9 }
  0xc9   :  { %v594_v12 = vadd.f32 %v593_v7, %v535_v8  ;;  %v478_v15 = vadd.f32 %v477_v10, %v419_v13  ;;  %v643_v8 = vld [vmem:[%s1367_s3 + $0x50] sm:$0xff] }
  0xcb   :  { %v657_v14 = vadd.f32 %v637_v11, %v594_v12 }
  0xcd   :  { %677 = vst [vmem:[%s1368_s4 + $0x20] sm:$0xff] %v657_v14 }
  0xce   :  { %v536_v16 = vpop.f32.mrf.mxu2  ;;  %v421_v19 = vpop.f32.mrf.mxu0 }
  0xcf   :  { %v595_v17 = vpop.f32.mrf.mxu3  ;;  %v537_v18 = vadd.f32 %v536_v16, %v478_v15  ;;  %v480_v20 = vpop.f32.mrf.mxu1  ;;  %v422_v22 = vadd.f32 %v1174_v0, %v421_v19 }
  0xd1   :  { %v596_v23 = vadd.f32 %v595_v17, %v537_v18  ;;  %v481_v25 = vadd.f32 %v480_v20, %v422_v22  ;;  %v644_v18 = vld [vmem:[%s1367_s3 + $0x58] sm:$0xff] }
  0xd3   :  { %v658_v24 = vadd.f32 %v638_v21, %v596_v23 }
  0xd5   :  { %678 = vst [vmem:[%s1368_s4 + $0x28] sm:$0xff] %v658_v24 }
  0xd6   :  { %v539_v26 = vpop.f32.mrf.mxu2  ;;  %v423_v29 = vpop.f32.mrf.mxu0 }
  0xd7   :  { %v598_v27 = vpop.f32.mrf.mxu3  ;;  %v540_v28 = vadd.f32 %v539_v26, %v481_v25  ;;  %v482_v30 = vpop.f32.mrf.mxu1  ;;  %v424_v33 = vadd.f32 %v1174_v0, %v423_v29 }
  0xd9   :  { %v599_v32 = vadd.f32 %v598_v27, %v540_v28  ;;  %v483_v35 = vadd.f32 %v482_v30, %v424_v33  ;;  %v645_v28 = vld [vmem:[%s1367_s3 + $0x60] sm:$0xff] }
  0xdb   :  { %v659_v34 = vadd.f32 %v639_v31, %v599_v32 }
  0xdd   :  { %679 = vst [vmem:[%s1368_s4 + $0x30] sm:$0xff] %v659_v34 }
  0xde   :  { %v541_v36 = vpop.f32.mrf.mxu2  ;;  %v426_v39 = vpop.f32.mrf.mxu0 }
  0xdf   :  { %v600_v37 = vpop.f32.mrf.mxu3  ;;  %v542_v38 = vadd.f32 %v541_v36, %v483_v35  ;;  %v485_v40 = vpop.f32.mrf.mxu1  ;;  %v427_v42 = vadd.f32 %v1174_v0, %v426_v39 }
  0xe1   :  { %v601_v43 = vadd.f32 %v600_v37, %v542_v38  ;;  %v486_v45 = vadd.f32 %v485_v40, %v427_v42  ;;  %v646_v38 = vld [vmem:[%s1367_s3 + $0x68] sm:$0xff] }
  0xe3   :  { %v660_v44 = vadd.f32 %v640_v41, %v601_v43 }
  0xe5   :  { %680 = vst [vmem:[%s1368_s4 + $0x38] sm:$0xff] %v660_v44 }
  0xe6   :  { %v544_v46 = vpop.f32.mrf.mxu2  ;;  %v428_v49 = vpop.f32.mrf.mxu0 }
  0xe7   :  { %v603_v47 = vpop.f32.mrf.mxu3  ;;  %v545_v48 = vadd.f32 %v544_v46, %v486_v45  ;;  %v487_v50 = vpop.f32.mrf.mxu1  ;;  %v429_v53 = vadd.f32 %v1174_v0, %v428_v49 }
  0xe9   :  { %v604_v52 = vadd.f32 %v603_v47, %v545_v48  ;;  %v488_v55 = vadd.f32 %v487_v50, %v429_v53  ;;  %v647_v48 = vld [vmem:[%s1367_s3 + $0x70] sm:$0xff] }
  0xeb   :  { %v661_v54 = vadd.f32 %v641_v51, %v604_v52 }
  0xed   :  { %681 = vst [vmem:[%s1368_s4 + $0x40] sm:$0xff] %v661_v54 }
  0xee   :  { %v546_v56 = vpop.f32.mrf.mxu2  ;;  %v431_v59 = vpop.f32.mrf.mxu0 }
  0xef   :  { %v605_v57 = vpop.f32.mrf.mxu3  ;;  %v547_v58 = vadd.f32 %v546_v56, %v488_v55  ;;  %v490_v60 = vpop.f32.mrf.mxu1  ;;  %v432_v62 = vadd.f32 %v1174_v0, %v431_v59 }
  0xf1   :  { %v606_v63 = vadd.f32 %v605_v57, %v547_v58  ;;  %v491_v2 = vadd.f32 %v490_v60, %v432_v62  ;;  %v648_v58 = vld [vmem:[%s1367_s3 + $0x78] sm:$0xff] }
  0xf3   :  { %v662_v1 = vadd.f32 %v642_v61, %v606_v63 }
  0xf5   :  { %682 = vst [vmem:[%s1368_s4 + $0x48] sm:$0xff] %v662_v1 }
  0xf6   :  { %v549_v3 = vpop.f32.mrf.mxu2  ;;  %v433_v6 = vpop.f32.mrf.mxu0 }
  0xf7   :  { %v608_v4 = vpop.f32.mrf.mxu3  ;;  %v550_v5 = vadd.f32 %v549_v3, %v491_v2  ;;  %v492_v7 = vpop.f32.mrf.mxu1  ;;  %v434_v10 = vadd.f32 %v1174_v0, %v433_v6 }
  0xf9   :  { %v609_v9 = vadd.f32 %v608_v4, %v550_v5  ;;  %v493_v12 = vadd.f32 %v492_v7, %v434_v10  ;;  %v649_v4 = vld [vmem:[%s1367_s3 + $0x80] sm:$0xff] }
  0xfb   :  { %v663_v11 = vadd.f32 %v643_v8, %v609_v9 }
  0xfd   :  { %683 = vst [vmem:[%s1368_s4 + $0x50] sm:$0xff] %v663_v11 }
  0xfe   :  { %v551_v13 = vpop.f32.mrf.mxu2  ;;  %v436_v16 = vpop.f32.mrf.mxu0 }
  0xff   :  { %v610_v14 = vpop.f32.mrf.mxu3  ;;  %v552_v15 = vadd.f32 %v551_v13, %v493_v12  ;;  %v495_v17 = vpop.f32.mrf.mxu1  ;;  %v437_v19 = vadd.f32 %v1174_v0, %v436_v16 }
 0x101   :  { %v611_v20 = vadd.f32 %v610_v14, %v552_v15  ;;  %v496_v22 = vadd.f32 %v495_v17, %v437_v19  ;;  %v650_v14 = vld [vmem:[%s1367_s3 + $0x88] sm:$0xff] }
 0x103   :  { %v664_v21 = vadd.f32 %v644_v18, %v611_v20 }
 0x105   :  { %684 = vst [vmem:[%s1368_s4 + $0x58] sm:$0xff] %v664_v21 }
 0x106   :  { %v554_v23 = vpop.f32.mrf.mxu2  ;;  %v438_v26 = vpop.f32.mrf.mxu0 }
 0x107   :  { %v613_v24 = vpop.f32.mrf.mxu3  ;;  %v555_v25 = vadd.f32 %v554_v23, %v496_v22  ;;  %v497_v27 = vpop.f32.mrf.mxu1  ;;  %v439_v30 = vadd.f32 %v1174_v0, %v438_v26 }
 0x109   :  { %v614_v29 = vadd.f32 %v613_v24, %v555_v25  ;;  %v498_v32 = vadd.f32 %v497_v27, %v439_v30  ;;  %v651_v24 = vld [vmem:[%s1367_s3 + $0x90] sm:$0xff] }
 0x10b   :  { %v665_v31 = vadd.f32 %v645_v28, %v614_v29 }
 0x10d   :  { %685 = vst [vmem:[%s1368_s4 + $0x60] sm:$0xff] %v665_v31 }
 0x10e   :  { %v556_v33 = vpop.f32.mrf.mxu2  ;;  %v441_v36 = vpop.f32.mrf.mxu0 }
 0x10f   :  { %v615_v34 = vpop.f32.mrf.mxu3  ;;  %v557_v35 = vadd.f32 %v556_v33, %v498_v32  ;;  %v500_v37 = vpop.f32.mrf.mxu1  ;;  %v442_v39 = vadd.f32 %v1174_v0, %v441_v36  ;;  %v652_v33 = vld [vmem:[%s1367_s3 + $0x98] sm:$0xff] }
 0x111   :  { %v616_v40 = vadd.f32 %v615_v34, %v557_v35  ;;  %v501_v42 = vadd.f32 %v500_v37, %v442_v39 }
 0x113   :  { %v666_v41 = vadd.f32 %v646_v38, %v616_v40 }
 0x115   :  { %686 = vst [vmem:[%s1368_s4 + $0x68] sm:$0xff] %v666_v41 }
 0x116   :  { %v559_v43 = vpop.f32.mrf.mxu2  ;;  %v443_v46 = vpop.f32.mrf.mxu0 }
 0x117   :  { %v618_v44 = vpop.f32.mrf.mxu3  ;;  %v560_v45 = vadd.f32 %v559_v43, %v501_v42  ;;  %v502_v47 = vpop.f32.mrf.mxu1  ;;  %v444_v50 = vadd.f32 %v1174_v0, %v443_v46 }
 0x119   :  { %v619_v49 = vadd.f32 %v618_v44, %v560_v45  ;;  %v503_v52 = vadd.f32 %v502_v47, %v444_v50 }
 0x11b   :  { %v667_v51 = vadd.f32 %v647_v48, %v619_v49 }
 0x11d   :  { %687 = vst [vmem:[%s1368_s4 + $0x70] sm:$0xff] %v667_v51 }
 0x11e   :  { %v561_v53 = vpop.f32.mrf.mxu2  ;;  %v446_v56 = vpop.f32.mrf.mxu0 }
 0x11f   :  { %v620_v54 = vpop.f32.mrf.mxu3  ;;  %v562_v55 = vadd.f32 %v561_v53, %v503_v52  ;;  %v505_v57 = vpop.f32.mrf.mxu1  ;;  %v447_v59 = vadd.f32 %v1174_v0, %v446_v56 }
 0x121   :  { %v621_v60 = vadd.f32 %v620_v54, %v562_v55  ;;  %v506_v62 = vadd.f32 %v505_v57, %v447_v59 }
 0x123   :  { %v668_v61 = vadd.f32 %v648_v58, %v621_v60 }
 0x125   :  { %688 = vst [vmem:[%s1368_s4 + $0x78] sm:$0xff] %v668_v61 }
 0x126   :  { %v564_v63 = vpop.f32.mrf.mxu2  ;;  %v448_v3 = vpop.f32.mrf.mxu0 }
 0x127   :  { %v623_v1 = vpop.f32.mrf.mxu3  ;;  %v565_v2 = vadd.f32 %v564_v63, %v506_v62  ;;  %v507_v5 = vpop.f32.mrf.mxu1  ;;  %v449_v7 = vadd.f32 %v1174_v0, %v448_v3 }
 0x129   :  { %v624_v6 = vadd.f32 %v623_v1, %v565_v2  ;;  %v508_v9 = vadd.f32 %v507_v5, %v449_v7 }
 0x12b   :  { %v669_v8 = vadd.f32 %v649_v4, %v624_v6 }
 0x12d   :  { %689 = vst [vmem:[%s1368_s4 + $0x80] sm:$0xff] %v669_v8 }
 0x12e   :  { %v566_v10 = vpop.f32.mrf.mxu2  ;;  %v451_v13 = vpop.f32.mrf.mxu0 }
 0x12f   :  { %v625_v11 = vpop.f32.mrf.mxu3  ;;  %v567_v12 = vadd.f32 %v566_v10, %v508_v9  ;;  %v452_v15 = vadd.f32 %v1174_v0, %v451_v13  ;;  %v510_v17 = vpop.f32.mrf.mxu1 }
 0x131   :  { %v626_v16 = vadd.f32 %v625_v11, %v567_v12  ;;  %v511_v19 = vadd.f32 %v510_v17, %v452_v15 }
 0x133   :  { %v670_v18 = vadd.f32 %v650_v14, %v626_v16 }
 0x135   :  { %690 = vst [vmem:[%s1368_s4 + $0x88] sm:$0xff] %v670_v18 }
 0x136   :  { %v569_v20 = vpop.f32.mrf.mxu2  ;;  %v453_v23 = vpop.f32.mrf.mxu0 }
 0x137   :  { %v628_v21 = vpop.f32.mrf.mxu3  ;;  %v570_v22 = vadd.f32 %v569_v20, %v511_v19  ;;  %v454_v26 = vadd.f32 %v1174_v0, %v453_v23  ;;  %v512_v28 = vpop.f32.mrf.mxu1 }
 0x139   :  { %v629_v25 = vadd.f32 %v628_v21, %v570_v22  ;;  %v513_v29 = vadd.f32 %v512_v28, %v454_v26 }
 0x13b   :  { %v671_v27 = vadd.f32 %v651_v24, %v629_v25 }
 0x13d   :  { %691 = vst [vmem:[%s1368_s4 + $0x90] sm:$0xff] %v671_v27 }
 0x13e   :  { %v571_v30 = vpop.f32.mrf.mxu2 }
 0x13f   :  { %v572_v31 = vadd.f32 %v571_v30, %v513_v29  ;;  %v630_v32 = vpop.f32.mrf.mxu3 }
 0x141   :  { %v631_v34 = vadd.f32 %v630_v32, %v572_v31 }
 0x143   :  { %v672_v35 = vadd.f32 %v652_v33, %v631_v34 }
 0x145   :  { %692 = vst [vmem:[%s1368_s4 + $0x98] sm:$0xff] %v672_v35 }

// kernel: forward.14
= control target key start
LH: loop header
LB: loop body
LE: loop exit
PB: predicated region body
PF: predicated region fallthrough
CT: control target
= control target key end

     0   :  { %v3316_v7 = vmov 128.0   ;;  %s5886_s0 = inlined_call_operand.vmem [shape: f32[160,128], index: 0, kind: input, shape index: {}]   ;;  %s5887_s3 = inlined_call_operand.vmem [shape: f32[1,128], index: 3, kind: input, shape index: {}]   ;;  %s5888_s4 = inlined_call_operand.vmem [shape: f32[1,128], index: 4, kind: input, shape index: {}]   ;;  %s5889_s1 = inlined_call_operand.vmem [shape: bf16[128,512], index: 1, kind: input, shape index: {}]   ;;  %s5890_s2 = inlined_call_operand.vmem [shape: f32[1,512], index: 2, kind: input, shape index: {}]   ;;  %s5891_s5 = inlined_call_operand.vmem [shape: f32[160,512], index: 5, kind: output, shape index: {}]  }
   0x1   :  { %v22_v0 = vld [vmem:[%s5886_s0 + $0x10] sm:$0xff]  ;;  %v20_v1 = vld [vmem:[%s5886_s0] sm:$0xff]  ;;  %v23_v3 = vld [vmem:[%s5886_s0 + $0x18] sm:$0xff]  ;;  %2950 = vrcp.f32 %v3316_v7 }
   0x2   :  { %44 = vadd.xlane.f32.xlu1 %v22_v0  ;;  %40 = vadd.xlane.f32.xlu0 %v20_v1  ;;  %v24_v2 = vld [vmem:[%s5886_s0 + $0x20] sm:$0xff]  ;;  %v21_v4 = vld [vmem:[%s5886_s0 + $0x8] sm:$0xff]  ;;  %v26_v6 = vld [vmem:[%s5886_s0 + $0x30] sm:$0xff] }
   0x3   :  { %48 = vadd.xlane.f32.xlu2 %v24_v2  ;;  %v25_v5 = vld [vmem:[%s5886_s0 + $0x28] sm:$0xff]  ;;  %v3386_v28 = vld [vmem:[%s5886_s0 + $0x38] sm:$0xff]  ;;  %v3403_v36 = vld [vmem:[%s5886_s0 + $0x40] sm:$0xff] }
   0x4   :  { %v3416_v42 = vld [vmem:[%s5886_s0 + $0x58] sm:$0xff]  ;;  %v3421_v43 = vld [vmem:[%s5886_s0 + $0x48] sm:$0xff]  ;;  %v3432_v46 = vld [vmem:[%s5886_s0 + $0x60] sm:$0xff] }
   0x5   :  { %v3437_v47 = vld [vmem:[%s5886_s0 + $0x50] sm:$0xff]  ;;  %v3444_v48 = vld [vmem:[%s5886_s0 + $0x68] sm:$0xff]  ;;  %v2821_v50 = vld [vmem:[%s5889_s1 + $0xe0] sm:$0xf] }
   0x6   :  { %v3450_v49 = vld [vmem:[%s5886_s0 + $0x70] sm:$0xff]  ;;  %v2943_v52 = vld [vmem:[%s5889_s1 + $0xe4] sm:$0xf]  ;;  %v2829_v55 = vld [vmem:[%s5889_s1 + $0xe8] sm:$0xf] }
   0x7   :  { %v2951_v8 = vpop.eup %2950  ;;  %v2945_v51 = vld [vmem:[%s5889_s1 + $0xec] sm:$0xf0]  ;;  %v2823_v54 = vld [vmem:[%s5889_s1 + $0xf0] sm:$0xf0]  ;;  %v2946_v56 = vld [vmem:[%s5889_s1 + $0xf4] sm:$0xf0] }
   0x8   :  { %v81_v9 = vmul.f32 128.0, %v2951_v8  ;;  %vm85_vm0 = vweird.f32 %v2951_v8  ;;  %v2822_v53 = vor.u32 %v2945_v51, %v2821_v50  ;;  %v2826_v57 = vor.u32 %v2943_v52, %v2823_v54  ;;  %v2944_v59 = vld [vmem:[%s5889_s1 + $0xec] sm:$0xf]  ;;  %v2831_v60 = vld [vmem:[%s5889_s1 + $0xf8] sm:$0xf0] }
   0x9   :  { %v2830_v58 = vor.u32 %v2946_v56, %v2829_v55  ;;  %v2834_v61 = vor.u32 %v2944_v59, %v2831_v60  ;;  %v2805_v62 = vld [vmem:[%s5889_s1 + $0xc0] sm:$0xf]  ;;  %v2941_v63 = vld [vmem:[%s5889_s1 + $0xcc] sm:$0xf0]  ;;  %v2940_v7 = vld [vmem:[%s5889_s1 + $0xcc] sm:$0xf] }
   0xa   :  { %46 = vadd.xlane.f32.xlu1 %v23_v3  ;;  %42 = vadd.xlane.f32.xlu0 %v21_v4  ;;  %v82_v10 = vsub.f32 1.0, %v81_v9  ;;  %v2757_v50 = vld [vmem:[%s5889_s1 + $0x60] sm:$0xf]  ;;  %v2929_v51 = vld [vmem:[%s5889_s1 + $0x6c] sm:$0xf0] }
   0xb   :  { %50 = vadd.xlane.f32.xlu2 %v25_v5  ;;  %707 = vmatpush.bf16.msra.mxu0 %v2822_v53  ;;  %v2927_v52 = vld [vmem:[%s5889_s1 + $0x64] sm:$0xf]  ;;  %v2758_v53 = vor.u32 %v2929_v51, %v2757_v50  ;;  %v2759_v54 = vld [vmem:[%s5889_s1 + $0x70] sm:$0xf0]  ;;  %v2765_v55 = vld [vmem:[%s5889_s1 + $0x68] sm:$0xf] }
   0xc   :  { %v83_v11 = vmul.f32 %v2951_v8, %v82_v10  ;;  %766 = vmatpush.bf16.msra.mxu1 %v2826_v57  ;;  %825 = vmatpush.bf16.msra.mxu2 %v2830_v58  ;;  %v2789_v10 = vld [vmem:[%s5889_s1 + $0xa0] sm:$0xf]  ;;  %v2930_v56 = vld [vmem:[%s5889_s1 + $0x74] sm:$0xf0]  ;;  %v2762_v57 = vor.u32 %v2927_v52, %v2759_v54  ;;  %v2928_v59 = vld [vmem:[%s5889_s1 + $0x6c] sm:$0xf] }
   0xd   :  { %884 = vmatpush.bf16.msra.mxu3 %v2834_v61  ;;  %v2766_v58 = vor.u32 %v2930_v56, %v2765_v55  ;;  %v2767_v60 = vld [vmem:[%s5889_s1 + $0x78] sm:$0xf0] }
   0xe   :  { %v84_v12 = vadd.f32 %v2951_v8, %v83_v11  ;;  %v2937_v11 = vld [vmem:[%s5889_s1 + $0xac] sm:$0xf0]  ;;  %v2770_v61 = vor.u32 %v2928_v59, %v2767_v60  ;;  %v2719_v50 = vld [vmem:[%s5889_s1 + $0x18] sm:$0xf0] }
  0x10   :  { %v3368_v13 = vsel %vm85_vm0, %v2951_v8, %v84_v12  ;;  %v2815_v8 = vld [vmem:[%s5889_s1 + $0xd8] sm:$0xf0]  ;;  %v2935_v12 = vld [vmem:[%s5889_s1 + $0xa4] sm:$0xf] }
  0x11   :  { %v2818_v9 = vor.u32 %v2940_v7, %v2815_v8  ;;  %v2924_v7 = vld [vmem:[%s5889_s1 + $0x4c] sm:$0xf]  ;;  %v2751_v8 = vld [vmem:[%s5889_s1 + $0x58] sm:$0xf0] }
  0x13   :  { %52 = vadd.xlane.f32.xlu2 %v26_v6  ;;  %885 = vmatpush.bf16.msra.mxu3 %v2818_v9  ;;  %v2754_v9 = vor.u32 %v2924_v7, %v2751_v8 }
  0x75   :  { %v45_v14 = vpop.xlane.xlu1 %44  ;;  %v41_v15 = vpop.xlane.xlu0 %40 }
  0x76   :  { %v87_v16 = vmul.f32 %v3368_v13, %v41_v15  ;;  %v49_v18 = vpop.xlane.xlu2 %48  ;;  %v89_v27 = vmul.f32 %v3368_v13, %v45_v14  ;;  %v2790_v14 = vor.u32 %v2937_v11, %v2789_v10  ;;  %v2791_v15 = vld [vmem:[%s5889_s1 + $0xb0] sm:$0xf0]  ;;  %v2725_v10 = vld [vmem:[%s5889_s1 + $0x20] sm:$0xf]  ;;  %v2921_v11 = vld [vmem:[%s5889_s1 + $0x2c] sm:$0xf0] }
  0x77   :  { %v91_v26 = vmul.f32 %v3368_v13, %v49_v18  ;;  %v2938_v18 = vld [vmem:[%s5889_s1 + $0xb4] sm:$0xf0] }
  0x78   :  { %v3371_v17 = vsub.f32 %v20_v1, %v87_v16  ;;  %v3395_v33 = vsub.f32 %v22_v0, %v89_v27  ;;  %v2939_v0 = vld [vmem:[%s5889_s1 + $0xc4] sm:$0xf]  ;;  %v2806_v1 = vor.u32 %v2941_v63, %v2805_v62  ;;  %v2797_v16 = vld [vmem:[%s5889_s1 + $0xa8] sm:$0xf]  ;;  %v2933_v27 = vld [vmem:[%s5889_s1 + $0x8c] sm:$0xf0] }
  0x79   :  { %v3393_v32 = vsub.f32 %v24_v2, %v91_v26  ;;  %v2807_v2 = vld [vmem:[%s5889_s1 + $0xd0] sm:$0xf0]  ;;  %v2773_v26 = vld [vmem:[%s5889_s1 + $0x80] sm:$0xf]  ;;  %v2925_v63 = vld [vmem:[%s5889_s1 + $0x4c] sm:$0xf0] }
  0x7a   :  { %v127_v19 = vmul.f32 %v3371_v17, %v3371_v17  ;;  %v129_v37 = vmul.f32 %v3395_v33, %v3395_v33  ;;  %708 = vmatpush.bf16.msra.mxu0 %v2806_v1  ;;  %v2741_v62 = vld [vmem:[%s5889_s1 + $0x40] sm:$0xf] }
  0x7b   :  { %v131_v34 = vmul.f32 %v3393_v32, %v3393_v32  ;;  %v2742_v1 = vor.u32 %v2925_v63, %v2741_v62 }
  0x7c   :  { %147 = vadd.xlane.f32.xlu0 %v127_v19  ;;  %v2794_v19 = vor.u32 %v2935_v12, %v2791_v15  ;;  %v2919_v12 = vld [vmem:[%s5889_s1 + $0x24] sm:$0xf]  ;;  %v2726_v15 = vor.u32 %v2921_v11, %v2725_v10 }
  0x7d   :  { %v47_v20 = vpop.xlane.xlu1 %46  ;;  %v43_v21 = vpop.xlane.xlu0 %42 }
  0x7e   :  { %v90_v22 = vmul.f32 %v3368_v13, %v47_v20  ;;  %v88_v23 = vmul.f32 %v3368_v13, %v43_v21  ;;  %v51_v31 = vpop.xlane.xlu2 %50  ;;  %v2798_v20 = vor.u32 %v2938_v18, %v2797_v16  ;;  %v2936_v21 = vld [vmem:[%s5889_s1 + $0xac] sm:$0xf]  ;;  %709 = vmatpush.bf16.msra.mxu0 %v2790_v14  ;;  %v2727_v16 = vld [vmem:[%s5889_s1 + $0x30] sm:$0xf0]  ;;  %v2733_v18 = vld [vmem:[%s5889_s1 + $0x28] sm:$0xf] }
  0x7f   :  { %v92_v35 = vmul.f32 %v3368_v13, %v51_v31  ;;  %v2775_v31 = vld [vmem:[%s5889_s1 + $0x90] sm:$0xf0] }
  0x80   :  { %v3377_v24 = vsub.f32 %v23_v3, %v90_v22  ;;  %v3379_v25 = vsub.f32 %v21_v4, %v88_v23  ;;  %v2813_v3 = vld [vmem:[%s5889_s1 + $0xc8] sm:$0xf]  ;;  %v2942_v4 = vld [vmem:[%s5889_s1 + $0xd4] sm:$0xf0]  ;;  %v2799_v22 = vld [vmem:[%s5889_s1 + $0xb8] sm:$0xf0] }
  0x81   :  { %v3408_v38 = vsub.f32 %v25_v5, %v92_v35  ;;  %v2810_v5 = vor.u32 %v2939_v0, %v2807_v2  ;;  %v2802_v23 = vor.u32 %v2936_v21, %v2799_v22  ;;  %v2934_v35 = vld [vmem:[%s5889_s1 + $0x94] sm:$0xf0]  ;;  %v2923_v0 = vld [vmem:[%s5889_s1 + $0x44] sm:$0xf]  ;;  %v2743_v2 = vld [vmem:[%s5889_s1 + $0x50] sm:$0xf0] }
  0x82   :  { %v130_v29 = vmul.f32 %v3377_v24, %v3377_v24  ;;  %v128_v30 = vmul.f32 %v3379_v25, %v3379_v25  ;;  %v2922_v21 = vld [vmem:[%s5889_s1 + $0x34] sm:$0xf0]  ;;  %v2920_v22 = vld [vmem:[%s5889_s1 + $0x2c] sm:$0xf] }
  0x83   :  { %v132_v40 = vmul.f32 %v3408_v38, %v3408_v38  ;;  %767 = vmatpush.bf16.msra.mxu1 %v2810_v5  ;;  %886 = vmatpush.bf16.msra.mxu3 %v2802_v23  ;;  %v2746_v5 = vor.u32 %v2923_v0, %v2743_v2  ;;  %v2735_v23 = vld [vmem:[%s5889_s1 + $0x38] sm:$0xf0] }
  0x84   :  { %153 = vadd.xlane.f32.xlu2 %v130_v29  ;;  %54 = vadd.xlane.f32.xlu0 %v3386_v28  ;;  %v2931_v29 = vld [vmem:[%s5889_s1 + $0x84] sm:$0xf] }
  0x85   :  { %149 = vadd.xlane.f32.xlu1 %v128_v30  ;;  %v2774_v30 = vor.u32 %v2933_v27, %v2773_v26  ;;  %v2734_v26 = vor.u32 %v2922_v21, %v2733_v18  ;;  %v2738_v27 = vor.u32 %v2920_v22, %v2735_v23 }
  0x86   :  { %v53_v39 = vpop.xlane.xlu2 %52 }
  0x87   :  { %v93_v41 = vmul.f32 %v3368_v13, %v53_v39  ;;  %768 = vmatpush.bf16.msra.mxu1 %v2794_v19  ;;  %710 = vmatpush.bf16.msra.mxu0 %v2774_v30  ;;  %v2709_v30 = vld [vmem:[%s5889_s1] sm:$0xf] }
  0x89   :  { %v3424_v44 = vsub.f32 %v26_v6, %v93_v41  ;;  %v2814_v6 = vor.u32 %v2942_v4, %v2813_v3  ;;  %v2783_v41 = vld [vmem:[%s5889_s1 + $0x98] sm:$0xf0]  ;;  %v2749_v3 = vld [vmem:[%s5889_s1 + $0x48] sm:$0xf]  ;;  %v2926_v4 = vld [vmem:[%s5889_s1 + $0x54] sm:$0xf0] }
  0x8b   :  { %v133_v45 = vmul.f32 %v3424_v44, %v3424_v44  ;;  %826 = vmatpush.bf16.msra.mxu2 %v2814_v6  ;;  %711 = vmatpush.bf16.msra.mxu0 %v2758_v53  ;;  %v2750_v6 = vor.u32 %v2926_v4, %v2749_v3 }
  0x8c   :  { %155 = vadd.xlane.f32.xlu2 %v131_v34  ;;  %56 = vadd.xlane.f32.xlu0 %v3403_v36  ;;  %v2781_v34 = vld [vmem:[%s5889_s1 + $0x88] sm:$0xf] }
  0x8d   :  { %151 = vadd.xlane.f32.xlu1 %v129_v37  ;;  %v2778_v37 = vor.u32 %v2931_v29, %v2775_v31  ;;  %v2782_v39 = vor.u32 %v2934_v35, %v2781_v34  ;;  %v2917_v31 = vld [vmem:[%s5889_s1 + $0xc] sm:$0xf0]  ;;  %v2915_v35 = vld [vmem:[%s5889_s1 + $0x4] sm:$0xf] }
  0x8e   :  { %v2710_v34 = vor.u32 %v2917_v31, %v2709_v30 }
  0x8f   :  { %827 = vmatpush.bf16.msra.mxu2 %v2798_v20  ;;  %769 = vmatpush.bf16.msra.mxu1 %v2778_v37  ;;  %v2730_v20 = vor.u32 %v2919_v12, %v2727_v16  ;;  %v2711_v37 = vld [vmem:[%s5889_s1 + $0x10] sm:$0xf0] }
  0x90   :  { %712 = vmatpush.bf16.msra.mxu0 %v2742_v1 }
  0x93   :  { %828 = vmatpush.bf16.msra.mxu2 %v2782_v39  ;;  %770 = vmatpush.bf16.msra.mxu1 %v2762_v57  ;;  %v2717_v39 = vld [vmem:[%s5889_s1 + $0x8] sm:$0xf] }
  0x94   :  { %62 = vadd.xlane.f32.xlu2 %v3416_v42  ;;  %157 = vadd.xlane.f32.xlu0 %v132_v40  ;;  %v2932_v40 = vld [vmem:[%s5889_s1 + $0x8c] sm:$0xf] }
  0x95   :  { %58 = vadd.xlane.f32.xlu1 %v3421_v43  ;;  %713 = vmatpush.bf16.msra.mxu0 %v2726_v15 }
  0x97   :  { %829 = vmatpush.bf16.msra.mxu2 %v2766_v58  ;;  %771 = vmatpush.bf16.msra.mxu1 %v2746_v5 }
  0x99   :  { %714 = vmatpush.bf16.msra.mxu0 %v2710_v34 }
  0x9b   :  { %830 = vmatpush.bf16.msra.mxu2 %v2750_v6  ;;  %772 = vmatpush.bf16.msra.mxu1 %v2730_v20 }
  0x9c   :  { %64 = vadd.xlane.f32.xlu2 %v3432_v46  ;;  %159 = vadd.xlane.f32.xlu0 %v133_v45  ;;  %v2786_v45 = vor.u32 %v2932_v40, %v2783_v41  ;;  %v2714_v40 = vor.u32 %v2915_v35, %v2711_v37  ;;  %v2918_v41 = vld [vmem:[%s5889_s1 + $0x14] sm:$0xf0] }
  0x9d   :  { %60 = vadd.xlane.f32.xlu1 %v3437_v47  ;;  %v2718_v51 = vor.u32 %v2918_v41, %v2717_v39 }
  0x9e   :  { %887 = vmatpush.bf16.msra.mxu3 %v2786_v45  ;;  %v2916_v45 = vld [vmem:[%s5889_s1 + $0xc] sm:$0xf] }
  0x9f   :  { %831 = vmatpush.bf16.msra.mxu2 %v2734_v26  ;;  %v2722_v52 = vor.u32 %v2916_v45, %v2719_v50  ;;  %773 = vmatpush.bf16.msra.mxu1 %v2714_v40 }
  0xa2   :  { %888 = vmatpush.bf16.msra.mxu3 %v2770_v61 }
  0xa3   :  { %832 = vmatpush.bf16.msra.mxu2 %v2718_v51 }
  0xa4   :  { %66 = vadd.xlane.f32.xlu0 %v3444_v48 }
  0xa6   :  { %889 = vmatpush.bf16.msra.mxu3 %v2754_v9 }
  0xaa   :  { %890 = vmatpush.bf16.msra.mxu3 %v2738_v27 }
  0xac   :  { %68 = vadd.xlane.f32.xlu0 %v3450_v49 }
  0xae   :  { %891 = vmatpush.bf16.msra.mxu3 %v2722_v52  ;;  %v3709_v52 = vld [vmem:[%s5887_s3] ss:$0 sm:$0xff] }
  0xef   :  { %v148_v14 = vpop.xlane.xlu0 %147 }
  0xf0   :  { %v187_v19 = vmul.f32 %v148_v14, %v3368_v13 }
  0xf2   :  { %v207_v29 = vadd.f32 1e-05, %v187_v19 }
  0xf4   :  { %2952 = vrsqrt.f32 %v207_v29  ;;  %vm233_vm2 = vweird.f32 %v207_v29 }
  0xf7   :  { %v154_v53 = vpop.xlane.xlu2 %153  ;;  %v55_v54 = vpop.xlane.xlu0 %54 }
  0xf8   :  { %v190_v55 = vmul.f32 %v154_v53, %v3368_v13  ;;  %v150_v56 = vpop.xlane.xlu1 %149  ;;  %v94_v57 = vmul.f32 %v3368_v13, %v55_v54 }
  0xf9   :  { %v188_v58 = vmul.f32 %v150_v56, %v3368_v13 }
  0xfa   :  { %v2953_v59 = vpop.eup %2952  ;;  %v3649_v60 = vadd.f32 1e-05, %v190_v55  ;;  %v3652_v61 = vsub.f32 %v3386_v28, %v94_v57 }
  0xfb   :  { %v228_v62 = vmul.f32 %v2953_v59, %v207_v29  ;;  %v208_v63 = vadd.f32 1e-05, %v188_v58  ;;  %vm234_vm1 = vweird.f32 %v2953_v59 }
  0xfc   :  { %2954 = vrsqrt.f32 %v3649_v60  ;;  %v134_v0 = vmul.f32 %v3652_v61, %v3652_v61  ;;  %vm3672_vm3 = vmor %vm233_vm2, %vm234_vm1  ;;  %vm263_vm7 = vweird.f32 %v3649_v60 }
  0xfd   :  { %v229_v1 = vmul.f32 %v2953_v59, %v228_v62  ;;  %2956 = vrsqrt.f32 %v208_v63  ;;  %vm243_vm5 = vweird.f32 %v208_v63 }
  0xfe   :  { %161 = vadd.xlane.f32.xlu1 %v134_v0 }
  0xff   :  { %v230_v2 = vmul.f32 0.5, %v229_v1  ;;  %v156_v3 = vpop.xlane.xlu2 %155  ;;  %v57_v4 = vpop.xlane.xlu0 %56 }
 0x100   :  { %v152_v5 = vpop.xlane.xlu1 %151  ;;  %v95_v6 = vmul.f32 %v3368_v13, %v57_v4  ;;  %v191_v15 = vmul.f32 %v156_v3, %v3368_v13 }
 0x101   :  { %v231_v7 = vsub.f32 1.5, %v230_v2  ;;  %v189_v28 = vmul.f32 %v152_v5, %v3368_v13 }
 0x102   :  { %v3659_v8 = vpop.eup %2954  ;;  %v3662_v9 = vsub.f32 %v3403_v36, %v95_v6  ;;  %v3680_v31 = vadd.f32 1e-05, %v191_v15 }
 0x103   :  { %v2957_v10 = vpop.eup %2956  ;;  %v3664_v11 = vadd.f32 1e-05, %v189_v28  ;;  %v232_v14 = vmul.f32 %v2953_v59, %v231_v7  ;;  %v258_v16 = vmul.f32 %v3659_v8, %v3649_v60  ;;  %vm264_vm8 = vweird.f32 %v3659_v8 }
 0x104   :  { %v238_v12 = vmul.f32 %v2957_v10, %v208_v63  ;;  %v135_v19 = vmul.f32 %v3662_v9, %v3662_v9  ;;  %vm244_vm4 = vweird.f32 %v2957_v10  ;;  %vm3755_vm10 = vmor %vm263_vm7, %vm264_vm8  ;;  %vm273_vm15 = vweird.f32 %v3680_v31 }
 0x105   :  { %2958 = vrsqrt.f32 %v3664_v11  ;;  %v236_v30 = vsel %vm3672_vm3, %v2953_v59, %v232_v14  ;;  %v259_v34 = vmul.f32 %v3659_v8, %v258_v16  ;;  %vm245_vm6 = vmor %vm243_vm5, %vm244_vm4  ;;  %vm253_vm11 = vweird.f32 %v3664_v11 }
 0x106   :  { %v239_v18 = vmul.f32 %v2957_v10, %v238_v12  ;;  %163 = vadd.xlane.f32.xlu1 %v135_v19  ;;  %v427_v51 = vmul.f32 %v236_v30, %v3371_v17 }
 0x107   :  { %v63_v36 = vpop.xlane.xlu2 %62  ;;  %v158_v20 = vpop.xlane.xlu0 %157  ;;  %v260_v53 = vmul.f32 0.5, %v259_v34 }
 0x108   :  { %v240_v22 = vmul.f32 0.5, %v239_v18  ;;  %v98_v23 = vmul.f32 %v3368_v13, %v63_v36  ;;  %v59_v26 = vpop.xlane.xlu1 %58  ;;  %v192_v27 = vmul.f32 %v158_v20, %v3368_v13  ;;  %v451_v1 = vmul.f32 %v3709_v52, %v427_v51 }
 0x109   :  { %v96_v29 = vmul.f32 %v3368_v13, %v59_v26  ;;  %v261_v4 = vsub.f32 1.5, %v260_v53 }
 0x10a   :  { %v241_v35 = vsub.f32 1.5, %v240_v22  ;;  %v3685_v37 = vsub.f32 %v3416_v42, %v98_v23  ;;  %v3687_v39 = vadd.f32 1e-05, %v192_v27 }
 0x10b   :  { %v3689_v40 = vpop.eup %2958  ;;  %v3692_v41 = vsub.f32 %v3421_v43, %v96_v29  ;;  %v3704_v43 = vld [vmem:[%s5886_s0 + $0x78] sm:$0xff]  ;;  %v262_v16 = vmul.f32 %v3659_v8, %v261_v4 }
 0x10c   :  { %v242_v45 = vmul.f32 %v2957_v10, %v241_v35  ;;  %v248_v50 = vmul.f32 %v3689_v40, %v3664_v11  ;;  %2960 = vrsqrt.f32 %v3687_v39  ;;  %v138_v42 = vmul.f32 %v3685_v37, %v3685_v37  ;;  %v3783_v35 = vld [vmem:[%s5886_s0 + $0x98] sm:$0xff] }
 0x10d   :  { %2962 = vrsqrt.f32 %v3680_v31  ;;  %v136_v55 = vmul.f32 %v3692_v41, %v3692_v41  ;;  %vm254_vm9 = vweird.f32 %v3689_v40  ;;  %v266_v11 = vsel %vm3755_vm10, %v3659_v8, %v262_v16 }
 0x10e   :  { %v246_v54 = vsel %vm245_vm6, %v2957_v10, %v242_v45  ;;  %v249_v17 = vmul.f32 %v3689_v40, %v248_v50  ;;  %169 = vadd.xlane.f32.xlu0 %v138_v42  ;;  %70 = vadd.xlane.f32.xlu1 %v3704_v43  ;;  %vm3762_vm12 = vmor %vm253_vm11, %vm254_vm9  ;;  %v430_v8 = vmul.f32 %v266_v11, %v3377_v24  ;;  %v3791_v45 = vld [vmem:[%s5886_s0 + $0x88] sm:$0xff]  ;;  %vm283_vm13 = vweird.f32 %v3687_v39 }
 0x10f   :  { %v428_v56 = vmul.f32 %v246_v54, %v3379_v25  ;;  %v65_v57 = vpop.xlane.xlu2 %64  ;;  %v3715_v58 = vpop.xlane.xlu0 %159  ;;  %165 = vadd.xlane.f32.xlu2 %v136_v55  ;;  %v3725_v25 = vld [vmem:[%s5888_s4] ss:$0 sm:$0xff] }
 0x110   :  { %v250_v59 = vmul.f32 0.5, %v249_v17  ;;  %v99_v62 = vmul.f32 %v3368_v13, %v65_v57  ;;  %v61_v63 = vpop.xlane.xlu1 %60  ;;  %v475_v60 = vadd.f32 %v3725_v25, %v451_v1  ;;  %v454_v53 = vmul.f32 %v3709_v52, %v430_v8 }
 0x111   :  { %v97_v0 = vmul.f32 %v3368_v13, %v61_v63  ;;  %v452_v2 = vmul.f32 %v3709_v52, %v428_v56 }
 0x112   :  { %v3727_v3 = vpop.eup %2960  ;;  %v251_v5 = vsub.f32 1.5, %v250_v59  ;;  %v3730_v6 = vsub.f32 %v3432_v46, %v99_v62 }
 0x113   :  { %v3732_v7 = vpop.eup %2962  ;;  %v3737_v28 = vsub.f32 %v3437_v47, %v97_v0  ;;  %v278_v12 = vmul.f32 %v3727_v3, %v3687_v39  ;;  %v476_v15 = vadd.f32 %v3725_v25, %v452_v2  ;;  %v3752_v47 = vld [vmem:[%s5886_s0 + $0x80] sm:$0xff]  ;;  %vm284_vm14 = vweird.f32 %v3727_v3  ;;  %v3812_v39 = vld [vmem:[%s5886_s0 + $0x90] sm:$0xff] }
 0x114   :  { %v252_v10 = vmul.f32 %v3689_v40, %v251_v5  ;;  %v139_v46 = vmul.f32 %v3730_v6, %v3730_v6  ;;  %v268_v19 = vmul.f32 %v3732_v7, %v3680_v31  ;;  %vm274_vm0 = vweird.f32 %v3732_v7  ;;  %vm285_vm1 = vmor %vm283_vm13, %vm284_vm14 }
 0x115   :  { %v137_v14 = vmul.f32 %v3737_v28, %v3737_v28  ;;  %v495_v20 = vpack.c.bf16 %v476_v15, %v475_v60  ;;  %v279_v23 = vmul.f32 %v3727_v3, %v278_v12  ;;  %vm275_vm2 = vmor %vm273_vm15, %vm274_vm0 }
 0x116   :  { %171 = vadd.xlane.f32.xlu0 %v139_v46  ;;  %v256_v22 = vsel %vm3762_vm12, %v3689_v40, %v252_v10  ;;  %72 = vadd.xlane.f32.xlu1 %v3752_v47  ;;  %v269_v27 = vmul.f32 %v3732_v7, %v268_v19 }
 0x117   :  { %v67_v21 = vpop.xlane.xlu0 %66  ;;  %167 = vadd.xlane.f32.xlu2 %v137_v14  ;;  %715 = vmatmul.bf16.vlgmr.msra.gmra.mxu0 %v495_v20  ;;  %v429_v29 = vmul.f32 %v256_v22, %v3395_v33  ;;  %v280_v34 = vmul.f32 0.5, %v279_v23 }
 0x118   :  { %v100_v26 = vmul.f32 %v3368_v13, %v67_v21  ;;  %774 = vmatmul.bf16.vlgmr.msra.gmra.mxu1 %v495_v20  ;;  %833 = vmatmul.bf16.vlgmr.msra.gmra.mxu2 %v495_v20 }
 0x119   :  { %892 = vmatmul.bf16.vlgmr.msra.gmra.mxu3 %v495_v20  ;;  %v453_v50 = vmul.f32 %v3709_v52, %v429_v29  ;;  %v281_v51 = vsub.f32 1.5, %v280_v34 }
 0x11a   :  { %v3777_v30 = vsub.f32 %v3444_v48, %v100_v26  ;;  %v270_v48 = vmul.f32 0.5, %v269_v27 }
 0x11b   :  { %v477_v17 = vadd.f32 %v3725_v25, %v453_v50  ;;  %v282_v55 = vmul.f32 %v3727_v3, %v281_v51 }
 0x11c   :  { %v140_v40 = vmul.f32 %v3777_v30, %v3777_v30  ;;  %v271_v24 = vsub.f32 1.5, %v270_v48 }
 0x11d   :  { %v286_v31 = vsel %vm285_vm1, %v3727_v3, %v282_v55 }
 0x11e   :  { %78 = vadd.xlane.f32.xlu0 %v3783_v35  ;;  %173 = vadd.xlane.f32.xlu1 %v140_v40  ;;  %v272_v57 = vmul.f32 %v3732_v7, %v271_v24  ;;  %v432_v63 = vmul.f32 %v286_v31, %v3408_v38 }
 0x11f   :  { %v69_v33 = vpop.xlane.xlu0 %68  ;;  %74 = vadd.xlane.f32.xlu2 %v3791_v45 }
 0x120   :  { %v101_v42 = vmul.f32 %v3368_v13, %v69_v33  ;;  %v276_v62 = vsel %vm275_vm2, %v3732_v7, %v272_v57  ;;  %v456_v1 = vmul.f32 %v3709_v52, %v432_v63  ;;  %v193_v7 = vmul.f32 %v3715_v58, %v3368_v13 }
 0x121   :  { %v431_v0 = vmul.f32 %v276_v62, %v3393_v32 }
 0x122   :  { %v3801_v54 = vsub.f32 %v3450_v49, %v101_v42  ;;  %v478_v49 = vadd.f32 %v3725_v25, %v454_v53  ;;  %v480_v4 = vadd.f32 %v3725_v25, %v456_v1  ;;  %v213_v10 = vadd.f32 1e-05, %v193_v7 }
 0x123   :  { %v455_v2 = vmul.f32 %v3709_v52, %v431_v0 }
 0x124   :  { %v141_v56 = vmul.f32 %v3801_v54, %v3801_v54  ;;  %v496_v59 = vpack.c.bf16 %v478_v49, %v477_v17  ;;  %2964 = vrsqrt.f32 %v213_v10  ;;  %vm293_vm3 = vweird.f32 %v213_v10 }
 0x125   :  { %v479_v3 = vadd.f32 %v3725_v25, %v455_v2 }
 0x126   :  { %175 = vadd.xlane.f32.xlu1 %v141_v56 }
 0x127   :  { %76 = vadd.xlane.f32.xlu2 %v3812_v39  ;;  %720 = vmatmul.bf16.gmra.mxu0 %v496_v59  ;;  %v497_v5 = vpack.c.bf16 %v480_v4, %v479_v3 }
 0x128   :  { %779 = vmatmul.bf16.gmra.mxu1 %v496_v59  ;;  %838 = vmatmul.bf16.gmra.mxu2 %v496_v59 }
 0x129   :  { %897 = vmatmul.bf16.gmra.mxu3 %v496_v59 }
 0x12a   :  { %v2965_v38 = vpop.eup %2964 }
 0x12b   :  { %v288_v32 = vmul.f32 %v2965_v38, %v213_v10  ;;  %vm294_vm4 = vweird.f32 %v2965_v38 }
 0x12c   :  { %vm3832_vm5 = vmor %vm293_vm3, %vm294_vm4 }
 0x12d   :  { %v289_v14 = vmul.f32 %v2965_v38, %v288_v32  ;;  %v537_v32 = vld [vmem:[%s5890_s2] sm:$0xf] }
 0x12f   :  { %v290_v15 = vmul.f32 0.5, %v289_v14 }
 0x131   :  { %v291_v19 = vsub.f32 1.5, %v290_v15 }
 0x133   :  { %v292_v22 = vmul.f32 %v2965_v38, %v291_v19 }
 0x135   :  { %v296_v8 = vsel %vm3832_vm5, %v2965_v38, %v292_v22  ;;  %v3886_v22 = vperm.slane %v537_v32, 1 }
 0x136   :  { %v433_v24 = vmul.f32 %v296_v8, %v3424_v44 }
 0x137   :  { %725 = vmatmul.bf16.gmra.mxu0 %v497_v5 }
 0x138   :  { %784 = vmatmul.bf16.gmra.mxu1 %v497_v5  ;;  %843 = vmatmul.bf16.gmra.mxu2 %v497_v5  ;;  %v457_v0 = vmul.f32 %v3709_v52, %v433_v24 }
 0x139   :  { %902 = vmatmul.bf16.gmra.mxu3 %v497_v5 }
 0x13a   :  { %v481_v38 = vadd.f32 %v3725_v25, %v457_v0 }
 0x171   :  { %v162_v12 = vpop.xlane.xlu1 %161 }
 0x172   :  { %v194_v46 = vmul.f32 %v162_v12, %v3368_v13 }
 0x174   :  { %v214_v60 = vadd.f32 1e-05, %v194_v46 }
 0x176   :  { %2966 = vrsqrt.f32 %v214_v60  ;;  %vm303_vm7 = vweird.f32 %v214_v60 }
 0x179   :  { %v164_v16 = vpop.xlane.xlu1 %163 }
 0x17a   :  { %v195_v36 = vmul.f32 %v164_v16, %v3368_v13 }
 0x17c   :  { %v2967_v18 = vpop.eup %2966  ;;  %v3829_v58 = vadd.f32 1e-05, %v195_v36 }
 0x17d   :  { %v298_v20 = vmul.f32 %v2967_v18, %v214_v60  ;;  %vm304_vm6 = vweird.f32 %v2967_v18 }
 0x17e   :  { %2968 = vrsqrt.f32 %v3829_v58  ;;  %vm305_vm8 = vmor %vm303_vm7, %vm304_vm6  ;;  %vm313_vm10 = vweird.f32 %v3829_v58 }
 0x17f   :  { %v299_v21 = vmul.f32 %v2967_v18, %v298_v20 }
 0x181   :  { %v300_v26 = vmul.f32 0.5, %v299_v21  ;;  %v170_v11 = vpop.xlane.xlu0 %169  ;;  %v71_v34 = vpop.xlane.xlu1 %70 }
 0x182   :  { %v166_v29 = vpop.xlane.xlu2 %165  ;;  %v198_v40 = vmul.f32 %v170_v11, %v3368_v13  ;;  %v102_v33 = vmul.f32 %v3368_v13, %v71_v34 }
 0x183   :  { %v301_v27 = vsub.f32 1.5, %v300_v26  ;;  %v196_v48 = vmul.f32 %v166_v29, %v3368_v13 }
 0x184   :  { %v3841_v51 = vpop.eup %2968  ;;  %v3846_v53 = vsub.f32 %v3704_v43, %v102_v33  ;;  %v3851_v56 = vadd.f32 1e-05, %v198_v40 }
 0x185   :  { %v302_v50 = vmul.f32 %v2967_v18, %v301_v27  ;;  %v3843_v42 = vadd.f32 1e-05, %v196_v48  ;;  %v308_v55 = vmul.f32 %v3841_v51, %v3829_v58  ;;  %vm314_vm9 = vweird.f32 %v3841_v51 }
 0x186   :  { %v142_v59 = vmul.f32 %v3846_v53, %v3846_v53  ;;  %vm3896_vm11 = vmor %vm313_vm10, %vm314_vm9  ;;  %vm343_vm15 = vweird.f32 %v3851_v56 }
 0x187   :  { %v306_v17 = vsel %vm305_vm8, %v2967_v18, %v302_v50  ;;  %2970 = vrsqrt.f32 %v3843_v42  ;;  %v309_v57 = vmul.f32 %v3841_v51, %v308_v55  ;;  %v3882_v18 = vperm.slane %v537_v32, 0 }
 0x188   :  { %v434_v49 = vmul.f32 %v306_v17, %v3652_v61  ;;  %2972 = vrsqrt.f32 %v3851_v56  ;;  %177 = vadd.xlane.f32.xlu2 %v142_v59  ;;  %vm323_vm13 = vweird.f32 %v3843_v42 }
 0x189   :  { %v172_v31 = vpop.xlane.xlu0 %171  ;;  %v310_v62 = vmul.f32 0.5, %v309_v57  ;;  %v73_v63 = vpop.xlane.xlu1 %72 }
 0x18a   :  { %v458_v43 = vmul.f32 %v3709_v52, %v434_v49  ;;  %v168_v44 = vpop.xlane.xlu2 %167  ;;  %v103_v1 = vmul.f32 %v3368_v13, %v73_v63  ;;  %v199_v12 = vmul.f32 %v172_v31, %v3368_v13  ;;  %v3933_v31 = vperm.slane %v537_v32, 2 }
 0x18b   :  { %v197_v61 = vmul.f32 %v168_v44, %v3368_v13  ;;  %v311_v3 = vsub.f32 1.5, %v310_v62 }
 0x18c   :  { %v482_v2 = vadd.f32 %v3725_v25, %v458_v43  ;;  %v3867_v7 = vsub.f32 %v3752_v47, %v103_v1  ;;  %v3890_v26 = vadd.f32 1e-05, %v199_v12  ;;  %v3935_v43 = vperm.slane %v537_v32, 3 }
 0x18d   :  { %v2971_v4 = vpop.eup %2970  ;;  %v3864_v5 = vadd.f32 1e-05, %v197_v61  ;;  %v312_v15 = vmul.f32 %v3841_v51, %v311_v3 }
 0x18e   :  { %v318_v10 = vmul.f32 %v2971_v4, %v3843_v42  ;;  %v3876_v46 = vpop.eup %2972  ;;  %v143_v60 = vmul.f32 %v3867_v7, %v3867_v7  ;;  %v498_v47 = vpack.c.bf16 %v482_v2, %v481_v38  ;;  %vm324_vm12 = vweird.f32 %v2971_v4 }
 0x18f   :  { %2974 = vrsqrt.f32 %v3864_v5  ;;  %v338_v23 = vmul.f32 %v3876_v46, %v3851_v56  ;;  %v316_v40 = vsel %vm3896_vm11, %v3841_v51, %v312_v15  ;;  %vm3916_vm14 = vmor %vm323_vm13, %vm324_vm12  ;;  %vm344_vm0 = vweird.f32 %v3876_v46 }
 0x190   :  { %v319_v14 = vmul.f32 %v2971_v4, %v318_v10  ;;  %179 = vadd.xlane.f32.xlu0 %v143_v60  ;;  %730 = vmatmul.bf16.gmra.mxu0 %v498_v47  ;;  %2976 = vrsqrt.f32 %v3890_v26  ;;  %v435_v57 = vmul.f32 %v316_v40, %v3662_v9  ;;  %vm3992_vm1 = vmor %vm343_vm15, %vm344_vm0  ;;  %vm333_vm3 = vweird.f32 %v3864_v5 }
 0x191   :  { %v79_v16 = vpop.xlane.xlu0 %78  ;;  %v174_v20 = vpop.xlane.xlu1 %173  ;;  %789 = vmatmul.bf16.gmra.mxu1 %v498_v47  ;;  %848 = vmatmul.bf16.gmra.mxu2 %v498_v47  ;;  %v339_v51 = vmul.f32 %v3876_v46, %v338_v23 }
 0x192   :  { %v320_v19 = vmul.f32 0.5, %v319_v14  ;;  %v75_v36 = vpop.xlane.xlu2 %74  ;;  %v106_v21 = vmul.f32 %v3368_v13, %v79_v16  ;;  %v200_v58 = vmul.f32 %v174_v20, %v3368_v13  ;;  %907 = vmatmul.bf16.gmra.mxu3 %v498_v47 }
 0x193   :  { %v104_v11 = vmul.f32 %v3368_v13, %v75_v36  ;;  %v340_v9 = vmul.f32 0.5, %v339_v51  ;;  %v459_v36 = vmul.f32 %v3709_v52, %v435_v57 }
 0x194   :  { %v321_v29 = vsub.f32 1.5, %v320_v19  ;;  %v3907_v8 = vsub.f32 %v3783_v35, %v106_v21  ;;  %v716_v48 = vpop.f32.mrf.mxu0  ;;  %v3914_v55 = vadd.f32 1e-05, %v200_v58 }
 0x195   :  { %v3900_v34 = vpop.eup %2974  ;;  %v775_v33 = vpop.f32.mrf.mxu1  ;;  %v3912_v17 = vsub.f32 %v3791_v45, %v104_v11  ;;  %v3923_v35 = vadd.f32 %v716_v48, %v3882_v18  ;;  %v341_v15 = vsub.f32 1.5, %v340_v9 }
 0x196   :  { %v322_v50 = vmul.f32 %v2971_v4, %v321_v29  ;;  %v328_v24 = vmul.f32 %v3900_v34, %v3864_v5  ;;  %v3926_v42 = vadd.f32 %v775_v33, %v3886_v22  ;;  %2978 = vrsqrt.f32 %v3914_v55  ;;  %v3945_v32 = vpop.eup %2976 }
 0x197   :  { %v2835_v59 = vmul.f32 -1.702, %v3923_v35  ;;  %v144_v63 = vmul.f32 %v3912_v17, %v3912_v17  ;;  %v146_v0 = vmul.f32 %v3907_v8, %v3907_v8  ;;  %v348_v21 = vmul.f32 %v3945_v32, %v3890_v26 }
 0x198   :  { %v326_v45 = vsel %vm3916_vm14, %v2971_v4, %v322_v50  ;;  %v329_v62 = vmul.f32 %v3900_v34, %v328_v24  ;;  %v2836_v44 = vmul.f32 -1.702, %v3926_v42  ;;  %v3974_v50 = vmul.f32 %v3876_v46, %v341_v15 }
 0x199   :  { %v436_v1 = vmul.f32 %v326_v45, %v3692_v41  ;;  %v1103_v2 = vmul.f32 1.442695, %v2835_v59  ;;  %181 = vadd.xlane.f32.xlu1 %v144_v63  ;;  %185 = vadd.xlane.f32.xlu0 %v146_v0  ;;  %v483_v24 = vadd.f32 %v3725_v25, %v459_v36  ;;  %v349_v45 = vmul.f32 %v3945_v32, %v348_v21 }
 0x19a   :  { %v77_v61 = vpop.xlane.xlu2 %76  ;;  %v1105_v3 = vmul.f32 1.442695, %v2836_v44  ;;  %v330_v60 = vmul.f32 0.5, %v329_v62  ;;  %vm334_vm2 = vweird.f32 %v3900_v34 }
 0x19b   :  { %v105_v4 = vmul.f32 %v3368_v13, %v77_v61  ;;  %v834_v10 = vpop.f32.mrf.mxu2  ;;  %2980 = vpow2.f32 %v1103_v2  ;;  %v460_v20 = vmul.f32 %v3709_v52, %v436_v1  ;;  %v4001_v2 = vmul.f32 0.5, %v349_v45  ;;  %vm4011_vm4 = vmor %vm333_vm3, %vm334_vm2 }
 0x19c   :  { %v893_v38 = vpop.f32.mrf.mxu3  ;;  %v3948_v12 = vadd.f32 %v834_v10, %v3933_v31  ;;  %v3950_v14 = vpop.eup %2978  ;;  %2982 = vpow2.f32 %v1105_v3  ;;  %v331_v27 = vsub.f32 1.5, %v330_v60 }
 0x19d   :  { %v3953_v41 = vsub.f32 %v3812_v39, %v105_v4  ;;  %v3956_v47 = vadd.f32 %v893_v38, %v3935_v43  ;;  %v718_v19 = vpop.f32.mrf.mxu0  ;;  %v358_v39 = vmul.f32 %v3950_v14, %v3914_v55  ;;  %v777_v58 = vpop.f32.mrf.mxu1  ;;  %v484_v49 = vadd.f32 %v3725_v25, %v460_v20 }
 0x19e   :  { %v2837_v16 = vmul.f32 -1.702, %v3948_v12  ;;  %v3969_v40 = vadd.f32 %v718_v19, %v3882_v18  ;;  %v3982_v59 = vadd.f32 %v777_v58, %v3886_v22  ;;  %v332_v9 = vmul.f32 %v3900_v34, %v331_v27 }
 0x19f   :  { %5905 = vst [vmem:[#allocation2_spill] sm:$0xff] %v3953_v41  ;;  %v2838_v23 = vmul.f32 -1.702, %v3956_v47  ;;  %v145_v48 = vmul.f32 %v3953_v41, %v3953_v41  ;;  %v359_v62 = vmul.f32 %v3950_v14, %v358_v39  ;;  %v499_v0 = vpack.c.bf16 %v484_v49, %v483_v24 }
 0x1a0   :  { %v1107_v11 = vmul.f32 1.442695, %v2837_v16  ;;  %v2839_v63 = vmul.f32 -1.702, %v3969_v40  ;;  %v2840_v56 = vmul.f32 -1.702, %v3982_v59  ;;  %v336_v16 = vsel %vm4011_vm4, %v3900_v34, %v332_v9 }
 0x1a1   :  { %v1109_v29 = vmul.f32 1.442695, %v2838_v23  ;;  %v2981_v33 = vpop.eup %2980  ;;  %183 = vadd.xlane.f32.xlu2 %v145_v48  ;;  %735 = vmatmul.bf16.gmra.mxu0 %v499_v0  ;;  %v4015_v5 = vmul.f32 0.5, %v359_v62  ;;  %v4032_v48 = vmul.f32 %v336_v16, %v3737_v28 }
 0x1a2   :  { %2984 = vpow2.f32 %v1107_v11  ;;  %v2983_v51 = vpop.eup %2982  ;;  %v3979_v57 = vadd.f32 1.0, %v2981_v33  ;;  %794 = vmatmul.bf16.gmra.mxu1 %v499_v0  ;;  %853 = vmatmul.bf16.gmra.mxu2 %v499_v0  ;;  %v1111_v60 = vmul.f32 1.442695, %v2839_v63  ;;  %v1113_v27 = vmul.f32 1.442695, %v2840_v56 }
 0x1a3   :  { %2986 = vpow2.f32 %v1109_v29  ;;  %v3985_v44 = vadd.f32 1.0, %v2983_v51  ;;  %v836_v61 = vpop.f32.mrf.mxu2  ;;  %912 = vmatmul.bf16.gmra.mxu3 %v499_v0  ;;  %v461_v1 = vmul.f32 %v3709_v52, %v4032_v48 }
 0x1a4   :  { %2988 = vrcp.f32 %v3979_v57  ;;  %v4005_v4 = vadd.f32 %v836_v61, %v3933_v31  ;;  %v1352_v19 = vand.u32 2147483647, %v3979_v57  ;;  %v1354_v36 = vand.u32 2147483648, %v3979_v57  ;;  %v895_v0 = vpop.f32.mrf.mxu3 }
 0x1a5   :  { %2990 = vrcp.f32 %v3985_v44  ;;  %v1367_v21 = vand.u32 2147483647, %v3985_v44  ;;  %v1369_v23 = vand.u32 2147483648, %v3985_v44  ;;  %vm1348_vm5 = vweird.f32 %v3979_v57 }
 0x1a6   :  { %2992 = vpow2.f32 %v1111_v60  ;;  %v2841_v34 = vmul.f32 -1.702, %v4005_v4  ;;  %vm4038_vm6 = vcmp.eq.f32.partialorder %v1352_v19, 8.507059e+37  ;;  %vm1363_vm7 = vweird.f32 %v3985_v44 }
 0x1a7   :  { %v1355_v62 = vor.u32 1.1754944e-38, %v1354_v36  ;;  %vm4044_vm8 = vcmp.eq.f32.partialorder %v1367_v21, 8.507059e+37  ;;  %v1370_v63 = vor.u32 1.1754944e-38, %v1369_v23  ;;  %v4053_v19 = vadd.f32 %v895_v0, %v3935_v43 }
 0x1a8   :  { %v2985_v3 = vpop.eup %2984  ;;  %v1115_v56 = vmul.f32 1.442695, %v2841_v34 }
 0x1a9   :  { %v2987_v15 = vpop.eup %2986  ;;  %v4022_v20 = vadd.f32 1.0, %v2985_v3  ;;  %v2842_v33 = vmul.f32 -1.702, %v4053_v19 }
 0x1aa   :  { %v4026_v39 = vadd.f32 1.0, %v2987_v15  ;;  %v2989_v11 = vpop.eup %2988 }
 0x1ab   :  { %2994 = vrcp.f32 %v4022_v20  ;;  %v2991_v29 = vpop.eup %2990  ;;  %v1344_v24 = vmul.f32 %v2989_v11, %v3979_v57  ;;  %v1382_v9 = vand.u32 2147483647, %v4022_v20  ;;  %vm1349_vm9 = vweird.f32 %v2989_v11 }
 0x1ac   :  { %2996 = vrcp.f32 %v4026_v39  ;;  %v1359_v51 = vmul.f32 %v2991_v29, %v3985_v44  ;;  %v2993_v3 = vpop.eup %2992  ;;  %vm1364_vm10 = vweird.f32 %v2991_v29  ;;  %vm1378_vm11 = vweird.f32 %v4022_v20  ;;  %vm1350_vm13 = vmor %vm1348_vm5, %vm1349_vm9 }
 0x1ad   :  { %v1345_v45 = vsub.f32 1.0, %v1344_v24  ;;  %2998 = vpow2.f32 %v1113_v27  ;;  %v4050_v16 = vadd.f32 1.0, %v2993_v3  ;;  %v1384_v27 = vand.u32 2147483648, %v4022_v20  ;;  %vm1365_vm15 = vmor %vm1363_vm7, %vm1364_vm10 }
 0x1ae   :  { %v1360_v61 = vsub.f32 1.0, %v1359_v51  ;;  %3000 = vpow2.f32 %v1115_v56  ;;  %vm1393_vm12 = vweird.f32 %v4026_v39  ;;  %vm4060_vm14 = vcmp.eq.f32.partialorder %v1382_v9, 8.507059e+37  ;;  %v721_v56 = vpop.f32.mrf.mxu0 }
 0x1af   :  { %v1346_v38 = vmul.f32 %v2989_v11, %v1345_v45  ;;  %3002 = vrcp.f32 %v4050_v16  ;;  %v1399_v57 = vand.u32 2147483648, %v4026_v39  ;;  %v1385_v49 = vor.u32 1.1754944e-38, %v1384_v27 }
 0x1b0   :  { %v1361_v15 = vmul.f32 %v2991_v29, %v1360_v61  ;;  %v1397_v61 = vand.u32 2147483647, %v4026_v39 }
 0x1b1   :  { %v2995_v60 = vpop.eup %2994  ;;  %v1347_v21 = vadd.f32 %v2989_v11, %v1346_v38 }
 0x1b2   :  { %v2997_v36 = vpop.eup %2996  ;;  %v1374_v23 = vmul.f32 %v2995_v60, %v4022_v20  ;;  %v1362_v34 = vadd.f32 %v2991_v29, %v1361_v15  ;;  %vm1379_vm0 = vweird.f32 %v2995_v60  ;;  %vm4083_vm3 = vcmp.eq.f32.partialorder %v1397_v61, 8.507059e+37 }
 0x1b3   :  { %v1389_v51 = vmul.f32 %v2997_v36, %v4026_v39  ;;  %v1351_v45 = vsel %vm1350_vm13, %v2989_v11, %v1347_v21  ;;  %v2999_v3 = vpop.eup %2998  ;;  %vm1394_vm2 = vweird.f32 %v2997_v36  ;;  %vm1380_vm4 = vmor %vm1378_vm11, %vm1379_vm0 }
 0x1b4   :  { %v1375_v0 = vsub.f32 1.0, %v1374_v23  ;;  %v1356_v9 = vsel %vm4038_vm6, %v1355_v62, %v1351_v45  ;;  %v1366_v38 = vsel %vm1365_vm15, %v2991_v29, %v1362_v34  ;;  %v3001_v23 = vpop.eup %3000  ;;  %v4078_v41 = vadd.f32 1.0, %v2999_v3  ;;  %vm1395_vm5 = vmor %vm1393_vm12, %vm1394_vm2 }
 0x1b5   :  { %v1390_v15 = vsub.f32 1.0, %v1389_v51  ;;  %v2543_v11 = vmul.f32 %v1356_v9, %v3923_v35  ;;  %v1371_v44 = vsel %vm4044_vm8, %v1370_v63, %v1366_v38  ;;  %v4087_v62 = vadd.f32 1.0, %v3001_v23  ;;  %v3003_v28 = vpop.eup %3002  ;;  %v839_v9 = vpop.f32.mrf.mxu2 }
 0x1b6   :  { %v1376_v21 = vmul.f32 %v2995_v60, %v1375_v0  ;;  %v2544_v58 = vmul.f32 %v1371_v44, %v3926_v42  ;;  %v1412_v63 = vand.u32 2147483647, %v4050_v16  ;;  %v1414_v34 = vand.u32 2147483648, %v4050_v16  ;;  %v898_v38 = vpop.f32.mrf.mxu3 }
 0x1b7   :  { %v1391_v10 = vmul.f32 %v2997_v36, %v1390_v15  ;;  %2623 = vst [vmem:[%s5891_s5] sm:$0xff] %v2543_v11  ;;  %3004 = vrcp.f32 %v4078_v41  ;;  %v1400_v51 = vor.u32 1.1754944e-38, %v1399_v57  ;;  %v1404_v45 = vmul.f32 %v3003_v28, %v4050_v16 }
 0x1b8   :  { %v1377_v29 = vadd.f32 %v2995_v60, %v1376_v21  ;;  %2624 = vst [vmem:[%s5891_s5 + $0x8] sm:$0xff] %v2544_v58  ;;  %v1117_v0 = vmul.f32 1.442695, %v2842_v33  ;;  %v780_v58 = vpop.f32.mrf.mxu1  ;;  %v1429_v61 = vand.u32 2147483648, %v4078_v41  ;;  %3006 = vrcp.f32 %v4087_v62 }
 0x1b9   :  { %v1392_v42 = vadd.f32 %v2997_v36, %v1391_v10  ;;  %v1405_v39 = vsub.f32 1.0, %v1404_v45  ;;  %v1427_v57 = vand.u32 2147483647, %v4078_v41  ;;  %vm1408_vm6 = vweird.f32 %v4050_v16 }
 0x1ba   :  { %v1381_v27 = vsel %vm1380_vm4, %v2995_v60, %v1377_v29  ;;  %vm4111_vm7 = vcmp.eq.f32.partialorder %v1412_v63, 8.507059e+37  ;;  %vm1409_vm8 = vweird.f32 %v3003_v28  ;;  %vm1423_vm9 = vweird.f32 %v4078_v41 }
 0x1bb   :  { %v1386_v20 = vsel %vm4060_vm14, %v1385_v49, %v1381_v27  ;;  %v1396_v10 = vsel %vm1395_vm5, %v2997_v36, %v1392_v42  ;;  %v1415_v36 = vor.u32 1.1754944e-38, %v1414_v34  ;;  %3008 = vpow2.f32 %v1117_v0  ;;  %vm1410_vm11 = vmor %vm1408_vm6, %vm1409_vm8 }
 0x1bc   :  { %v2545_v3 = vmul.f32 %v1386_v20, %v3948_v12  ;;  %v1401_v60 = vsel %vm4083_vm3, %v1400_v51, %v1396_v10  ;;  %v1406_v12 = vmul.f32 %v3003_v28, %v1405_v39  ;;  %v4120_v15 = vadd.f32 %v721_v56, %v3882_v18 }
 0x1bd   :  { %v2546_v33 = vmul.f32 %v1401_v60, %v3956_v47  ;;  %v723_v47 = vpop.f32.mrf.mxu0  ;;  %v3005_v11 = vpop.eup %3004  ;;  %v1430_v44 = vor.u32 1.1754944e-38, %v1429_v61  ;;  %v1442_v21 = vand.u32 2147483647, %v4087_v62  ;;  %v4127_v23 = vadd.f32 %v780_v58, %v3886_v22 }
 0x1be   :  { %2625 = vst [vmem:[%s5891_s5 + $0x10] sm:$0xff] %v2545_v3  ;;  %v4130_v29 = vadd.f32 %v839_v9, %v3933_v31  ;;  %v1407_v49 = vadd.f32 %v3003_v28, %v1406_v12  ;;  %v1419_v35 = vmul.f32 %v3005_v11, %v4078_v41  ;;  %vm4133_vm10 = vcmp.eq.f32.partialorder %v1427_v57, 8.507059e+37  ;;  %v3007_v34 = vpop.eup %3006 }
 0x1bf   :  { %2626 = vst [vmem:[%s5891_s5 + $0x18] sm:$0xff] %v2546_v33  ;;  %v1444_v42 = vand.u32 2147483648, %v4087_v62  ;;  %v4139_v63 = vadd.f32 %v898_v38, %v3935_v43  ;;  %v2843_v27 = vmul.f32 -1.702, %v4120_v15  ;;  %v2844_v51 = vmul.f32 -1.702, %v4127_v23 }
 0x1c0   :  { %v2845_v45 = vmul.f32 -1.702, %v4130_v29  ;;  %v4148_v0 = vadd.f32 %v723_v47, %v3882_v18  ;;  %v1411_v58 = vsel %vm1410_vm11, %v3003_v28, %v1407_v49  ;;  %v1420_v20 = vsub.f32 1.0, %v1419_v35  ;;  %v782_v12 = vpop.f32.mrf.mxu1 }
 0x1c1   :  { %vm1424_vm12 = vweird.f32 %v3005_v11  ;;  %v1434_v10 = vmul.f32 %v3007_v34, %v4087_v62  ;;  %v1416_v61 = vsel %vm4111_vm7, %v1415_v36, %v1411_v58  ;;  %v1119_v3 = vmul.f32 1.442695, %v2843_v27  ;;  %v3009_v39 = vpop.eup %3008 }
 0x1c2   :  { %v1121_v16 = vmul.f32 1.442695, %v2844_v51  ;;  %v1123_v60 = vmul.f32 1.442695, %v2845_v45  ;;  %v2547_v57 = vmul.f32 %v1416_v61, %v3969_v40  ;;  %v1421_v9 = vmul.f32 %v3005_v11, %v1420_v20  ;;  %vm1425_vm14 = vmor %vm1423_vm9, %vm1424_vm12 }
 0x1c3   :  { %v1435_v33 = vsub.f32 1.0, %v1434_v10  ;;  %v2846_v38 = vmul.f32 -1.702, %v4139_v63  ;;  %vm1439_vm13 = vweird.f32 %v3007_v34  ;;  %v4155_v28 = vadd.f32 1.0, %v3009_v39 }
 0x1c4   :  { %3010 = vpow2.f32 %v1119_v3  ;;  %v2847_v47 = vmul.f32 -1.702, %v4148_v0  ;;  %2627 = vst [vmem:[%s5891_s5 + $0x20] sm:$0xff] %v2547_v57  ;;  %v1422_v24 = vadd.f32 %v3005_v11, %v1421_v9  ;;  %vm1438_vm15 = vweird.f32 %v4087_v62  ;;  %v900_v57 = vpop.f32.mrf.mxu3 }
 0x1c5   :  { %v1436_v36 = vmul.f32 %v3007_v34, %v1435_v33  ;;  %3012 = vpow2.f32 %v1121_v16  ;;  %v1125_v49 = vmul.f32 1.442695, %v2846_v38  ;;  %vm4165_vm0 = vcmp.eq.f32.partialorder %v1442_v21, 8.507059e+37  ;;  %vm1440_vm2 = vmor %vm1438_vm15, %vm1439_vm13  ;;  %v841_v16 = vpop.f32.mrf.mxu2 }
 0x1c6   :  { %3014 = vrcp.f32 %v4155_v28  ;;  %v4171_v35 = vadd.f32 %v782_v12, %v3886_v22  ;;  %v1426_v27 = vsel %vm1425_vm14, %v3005_v11, %v1422_v24  ;;  %v1127_v45 = vmul.f32 1.442695, %v2847_v47 }
 0x1c7   :  { %v1437_v51 = vadd.f32 %v3007_v34, %v1436_v36  ;;  %3016 = vpow2.f32 %v1123_v60  ;;  %v1431_v58 = vsel %vm4133_vm10, %v1430_v44, %v1426_v27  ;;  %v1445_v41 = vor.u32 1.1754944e-38, %v1444_v42 }
 0x1c8   :  { %v1457_v62 = vand.u32 2147483647, %v4155_v28  ;;  %3018 = vpow2.f32 %v1125_v49  ;;  %v2548_v21 = vmul.f32 %v1431_v58, %v3982_v59  ;;  %v1459_v10 = vand.u32 2147483648, %v4155_v28 }
 0x1c9   :  { %v1441_v20 = vsel %vm1440_vm2, %v3007_v34, %v1437_v51  ;;  %3020 = vpow2.f32 %v1127_v45  ;;  %v5924_v11 = vsel %vm3992_vm1, %v3876_v46, %v3974_v50  ;;  %v2848_v42 = vmul.f32 -1.702, %v4171_v35 }
 0x1ca   :  { %v3011_v61 = vpop.eup %3010  ;;  %v438_v44 = vmul.f32 %v5924_v11, %v3685_v37  ;;  %v1446_v56 = vsel %vm4165_vm0, %v1445_v41, %v1441_v20  ;;  %2628 = vst [vmem:[%s5891_s5 + $0x28] sm:$0xff] %v2548_v21  ;;  %v5925_v37 = vsub.f32 1.5, %v4001_v2  ;;  %v5926_v60 = vsub.f32 1.5, %v4015_v5 }
 0x1cb   :  { %v3013_v3 = vpop.eup %3012  ;;  %v2549_v59 = vmul.f32 %v1446_v56, %v4005_v4  ;;  %v4192_v34 = vadd.f32 1.0, %v3011_v61  ;;  %vm1453_vm1 = vweird.f32 %v4155_v28  ;;  %vm4213_vm3 = vcmp.eq.f32.partialorder %v1457_v62, 8.507059e+37 }
 0x1cc   :  { %v3015_v46 = vpop.eup %3014  ;;  %v4199_v50 = vmul.f32 %v3945_v32, %v5925_v37  ;;  %v4204_v39 = vmul.f32 %v3950_v14, %v5926_v60  ;;  %v4207_v4 = vadd.f32 1.0, %v3013_v3  ;;  %v1460_v5 = vor.u32 1.1754944e-38, %v1459_v10 }
 0x1cd   :  { %v3017_v9 = vpop.eup %3016  ;;  %2629 = vst [vmem:[%s5891_s5 + $0x30] sm:$0xff] %v2549_v59  ;;  %v1449_v2 = vmul.f32 %v3015_v46, %v4155_v28  ;;  %3022 = vrcp.f32 %v4192_v34  ;;  %v4219_v38 = vmul.f32 1.442695, %v2848_v42  ;;  %v462_v12 = vmul.f32 %v3709_v52, %v438_v44 }
 0x1ce   :  { %v3019_v33 = vpop.eup %3018  ;;  %3024 = vrcp.f32 %v4207_v4  ;;  %v4223_v47 = vadd.f32 %v841_v16, %v3933_v31  ;;  %v4225_v49 = vadd.f32 1.0, %v3017_v9  ;;  %v4228_v40 = vadd.f32 %v3725_v25, %v461_v1 }
 0x1cf   :  { %v3021_v24 = vpop.eup %3020  ;;  %v1450_v36 = vsub.f32 1.0, %v1449_v2  ;;  %v4231_v27 = vadd.f32 %v900_v57, %v3935_v43  ;;  %vm1454_vm4 = vweird.f32 %v3015_v46  ;;  %v1472_v51 = vand.u32 2147483647, %v4192_v34 }
 0x1d0   :  { %v1474_v45 = vand.u32 2147483648, %v4192_v34  ;;  %v4235_v58 = vadd.f32 1.0, %v3019_v33  ;;  %v1487_v41 = vand.u32 2147483647, %v4207_v4  ;;  %v1489_v62 = vand.u32 2147483648, %v4207_v4  ;;  %vm1455_vm7 = vmor %vm1453_vm1, %vm1454_vm4 }
 0x1d1   :  { %v1451_v52 = vmul.f32 %v3015_v46, %v1450_v36  ;;  %3026 = vrcp.f32 %v4225_v49  ;;  %v4241_v21 = vadd.f32 1.0, %v3021_v24  ;;  %v486_v20 = vadd.f32 %v3725_v25, %v462_v12 }
 0x1d2   :  { %3028 = vrcp.f32 %v4235_v58  ;;  %v2849_v10 = vmul.f32 -1.702, %v4223_v47  ;;  %vm1468_vm5 = vweird.f32 %v4192_v34  ;;  %vm1483_vm6 = vweird.f32 %v4207_v4 }
 0x1d3   :  { %v3023_v61 = vpop.eup %3022  ;;  %v1452_v11 = vadd.f32 %v3015_v46, %v1451_v52  ;;  %v1504_v44 = vand.u32 2147483648, %v4225_v49  ;;  %vm4254_vm8 = vcmp.eq.f32.partialorder %v1472_v51, 8.507059e+37  ;;  %v1475_v3 = vor.u32 1.1754944e-38, %v1474_v45 }
 0x1d4   :  { %v4248_v56 = vpop.eup %3024  ;;  %v1464_v42 = vmul.f32 %v3023_v61, %v4192_v34  ;;  %v1502_v59 = vand.u32 2147483647, %v4225_v49  ;;  %v1519_v1 = vand.u32 2147483648, %v4235_v58  ;;  %vm4262_vm9 = vcmp.eq.f32.partialorder %v1487_v41, 8.507059e+37 }
 0x1d5   :  { %v1456_v16 = vsel %vm1455_vm7, %v3015_v46, %v1452_v11  ;;  %v1479_v37 = vmul.f32 %v4248_v56, %v4207_v4  ;;  %v1490_v28 = vor.u32 1.1754944e-38, %v1489_v62  ;;  %v1517_v57 = vand.u32 2147483647, %v4235_v58  ;;  %v785_v4 = vpop.f32.mrf.mxu1  ;;  %v176_v62 = vpop.xlane.xlu1 %175 }
 0x1d6   :  { %v1461_v9 = vsel %vm4213_vm3, %v1460_v5, %v1456_v16  ;;  %v1465_v2 = vsub.f32 1.0, %v1464_v42  ;;  %vm1469_vm10 = vweird.f32 %v3023_v61  ;;  %vm1498_vm11 = vweird.f32 %v4225_v49 }
 0x1d7   :  { %3030 = vrcp.f32 %v4241_v21  ;;  %v4271_v46 = vpop.eup %3026  ;;  %vm353_vm12 = vweird.f32 %v3890_v26  ;;  %vm354_vm13 = vweird.f32 %v3945_v32  ;;  %v2550_v33 = vmul.f32 %v1461_v9, %v4053_v19  ;;  %vm1470_vm0 = vmor %vm1468_vm5, %vm1469_vm10 }
 0x1d8   :  { %v1480_v12 = vsub.f32 1.0, %v1479_v37  ;;  %vm1484_vm14 = vweird.f32 %v4248_v56  ;;  %v1505_v24 = vor.u32 1.1754944e-38, %v1504_v44  ;;  %vm1513_vm15 = vweird.f32 %v4235_v58  ;;  %v4278_v48 = vpop.eup %3028  ;;  %v726_v44 = vpop.f32.mrf.mxu0 }
 0x1d9   :  { %v1466_v5 = vmul.f32 %v3023_v61, %v1465_v2  ;;  %v1494_v36 = vmul.f32 %v4271_v46, %v4225_v49  ;;  %vm4284_vm1 = vcmp.eq.f32.partialorder %v1502_v59, 8.507059e+37  ;;  %v1520_v19 = vor.u32 1.1754944e-38, %v1519_v1  ;;  %2630 = vst [vmem:[%s5891_s5 + $0x38] sm:$0xff] %v2550_v33  ;;  %vm1485_vm2 = vmor %vm1483_vm6, %vm1484_vm14 }
 0x1da   :  { %v1532_v45 = vand.u32 2147483647, %v4241_v21  ;;  %v1481_v52 = vmul.f32 %v4248_v56, %v1480_v12  ;;  %vm1499_vm3 = vweird.f32 %v4271_v46  ;;  %v1509_v41 = vmul.f32 %v4278_v48, %v4235_v58 }
 0x1db   :  { %vm4296_vm4 = vcmp.eq.f32.partialorder %v1517_v57, 8.507059e+37  ;;  %v1534_v11 = vand.u32 2147483648, %v4241_v21  ;;  %v1467_v42 = vadd.f32 %v3023_v61, %v1466_v5  ;;  %v1495_v59 = vsub.f32 1.0, %v1494_v36  ;;  %vm1500_vm6 = vmor %vm1498_vm11, %vm1499_vm3 }
 0x1dc   :  { %vm1514_vm7 = vweird.f32 %v4278_v48  ;;  %3032 = vpow2.f32 %v4219_v38  ;;  %v1482_v1 = vadd.f32 %v4248_v56, %v1481_v52  ;;  %v1510_v16 = vsub.f32 1.0, %v1509_v41 }
 0x1dd   :  { %v500_v37 = vpack.c.bf16 %v486_v20, %v4228_v40  ;;  %v1131_v57 = vmul.f32 1.442695, %v2849_v10  ;;  %v4308_v9 = vpop.eup %3030  ;;  %v1471_v2 = vsel %vm1470_vm0, %v3023_v61, %v1467_v42  ;;  %v1496_v38 = vmul.f32 %v4271_v46, %v1495_v59  ;;  %v903_v59 = vpop.f32.mrf.mxu3 }
 0x1de   :  { %v2850_v33 = vmul.f32 -1.702, %v4231_v27  ;;  %v4317_v34 = vadd.f32 %v726_v44, %v3882_v18  ;;  %v1476_v12 = vsel %vm4254_vm8, %v1475_v3, %v1471_v2  ;;  %v1486_v40 = vsel %vm1485_vm2, %v4248_v56, %v1482_v1  ;;  %vm1515_vm8 = vmor %vm1513_vm15, %vm1514_vm7 }
 0x1df   :  { %v1511_v20 = vmul.f32 %v4278_v48, %v1510_v16  ;;  %v1524_v10 = vmul.f32 %v4308_v9, %v4241_v21  ;;  %740 = vmatmul.bf16.gmra.mxu0 %v500_v37  ;;  %v2551_v61 = vmul.f32 %v1476_v12, %v4120_v15  ;;  %v1491_v5 = vsel %vm4262_vm9, %v1490_v28, %v1486_v40  ;;  %vm4361_vm9 = vmor %vm353_vm12, %vm354_vm13 }
 0x1e0   :  { %v1497_v36 = vadd.f32 %v4271_v46, %v1496_v38  ;;  %vm1529_vm5 = vweird.f32 %v4308_v9  ;;  %799 = vmatmul.bf16.gmra.mxu1 %v500_v37  ;;  %858 = vmatmul.bf16.gmra.mxu2 %v500_v37  ;;  %v2552_v56 = vmul.f32 %v1491_v5, %v4127_v23  ;;  %3034 = vpow2.f32 %v1131_v57 }
 0x1e1   :  { %v1512_v25 = vadd.f32 %v4278_v48, %v1511_v20  ;;  %v1525_v3 = vsub.f32 1.0, %v1524_v10  ;;  %917 = vmatmul.bf16.gmra.mxu3 %v500_v37  ;;  %2631 = vst [vmem:[%s5891_s5 + $0x40] sm:$0xff] %v2551_v61  ;;  %v1133_v23 = vmul.f32 1.442695, %v2850_v33  ;;  %v2851_v49 = vmul.f32 -1.702, %v4317_v34 }
 0x1e2   :  { %v3033_v15 = vpop.eup %3032  ;;  %v1501_v60 = vsel %vm1500_vm6, %v4271_v46, %v1497_v36  ;;  %v4346_v28 = vadd.f32 %v785_v4, %v3886_v22  ;;  %2632 = vst [vmem:[%s5891_s5 + $0x48] sm:$0xff] %v2552_v56  ;;  %vm5939_vm10 = vweird.f32 %v3950_v14  ;;  %vm5940_vm11 = vweird.f32 %v3914_v55 }
 0x1e3   :  { %v1506_v52 = vsel %vm4284_vm1, %v1505_v24, %v1501_v60  ;;  %v1516_v46 = vsel %vm1515_vm8, %v4278_v48, %v1512_v25  ;;  %v1526_v41 = vmul.f32 %v4308_v9, %v1525_v3  ;;  %v4355_v44 = vadd.f32 1.0, %v3033_v15  ;;  %v844_v48 = vpop.f32.mrf.mxu2  ;;  %vm4372_vm14 = vmor %vm5940_vm11, %vm5939_vm10 }
 0x1e4   :  { %v2553_v42 = vmul.f32 %v1506_v52, %v4130_v29  ;;  %v1521_v51 = vsel %vm4296_vm4, %v1520_v19, %v1516_v46  ;;  %3036 = vpow2.f32 %v1133_v23  ;;  %v1135_v24 = vmul.f32 1.442695, %v2851_v49  ;;  %v787_v52 = vpop.f32.mrf.mxu1 }
 0x1e5   :  { %v2554_v26 = vmul.f32 %v1521_v51, %v4139_v63  ;;  %v1527_v16 = vadd.f32 %v4308_v9, %v1526_v41  ;;  %vm1528_vm12 = vweird.f32 %v4241_v21  ;;  %3038 = vrcp.f32 %v4355_v44 }
 0x1e6   :  { %2633 = vst [vmem:[%s5891_s5 + $0x50] sm:$0xff] %v2553_v42  ;;  %vm1530_vm13 = vmor %vm1528_vm12, %vm1529_vm5  ;;  %v1535_v55 = vor.u32 1.1754944e-38, %v1534_v11  ;;  %3040 = vpow2.f32 %v1135_v24  ;;  %v2852_v29 = vmul.f32 -1.702, %v4346_v28  ;;  %v3035_v19 = vpop.eup %3034  ;;  %vm1533_vm15 = vcmp.eq.f32.partialorder %v1532_v45, 8.507059e+37  ;;  %v728_v11 = vpop.f32.mrf.mxu0 }
 0x1e7   :  { %2634 = vst [vmem:[%s5891_s5 + $0x58] sm:$0xff] %v2554_v26  ;;  %v1531_v63 = vsel %vm1530_vm13, %v4308_v9, %v1527_v16  ;;  %v4393_v37 = vadd.f32 %v844_v48, %v3933_v31  ;;  %v4396_v57 = vadd.f32 %v903_v59, %v3935_v43  ;;  %v356_v2 = vsel %vm4361_vm9, %v3945_v32, %v4199_v50 }
 0x1e8   :  { %v366_v9 = vsel %vm4372_vm14, %v3950_v14, %v4204_v39  ;;  %v1536_v38 = vsel %vm1533_vm15, %v1535_v55, %v1531_v63  ;;  %v4406_v21 = vadd.f32 1.0, %v3035_v19  ;;  %v1137_v33 = vmul.f32 1.442695, %v2852_v29 }
 0x1e9   :  { %v2555_v45 = vmul.f32 %v1536_v38, %v4148_v0  ;;  %v2853_v12 = vmul.f32 -1.702, %v4393_v37  ;;  %v2854_v40 = vmul.f32 -1.702, %v4396_v57  ;;  %v4412_v10 = vmul.f32 %v176_v62, %v3368_v13 }
 0x1ea   :  { %v3037_v20 = vpop.eup %3036  ;;  %v1547_v32 = vand.u32 2147483647, %v4355_v44  ;;  %3042 = vrcp.f32 %v4406_v21  ;;  %v4417_v14 = vadd.f32 %v728_v11, %v3882_v18  ;;  %v1549_v0 = vand.u32 2147483648, %v4355_v44 }
 0x1eb   :  { %v3039_v50 = vpop.eup %3038  ;;  %2635 = vst [vmem:[%s5891_s5 + $0x60] sm:$0xff] %v2555_v45  ;;  %v4423_v39 = vadd.f32 1.0, %v3037_v20  ;;  %3044 = vpow2.f32 %v1137_v33  ;;  %v1139_v4 = vmul.f32 1.442695, %v2853_v12  ;;  %v4426_v5 = vmul.f32 %v356_v2, %v3730_v6 }
 0x1ec   :  { %v3041_v61 = vpop.eup %3040  ;;  %v4429_v36 = vmul.f32 %v366_v9, %v3777_v30  ;;  %v1539_v56 = vmul.f32 %v3039_v50, %v4355_v44  ;;  %v1564_v25 = vand.u32 2147483648, %v4406_v21  ;;  %vm1543_vm0 = vweird.f32 %v4355_v44 }
 0x1ed   :  { %v1562_v3 = vand.u32 2147483647, %v4406_v21  ;;  %3046 = vrcp.f32 %v4423_v39  ;;  %v1141_v15 = vmul.f32 1.442695, %v2854_v40  ;;  %v4436_v23 = vadd.f32 1.0, %v3041_v61 }
 0x1ee   :  { %v1540_v60 = vsub.f32 1.0, %v1539_v56  ;;  %3048 = vpow2.f32 %v1139_v4  ;;  %v2855_v6 = vmul.f32 -1.702, %v4417_v14  ;;  %vm1544_vm2 = vweird.f32 %v3039_v50 }
 0x1ef   :  { %vm4439_vm1 = vcmp.eq.f32.partialorder %v1547_v32, 8.507059e+37  ;;  %v1550_v49 = vor.u32 1.1754944e-38, %v1549_v0  ;;  %vm1558_vm3 = vweird.f32 %v4406_v21  ;;  %v1565_v58 = vor.u32 1.1754944e-38, %v1564_v25  ;;  %vm1545_vm5 = vmor %vm1543_vm0, %vm1544_vm2 }
 0x1f0   :  { %v3043_v46 = vpop.eup %3042  ;;  %v1541_v41 = vmul.f32 %v3039_v50, %v1540_v60  ;;  %v1577_v42 = vand.u32 2147483647, %v4423_v39  ;;  %3050 = vrcp.f32 %v4436_v23  ;;  %vm4447_vm4 = vcmp.eq.f32.partialorder %v1562_v3, 8.507059e+37  ;;  %v4490_v3 = vld [vmem:[%s5887_s3] ss:$0 sm:$0xff] }
 0x1f1   :  { %v3045_v51 = vpop.eup %3044  ;;  %v1554_v24 = vmul.f32 %v3043_v46, %v4406_v21  ;;  %v1579_v59 = vand.u32 2147483648, %v4423_v39  ;;  %3052 = vpow2.f32 %v1141_v15  ;;  %v1143_v1 = vmul.f32 1.442695, %v2855_v6 }
 0x1f2   :  { %v1542_v26 = vadd.f32 %v3039_v50, %v1541_v41  ;;  %vm1573_vm7 = vweird.f32 %v4423_v39  ;;  %v4453_v16 = vadd.f32 1.0, %v3045_v51  ;;  %v4456_v55 = vadd.f32 %v787_v52, %v3886_v22 }
 0x1f3   :  { %v3047_v29 = vpop.eup %3046  ;;  %v1555_v19 = vsub.f32 1.0, %v1554_v24  ;;  %v1592_v62 = vand.u32 2147483647, %v4436_v23  ;;  %v1594_v63 = vand.u32 2147483648, %v4436_v23  ;;  %3054 = vpow2.f32 %v1143_v1 }
 0x1f4   :  { %v3049_v11 = vpop.eup %3048  ;;  %v1546_v2 = vsel %vm1545_vm5, %v3039_v50, %v1542_v26  ;;  %v1569_v9 = vmul.f32 %v3047_v29, %v4423_v39  ;;  %vm4464_vm6 = vcmp.eq.f32.partialorder %v1577_v42, 8.507059e+37  ;;  %3056 = vrcp.f32 %v4453_v16 }
 0x1f5   :  { %v1551_v44 = vsel %vm4439_vm1, %v1550_v49, %v1546_v2  ;;  %v1556_v45 = vmul.f32 %v3043_v46, %v1555_v19  ;;  %vm1559_vm8 = vweird.f32 %v3043_v46  ;;  %v1580_v33 = vor.u32 1.1754944e-38, %v1579_v59 }
 0x1f6   :  { %v3051_v12 = vpop.eup %3050  ;;  %v2556_v40 = vmul.f32 %v1551_v44, %v4171_v35  ;;  %v1570_v20 = vsub.f32 1.0, %v1569_v9  ;;  %vm1588_vm9 = vweird.f32 %v4436_v23  ;;  %v4473_v32 = vadd.f32 1.0, %v3049_v11  ;;  %vm1560_vm11 = vmor %vm1558_vm3, %vm1559_vm8 }
 0x1f7   :  { %v3053_v50 = vpop.eup %3052  ;;  %v1557_v0 = vadd.f32 %v3043_v46, %v1556_v45  ;;  %v1584_v4 = vmul.f32 %v3051_v12, %v4436_v23  ;;  %vm4476_vm10 = vcmp.eq.f32.partialorder %v1592_v62, 8.507059e+37  ;;  %v1595_v56 = vor.u32 1.1754944e-38, %v1594_v63 }
 0x1f8   :  { %v2856_v25 = vmul.f32 -1.702, %v4456_v55  ;;  %2636 = vst [vmem:[%s5891_s5 + $0x68] sm:$0xff] %v2556_v40  ;;  %v1571_v35 = vmul.f32 %v3047_v29, %v1570_v20  ;;  %vm1574_vm14 = vweird.f32 %v3047_v29  ;;  %3058 = vrcp.f32 %v4473_v32 }
 0x1f9   :  { %v4494_v15 = vmul.f32 %v4490_v3, %v4426_v5  ;;  %v3055_v60 = vpop.eup %3054  ;;  %v1561_v6 = vsel %vm1560_vm11, %v3043_v46, %v1557_v0  ;;  %v1585_v30 = vsub.f32 1.0, %v1584_v4  ;;  %v1607_v49 = vand.u32 2147483647, %v4453_v16  ;;  %vm1575_vm12 = vmor %vm1573_vm7, %vm1574_vm14 }
 0x1fa   :  { %v1609_v21 = vand.u32 2147483648, %v4453_v16  ;;  %v3057_v52 = vpop.eup %3056  ;;  %v1566_v41 = vsel %vm4447_vm4, %v1565_v58, %v1561_v6  ;;  %v1572_v42 = vadd.f32 %v3047_v29, %v1571_v35  ;;  %v4500_v51 = vadd.f32 1.0, %v3053_v50 }
 0x1fb   :  { %v4502_v24 = vadd.f32 1.0, %v3055_v60  ;;  %v2557_v59 = vmul.f32 %v1566_v41, %v4223_v47  ;;  %v1586_v5 = vmul.f32 %v3051_v12, %v1585_v30  ;;  %vm1589_vm13 = vweird.f32 %v3051_v12 }
 0x1fc   :  { %v1599_v46 = vmul.f32 %v3057_v52, %v4453_v16  ;;  %v1576_v1 = vsel %vm1575_vm12, %v3047_v29, %v1572_v42  ;;  %v1622_v26 = vand.u32 2147483647, %v4473_v32  ;;  %v1624_v58 = vand.u32 2147483648, %v4473_v32  ;;  %vm1590_vm0 = vmor %vm1588_vm9, %vm1589_vm13 }
 0x1fd   :  { %3060 = vrcp.f32 %v4500_v51  ;;  %2637 = vst [vmem:[%s5891_s5 + $0x70] sm:$0xff] %v2557_v59  ;;  %v1581_v47 = vsel %vm4464_vm6, %v1580_v33, %v1576_v1  ;;  %v1587_v39 = vadd.f32 %v3051_v12, %v1586_v5  ;;  %vm1603_vm15 = vweird.f32 %v4453_v16  ;;  %v905_v16 = vpop.f32.mrf.mxu3 }
 0x1fe   :  { %v1600_v48 = vsub.f32 1.0, %v1599_v46  ;;  %v3059_v19 = vpop.eup %3058  ;;  %v2558_v29 = vmul.f32 %v1581_v47, %v4231_v27  ;;  %vm4521_vm2 = vcmp.eq.f32.partialorder %v1607_v49, 8.507059e+37  ;;  %v1610_v63 = vor.u32 1.1754944e-38, %v1609_v21 }
 0x1ff   :  { %3062 = vrcp.f32 %v4502_v24  ;;  %v1591_v11 = vsel %vm1590_vm0, %v3051_v12, %v1587_v39  ;;  %vm1604_vm1 = vweird.f32 %v3057_v52  ;;  %v1614_v9 = vmul.f32 %v3059_v19, %v4473_v32 }
 0x200   :  { %v1601_v2 = vmul.f32 %v3057_v52, %v1600_v48  ;;  %2638 = vst [vmem:[%s5891_s5 + $0x78] sm:$0xff] %v2558_v29  ;;  %v1596_v27 = vsel %vm4476_vm10, %v1595_v56, %v1591_v11  ;;  %vm1618_vm3 = vweird.f32 %v4473_v32  ;;  %vm4533_vm4 = vcmp.eq.f32.partialorder %v1622_v26, 8.507059e+37  ;;  %vm1605_vm5 = vmor %vm1603_vm15, %vm1604_vm1  ;;  %v846_v56 = vpop.f32.mrf.mxu2 }
 0x201   :  { %v1625_v38 = vor.u32 1.1754944e-38, %v1624_v58  ;;  %v2559_v44 = vmul.f32 %v1596_v27, %v4317_v34  ;;  %v1615_v33 = vsub.f32 1.0, %v1614_v9  ;;  %vm1633_vm7 = vweird.f32 %v4500_v51 }
 0x202   :  { %v1602_v45 = vadd.f32 %v3057_v52, %v1601_v2  ;;  %v1637_v40 = vand.u32 2147483647, %v4500_v51  ;;  %v1639_v20 = vand.u32 2147483648, %v4500_v51  ;;  %v1145_v50 = vmul.f32 1.442695, %v2856_v25 }
 0x203   :  { %v3061_v12 = vpop.eup %3060  ;;  %v464_v0 = vmul.f32 %v4490_v3, %v4429_v36  ;;  %2639 = vst [vmem:[%s5891_s5 + $0x80] sm:$0xff] %v2559_v44  ;;  %v1616_v4 = vmul.f32 %v3059_v19, %v1615_v33  ;;  %vm1619_vm6 = vweird.f32 %v3059_v19  ;;  %v1652_v25 = vand.u32 2147483647, %v4502_v24  ;;  %v178_v33 = vpop.xlane.xlu2 %177 }
 0x204   :  { %v1606_v34 = vsel %vm1605_vm5, %v3057_v52, %v1602_v45  ;;  %v1629_v61 = vmul.f32 %v3061_v12, %v4500_v51  ;;  %v1654_v6 = vand.u32 2147483648, %v4502_v24  ;;  %3064 = vpow2.f32 %v1145_v50  ;;  %vm1620_vm8 = vmor %vm1618_vm3, %vm1619_vm6  ;;  %v4560_v52 = vld [vmem:[%s5888_s4] ss:$0 sm:$0xff] }
 0x205   :  { %v3063_v35 = vpop.eup %3062  ;;  %v1611_v60 = vsel %vm4521_vm2, %v1610_v63, %v1606_v34  ;;  %v1617_v30 = vadd.f32 %v3059_v19, %v1616_v4  ;;  %v487_v41 = vadd.f32 %v4560_v52, %v4494_v15  ;;  %v488_v42 = vadd.f32 %v4560_v52, %v464_v0 }
 0x206   :  { %v2560_v36 = vmul.f32 %v1611_v60, %v4346_v28  ;;  %v1630_v49 = vsub.f32 1.0, %v1629_v61  ;;  %v1644_v21 = vmul.f32 %v3063_v35, %v4502_v24  ;;  %v4566_v59 = vadd.f32 %v846_v56, %v3933_v31 }
 0x207   :  { %v4569_v28 = vadd.f32 %v905_v16, %v3935_v43  ;;  %v1621_v32 = vsel %vm1620_vm8, %v3059_v19, %v1617_v30  ;;  %vm1634_vm9 = vweird.f32 %v3061_v12  ;;  %v501_v15 = vpack.c.bf16 %v488_v42, %v487_v41 }
 0x208   :  { %2640 = vst [vmem:[%s5891_s5 + $0x88] sm:$0xff] %v2560_v36  ;;  %v1631_v5 = vmul.f32 %v3061_v12, %v1630_v49  ;;  %v1645_v46 = vsub.f32 1.0, %v1644_v21  ;;  %v1626_v1 = vsel %vm4533_vm4, %v1625_v38, %v1621_v32  ;;  %v2857_v26 = vmul.f32 -1.702, %v4566_v59  ;;  %vm4581_vm11 = vmor %vm1633_vm7, %vm1634_vm9 }
 0x209   :  { %v2858_v58 = vmul.f32 -1.702, %v4569_v28  ;;  %v2561_v47 = vmul.f32 %v1626_v1, %v4393_v37  ;;  %vm1649_vm10 = vweird.f32 %v3063_v35  ;;  %vm1638_vm14 = vcmp.eq.f32.partialorder %v1637_v40, 8.507059e+37  ;;  %745 = vmatmul.bf16.gmra.mxu0 %v501_v15  ;;  %804 = vmatmul.bf16.gmra.mxu1 %v501_v15 }
 0x20a   :  { %v1632_v39 = vadd.f32 %v3061_v12, %v1631_v5  ;;  %v1646_v48 = vmul.f32 %v3063_v35, %v1645_v46  ;;  %v3065_v29 = vpop.eup %3064  ;;  %v1640_v62 = vor.u32 1.1754944e-38, %v1639_v20  ;;  %v1147_v63 = vmul.f32 1.442695, %v2857_v26  ;;  %863 = vmatmul.bf16.gmra.mxu2 %v501_v15  ;;  %922 = vmatmul.bf16.gmra.mxu3 %v501_v15 }
 0x20b   :  { %v1149_v11 = vmul.f32 1.442695, %v2858_v58  ;;  %2641 = vst [vmem:[%s5891_s5 + $0x90] sm:$0xff] %v2561_v47  ;;  %vm1648_vm12 = vweird.f32 %v4502_v24  ;;  %v1284_v51 = vadd.f32 1.0, %v3065_v29  ;;  %v4592_v9 = vadd.f32 1e-05, %v4412_v10 }
 0x20c   :  { %v1636_v37 = vsel %vm4581_vm11, %v3061_v12, %v1632_v39  ;;  %v1647_v2 = vadd.f32 %v3063_v35, %v1646_v48  ;;  %vm1650_vm13 = vmor %vm1648_vm12, %vm1649_vm10  ;;  %v1655_v23 = vor.u32 1.1754944e-38, %v1654_v6  ;;  %3066 = vpow2.f32 %v1147_v63  ;;  %v182_v49 = vpop.xlane.xlu1 %181 }
 0x20d   :  { %v1641_v27 = vsel %vm1638_vm14, %v1640_v62, %v1636_v37  ;;  %vm1653_vm15 = vcmp.eq.f32.partialorder %v1652_v25, 8.507059e+37  ;;  %3068 = vrcp.f32 %v1284_v51  ;;  %v731_v24 = vpop.f32.mrf.mxu0  ;;  %v1667_v16 = vand.u32 2147483647, %v1284_v51  ;;  %v180_v25 = vpop.xlane.xlu0 %179 }
 0x20e   :  { %v2562_v38 = vmul.f32 %v1641_v27, %v4396_v57  ;;  %v1651_v44 = vsel %vm1650_vm13, %v3063_v35, %v1647_v2  ;;  %3070 = vpow2.f32 %v1149_v11  ;;  %v202_v57 = vmul.f32 %v178_v33, %v3368_v13  ;;  %v790_v58 = vpop.f32.mrf.mxu1 }
 0x20f   :  { %v1656_v45 = vsel %vm1653_vm15, %v1655_v23, %v1651_v44  ;;  %3072 = vrsqrt.f32 %v4592_v9  ;;  %v4608_v34 = vadd.f32 %v731_v24, %v3882_v18  ;;  %v1669_v35 = vand.u32 2147483648, %v1284_v51 }
 0x210   :  { %2642 = vst [vmem:[%s5891_s5 + $0x98] sm:$0xff] %v2562_v38  ;;  %v2563_v10 = vmul.f32 %v1656_v45, %v4417_v14  ;;  %v4611_v14 = vadd.f32 1e-05, %v202_v57  ;;  %vm1663_vm2 = vweird.f32 %v1284_v51  ;;  %v203_v42 = vmul.f32 %v180_v25, %v3368_v13 }
 0x211   :  { %v2859_v6 = vmul.f32 -1.702, %v4608_v34  ;;  %v1670_v41 = vor.u32 1.1754944e-38, %v1669_v35  ;;  %vm1668_vm3 = vcmp.eq.f32.partialorder %v1667_v16, 8.507059e+37  ;;  %v204_v26 = vmul.f32 %v182_v49, %v3368_v13 }
 0x212   :  { %2643 = vst [vmem:[%s5891_s5 + $0xa0] sm:$0xff] %v2563_v10  ;;  %v3067_v12 = vpop.eup %3066  ;;  %v4632_v11 = vadd.f32 1e-05, %v203_v42  ;;  %vm373_vm4 = vweird.f32 %v4592_v9 }
 0x213   :  { %v3069_v40 = vpop.eup %3068  ;;  %v4605_v20 = vadd.f32 1.0, %v3067_v12  ;;  %v1151_v46 = vmul.f32 1.442695, %v2859_v6  ;;  %v4642_v27 = vadd.f32 1e-05, %v204_v26 }
 0x214   :  { %v3071_v50 = vpop.eup %3070  ;;  %v1659_v0 = vmul.f32 %v3069_v40, %v1284_v51  ;;  %vm1664_vm0 = vweird.f32 %v3069_v40 }
 0x215   :  { %3074 = vrcp.f32 %v4605_v20  ;;  %v4613_v4 = vpop.eup %3072  ;;  %v4615_v56 = vadd.f32 1.0, %v3071_v50  ;;  %vm1665_vm1 = vmor %vm1663_vm2, %vm1664_vm0  ;;  %v1682_v19 = vand.u32 2147483647, %v4605_v20  ;;  %v1684_v62 = vand.u32 2147483648, %v4605_v20  ;;  %v186_v50 = vpop.xlane.xlu0 %185 }
 0x216   :  { %v1660_v61 = vsub.f32 1.0, %v1659_v0  ;;  %v368_v36 = vmul.f32 %v4613_v4, %v4592_v9  ;;  %vm1678_vm5 = vweird.f32 %v4605_v20  ;;  %vm374_vm9 = vweird.f32 %v4613_v4  ;;  %v849_v0 = vpop.f32.mrf.mxu2 }
 0x217   :  { %3076 = vrcp.f32 %v4615_v56  ;;  %v1699_v38 = vand.u32 2147483648, %v4615_v56  ;;  %v1685_v33 = vor.u32 1.1754944e-38, %v1684_v62  ;;  %v1697_v57 = vand.u32 2147483647, %v4615_v56  ;;  %vm4673_vm13 = vmor %vm373_vm4, %vm374_vm9 }
 0x218   :  { %v1661_v60 = vmul.f32 %v3069_v40, %v1660_v61  ;;  %3078 = vrsqrt.f32 %v4611_v14  ;;  %v369_v1 = vmul.f32 %v4613_v4, %v368_v36  ;;  %vm1683_vm10 = vcmp.eq.f32.partialorder %v1682_v19, 8.507059e+37 }
 0x219   :  { %3080 = vpow2.f32 %v1151_v46  ;;  %vm1693_vm11 = vweird.f32 %v4615_v56  ;;  %v1700_v35 = vor.u32 1.1754944e-38, %v1699_v38  ;;  %vm1698_vm12 = vcmp.eq.f32.partialorder %v1697_v57, 8.507059e+37  ;;  %v184_v46 = vpop.xlane.xlu2 %183 }
 0x21a   :  { %v1662_v30 = vadd.f32 %v3069_v40, %v1661_v60  ;;  %v370_v2 = vmul.f32 0.5, %v369_v1  ;;  %3082 = vrsqrt.f32 %v4632_v11  ;;  %v908_v1 = vpop.f32.mrf.mxu3  ;;  %vm383_vm2 = vweird.f32 %v4611_v14 }
 0x21b   :  { %v3075_v21 = vpop.eup %3074  ;;  %3084 = vrsqrt.f32 %v4642_v27 }
 0x21c   :  { %v1666_v32 = vsel %vm1665_vm1, %v3069_v40, %v1662_v30  ;;  %v1674_v5 = vmul.f32 %v3075_v21, %v4605_v20  ;;  %vm1679_vm7 = vweird.f32 %v3075_v21  ;;  %v371_v12 = vsub.f32 1.5, %v370_v2 }
 0x21d   :  { %v1671_v15 = vsel %vm1668_vm3, %v1670_v41, %v1666_v32  ;;  %v3077_v47 = vpop.eup %3076  ;;  %vm1680_vm6 = vmor %vm1678_vm5, %vm1679_vm7  ;;  %v206_v30 = vmul.f32 %v186_v50, %v3368_v13 }
 0x21e   :  { %v2564_v39 = vmul.f32 %v1671_v15, %v4456_v55  ;;  %v1675_v48 = vsub.f32 1.0, %v1674_v5  ;;  %v4627_v29 = vpop.eup %3078  ;;  %v1689_v63 = vmul.f32 %v3077_v47, %v4615_v56  ;;  %v4639_v55 = vadd.f32 %v790_v58, %v3886_v22 }
 0x21f   :  { %v378_v44 = vmul.f32 %v4627_v29, %v4611_v14  ;;  %vm1694_vm8 = vweird.f32 %v3077_v47  ;;  %v3081_v61 = vpop.eup %3080  ;;  %v372_v41 = vmul.f32 %v4613_v4, %v371_v12  ;;  %v4681_v5 = vadd.f32 1e-05, %v206_v30 }
 0x220   :  { %2644 = vst [vmem:[%s5891_s5 + $0xa8] sm:$0xff] %v2564_v39  ;;  %v1676_v37 = vmul.f32 %v3075_v21, %v1675_v48  ;;  %v1690_v51 = vsub.f32 1.0, %v1689_v63  ;;  %v2860_v45 = vmul.f32 -1.702, %v4639_v55  ;;  %vm1695_vm14 = vmor %vm1693_vm11, %vm1694_vm8  ;;  %v4655_v36 = vadd.f32 1.0, %v3081_v61 }
 0x221   :  { %v379_v60 = vmul.f32 %v4627_v29, %v378_v44  ;;  %v4688_v58 = vadd.f32 %v908_v1, %v3935_v43  ;;  %v376_v39 = vsel %vm4673_vm13, %v4613_v4, %v372_v41  ;;  %v205_v63 = vmul.f32 %v184_v46, %v3368_v13 }
 0x222   :  { %v1677_v23 = vadd.f32 %v3075_v21, %v1676_v37  ;;  %v1691_v10 = vmul.f32 %v3077_v47, %v1690_v51  ;;  %v1153_v25 = vmul.f32 1.442695, %v2860_v45  ;;  %v733_v51 = vpop.f32.mrf.mxu0  ;;  %v441_v4 = vmul.f32 %v376_v39, %v3801_v54 }
 0x223   :  { %v380_v42 = vmul.f32 0.5, %v379_v60  ;;  %v2862_v37 = vmul.f32 -1.702, %v4688_v58  ;;  %vm384_vm15 = vweird.f32 %v4627_v29  ;;  %v4710_v57 = vadd.f32 %v733_v51, %v3882_v18 }
 0x224   :  { %v1681_v24 = vsel %vm1680_vm6, %v3075_v21, %v1677_v23  ;;  %v1692_v20 = vadd.f32 %v3077_v47, %v1691_v10  ;;  %3086 = vpow2.f32 %v1153_v25  ;;  %v4666_v21 = vpop.eup %3082  ;;  %v4707_v10 = vadd.f32 1e-05, %v205_v63  ;;  %vm4720_vm1 = vmor %vm383_vm2, %vm384_vm15 }
 0x225   :  { %v1686_v40 = vsel %vm1683_vm10, %v1685_v33, %v1681_v24  ;;  %3088 = vrcp.f32 %v4655_v36  ;;  %v4683_v15 = vpop.eup %3084  ;;  %v388_v26 = vmul.f32 %v4666_v21, %v4632_v11  ;;  %v381_v48 = vsub.f32 1.5, %v380_v42 }
 0x226   :  { %v2565_v16 = vmul.f32 %v1686_v40, %v4566_v59  ;;  %v1696_v6 = vsel %vm1695_vm14, %v3077_v47, %v1692_v20  ;;  %v4662_v59 = vadd.f32 %v849_v0, %v3933_v31  ;;  %v398_v38 = vmul.f32 %v4683_v15, %v4642_v27 }
 0x227   :  { %v1701_v56 = vsel %vm1698_vm12, %v1700_v35, %v1696_v6  ;;  %v389_v23 = vmul.f32 %v4666_v21, %v388_v26  ;;  %v1157_v44 = vmul.f32 1.442695, %v2862_v37  ;;  %v382_v45 = vmul.f32 %v4627_v29, %v381_v48 }
 0x228   :  { %2645 = vst [vmem:[%s5891_s5 + $0xb0] sm:$0xff] %v2565_v16  ;;  %v2566_v49 = vmul.f32 %v1701_v56, %v4569_v28  ;;  %v2861_v28 = vmul.f32 -1.702, %v4662_v59  ;;  %v1714_v33 = vand.u32 2147483648, %v4655_v36  ;;  %v1712_v12 = vand.u32 2147483647, %v4655_v36 }
 0x229   :  { %v390_v54 = vmul.f32 0.5, %v389_v23  ;;  %v399_v20 = vmul.f32 %v4683_v15, %v398_v38  ;;  %v2863_v50 = vmul.f32 -1.702, %v4710_v57  ;;  %vm1708_vm3 = vweird.f32 %v4655_v36 }
 0x22a   :  { %2646 = vst [vmem:[%s5891_s5 + $0xb8] sm:$0xff] %v2566_v49  ;;  %v1155_v9 = vmul.f32 1.442695, %v2861_v28  ;;  %v3087_v47 = vpop.eup %3086  ;;  %v386_v14 = vsel %vm4720_vm1, %v4627_v29, %v382_v45  ;;  %v1715_v25 = vor.u32 1.1754944e-38, %v1714_v33  ;;  %vm1713_vm7 = vcmp.eq.f32.partialorder %v1712_v12, 8.507059e+37  ;;  %v792_v49 = vpop.f32.mrf.mxu1 }
 0x22b   :  { %v3089_v19 = vpop.eup %3088  ;;  %v4693_v62 = vadd.f32 1.0, %v3087_v47  ;;  %v1159_v6 = vmul.f32 1.442695, %v2863_v50  ;;  %v391_v41 = vsub.f32 1.5, %v390_v54  ;;  %v4734_v42 = vmul.f32 0.5, %v399_v20 }
 0x22c   :  { %3090 = vpow2.f32 %v1155_v9  ;;  %v1704_v2 = vmul.f32 %v3089_v19, %v4655_v36  ;;  %vm1709_vm0 = vweird.f32 %v3089_v19  ;;  %v465_v36 = vmul.f32 %v4490_v3, %v441_v4 }
 0x22d   :  { %3092 = vrsqrt.f32 %v4681_v5  ;;  %vm1710_vm4 = vmor %vm1708_vm3, %vm1709_vm0  ;;  %v442_v28 = vmul.f32 %v386_v14, %v3846_v53  ;;  %v1729_v9 = vand.u32 2147483648, %v4693_v62  ;;  %v4745_v39 = vadd.f32 %v792_v49, %v3886_v22 }
 0x22e   :  { %3094 = vrcp.f32 %v4693_v62  ;;  %v1705_v13 = vsub.f32 1.0, %v1704_v2  ;;  %v1727_v53 = vand.u32 2147483647, %v4693_v62  ;;  %v4756_v63 = vmul.f32 %v4666_v21, %v391_v41 }
 0x22f   :  { %3096 = vpow2.f32 %v1157_v44  ;;  %vm1723_vm6 = vweird.f32 %v4693_v62  ;;  %v2864_v2 = vmul.f32 -1.702, %v4745_v39  ;;  %v401_v23 = vsub.f32 1.5, %v4734_v42  ;;  %v851_v44 = vpop.f32.mrf.mxu2 }
 0x230   :  { %v1706_v24 = vmul.f32 %v3089_v19, %v1705_v13  ;;  %3098 = vrsqrt.f32 %v4707_v10  ;;  %v1730_v4 = vor.u32 1.1754944e-38, %v1729_v9  ;;  %v466_v13 = vmul.f32 %v4490_v3, %v442_v28 }
 0x231   :  { %vm1728_vm9 = vcmp.eq.f32.partialorder %v1727_v53, 8.507059e+37  ;;  %v4768_v20 = vadd.f32 %v851_v44, %v3933_v31  ;;  %vm393_vm10 = vweird.f32 %v4632_v11  ;;  %vm394_vm11 = vweird.f32 %v4666_v21 }
 0x232   :  { %v3091_v40 = vpop.eup %3090  ;;  %v1707_v16 = vadd.f32 %v3089_v19, %v1706_v24  ;;  %v490_v54 = vadd.f32 %v4560_v52, %v466_v13  ;;  %vm404_vm14 = vweird.f32 %v4683_v15  ;;  %vm403_vm15 = vweird.f32 %v4642_v27 }
 0x233   :  { %v4716_v0 = vpop.eup %3092  ;;  %v4725_v35 = vadd.f32 1.0, %v3091_v40  ;;  %v1161_v40 = vmul.f32 1.442695, %v2864_v2  ;;  %vm423_vm0 = vweird.f32 %v4681_v5 }
 0x234   :  { %v3095_v60 = vpop.eup %3094  ;;  %v1711_v56 = vsel %vm1710_vm4, %v3089_v19, %v1707_v16  ;;  %v418_v46 = vmul.f32 %v4716_v0, %v4681_v5 }
 0x235   :  { %v1719_v30 = vmul.f32 %v3095_v60, %v4693_v62  ;;  %v1716_v32 = vsel %vm1713_vm7, %v1715_v25, %v1711_v56  ;;  %3100 = vrcp.f32 %v4725_v35  ;;  %v3097_v29 = vpop.eup %3096  ;;  %vm1724_vm5 = vweird.f32 %v3095_v60 }
 0x236   :  { %v2567_v1 = vmul.f32 %v1716_v32, %v4608_v34  ;;  %v4742_v47 = vadd.f32 1.0, %v3097_v29  ;;  %3102 = vpow2.f32 %v1159_v6  ;;  %v4751_v19 = vpop.eup %3098  ;;  %v489_v34 = vadd.f32 %v4560_v52, %v465_v36  ;;  %vm1725_vm8 = vmor %vm1723_vm6, %vm1724_vm5 }
 0x237   :  { %v1720_v26 = vsub.f32 1.0, %v1719_v30  ;;  %v419_v38 = vmul.f32 %v4716_v0, %v418_v46  ;;  %v408_v33 = vmul.f32 %v4751_v19, %v4707_v10  ;;  %v1742_v16 = vand.u32 2147483647, %v4725_v35  ;;  %v910_v30 = vpop.f32.mrf.mxu3 }
 0x238   :  { %2647 = vst [vmem:[%s5891_s5 + $0xc0] sm:$0xff] %v2567_v1  ;;  %3104 = vrcp.f32 %v4742_v47  ;;  %v1744_v25 = vand.u32 2147483648, %v4725_v35  ;;  %v502_v6 = vpack.c.bf16 %v490_v54, %v489_v34  ;;  %v2865_v56 = vmul.f32 -1.702, %v4768_v20 }
 0x239   :  { %v1721_v48 = vmul.f32 %v3095_v60, %v1720_v26  ;;  %3106 = vpow2.f32 %v1161_v40  ;;  %v420_v36 = vmul.f32 0.5, %v419_v38  ;;  %v409_v41 = vmul.f32 %v4751_v19, %v408_v33 }
 0x23a   :  { %vm1738_vm13 = vweird.f32 %v4725_v35  ;;  %750 = vmatmul.bf16.gmra.mxu0 %v502_v6  ;;  %809 = vmatmul.bf16.gmra.mxu1 %v502_v6  ;;  %v1163_v42 = vmul.f32 1.442695, %v2865_v56  ;;  %vm4788_vm2 = vcmp.eq.f32.partialorder %v1742_v16, 8.507059e+37  ;;  %v4793_v46 = vadd.f32 %v910_v30, %v3935_v43 }
 0x23b   :  { %v1722_v37 = vadd.f32 %v3095_v60, %v1721_v48  ;;  %v3101_v51 = vpop.eup %3100  ;;  %868 = vmatmul.bf16.gmra.mxu2 %v502_v6  ;;  %927 = vmatmul.bf16.gmra.mxu3 %v502_v6  ;;  %v1757_v1 = vand.u32 2147483647, %v4742_v47  ;;  %v1759_v26 = vand.u32 2147483648, %v4742_v47  ;;  %v410_v2 = vmul.f32 0.5, %v409_v41 }
 0x23c   :  { %v1734_v24 = vmul.f32 %v3101_v51, %v4725_v35  ;;  %v3103_v62 = vpop.eup %3102  ;;  %vm1739_vm12 = vweird.f32 %v3101_v51  ;;  %v1745_v35 = vor.u32 1.1754944e-38, %v1744_v25  ;;  %v2866_v53 = vmul.f32 -1.702, %v4793_v46 }
 0x23d   :  { %v1726_v45 = vsel %vm1725_vm8, %v3095_v60, %v1722_v37  ;;  %v4772_v60 = vadd.f32 1.0, %v3103_v62  ;;  %vm1740_vm1 = vmor %vm1738_vm13, %vm1739_vm12  ;;  %v402_v37 = vmul.f32 %v4683_v15, %v401_v23  ;;  %vm1753_vm4 = vweird.f32 %v4742_v47 }
 0x23e   :  { %v1731_v12 = vsel %vm1728_vm9, %v1730_v4, %v1726_v45  ;;  %v1735_v61 = vsub.f32 1.0, %v1734_v24  ;;  %v3105_v14 = vpop.eup %3104  ;;  %v736_v4 = vpop.f32.mrf.mxu0  ;;  %vm424_vm7 = vweird.f32 %v4716_v0  ;;  %v1760_v24 = vor.u32 1.1754944e-38, %v1759_v26  ;;  %vm4819_vm8 = vmor %vm393_vm10, %vm394_vm11 }
 0x23f   :  { %v2568_v50 = vmul.f32 %v1731_v12, %v4639_v55  ;;  %v1749_v49 = vmul.f32 %v3105_v14, %v4742_v47  ;;  %3108 = vrcp.f32 %v4772_v60  ;;  %vm1754_vm3 = vweird.f32 %v3105_v14  ;;  %v3107_v34 = vpop.eup %3106  ;;  %vm4832_vm9 = vmor %vm403_vm15, %vm404_vm14 }
 0x240   :  { %v1736_v55 = vmul.f32 %v3101_v51, %v1735_v61  ;;  %3110 = vpow2.f32 %v1163_v42  ;;  %v4804_v33 = vadd.f32 1.0, %v3107_v34  ;;  %vm1755_vm5 = vmor %vm1753_vm4, %vm1754_vm3  ;;  %v4809_v62 = vadd.f32 %v736_v4, %v3882_v18 }
 0x241   :  { %2648 = vst [vmem:[%s5891_s5 + $0xc8] sm:$0xff] %v2568_v50  ;;  %v1750_v28 = vsub.f32 1.0, %v1749_v49  ;;  %v421_v12 = vsub.f32 1.5, %v420_v36  ;;  %vm1758_vm6 = vcmp.eq.f32.partialorder %v1757_v1, 8.507059e+37  ;;  %v411_v40 = vsub.f32 1.5, %v410_v2  ;;  %vm4853_vm11 = vmor %vm423_vm0, %vm424_vm7 }
 0x242   :  { %v1737_v32 = vadd.f32 %v3101_v51, %v1736_v55  ;;  %3112 = vrcp.f32 %v4804_v33  ;;  %v2867_v6 = vmul.f32 -1.702, %v4809_v62  ;;  %v1772_v30 = vand.u32 2147483647, %v4772_v60  ;;  %v795_v55 = vpop.f32.mrf.mxu1 }
 0x243   :  { %v1751_v48 = vmul.f32 %v3105_v14, %v1750_v28  ;;  %v406_v49 = vsel %vm4832_vm9, %v4683_v15, %v402_v37  ;;  %v422_v27 = vmul.f32 %v4716_v0, %v421_v12  ;;  %vm1768_vm14 = vweird.f32 %v4772_v60  ;;  %v854_v37 = vpop.f32.mrf.mxu2  ;;  %v5971_v12 = vld [vmem:[#allocation2_spill] sm:$0xff] }
 0x244   :  { %v1741_v9 = vsel %vm1740_vm1, %v3101_v51, %v1737_v32  ;;  %v1165_v51 = vmul.f32 1.442695, %v2866_v53  ;;  %v1167_v15 = vmul.f32 1.442695, %v2867_v6  ;;  %v412_v42 = vmul.f32 %v4751_v19, %v411_v40 }
 0x245   :  { %v1746_v38 = vsel %vm4788_vm2, %v1745_v35, %v1741_v9  ;;  %v3109_v13 = vpop.eup %3108  ;;  %v1752_v45 = vadd.f32 %v3105_v14, %v1751_v48  ;;  %vm413_vm12 = vweird.f32 %v4707_v10  ;;  %vm414_vm13 = vweird.f32 %v4751_v19 }
 0x246   :  { %v2569_v44 = vmul.f32 %v1746_v38, %v4662_v59  ;;  %v1764_v23 = vmul.f32 %v3109_v13, %v4772_v60  ;;  %v3111_v59 = vpop.eup %3110  ;;  %3114 = vpow2.f32 %v1165_v51  ;;  %vm1769_vm10 = vweird.f32 %v3109_v13  ;;  %vm4880_vm2 = vmor %vm413_vm12, %vm414_vm13 }
 0x247   :  { %v1756_v47 = vsel %vm1755_vm5, %v3105_v14, %v1752_v45  ;;  %v1774_v14 = vand.u32 2147483648, %v4772_v60  ;;  %v4825_v25 = vadd.f32 1.0, %v3111_v59  ;;  %vm1770_vm15 = vmor %vm1768_vm14, %vm1769_vm10  ;;  %vm1773_vm0 = vcmp.eq.f32.partialorder %v1772_v30, 8.507059e+37 }
 0x248   :  { %2649 = vst [vmem:[%s5891_s5 + $0xd0] sm:$0xff] %v2569_v44  ;;  %v1761_v54 = vsel %vm1758_vm6, %v1760_v24, %v1756_v47  ;;  %v1765_v50 = vsub.f32 1.0, %v1764_v23  ;;  %v3113_v41 = vpop.eup %3112  ;;  %v4873_v9 = vmul.f32 %v406_v49, %v3912_v17  ;;  %v426_v48 = vsel %vm4853_vm11, %v4716_v0, %v422_v27 }
 0x249   :  { %v2570_v16 = vmul.f32 %v1761_v54, %v4688_v58  ;;  %v396_v58 = vsel %vm4819_vm8, %v4666_v21, %v4756_v63  ;;  %3116 = vrcp.f32 %v4825_v25  ;;  %v4859_v63 = vadd.f32 %v795_v55, %v3886_v22 }
 0x24a   :  { %v1766_v11 = vmul.f32 %v3109_v13, %v1765_v50  ;;  %v1775_v5 = vor.u32 1.1754944e-38, %v1774_v14  ;;  %v1779_v28 = vmul.f32 %v3113_v41, %v4804_v33  ;;  %3118 = vpow2.f32 %v1167_v15  ;;  %v913_v14 = vpop.f32.mrf.mxu3 }
 0x24b   :  { %2650 = vst [vmem:[%s5891_s5 + $0xd8] sm:$0xff] %v2570_v16  ;;  %v4867_v60 = vmul.f32 %v396_v58, %v3867_v7  ;;  %v2868_v26 = vmul.f32 -1.702, %v4859_v63  ;;  %v416_v17 = vsel %vm4880_vm2, %v4751_v19, %v412_v42  ;;  %v1787_v38 = vand.u32 2147483647, %v4804_v33 }
 0x24c   :  { %v1767_v21 = vadd.f32 %v3109_v13, %v1766_v11  ;;  %v3115_v32 = vpop.eup %3114  ;;  %v1780_v34 = vsub.f32 1.0, %v1779_v28  ;;  %v1789_v4 = vand.u32 2147483648, %v4804_v33  ;;  %vm1784_vm1 = vweird.f32 %v3113_v41  ;;  %v738_v28 = vpop.f32.mrf.mxu0 }
 0x24d   :  { %v4869_v1 = vadd.f32 1.0, %v3115_v32  ;;  %v1169_v0 = vmul.f32 1.442695, %v2868_v26  ;;  %vm1783_vm3 = vweird.f32 %v4804_v33  ;;  %v1802_v19 = vand.u32 2147483647, %v4825_v25 }
 0x24e   :  { %v1771_v29 = vsel %vm1770_vm15, %v3109_v13, %v1767_v21  ;;  %v1781_v10 = vmul.f32 %v3113_v41, %v1780_v34  ;;  %v4896_v13 = vmul.f32 %v426_v48, %v3907_v8  ;;  %v4901_v44 = vadd.f32 %v854_v37, %v3933_v31  ;;  %vm1785_vm4 = vmor %vm1783_vm3, %vm1784_vm1  ;;  %v797_v37 = vpop.f32.mrf.mxu1 }
 0x24f   :  { %v1776_v35 = vsel %vm1773_vm0, %v1775_v5, %v1771_v29  ;;  %v3117_v2 = vpop.eup %3116  ;;  %3120 = vrcp.f32 %v4869_v1  ;;  %v1804_v23 = vand.u32 2147483648, %v4825_v25  ;;  %v4905_v47 = vmul.f32 %v416_v17, %v5971_v12 }
 0x250   :  { %v2571_v7 = vmul.f32 %v1776_v35, %v4710_v57  ;;  %v1794_v57 = vmul.f32 %v3117_v2, %v4825_v25  ;;  %v3119_v45 = vpop.eup %3118  ;;  %v1782_v51 = vadd.f32 %v3113_v41, %v1781_v10  ;;  %3122 = vpow2.f32 %v1169_v0 }
 0x251   :  { %v1790_v59 = vor.u32 1.1754944e-38, %v1789_v4  ;;  %v4907_v8 = vadd.f32 1.0, %v3119_v45  ;;  %v2869_v33 = vmul.f32 -1.702, %v4901_v44  ;;  %vm1788_vm7 = vcmp.eq.f32.partialorder %v1787_v38, 8.507059e+37 }
 0x252   :  { %2651 = vst [vmem:[%s5891_s5 + $0xe0] sm:$0xff] %v2571_v7  ;;  %v1795_v24 = vsub.f32 1.0, %v1794_v57  ;;  %v1786_v40 = vsel %vm1785_vm4, %v3113_v41, %v1782_v51  ;;  %vm1799_vm5 = vweird.f32 %v3117_v2  ;;  %vm1798_vm6 = vweird.f32 %v4825_v25 }
 0x253   :  { %v1791_v61 = vsel %vm1788_vm7, %v1790_v59, %v1786_v40  ;;  %vm4911_vm8 = vcmp.eq.f32.partialorder %v1802_v19, 8.507059e+37  ;;  %3124 = vrcp.f32 %v4907_v8  ;;  %v1805_v11 = vor.u32 1.1754944e-38, %v1804_v23  ;;  %vm1800_vm9 = vmor %vm1798_vm6, %vm1799_vm5  ;;  %v856_v59 = vpop.f32.mrf.mxu2 }
 0x254   :  { %v1796_v54 = vmul.f32 %v3117_v2, %v1795_v24  ;;  %v2572_v6 = vmul.f32 %v1791_v61, %v4745_v39  ;;  %v1817_v55 = vand.u32 2147483647, %v4869_v1  ;;  %v1819_v58 = vand.u32 2147483648, %v4869_v1 }
 0x255   :  { %v3121_v50 = vpop.eup %3120  ;;  %v1171_v49 = vmul.f32 1.442695, %v2869_v33  ;;  %v4921_v25 = vadd.f32 %v913_v14, %v3935_v43  ;;  %vm1813_vm10 = vweird.f32 %v4869_v1  ;;  %v1832_v21 = vand.u32 2147483647, %v4907_v8  ;;  %v915_v14 = vpop.f32.mrf.mxu3 }
 0x256   :  { %v1797_v56 = vadd.f32 %v3117_v2, %v1796_v54  ;;  %v1809_v30 = vmul.f32 %v3121_v50, %v4869_v1  ;;  %v3123_v27 = vpop.eup %3122  ;;  %2652 = vst [vmem:[%s5891_s5 + $0xe8] sm:$0xff] %v2572_v6  ;;  %v1834_v41 = vand.u32 2147483648, %v4907_v8  ;;  %vm1814_vm11 = vweird.f32 %v3121_v50  ;;  %v4987_v6 = vld [vmem:[%s5887_s3] ss:$0 sm:$0xff] }
 0x257   :  { %v4931_v42 = vadd.f32 1.0, %v3123_v27  ;;  %3126 = vpow2.f32 %v1171_v49  ;;  %v2870_v29 = vmul.f32 -1.702, %v4921_v25  ;;  %vm4935_vm14 = vcmp.eq.f32.partialorder %v1817_v55, 8.507059e+37  ;;  %vm1815_vm13 = vmor %vm1813_vm10, %vm1814_vm11 }
 0x258   :  { %v1801_v36 = vsel %vm1800_vm9, %v3117_v2, %v1797_v56  ;;  %v1810_v39 = vsub.f32 1.0, %v1809_v30  ;;  %v1820_v48 = vor.u32 1.1754944e-38, %v1819_v58  ;;  %v467_v53 = vmul.f32 %v4490_v3, %v4867_v60 }
 0x259   :  { %v1806_v15 = vsel %vm4911_vm8, %v1805_v11, %v1801_v36  ;;  %v3125_v35 = vpop.eup %3124  ;;  %3128 = vrcp.f32 %v4931_v42  ;;  %vm1828_vm12 = vweird.f32 %v4907_v8  ;;  %v1173_v34 = vmul.f32 1.442695, %v2870_v29 }
 0x25a   :  { %v2573_v5 = vmul.f32 %v1806_v15, %v4768_v20  ;;  %v1811_v32 = vmul.f32 %v3121_v50, %v1810_v39  ;;  %v1824_v7 = vmul.f32 %v3125_v35, %v4907_v8  ;;  %vm4949_vm15 = vcmp.eq.f32.partialorder %v1832_v21, 8.507059e+37 }
 0x25b   :  { %v1835_v17 = vor.u32 1.1754944e-38, %v1834_v41  ;;  %v4954_v60 = vadd.f32 %v738_v28, %v3882_v18  ;;  %v4957_v38 = vadd.f32 %v797_v37, %v3886_v22  ;;  %3130 = vpow2.f32 %v1173_v34 }
 0x25c   :  { %2653 = vst [vmem:[%s5891_s5 + $0xf0] sm:$0xff] %v2573_v5  ;;  %v1812_v20 = vadd.f32 %v3121_v50, %v1811_v32  ;;  %v1825_v10 = vsub.f32 1.0, %v1824_v7  ;;  %v468_v57 = vmul.f32 %v4490_v3, %v4873_v9  ;;  %vm1829_vm0 = vweird.f32 %v3125_v35  ;;  %v741_v36 = vpop.f32.mrf.mxu0 }
 0x25d   :  { %v3127_v0 = vpop.eup %3126  ;;  %v2871_v19 = vmul.f32 -1.702, %v4954_v60  ;;  %v2872_v45 = vmul.f32 -1.702, %v4957_v38  ;;  %v1847_v3 = vand.u32 2147483647, %v4931_v42  ;;  %v491_v54 = vadd.f32 %v4560_v52, %v467_v53  ;;  %vm1830_vm2 = vmor %vm1828_vm12, %vm1829_vm0 }
 0x25e   :  { %v1816_v4 = vsel %vm1815_vm13, %v3121_v50, %v1812_v20  ;;  %v1826_v24 = vmul.f32 %v3125_v35, %v1825_v10  ;;  %v4966_v23 = vadd.f32 1.0, %v3127_v0  ;;  %v492_v12 = vadd.f32 %v4560_v52, %v468_v57 }
 0x25f   :  { %v1821_v1 = vsel %vm4935_vm14, %v1820_v48, %v1816_v4  ;;  %v3129_v33 = vpop.eup %3128  ;;  %v1175_v9 = vmul.f32 1.442695, %v2871_v19  ;;  %v1177_v40 = vmul.f32 1.442695, %v2872_v45  ;;  %v4977_v61 = vadd.f32 %v856_v59, %v3933_v31 }
 0x260   :  { %v2574_v51 = vmul.f32 %v1821_v1, %v4793_v46  ;;  %v1827_v50 = vadd.f32 %v3125_v35, %v1826_v24  ;;  %v1839_v46 = vmul.f32 %v3129_v33, %v4931_v42  ;;  %3132 = vrcp.f32 %v4966_v23  ;;  %v800_v24 = vpop.f32.mrf.mxu1 }
 0x261   :  { %vm1843_vm1 = vweird.f32 %v4931_v42  ;;  %v1849_v16 = vand.u32 2147483648, %v4931_v42  ;;  %3134 = vpow2.f32 %v1175_v9  ;;  %v470_v56 = vmul.f32 %v4987_v6, %v4896_v13  ;;  %v3131_v11 = vpop.eup %3130 }
 0x262   :  { %2654 = vst [vmem:[%s5891_s5 + $0xf8] sm:$0xff] %v2574_v51  ;;  %v1831_v30 = vsel %vm1830_vm2, %v3125_v35, %v1827_v50  ;;  %v1840_v55 = vsub.f32 1.0, %v1839_v46  ;;  %3136 = vpow2.f32 %v1177_v40  ;;  %v503_v8 = vpack.c.bf16 %v492_v12, %v491_v54 }
 0x263   :  { %v1836_v58 = vsel %vm4949_vm15, %v1835_v17, %v1831_v30  ;;  %vm1844_vm3 = vweird.f32 %v3129_v33  ;;  %vm4993_vm4 = vcmp.eq.f32.partialorder %v1847_v3, 8.507059e+37  ;;  %v4997_v27 = vadd.f32 1.0, %v3131_v11 }
 0x264   :  { %v2575_v39 = vmul.f32 %v1836_v58, %v4809_v62  ;;  %v1841_v21 = vmul.f32 %v3129_v33, %v1840_v55  ;;  %755 = vmatmul.bf16.gmra.mxu0 %v503_v8  ;;  %814 = vmatmul.bf16.gmra.mxu1 %v503_v8  ;;  %v2873_v13 = vmul.f32 -1.702, %v4977_v61  ;;  %v5002_v15 = vadd.f32 %v915_v14, %v3935_v43  ;;  %vm1845_vm7 = vmor %vm1843_vm1, %vm1844_vm3  ;;  %v859_v58 = vpop.f32.mrf.mxu2 }
 0x265   :  { %v1850_v41 = vor.u32 1.1754944e-38, %v1849_v16  ;;  %v1862_v5 = vand.u32 2147483647, %v4966_v23  ;;  %3138 = vrcp.f32 %v4997_v27  ;;  %873 = vmatmul.bf16.gmra.mxu2 %v503_v8  ;;  %932 = vmatmul.bf16.gmra.mxu3 %v503_v8  ;;  %v5007_v32 = vadd.f32 %v4560_v52, %v470_v56 }
 0x266   :  { %v3133_v29 = vpop.eup %3132  ;;  %2655 = vst [vmem:[%s5891_s5 + $0x100] sm:$0xff] %v2575_v39  ;;  %v1842_v62 = vadd.f32 %v3129_v33, %v1841_v21  ;;  %v1179_v28 = vmul.f32 1.442695, %v2873_v13  ;;  %v2874_v35 = vmul.f32 -1.702, %v5002_v15  ;;  %v5014_v26 = vadd.f32 %v741_v36, %v3882_v18 }
 0x267   :  { %v3135_v48 = vpop.eup %3134  ;;  %v1854_v52 = vmul.f32 %v3133_v29, %v4966_v23  ;;  %vm1858_vm5 = vweird.f32 %v4966_v23  ;;  %v1864_v53 = vand.u32 2147483648, %v4966_v23  ;;  %v1877_v20 = vand.u32 2147483647, %v4997_v27 }
 0x268   :  { %v3137_v7 = vpop.eup %3136  ;;  %v1846_v34 = vsel %vm1845_vm7, %v3129_v33, %v1842_v62  ;;  %v1879_v37 = vand.u32 2147483648, %v4997_v27  ;;  %v5024_v2 = vadd.f32 1.0, %v3135_v48  ;;  %3140 = vpow2.f32 %v1179_v28 }
 0x269   :  { %v1851_v17 = vsel %vm4993_vm4, %v1850_v41, %v1846_v34  ;;  %v1855_v42 = vsub.f32 1.0, %v1854_v52  ;;  %v5028_v4 = vadd.f32 1.0, %v3137_v7  ;;  %v1181_v10 = vmul.f32 1.442695, %v2874_v35 }
 0x26a   :  { %v2576_v57 = vmul.f32 %v1851_v17, %v4859_v63  ;;  %vm5031_vm6 = vcmp.eq.f32.partialorder %v1862_v5, 8.507059e+37  ;;  %3142 = vrcp.f32 %v5024_v2  ;;  %v2875_v1 = vmul.f32 -1.702, %v5014_v26 }
 0x26b   :  { %v3139_v19 = vpop.eup %3138  ;;  %v1856_v45 = vmul.f32 %v3133_v29, %v1855_v42  ;;  %vm1859_vm8 = vweird.f32 %v3133_v29  ;;  %v1865_v51 = vor.u32 1.1754944e-38, %v1864_v53  ;;  %3144 = vrcp.f32 %v5028_v4 }
 0x26c   :  { %2656 = vst [vmem:[%s5891_s5 + $0x108] sm:$0xff] %v2576_v57  ;;  %v1869_v63 = vmul.f32 %v3139_v19, %v4997_v27  ;;  %vm1873_vm9 = vweird.f32 %v4997_v27  ;;  %vm5043_vm10 = vcmp.eq.f32.partialorder %v1877_v20, 8.507059e+37  ;;  %v1880_v59 = vor.u32 1.1754944e-38, %v1879_v37  ;;  %vm1860_vm11 = vmor %vm1858_vm5, %vm1859_vm8  ;;  %v918_v27 = vpop.f32.mrf.mxu3 }
 0x26d   :  { %v1857_v33 = vadd.f32 %v3133_v29, %v1856_v45  ;;  %v1892_v3 = vand.u32 2147483647, %v5024_v2  ;;  %v1894_v9 = vand.u32 2147483648, %v5024_v2  ;;  %3146 = vpow2.f32 %v1181_v10 }
 0x26e   :  { %v3141_v40 = vpop.eup %3140  ;;  %v1870_v54 = vsub.f32 1.0, %v1869_v63  ;;  %vm1874_vm14 = vweird.f32 %v3139_v19  ;;  %v1183_v50 = vmul.f32 1.442695, %v2875_v1  ;;  %v5052_v46 = vadd.f32 %v800_v24, %v3886_v22 }
 0x26f   :  { %v1861_v16 = vsel %vm1860_vm11, %v3133_v29, %v1857_v33  ;;  %vm1888_vm12 = vweird.f32 %v5024_v2  ;;  %v1907_v14 = vand.u32 2147483647, %v5028_v4  ;;  %v1909_v56 = vand.u32 2147483648, %v5028_v4  ;;  %vm1875_vm0 = vmor %vm1873_vm9, %vm1874_vm14 }
 0x270   :  { %v5057_v11 = vadd.f32 1.0, %v3141_v40  ;;  %v3143_v30 = vpop.eup %3142  ;;  %v1866_v23 = vsel %vm5031_vm6, %v1865_v51, %v1861_v16  ;;  %v1871_v55 = vmul.f32 %v3139_v19, %v1870_v54  ;;  %3148 = vpow2.f32 %v1183_v50 }
 0x271   :  { %v2876_v8 = vmul.f32 -1.702, %v5052_v46  ;;  %v3145_v49 = vpop.eup %3144  ;;  %v2577_v36 = vmul.f32 %v1866_v23, %v4901_v44  ;;  %v1884_v39 = vmul.f32 %v3143_v30, %v5024_v2  ;;  %vm1903_vm13 = vweird.f32 %v5028_v4  ;;  %v802_v23 = vpop.f32.mrf.mxu1 }
 0x272   :  { %3150 = vrcp.f32 %v5057_v11  ;;  %v1872_v21 = vadd.f32 %v3139_v19, %v1871_v55  ;;  %vm5066_vm15 = vcmp.eq.f32.partialorder %v1892_v3, 8.507059e+37  ;;  %v1895_v41 = vor.u32 1.1754944e-38, %v1894_v9 }
 0x273   :  { %v1899_v5 = vmul.f32 %v3145_v49, %v5028_v4  ;;  %v3147_v29 = vpop.eup %3146  ;;  %2657 = vst [vmem:[%s5891_s5 + $0x110] sm:$0xff] %v2577_v36  ;;  %v1885_v44 = vsub.f32 1.0, %v1884_v39  ;;  %vm5077_vm2 = vcmp.eq.f32.partialorder %v1907_v14, 8.507059e+37  ;;  %v1910_v28 = vor.u32 1.1754944e-38, %v1909_v56 }
 0x274   :  { %v5082_v35 = vadd.f32 %v859_v58, %v3933_v31  ;;  %v1876_v48 = vsel %vm1875_vm0, %v3139_v19, %v1872_v21  ;;  %v5084_v53 = vadd.f32 1.0, %v3147_v29  ;;  %v1185_v20 = vmul.f32 1.442695, %v2876_v8 }
 0x275   :  { %v1900_v52 = vsub.f32 1.0, %v1899_v5  ;;  %v1881_v7 = vsel %vm5043_vm10, %v1880_v59, %v1876_v48  ;;  %v1886_v34 = vmul.f32 %v3143_v30, %v1885_v44  ;;  %vm1889_vm1 = vweird.f32 %v3143_v30 }
 0x276   :  { %vm1904_vm3 = vweird.f32 %v3145_v49  ;;  %v3149_v37 = vpop.eup %3148  ;;  %v2578_v17 = vmul.f32 %v1881_v7, %v4921_v25  ;;  %v1922_v10 = vand.u32 2147483647, %v5057_v11  ;;  %3152 = vrcp.f32 %v5084_v53  ;;  %vm1890_vm7 = vmor %vm1888_vm12, %vm1889_vm1 }
 0x277   :  { %v1901_v42 = vmul.f32 %v3145_v49, %v1900_v52  ;;  %v1887_v0 = vadd.f32 %v3143_v30, %v1886_v34  ;;  %vm1918_vm4 = vweird.f32 %v5057_v11  ;;  %v1924_v1 = vand.u32 2147483648, %v5057_v11  ;;  %vm1905_vm5 = vmor %vm1903_vm13, %vm1904_vm3  ;;  %v861_v34 = vpop.f32.mrf.mxu2 }
 0x278   :  { %v3151_v57 = vpop.eup %3150  ;;  %v5093_v19 = vadd.f32 1.0, %v3149_v37  ;;  %2658 = vst [vmem:[%s5891_s5 + $0x118] sm:$0xff] %v2578_v17  ;;  %3154 = vpow2.f32 %v1185_v20  ;;  %v5102_v51 = vadd.f32 %v918_v27, %v3935_v43  ;;  %v1937_v63 = vand.u32 2147483647, %v5084_v53 }
 0x279   :  { %v1902_v25 = vadd.f32 %v3145_v49, %v1901_v42  ;;  %v1914_v45 = vmul.f32 %v3151_v57, %v5057_v11  ;;  %v1891_v24 = vsel %vm1890_vm7, %v3143_v30, %v1887_v0  ;;  %v1939_v12 = vand.u32 2147483648, %v5084_v53  ;;  %v743_v30 = vpop.f32.mrf.mxu0  ;;  %v3315_v42 = vld [vmem:[%s5888_s4] ss:$0 sm:$0xff] }
 0x27a   :  { %3156 = vrcp.f32 %v5093_v19  ;;  %v1896_v2 = vsel %vm5066_vm15, %v1895_v41, %v1891_v24  ;;  %vm5112_vm6 = vcmp.eq.f32.partialorder %v1922_v10, 8.507059e+37  ;;  %vm1919_vm8 = vweird.f32 %v3151_v57 }
 0x27b   :  { %v1906_v59 = vsel %vm1905_vm5, %v3145_v49, %v1902_v25  ;;  %v1915_v33 = vsub.f32 1.0, %v1914_v45  ;;  %v2579_v9 = vmul.f32 %v1896_v2, %v4954_v60  ;;  %v1925_v40 = vor.u32 1.1754944e-38, %v1924_v1  ;;  %vm1920_vm11 = vmor %vm1918_vm4, %vm1919_vm8 }
 0x27c   :  { %v1911_v4 = vsel %vm5077_vm2, %v1910_v28, %v1906_v59  ;;  %v3153_v54 = vpop.eup %3152  ;;  %v2877_v14 = vmul.f32 -1.702, %v5082_v35  ;;  %v2878_v56 = vmul.f32 -1.702, %v5102_v51  ;;  %vm1933_vm9 = vweird.f32 %v5084_v53 }
 0x27d   :  { %v2580_v50 = vmul.f32 %v1911_v4, %v4957_v38  ;;  %v1916_v16 = vmul.f32 %v3151_v57, %v1915_v33  ;;  %2659 = vst [vmem:[%s5891_s5 + $0x120] sm:$0xff] %v2579_v9  ;;  %v1929_v60 = vmul.f32 %v3153_v54, %v5084_v53  ;;  %vm5127_vm10 = vcmp.eq.f32.partialorder %v1937_v63, 8.507059e+37 }
 0x27e   :  { %v1940_v38 = vor.u32 1.1754944e-38, %v1939_v12  ;;  %v3155_v8 = vpop.eup %3154  ;;  %v1954_v49 = vand.u32 2147483648, %v5093_v19  ;;  %v1187_v36 = vmul.f32 1.442695, %v2877_v14  ;;  %v1189_v39 = vmul.f32 1.442695, %v2878_v56 }
 0x27f   :  { %2660 = vst [vmem:[%s5891_s5 + $0x128] sm:$0xff] %v2580_v50  ;;  %v1917_v58 = vadd.f32 %v3151_v57, %v1916_v16  ;;  %v1930_v13 = vsub.f32 1.0, %v1929_v60  ;;  %v5138_v41 = vadd.f32 1.0, %v3155_v8  ;;  %v5141_v5 = vadd.f32 %v743_v30, %v3882_v18 }
 0x280   :  { %v3157_v21 = vpop.eup %3156  ;;  %v5144_v29 = vadd.f32 %v802_v23, %v3886_v22  ;;  %3158 = vpow2.f32 %v1187_v36  ;;  %v469_v28 = vmul.f32 %v4987_v6, %v4905_v47  ;;  %vm1934_vm14 = vweird.f32 %v3153_v54  ;;  %v920_v6 = vpop.f32.mrf.mxu3 }
 0x281   :  { %v1921_v44 = vsel %vm1920_vm11, %v3151_v57, %v1917_v58  ;;  %v1944_v62 = vmul.f32 %v3157_v21, %v5093_v19  ;;  %v1931_v48 = vmul.f32 %v3153_v54, %v1930_v13  ;;  %3160 = vrcp.f32 %v5138_v41  ;;  %vm1935_vm13 = vmor %vm1933_vm9, %vm1934_vm14 }
 0x282   :  { %v1926_v11 = vsel %vm5112_vm6, %v1925_v40, %v1921_v44  ;;  %vm1948_vm12 = vweird.f32 %v5093_v19  ;;  %v1952_v7 = vand.u32 2147483647, %v5093_v19  ;;  %3162 = vpow2.f32 %v1189_v39 }
 0x283   :  { %v2581_v52 = vmul.f32 %v1926_v11, %v4977_v61  ;;  %v1945_v20 = vsub.f32 1.0, %v1944_v62  ;;  %v1932_v27 = vadd.f32 %v3153_v54, %v1931_v48  ;;  %v2879_v37 = vmul.f32 -1.702, %v5141_v5 }
 0x284   :  { %v2880_v47 = vmul.f32 -1.702, %v5144_v29  ;;  %vm1949_vm15 = vweird.f32 %v3157_v21  ;;  %v1955_v17 = vor.u32 1.1754944e-38, %v1954_v49  ;;  %v493_v10 = vadd.f32 %v3315_v42, %v469_v28 }
 0x285   :  { %2661 = vst [vmem:[%s5891_s5 + $0x130] sm:$0xff] %v2581_v52  ;;  %v1946_v61 = vmul.f32 %v3157_v21, %v1945_v20  ;;  %v1936_v57 = vsel %vm1935_vm13, %v3153_v54, %v1932_v27  ;;  %v1191_v0 = vmul.f32 1.442695, %v2879_v37  ;;  %v5166_v25 = vadd.f32 %v861_v34, %v3933_v31  ;;  %vm1950_vm0 = vmor %vm1948_vm12, %vm1949_vm15 }
 0x286   :  { %v1193_v1 = vmul.f32 1.442695, %v2880_v47  ;;  %v3159_v45 = vpop.eup %3158  ;;  %v1941_v24 = vsel %vm5127_vm10, %v1940_v38, %v1936_v57  ;;  %v504_v63 = vpack.c.bf16 %v5007_v32, %v493_v10  ;;  %v5172_v12 = vadd.f32 %v920_v6, %v3935_v43  ;;  %v746_v30 = vpop.f32.mrf.mxu0 }
 0x287   :  { %v1947_v53 = vadd.f32 %v3157_v21, %v1946_v61  ;;  %v3161_v2 = vpop.eup %3160  ;;  %v2582_v59 = vmul.f32 %v1941_v24, %v5002_v15  ;;  %v5178_v33 = vadd.f32 1.0, %v3159_v45  ;;  %3164 = vpow2.f32 %v1191_v0 }
 0x288   :  { %v2881_v3 = vmul.f32 -1.702, %v5166_v25  ;;  %vm1953_vm2 = vcmp.eq.f32.partialorder %v1952_v7, 8.507059e+37  ;;  %v1959_v4 = vmul.f32 %v3161_v2, %v5138_v41  ;;  %3166 = vpow2.f32 %v1193_v1  ;;  %760 = vmatmul.bf16.gmra.mxu0 %v504_v63  ;;  %819 = vmatmul.bf16.gmra.mxu1 %v504_v63  ;;  %v3163_v32 = vpop.eup %3162 }
 0x289   :  { %v1951_v9 = vsel %vm1950_vm0, %v3157_v21, %v1947_v53  ;;  %2662 = vst [vmem:[%s5891_s5 + $0x138] sm:$0xff] %v2582_v59  ;;  %v1967_v19 = vand.u32 2147483647, %v5138_v41  ;;  %3168 = vrcp.f32 %v5178_v33  ;;  %878 = vmatmul.bf16.gmra.mxu2 %v504_v63  ;;  %937 = vmatmul.bf16.gmra.mxu3 %v504_v63  ;;  %v1969_v50 = vand.u32 2147483648, %v5138_v41 }
 0x28a   :  { %v1956_v15 = vsel %vm1953_vm2, %v1955_v17, %v1951_v9  ;;  %v1960_v54 = vsub.f32 1.0, %v1959_v4  ;;  %v5189_v16 = vadd.f32 1.0, %v3163_v32  ;;  %vm1963_vm1 = vweird.f32 %v5138_v41  ;;  %v805_v41 = vpop.f32.mrf.mxu1 }
 0x28b   :  { %v2583_v40 = vmul.f32 %v1956_v15, %v5014_v26  ;;  %v1195_v14 = vmul.f32 1.442695, %v2881_v3  ;;  %v2882_v56 = vmul.f32 -1.702, %v5172_v12  ;;  %vm1964_vm3 = vweird.f32 %v3161_v2 }
 0x28c   :  { %v1961_v23 = vmul.f32 %v3161_v2, %v1960_v54  ;;  %v1982_v60 = vand.u32 2147483647, %v5178_v33  ;;  %3170 = vrcp.f32 %v5189_v16  ;;  %vm5198_vm4 = vcmp.eq.f32.partialorder %v1967_v19, 8.507059e+37  ;;  %vm1965_vm7 = vmor %vm1963_vm1, %vm1964_vm3 }
 0x28d   :  { %2663 = vst [vmem:[%s5891_s5 + $0x140] sm:$0xff] %v2583_v40  ;;  %v3165_v26 = vpop.eup %3164  ;;  %v1984_v38 = vand.u32 2147483648, %v5178_v33  ;;  %3172 = vpow2.f32 %v1195_v14  ;;  %v1197_v8 = vmul.f32 1.442695, %v2882_v56  ;;  %v1970_v36 = vor.u32 1.1754944e-38, %v1969_v50  ;;  %v864_v63 = vpop.f32.mrf.mxu2 }
 0x28e   :  { %v3167_v58 = vpop.eup %3166  ;;  %v1962_v49 = vadd.f32 %v3161_v2, %v1961_v23  ;;  %v5203_v39 = vadd.f32 1.0, %v3165_v26  ;;  %v5206_v21 = vadd.f32 %v746_v30, %v3882_v18  ;;  %vm1978_vm5 = vweird.f32 %v5178_v33 }
 0x28f   :  { %v3169_v13 = vpop.eup %3168  ;;  %v1997_v44 = vand.u32 2147483647, %v5189_v16  ;;  %v5212_v62 = vadd.f32 1.0, %v3167_v58  ;;  %3174 = vpow2.f32 %v1197_v8  ;;  %vm5215_vm6 = vcmp.eq.f32.partialorder %v1982_v60, 8.507059e+37 }
 0x290   :  { %v1966_v28 = vsel %vm1965_vm7, %v3161_v2, %v1962_v49  ;;  %v1974_v11 = vmul.f32 %v3169_v13, %v5178_v33  ;;  %v1999_v52 = vand.u32 2147483648, %v5189_v16  ;;  %3176 = vrcp.f32 %v5203_v39 }
 0x291   :  { %v1971_v20 = vsel %vm5198_vm4, %v1970_v36, %v1966_v28  ;;  %v1985_v7 = vor.u32 1.1754944e-38, %v1984_v38  ;;  %vm1993_vm8 = vweird.f32 %v5189_v16  ;;  %v2014_v34 = vand.u32 2147483648, %v5203_v39 }
 0x292   :  { %v3171_v27 = vpop.eup %3170  ;;  %v2584_v37 = vmul.f32 %v1971_v20, %v5052_v46  ;;  %v1975_v47 = vsub.f32 1.0, %v1974_v11  ;;  %3178 = vrcp.f32 %v5212_v62  ;;  %v2883_v6 = vmul.f32 -1.702, %v5206_v21  ;;  %v748_v20 = vpop.f32.mrf.mxu0 }
 0x293   :  { %v3173_v61 = vpop.eup %3172  ;;  %v1989_v17 = vmul.f32 %v3171_v27, %v5189_v16  ;;  %vm5229_vm9 = vcmp.eq.f32.partialorder %v1997_v44, 8.507059e+37  ;;  %v2012_v10 = vand.u32 2147483647, %v5203_v39  ;;  %v5235_v57 = vadd.f32 %v805_v41, %v3886_v22  ;;  %v923_v41 = vpop.f32.mrf.mxu3 }
 0x294   :  { %2664 = vst [vmem:[%s5891_s5 + $0x148] sm:$0xff] %v2584_v37  ;;  %v1976_v46 = vmul.f32 %v3169_v13, %v1975_v47  ;;  %vm1979_vm10 = vweird.f32 %v3169_v13  ;;  %v2000_v0 = vor.u32 1.1754944e-38, %v1999_v52  ;;  %v5240_v1 = vadd.f32 1.0, %v3173_v61 }
 0x295   :  { %v3175_v45 = vpop.eup %3174  ;;  %v1990_v24 = vsub.f32 1.0, %v1989_v17  ;;  %vm1994_vm11 = vweird.f32 %v3171_v27  ;;  %vm2008_vm14 = vweird.f32 %v5203_v39  ;;  %v2015_v53 = vor.u32 1.1754944e-38, %v2014_v34  ;;  %vm1980_vm12 = vmor %vm1978_vm5, %vm1979_vm10 }
 0x296   :  { %v3177_v2 = vpop.eup %3176  ;;  %v1977_v59 = vadd.f32 %v3169_v13, %v1976_v46  ;;  %v2027_v3 = vand.u32 2147483647, %v5212_v62  ;;  %v2029_v9 = vand.u32 2147483648, %v5212_v62  ;;  %3180 = vrcp.f32 %v5240_v1  ;;  %vm1995_vm0 = vmor %vm1993_vm8, %vm1994_vm11 }
 0x297   :  { %v1991_v4 = vmul.f32 %v3171_v27, %v1990_v24  ;;  %v2004_v32 = vmul.f32 %v3177_v2, %v5203_v39  ;;  %vm5249_vm13 = vcmp.eq.f32.partialorder %v2012_v10, 8.507059e+37  ;;  %vm2023_vm15 = vweird.f32 %v5212_v62  ;;  %v866_v24 = vpop.f32.mrf.mxu2 }
 0x298   :  { %v1199_v19 = vmul.f32 1.442695, %v2883_v6  ;;  %v2884_v40 = vmul.f32 -1.702, %v5235_v57  ;;  %v3179_v54 = vpop.eup %3178  ;;  %v1981_v50 = vsel %vm1980_vm12, %v3169_v13, %v1977_v59  ;;  %v2042_v14 = vand.u32 2147483647, %v5240_v1 }
 0x299   :  { %v5256_v56 = vadd.f32 1.0, %v3175_v45  ;;  %v5259_v33 = vadd.f32 %v864_v63, %v3933_v31  ;;  %v1986_v30 = vsel %vm5215_vm6, %v1985_v7, %v1981_v50  ;;  %v1992_v23 = vadd.f32 %v3171_v27, %v1991_v4  ;;  %v807_v45 = vpop.f32.mrf.mxu1 }
 0x29a   :  { %v2005_v60 = vsub.f32 1.0, %v2004_v32  ;;  %v2019_v26 = vmul.f32 %v3179_v54, %v5212_v62  ;;  %v2585_v55 = vmul.f32 %v1986_v30, %v5082_v35  ;;  %vm2009_vm2 = vweird.f32 %v3177_v2 }
 0x29b   :  { %vm5268_vm1 = vcmp.eq.f32.partialorder %v2027_v3, 8.507059e+37  ;;  %v2044_v8 = vand.u32 2147483648, %v5240_v1  ;;  %v1996_v58 = vsel %vm1995_vm0, %v3171_v27, %v1992_v23  ;;  %3182 = vrcp.f32 %v5256_v56  ;;  %vm2010_vm5 = vmor %vm2008_vm14, %vm2009_vm2 }
 0x29c   :  { %v2006_v49 = vmul.f32 %v3177_v2, %v2005_v60  ;;  %v2020_v36 = vsub.f32 1.0, %v2019_v26  ;;  %v3181_v13 = vpop.eup %3180  ;;  %2665 = vst [vmem:[%s5891_s5 + $0x150] sm:$0xff] %v2585_v55  ;;  %v2001_v35 = vsel %vm5229_vm9, %v2000_v0, %v1996_v58  ;;  %vm2024_vm3 = vweird.f32 %v3179_v54 }
 0x29d   :  { %v2030_v16 = vor.u32 1.1754944e-38, %v2029_v9  ;;  %vm2038_vm4 = vweird.f32 %v5240_v1  ;;  %v2586_v44 = vmul.f32 %v2001_v35, %v5102_v51  ;;  %v2034_v48 = vmul.f32 %v3181_v13, %v5240_v1  ;;  %vm2025_vm8 = vmor %vm2023_vm15, %vm2024_vm3 }
 0x29e   :  { %v2007_v28 = vadd.f32 %v3177_v2, %v2006_v49  ;;  %v2021_v11 = vmul.f32 %v3179_v54, %v2020_v36  ;;  %vm5282_vm7 = vcmp.eq.f32.partialorder %v2042_v14, 8.507059e+37  ;;  %vm2039_vm6 = vweird.f32 %v3181_v13 }
 0x29f   :  { %v2045_v7 = vor.u32 1.1754944e-38, %v2044_v8  ;;  %v2057_v34 = vand.u32 2147483647, %v5256_v56  ;;  %3184 = vpow2.f32 %v1199_v19  ;;  %2666 = vst [vmem:[%s5891_s5 + $0x158] sm:$0xff] %v2586_v44  ;;  %v2035_v37 = vsub.f32 1.0, %v2034_v48  ;;  %vm2040_vm9 = vmor %vm2038_vm4, %vm2039_vm6  ;;  %v925_v48 = vpop.f32.mrf.mxu3 }
 0x2a0   :  { %v2011_v51 = vsel %vm2010_vm5, %v3177_v2, %v2007_v28  ;;  %v2022_v27 = vadd.f32 %v3179_v54, %v2021_v11  ;;  %v1201_v47 = vmul.f32 1.442695, %v2884_v40  ;;  %v2885_v39 = vmul.f32 -1.702, %v5259_v33 }
 0x2a1   :  { %v2016_v6 = vsel %vm5249_vm13, %v2015_v53, %v2011_v51  ;;  %v5300_v61 = vadd.f32 %v923_v41, %v3935_v43  ;;  %v5303_v17 = vadd.f32 %v748_v20, %v3882_v18  ;;  %v3183_v42 = vpop.eup %3182  ;;  %v2036_v0 = vmul.f32 %v3181_v13, %v2035_v37 }
 0x2a2   :  { %v2587_v10 = vmul.f32 %v2016_v6, %v5141_v5  ;;  %v2026_v46 = vsel %vm2025_vm8, %v3179_v54, %v2022_v27  ;;  %3186 = vpow2.f32 %v1201_v47  ;;  %v2049_v53 = vmul.f32 %v3183_v42, %v5256_v56 }
 0x2a3   :  { %v2031_v62 = vsel %vm5268_vm1, %v2030_v16, %v2026_v46  ;;  %v2059_v63 = vand.u32 2147483648, %v5256_v56  ;;  %v1203_v2 = vmul.f32 1.442695, %v2885_v39  ;;  %v2037_v5 = vadd.f32 %v3181_v13, %v2036_v0 }
 0x2a4   :  { %2667 = vst [vmem:[%s5891_s5 + $0x160] sm:$0xff] %v2587_v10  ;;  %v2588_v59 = vmul.f32 %v2031_v62, %v5144_v29  ;;  %v2886_v3 = vmul.f32 -1.702, %v5300_v61  ;;  %v2887_v9 = vmul.f32 -1.702, %v5303_v17  ;;  %v2050_v32 = vsub.f32 1.0, %v2049_v53 }
 0x2a5   :  { %v3185_v4 = vpop.eup %3184  ;;  %3188 = vpow2.f32 %v1203_v2  ;;  %v5320_v15 = vadd.f32 %v807_v45, %v3886_v22  ;;  %v5323_v19 = vadd.f32 %v866_v24, %v3933_v31  ;;  %v2041_v29 = vsel %vm2040_vm9, %v3181_v13, %v2037_v5 }
 0x2a6   :  { %2668 = vst [vmem:[%s5891_s5 + $0x168] sm:$0xff] %v2588_v59  ;;  %v5328_v40 = vadd.f32 1.0, %v3185_v4  ;;  %v1205_v54 = vmul.f32 1.442695, %v2886_v3  ;;  %v1207_v50 = vmul.f32 1.442695, %v2887_v9  ;;  %v2046_v1 = vsel %vm5282_vm7, %v2045_v7, %v2041_v29 }
 0x2a7   :  { %v2051_v14 = vmul.f32 %v3183_v42, %v2050_v32  ;;  %vm2054_vm10 = vweird.f32 %v3183_v42  ;;  %v2888_v30 = vmul.f32 -1.702, %v5320_v15  ;;  %v2589_v60 = vmul.f32 %v2046_v1, %v5166_v25 }
 0x2a8   :  { %v3187_v23 = vpop.eup %3186  ;;  %3190 = vrcp.f32 %v5328_v40  ;;  %v2889_v26 = vmul.f32 -1.702, %v5323_v19  ;;  %vm2053_vm11 = vweird.f32 %v5256_v56  ;;  %v2060_v8 = vor.u32 1.1754944e-38, %v2059_v63 }
 0x2a9   :  { %v2052_v55 = vadd.f32 %v3183_v42, %v2051_v14  ;;  %v5337_v38 = vadd.f32 1.0, %v3187_v23  ;;  %3192 = vpow2.f32 %v1205_v54  ;;  %2669 = vst [vmem:[%s5891_s5 + $0x170] sm:$0xff] %v2589_v60  ;;  %vm2055_vm14 = vmor %vm2053_vm11, %vm2054_vm10  ;;  %v1209_v58 = vmul.f32 1.442695, %v2888_v30 }
 0x2aa   :  { %3194 = vpow2.f32 %v1207_v50  ;;  %vm2058_vm12 = vcmp.eq.f32.partialorder %v2057_v34, 8.507059e+37  ;;  %v1211_v56 = vmul.f32 1.442695, %v2889_v26  ;;  %v2072_v44 = vand.u32 2147483647, %v5328_v40 }
 0x2ab   :  { %v3189_v49 = vpop.eup %3188  ;;  %v2056_v25 = vsel %vm2055_vm14, %v3183_v42, %v2052_v55  ;;  %3196 = vrcp.f32 %v5337_v38  ;;  %vm2068_vm13 = vweird.f32 %v5328_v40  ;;  %v2074_v41 = vand.u32 2147483648, %v5328_v40 }
 0x2ac   :  { %v2061_v36 = vsel %vm2058_vm12, %v2060_v8, %v2056_v25  ;;  %v5343_v13 = vadd.f32 1.0, %v3189_v49  ;;  %3198 = vpow2.f32 %v1209_v58  ;;  %v2087_v34 = vand.u32 2147483647, %v5337_v38 }
 0x2ad   :  { %v2590_v35 = vmul.f32 %v2061_v36, %v5172_v12  ;;  %v2089_v51 = vand.u32 2147483648, %v5337_v38  ;;  %vm5360_vm15 = vcmp.eq.f32.partialorder %v2072_v44, 8.507059e+37  ;;  %v5367_v6 = vadd.f32 %v925_v48, %v3935_v43 }
 0x2ae   :  { %v3191_v16 = vpop.eup %3190  ;;  %3200 = vrcp.f32 %v5343_v13  ;;  %v2102_v10 = vand.u32 2147483647, %v5343_v13  ;;  %v2075_v0 = vor.u32 1.1754944e-38, %v2074_v41  ;;  %vm2083_vm2 = vweird.f32 %v5337_v38 }
 0x2af   :  { %v3193_v28 = vpop.eup %3192  ;;  %2670 = vst [vmem:[%s5891_s5 + $0x178] sm:$0xff] %v2590_v35  ;;  %v2064_v11 = vmul.f32 %v3191_v16, %v5328_v40  ;;  %3202 = vpow2.f32 %v1211_v56  ;;  %vm2069_vm0 = vweird.f32 %v3191_v16  ;;  %v2104_v24 = vand.u32 2147483648, %v5343_v13 }
 0x2b0   :  { %v3195_v52 = vpop.eup %3194  ;;  %v5354_v12 = vadd.f32 1.0, %v3193_v28  ;;  %vm5373_vm1 = vcmp.eq.f32.partialorder %v2087_v34, 8.507059e+37  ;;  %v2090_v63 = vor.u32 1.1754944e-38, %v2089_v51  ;;  %vm2070_vm3 = vmor %vm2068_vm13, %vm2069_vm0  ;;  %vm2098_vm7 = vweird.f32 %v5343_v13 }
 0x2b1   :  { %v3197_v20 = vpop.eup %3196  ;;  %v2065_v7 = vsub.f32 1.0, %v2064_v11  ;;  %v5358_v27 = vadd.f32 1.0, %v3195_v52  ;;  %v2890_v3 = vmul.f32 -1.702, %v5367_v6  ;;  %vm5382_vm5 = vcmp.eq.f32.partialorder %v2102_v10, 8.507059e+37 }
 0x2b2   :  { %v2079_v47 = vmul.f32 %v3197_v20, %v5337_v38  ;;  %3204 = vrcp.f32 %v5354_v12  ;;  %v3199_v39 = vpop.eup %3198  ;;  %vm2084_vm4 = vweird.f32 %v3197_v20  ;;  %v2105_v1 = vor.u32 1.1754944e-38, %v2104_v24 }
 0x2b3   :  { %v2066_v42 = vmul.f32 %v3191_v16, %v2065_v7  ;;  %3206 = vrcp.f32 %v5358_v27  ;;  %v5386_v29 = vadd.f32 1.0, %v3199_v39  ;;  %vm2085_vm8 = vmor %vm2083_vm2, %vm2084_vm4  ;;  %v2117_v8 = vand.u32 2147483647, %v5354_v12 }
 0x2b4   :  { %v3201_v46 = vpop.eup %3200  ;;  %v2080_v45 = vsub.f32 1.0, %v2079_v47  ;;  %v2119_v25 = vand.u32 2147483648, %v5354_v12  ;;  %v2134_v35 = vand.u32 2147483648, %v5358_v27  ;;  %vm2113_vm14 = vweird.f32 %v5354_v12 }
 0x2b5   :  { %v2067_v62 = vadd.f32 %v3191_v16, %v2066_v42  ;;  %v2094_v2 = vmul.f32 %v3201_v46, %v5343_v13  ;;  %v3203_v59 = vpop.eup %3202  ;;  %vm2099_vm6 = vweird.f32 %v3201_v46  ;;  %3208 = vrcp.f32 %v5386_v29 }
 0x2b6   :  { %v2081_v5 = vmul.f32 %v3197_v20, %v2080_v45  ;;  %v5394_v26 = vadd.f32 1.0, %v3203_v59  ;;  %vm2100_vm9 = vmor %vm2098_vm7, %vm2099_vm6  ;;  %v2132_v13 = vand.u32 2147483647, %v5358_v27  ;;  %vm2128_vm12 = vweird.f32 %v5358_v27 }
 0x2b7   :  { %v2071_v9 = vsel %vm2070_vm3, %v3191_v16, %v2067_v62  ;;  %v2095_v4 = vsub.f32 1.0, %v2094_v2  ;;  %v1213_v16 = vmul.f32 1.442695, %v2890_v3  ;;  %v751_v11 = vpop.f32.mrf.mxu0  ;;  %v2120_v7 = vor.u32 1.1754944e-38, %v2119_v25  ;;  %v810_v42 = vpop.f32.mrf.mxu1 }
 0x2b8   :  { %v3205_v54 = vpop.eup %3204  ;;  %v2076_v50 = vsel %vm5360_vm15, %v2075_v0, %v2071_v9  ;;  %v2082_v40 = vadd.f32 %v3197_v20, %v2081_v5  ;;  %3210 = vrcp.f32 %v5394_v26  ;;  %v5421_v51 = vadd.f32 %v751_v11, %v3882_v18 }
 0x2b9   :  { %v3207_v14 = vpop.eup %3206  ;;  %v2591_v30 = vmul.f32 %v2076_v50, %v5206_v21  ;;  %v2096_v23 = vmul.f32 %v3201_v46, %v2095_v4  ;;  %v2109_v60 = vmul.f32 %v3205_v54, %v5354_v12  ;;  %vm2114_vm10 = vweird.f32 %v3205_v54 }
 0x2ba   :  { %v2086_v55 = vsel %vm2085_vm8, %v3197_v20, %v2082_v40  ;;  %v2124_v58 = vmul.f32 %v3207_v14, %v5358_v27  ;;  %vm2129_vm11 = vweird.f32 %v3207_v14  ;;  %vm2115_vm13 = vmor %vm2113_vm14, %vm2114_vm10  ;;  %3212 = vpow2.f32 %v1213_v16 }
 0x2bb   :  { %2671 = vst [vmem:[%s5891_s5 + $0x180] sm:$0xff] %v2591_v30  ;;  %v2091_v21 = vsel %vm5373_vm1, %v2090_v63, %v2086_v55  ;;  %v2097_v38 = vadd.f32 %v3201_v46, %v2096_v23  ;;  %v2110_v49 = vsub.f32 1.0, %v2109_v60  ;;  %v3209_v20 = vpop.eup %3208  ;;  %vm2118_vm15 = vcmp.eq.f32.partialorder %v2117_v8, 8.507059e+37  ;;  %vm2130_vm0 = vmor %vm2128_vm12, %vm2129_vm11 }
 0x2bc   :  { %v2592_v36 = vmul.f32 %v2091_v21, %v5235_v57  ;;  %v2125_v56 = vsub.f32 1.0, %v2124_v58  ;;  %v2139_v12 = vmul.f32 %v3209_v20, %v5386_v29  ;;  %vm2133_vm2 = vcmp.eq.f32.partialorder %v2132_v13, 8.507059e+37 }
 0x2bd   :  { %v2101_v44 = vsel %vm2100_vm9, %v3201_v46, %v2097_v38  ;;  %v2111_v28 = vmul.f32 %v3205_v54, %v2110_v49  ;;  %v2891_v39 = vmul.f32 -1.702, %v5421_v51  ;;  %v5431_v24 = vadd.f32 %v810_v42, %v3886_v22 }
 0x2be   :  { %2672 = vst [vmem:[%s5891_s5 + $0x188] sm:$0xff] %v2592_v36  ;;  %v2106_v57 = vsel %vm5382_vm5, %v2105_v1, %v2101_v44  ;;  %v2126_v48 = vmul.f32 %v3207_v14, %v2125_v56  ;;  %v3211_v10 = vpop.eup %3210  ;;  %v2140_v45 = vsub.f32 1.0, %v2139_v12  ;;  %v2149_v53 = vand.u32 2147483648, %v5386_v29  ;;  %v869_v4 = vpop.f32.mrf.mxu2 }
 0x2bf   :  { %v2593_v52 = vmul.f32 %v2106_v57, %v5259_v33  ;;  %v2112_v41 = vadd.f32 %v3205_v54, %v2111_v28  ;;  %v2135_v33 = vor.u32 1.1754944e-38, %v2134_v35  ;;  %v2154_v63 = vmul.f32 %v3211_v10, %v5394_v26  ;;  %v928_v49 = vpop.f32.mrf.mxu3  ;;  %v753_v11 = vpop.f32.mrf.mxu0 }
 0x2c0   :  { %v2127_v34 = vadd.f32 %v3207_v14, %v2126_v48  ;;  %v1215_v2 = vmul.f32 1.442695, %v2891_v39  ;;  %v2141_v59 = vmul.f32 %v3209_v20, %v2140_v45  ;;  %vm2144_vm1 = vweird.f32 %v3209_v20  ;;  %v3213_v3 = vpop.eup %3212 }
 0x2c1   :  { %2673 = vst [vmem:[%s5891_s5 + $0x190] sm:$0xff] %v2593_v52  ;;  %v2116_v37 = vsel %vm2115_vm13, %v3205_v54, %v2112_v41  ;;  %v2892_v5 = vmul.f32 -1.702, %v5431_v24  ;;  %vm2143_vm3 = vweird.f32 %v5386_v29  ;;  %v2164_v9 = vand.u32 2147483648, %v5394_v26 }
 0x2c2   :  { %v2121_v27 = vsel %vm2118_vm15, %v2120_v7, %v2116_v37  ;;  %v2131_v47 = vsel %vm2130_vm0, %v3207_v14, %v2127_v34  ;;  %3214 = vpow2.f32 %v1215_v2  ;;  %v2142_v32 = vadd.f32 %v3209_v20, %v2141_v59  ;;  %vm2145_vm4 = vmor %vm2143_vm3, %vm2144_vm1  ;;  %v812_v34 = vpop.f32.mrf.mxu1 }
 0x2c3   :  { %v2594_v46 = vmul.f32 %v2121_v27, %v5300_v61  ;;  %v2136_v0 = vsel %vm2133_vm2, %v2135_v33, %v2131_v47  ;;  %v2147_v61 = vand.u32 2147483647, %v5386_v29  ;;  %v1318_v54 = vadd.f32 1.0, %v3213_v3 }
 0x2c4   :  { %v2595_v62 = vmul.f32 %v2136_v0, %v5303_v17  ;;  %v2155_v17 = vsub.f32 1.0, %v2154_v63  ;;  %v1217_v50 = vmul.f32 1.442695, %v2892_v5  ;;  %v5447_v40 = vadd.f32 %v869_v4, %v3933_v31 }
 0x2c5   :  { %2674 = vst [vmem:[%s5891_s5 + $0x198] sm:$0xff] %v2594_v46  ;;  %v2150_v1 = vor.u32 1.1754944e-38, %v2149_v53  ;;  %vm2159_vm7 = vweird.f32 %v3211_v10  ;;  %v2162_v30 = vand.u32 2147483647, %v5394_v26  ;;  %v2146_v23 = vsel %vm2145_vm4, %v3209_v20, %v2142_v32 }
 0x2c6   :  { %2675 = vst [vmem:[%s5891_s5 + $0x1a0] sm:$0xff] %v2595_v62  ;;  %v2156_v14 = vmul.f32 %v3211_v10, %v2155_v17  ;;  %vm2148_vm5 = vcmp.eq.f32.partialorder %v2147_v61, 8.507059e+37  ;;  %3216 = vrcp.f32 %v1318_v54  ;;  %vm2158_vm6 = vweird.f32 %v5394_v26  ;;  %v871_v17 = vpop.f32.mrf.mxu2 }
 0x2c7   :  { %v2151_v29 = vsel %vm2148_vm5, %v2150_v1, %v2146_v23  ;;  %3218 = vpow2.f32 %v1217_v50  ;;  %vm2160_vm8 = vmor %vm2158_vm6, %vm2159_vm7  ;;  %v2165_v8 = vor.u32 1.1754944e-38, %v2164_v9  ;;  %v2893_v58 = vmul.f32 -1.702, %v5447_v40 }
 0x2c8   :  { %v2157_v60 = vadd.f32 %v3211_v10, %v2156_v14  ;;  %v2596_v55 = vmul.f32 %v2151_v29, %v5320_v15  ;;  %v3215_v21 = vpop.eup %3214  ;;  %vm2163_vm9 = vcmp.eq.f32.partialorder %v2162_v30, 8.507059e+37  ;;  %v5457_v26 = vadd.f32 %v928_v49, %v3935_v43 }
 0x2c9   :  { %v1319_v36 = vadd.f32 1.0, %v3215_v21  ;;  %v1219_v56 = vmul.f32 1.442695, %v2893_v58  ;;  %v5467_v48 = vadd.f32 %v753_v11, %v3882_v18  ;;  %v2179_v41 = vand.u32 2147483648, %v1318_v54 }
 0x2ca   :  { %v2161_v38 = vsel %vm2160_vm8, %v3211_v10, %v2157_v60  ;;  %2676 = vst [vmem:[%s5891_s5 + $0x1a8] sm:$0xff] %v2596_v55  ;;  %v2894_v28 = vmul.f32 -1.702, %v5457_v26  ;;  %v5472_v33 = vadd.f32 %v812_v34, %v3886_v22  ;;  %vm2173_vm11 = vweird.f32 %v1318_v54 }
 0x2cb   :  { %v2166_v25 = vsel %vm2163_vm9, %v2165_v8, %v2161_v38  ;;  %3220 = vrcp.f32 %v1319_v36  ;;  %v2895_v7 = vmul.f32 -1.702, %v5467_v48  ;;  %v2180_v42 = vor.u32 1.1754944e-38, %v2179_v41 }
 0x2cc   :  { %v2597_v15 = vmul.f32 %v2166_v25, %v5323_v19  ;;  %v3217_v35 = vpop.eup %3216  ;;  %3222 = vpow2.f32 %v1219_v56  ;;  %v1221_v52 = vmul.f32 1.442695, %v2894_v28  ;;  %v2177_v19 = vand.u32 2147483647, %v1318_v54 }
 0x2cd   :  { %v3219_v16 = vpop.eup %3218  ;;  %v2169_v44 = vmul.f32 %v3217_v35, %v1318_v54  ;;  %vm2174_vm10 = vweird.f32 %v3217_v35  ;;  %v1223_v39 = vmul.f32 1.442695, %v2895_v7  ;;  %v2896_v46 = vmul.f32 -1.702, %v5472_v33 }
 0x2ce   :  { %2677 = vst [vmem:[%s5891_s5 + $0x1b0] sm:$0xff] %v2597_v15  ;;  %v5464_v57 = vadd.f32 1.0, %v3219_v16  ;;  %vm2175_vm14 = vmor %vm2173_vm11, %vm2174_vm10  ;;  %vm2178_vm12 = vcmp.eq.f32.partialorder %v2177_v19, 8.507059e+37  ;;  %v2192_v62 = vand.u32 2147483647, %v1319_v36  ;;  %v2194_v2 = vand.u32 2147483648, %v1319_v36 }
 0x2cf   :  { %v2170_v13 = vsub.f32 1.0, %v2169_v44  ;;  %vm2188_vm15 = vweird.f32 %v1319_v36  ;;  %v1225_v4 = vmul.f32 1.442695, %v2896_v46  ;;  %v5486_v50 = vadd.f32 %v871_v17, %v3933_v31 }
 0x2d0   :  { %3224 = vrcp.f32 %v5464_v57  ;;  %vm2193_vm0 = vcmp.eq.f32.partialorder %v2192_v62, 8.507059e+37  ;;  %v2207_v1 = vand.u32 2147483647, %v5464_v57  ;;  %v2209_v14 = vand.u32 2147483648, %v5464_v57 }
 0x2d1   :  { %v2171_v20 = vmul.f32 %v3217_v35, %v2170_v13  ;;  %3226 = vpow2.f32 %v1221_v52  ;;  %v3221_v37 = vpop.eup %3220  ;;  %v2897_v58 = vmul.f32 -1.702, %v5486_v50  ;;  %vm2203_vm3 = vweird.f32 %v5464_v57 }
 0x2d2   :  { %v3223_v12 = vpop.eup %3222  ;;  %v2184_v47 = vmul.f32 %v3221_v37, %v1319_v36  ;;  %3228 = vpow2.f32 %v1223_v39  ;;  %vm2189_vm13 = vweird.f32 %v3221_v37  ;;  %vm2208_vm7 = vcmp.eq.f32.partialorder %v2207_v1, 8.507059e+37 }
 0x2d3   :  { %v2172_v27 = vadd.f32 %v3217_v35, %v2171_v20  ;;  %v5474_v10 = vadd.f32 1.0, %v3223_v12  ;;  %vm2190_vm2 = vmor %vm2188_vm15, %vm2189_vm13  ;;  %v2210_v25 = vor.u32 1.1754944e-38, %v2209_v14 }
 0x2d4   :  { %v2185_v45 = vsub.f32 1.0, %v2184_v47 }
 0x2d5   :  { %v2176_v0 = vsel %vm2175_vm14, %v3217_v35, %v2172_v27  ;;  %3230 = vrcp.f32 %v5474_v10  ;;  %v2222_v15 = vand.u32 2147483647, %v5474_v10  ;;  %v1227_v35 = vmul.f32 1.442695, %v2897_v58 }
 0x2d6   :  { %v3225_v53 = vpop.eup %3224  ;;  %v2181_v63 = vsel %vm2178_vm12, %v2180_v42, %v2176_v0  ;;  %v2186_v5 = vmul.f32 %v3221_v37, %v2185_v45  ;;  %v2224_v28 = vand.u32 2147483648, %v5474_v10  ;;  %vm2218_vm6 = vweird.f32 %v5474_v10 }
 0x2d7   :  { %v3227_v59 = vpop.eup %3226  ;;  %v2598_v61 = vmul.f32 %v2181_v63, %v5367_v6  ;;  %v2199_v3 = vmul.f32 %v3225_v53, %v5464_v57  ;;  %v2195_v6 = vor.u32 1.1754944e-38, %v2194_v2  ;;  %vm2204_vm1 = vweird.f32 %v3225_v53 }
 0x2d8   :  { %v5480_v9 = vadd.f32 1.0, %v3227_v59  ;;  %v2187_v32 = vadd.f32 %v3221_v37, %v2186_v5  ;;  %v3229_v30 = vpop.eup %3228  ;;  %vm2205_vm4 = vmor %vm2203_vm3, %vm2204_vm1  ;;  %vm2223_vm9 = vcmp.eq.f32.partialorder %v2222_v15, 8.507059e+37  ;;  %v2225_v27 = vor.u32 1.1754944e-38, %v2224_v28 }
 0x2d9   :  { %2678 = vst [vmem:[%s5891_s5 + $0x1b8] sm:$0xff] %v2598_v61  ;;  %v2200_v54 = vsub.f32 1.0, %v2199_v3  ;;  %v5491_v8 = vadd.f32 1.0, %v3229_v30 }
 0x2da   :  { %3232 = vrcp.f32 %v5480_v9  ;;  %v2191_v23 = vsel %vm2190_vm2, %v3221_v37, %v2187_v32  ;;  %v2237_v11 = vand.u32 2147483647, %v5480_v9  ;;  %v2239_v20 = vand.u32 2147483648, %v5480_v9 }
 0x2db   :  { %v2201_v29 = vmul.f32 %v3225_v53, %v2200_v54  ;;  %3234 = vpow2.f32 %v1225_v4  ;;  %v3231_v60 = vpop.eup %3230  ;;  %v2196_v55 = vsel %vm2193_vm0, %v2195_v6, %v2191_v23  ;;  %vm2233_vm10 = vweird.f32 %v5480_v9 }
 0x2dc   :  { %v2599_v21 = vmul.f32 %v2196_v55, %v5421_v51  ;;  %v2214_v49 = vmul.f32 %v3231_v60, %v5474_v10  ;;  %3236 = vrcp.f32 %v5491_v8  ;;  %v930_v51 = vpop.f32.mrf.mxu3  ;;  %vm2219_vm5 = vweird.f32 %v3231_v60 }
 0x2dd   :  { %v2202_v38 = vadd.f32 %v3225_v53, %v2201_v29  ;;  %v5505_v57 = vadd.f32 %v930_v51, %v3935_v43  ;;  %3238 = vpow2.f32 %v1227_v35  ;;  %vm2220_vm8 = vmor %vm2218_vm6, %vm2219_vm5  ;;  %vm5520_vm14 = vcmp.eq.f32.partialorder %v2237_v11, 8.507059e+37 }
 0x2de   :  { %2679 = vst [vmem:[%s5891_s5 + $0x1c0] sm:$0xff] %v2599_v21  ;;  %v2215_v56 = vsub.f32 1.0, %v2214_v49  ;;  %v2240_v10 = vor.u32 1.1754944e-38, %v2239_v20  ;;  %v2252_v5 = vand.u32 2147483647, %v5491_v8  ;;  %v2254_v3 = vand.u32 2147483648, %v5491_v8 }
 0x2df   :  { %v2206_v36 = vsel %vm2205_vm4, %v3225_v53, %v2202_v38  ;;  %v2898_v34 = vmul.f32 -1.702, %v5505_v57  ;;  %vm2248_vm15 = vweird.f32 %v5491_v8 }
 0x2e0   :  { %v3233_v16 = vpop.eup %3232  ;;  %v2211_v44 = vsel %vm2208_vm7, %v2210_v25, %v2206_v36  ;;  %v2216_v19 = vmul.f32 %v3231_v60, %v2215_v56  ;;  %vm2253_vm2 = vcmp.eq.f32.partialorder %v2252_v5, 8.507059e+37  ;;  %v2255_v23 = vor.u32 1.1754944e-38, %v2254_v3 }
 0x2e1   :  { %v3235_v13 = vpop.eup %3234  ;;  %v2600_v52 = vmul.f32 %v2211_v44, %v5431_v24  ;;  %v2229_v41 = vmul.f32 %v3233_v16, %v5480_v9  ;;  %v756_v47 = vpop.f32.mrf.mxu0  ;;  %vm2234_vm11 = vweird.f32 %v3233_v16  ;;  %v1229_v62 = vmul.f32 1.442695, %v2898_v34 }
 0x2e2   :  { %v5510_v7 = vadd.f32 1.0, %v3235_v13  ;;  %v2217_v37 = vadd.f32 %v3231_v60, %v2216_v19  ;;  %v3237_v24 = vpop.eup %3236  ;;  %v5526_v59 = vadd.f32 %v756_v47, %v3882_v18  ;;  %vm2235_vm12 = vmor %vm2233_vm10, %vm2234_vm11  ;;  %v815_v30 = vpop.f32.mrf.mxu1 }
 0x2e3   :  { %2680 = vst [vmem:[%s5891_s5 + $0x1c8] sm:$0xff] %v2600_v52  ;;  %v2230_v12 = vsub.f32 1.0, %v2229_v41  ;;  %v2244_v46 = vmul.f32 %v3237_v24, %v5491_v8  ;;  %v3239_v61 = vpop.eup %3238  ;;  %vm2249_vm13 = vweird.f32 %v3237_v24 }
 0x2e4   :  { %3240 = vrcp.f32 %v5510_v7  ;;  %v2221_v39 = vsel %vm2220_vm8, %v3231_v60, %v2217_v37  ;;  %v5535_v4 = vadd.f32 1.0, %v3239_v61  ;;  %v2899_v32 = vmul.f32 -1.702, %v5526_v59  ;;  %vm2250_vm0 = vmor %vm2248_vm15, %vm2249_vm13 }
 0x2e5   :  { %v2231_v42 = vmul.f32 %v3233_v16, %v2230_v12  ;;  %v2226_v0 = vsel %vm2223_vm9, %v2225_v27, %v2221_v39  ;;  %v2245_v2 = vsub.f32 1.0, %v2244_v46  ;;  %3242 = vpow2.f32 %v1229_v62 }
 0x2e6   :  { %v2601_v53 = vmul.f32 %v2226_v0, %v5447_v40  ;;  %3244 = vrcp.f32 %v5535_v4  ;;  %v1231_v55 = vmul.f32 1.442695, %v2899_v32  ;;  %v2267_v21 = vand.u32 2147483647, %v5510_v7 }
 0x2e7   :  { %v2232_v63 = vadd.f32 %v3233_v16, %v2231_v42  ;;  %v2246_v17 = vmul.f32 %v3237_v24, %v2245_v2  ;;  %v2269_v38 = vand.u32 2147483648, %v5510_v7  ;;  %vm2263_vm3 = vweird.f32 %v5510_v7 }
 0x2e8   :  { %2681 = vst [vmem:[%s5891_s5 + $0x1d0] sm:$0xff] %v2601_v53  ;;  %3246 = vpow2.f32 %v1231_v55  ;;  %v874_v15 = vpop.f32.mrf.mxu2  ;;  %vm2268_vm7 = vcmp.eq.f32.partialorder %v2267_v21, 8.507059e+37  ;;  %v933_v34 = vpop.f32.mrf.mxu3  ;;  %v2284_v37 = vand.u32 2147483648, %v5535_v4  ;;  %vm2278_vm6 = vweird.f32 %v5535_v4 }
 0x2e9   :  { %v2236_v40 = vsel %vm2235_vm12, %v3233_v16, %v2232_v63  ;;  %v2247_v1 = vadd.f32 %v3237_v24, %v2246_v17  ;;  %v2270_v16 = vor.u32 1.1754944e-38, %v2269_v38  ;;  %v5563_v44 = vadd.f32 %v874_v15, %v3933_v31  ;;  %v758_v53 = vpop.f32.mrf.mxu0 }
 0x2ea   :  { %v3241_v54 = vpop.eup %3240  ;;  %v2241_v9 = vsel %vm5520_vm14, %v2240_v10, %v2236_v40  ;;  %v5573_v27 = vadd.f32 %v933_v34, %v3935_v43  ;;  %v2285_v0 = vor.u32 1.1754944e-38, %v2284_v37  ;;  %v5587_v17 = vadd.f32 %v758_v53, %v3882_v18 }
 0x2eb   :  { %v2602_v6 = vmul.f32 %v2241_v9, %v5457_v26  ;;  %v2259_v14 = vmul.f32 %v3241_v54, %v5510_v7  ;;  %v2251_v29 = vsel %vm2250_vm0, %v3237_v24, %v2247_v1  ;;  %v5549_v26 = vadd.f32 %v815_v30, %v3886_v22  ;;  %v3243_v8 = vpop.eup %3242 }
 0x2ec   :  { %v2256_v58 = vsel %vm2253_vm2, %v2255_v23, %v2251_v29  ;;  %vm2264_vm1 = vweird.f32 %v3241_v54  ;;  %v5554_v36 = vadd.f32 1.0, %v3243_v8  ;;  %v3245_v51 = vpop.eup %3244  ;;  %v2901_v52 = vmul.f32 -1.702, %v5563_v44 }
 0x2ed   :  { %2682 = vst [vmem:[%s5891_s5 + $0x1d8] sm:$0xff] %v2602_v6  ;;  %v2260_v60 = vsub.f32 1.0, %v2259_v14  ;;  %v2603_v49 = vmul.f32 %v2256_v58, %v5467_v48  ;;  %v2900_v56 = vmul.f32 -1.702, %v5549_v26  ;;  %vm2265_vm4 = vmor %vm2263_vm3, %vm2264_vm1  ;;  %v2274_v11 = vmul.f32 %v3245_v51, %v5535_v4 }
 0x2ee   :  { %3248 = vrcp.f32 %v5554_v36  ;;  %v3247_v19 = vpop.eup %3246  ;;  %v2282_v7 = vand.u32 2147483647, %v5535_v4  ;;  %v1235_v24 = vmul.f32 1.442695, %v2901_v52  ;;  %vm2279_vm5 = vweird.f32 %v3245_v51  ;;  %v817_v4 = vpop.f32.mrf.mxu1 }
 0x2ef   :  { %v2261_v25 = vmul.f32 %v3241_v54, %v2260_v60  ;;  %2683 = vst [vmem:[%s5891_s5 + $0x1e0] sm:$0xff] %v2603_v49  ;;  %v1233_v48 = vmul.f32 1.442695, %v2900_v56  ;;  %v2275_v20 = vsub.f32 1.0, %v2274_v11  ;;  %v5570_v12 = vadd.f32 1.0, %v3247_v19  ;;  %vm2280_vm9 = vmor %vm2278_vm6, %vm2279_vm5 }
 0x2f0   :  { %vm2283_vm8 = vcmp.eq.f32.partialorder %v2282_v7, 8.507059e+37  ;;  %v2297_v10 = vand.u32 2147483647, %v5554_v36  ;;  %v2902_v62 = vmul.f32 -1.702, %v5573_v27  ;;  %v2299_v2 = vand.u32 2147483648, %v5554_v36  ;;  %v876_v49 = vpop.f32.mrf.mxu2  ;;  %v935_v34 = vpop.f32.mrf.mxu3 }
 0x2f1   :  { %v2262_v35 = vadd.f32 %v3241_v54, %v2261_v25  ;;  %3250 = vpow2.f32 %v1233_v48  ;;  %v2276_v39 = vmul.f32 %v3245_v51, %v2275_v20  ;;  %vm2293_vm11 = vweird.f32 %v5554_v36 }
 0x2f2   :  { %3252 = vrcp.f32 %v5570_v12  ;;  %v1237_v40 = vmul.f32 1.442695, %v2902_v62  ;;  %vm2298_vm14 = vcmp.eq.f32.partialorder %v2297_v10, 8.507059e+37  ;;  %v2903_v6 = vmul.f32 -1.702, %v5587_v17 }
 0x2f3   :  { %v2266_v28 = vsel %vm2265_vm4, %v3241_v54, %v2262_v35  ;;  %v2277_v42 = vadd.f32 %v3245_v51, %v2276_v39  ;;  %3254 = vpow2.f32 %v1235_v24  ;;  %v2300_v14 = vor.u32 1.1754944e-38, %v2299_v2 }
 0x2f4   :  { %v2271_v13 = vsel %vm2268_vm7, %v2270_v16, %v2266_v28  ;;  %v3249_v47 = vpop.eup %3248  ;;  %v2312_v30 = vand.u32 2147483647, %v5570_v12  ;;  %v5600_v23 = vadd.f32 %v817_v4, %v3886_v22  ;;  %v2314_v60 = vand.u32 2147483648, %v5570_v12 }
 0x2f5   :  { %v2604_v41 = vmul.f32 %v2271_v13, %v5472_v33  ;;  %v2289_v33 = vmul.f32 %v3249_v47, %v5554_v36  ;;  %v2281_v63 = vsel %vm2280_vm9, %v3245_v51, %v2277_v42  ;;  %vm2294_vm10 = vweird.f32 %v3249_v47 }
 0x2f6   :  { %v2286_v5 = vsel %vm2283_vm8, %v2285_v0, %v2281_v63  ;;  %vm2295_vm12 = vmor %vm2293_vm11, %vm2294_vm10  ;;  %v1239_v8 = vmul.f32 1.442695, %v2903_v6  ;;  %vm2308_vm13 = vweird.f32 %v5570_v12  ;;  %v2904_v38 = vmul.f32 -1.702, %v5600_v23 }
 0x2f7   :  { %2684 = vst [vmem:[%s5891_s5 + $0x1e8] sm:$0xff] %v2604_v41  ;;  %v3251_v46 = vpop.eup %3250  ;;  %v2290_v45 = vsub.f32 1.0, %v2289_v33  ;;  %v2605_v32 = vmul.f32 %v2286_v5, %v5486_v50  ;;  %vm5614_vm0 = vcmp.eq.f32.partialorder %v2312_v30, 8.507059e+37  ;;  %v5620_v11 = vadd.f32 %v876_v49, %v3933_v31 }
 0x2f8   :  { %v5584_v61 = vadd.f32 1.0, %v3251_v46  ;;  %v3253_v54 = vpop.eup %3252  ;;  %v1241_v51 = vmul.f32 1.442695, %v2904_v38  ;;  %v5642_v53 = vadd.f32 %v935_v34, %v3935_v43 }
 0x2f9   :  { %v2291_v3 = vmul.f32 %v3249_v47, %v2290_v45  ;;  %v3255_v1 = vpop.eup %3254  ;;  %2685 = vst [vmem:[%s5891_s5 + $0x1f0] sm:$0xff] %v2605_v32  ;;  %v2304_v50 = vmul.f32 %v3253_v54, %v5570_v12  ;;  %vm2309_vm15 = vweird.f32 %v3253_v54  ;;  %v2905_v7 = vmul.f32 -1.702, %v5620_v11 }
 0x2fa   :  { %3256 = vrcp.f32 %v5584_v61  ;;  %v5603_v55 = vadd.f32 1.0, %v3255_v1  ;;  %v2327_v36 = vand.u32 2147483647, %v5584_v61  ;;  %v2329_v56 = vand.u32 2147483648, %v5584_v61  ;;  %vm2310_vm1 = vmor %vm2308_vm13, %vm2309_vm15 }
 0x2fb   :  { %v2292_v9 = vadd.f32 %v3249_v47, %v2291_v3  ;;  %3258 = vpow2.f32 %v1237_v40  ;;  %v2305_v21 = vsub.f32 1.0, %v2304_v50  ;;  %vm2323_vm2 = vweird.f32 %v5584_v61 }
 0x2fc   :  { %3260 = vrcp.f32 %v5603_v55  ;;  %vm5627_vm3 = vcmp.eq.f32.partialorder %v2327_v36, 8.507059e+37  ;;  %v2330_v20 = vor.u32 1.1754944e-38, %v2329_v56  ;;  %vm2338_vm4 = vweird.f32 %v5603_v55 }
 0x2fd   :  { %v2296_v29 = vsel %vm2295_vm12, %v3249_v47, %v2292_v9  ;;  %v2306_v35 = vmul.f32 %v3253_v54, %v2305_v21  ;;  %3262 = vpow2.f32 %v1239_v8  ;;  %v2342_v24 = vand.u32 2147483647, %v5603_v55 }
 0x2fe   :  { %v2301_v58 = vsel %vm2298_vm14, %v2300_v14, %v2296_v29  ;;  %3264 = vpow2.f32 %v1241_v51  ;;  %v2344_v47 = vand.u32 2147483648, %v5603_v55  ;;  %v1243_v42 = vmul.f32 1.442695, %v2905_v7 }
 0x2ff   :  { %v2606_v25 = vmul.f32 %v2301_v58, %v5505_v57  ;;  %v2315_v57 = vor.u32 1.1754944e-38, %v2314_v60  ;;  %v2307_v13 = vadd.f32 %v3253_v54, %v2306_v35  ;;  %vm5652_vm6 = vcmp.eq.f32.partialorder %v2342_v24, 8.507059e+37 }
 0x300   :  { %v3257_v15 = vpop.eup %3256  ;;  %v2345_v4 = vor.u32 1.1754944e-38, %v2344_v47  ;;  %v2906_v50 = vmul.f32 -1.702, %v5642_v53 }
 0x301   :  { %v3259_v16 = vpop.eup %3258  ;;  %2686 = vst [vmem:[%s5891_s5 + $0x1f8] sm:$0xff] %v2606_v25  ;;  %v2319_v28 = vmul.f32 %v3257_v15, %v5584_v61  ;;  %v2311_v37 = vsel %vm2310_vm1, %v3253_v54, %v2307_v13  ;;  %vm2324_vm7 = vweird.f32 %v3257_v15 }
 0x302   :  { %v5623_v52 = vadd.f32 1.0, %v3259_v16  ;;  %v3261_v12 = vpop.eup %3260  ;;  %v2316_v39 = vsel %vm5614_vm0, %v2315_v57, %v2311_v37  ;;  %vm2325_vm5 = vmor %vm2323_vm2, %vm2324_vm7  ;;  %v1245_v51 = vmul.f32 1.442695, %v2906_v50 }
 0x303   :  { %v2320_v19 = vsub.f32 1.0, %v2319_v28  ;;  %v3263_v0 = vpop.eup %3262  ;;  %v2607_v45 = vmul.f32 %v2316_v39, %v5526_v59  ;;  %v2334_v10 = vmul.f32 %v3261_v12, %v5603_v55  ;;  %vm2339_vm8 = vweird.f32 %v3261_v12 }
 0x304   :  { %3266 = vrcp.f32 %v5623_v52  ;;  %v2357_v62 = vand.u32 2147483647, %v5623_v52  ;;  %v2359_v2 = vand.u32 2147483648, %v5623_v52  ;;  %v5645_v5 = vadd.f32 1.0, %v3263_v0  ;;  %v3265_v3 = vpop.eup %3264  ;;  %vm2340_vm11 = vmor %vm2338_vm4, %vm2339_vm8 }
 0x305   :  { %v2321_v33 = vmul.f32 %v3257_v15, %v2320_v19  ;;  %v761_v46 = vpop.f32.mrf.mxu0  ;;  %3268 = vpow2.f32 %v1243_v42  ;;  %2687 = vst [vmem:[%s5891_s5 + $0x200] sm:$0xff] %v2607_v45  ;;  %v2335_v59 = vsub.f32 1.0, %v2334_v10  ;;  %vm2353_vm9 = vweird.f32 %v5623_v52  ;;  %v820_v9 = vpop.f32.mrf.mxu1 }
 0x306   :  { %v5657_v32 = vadd.f32 %v761_v46, %v3882_v18  ;;  %3270 = vrcp.f32 %v5645_v5  ;;  %v5663_v14 = vadd.f32 1.0, %v3265_v3  ;;  %vm5668_vm10 = vcmp.eq.f32.partialorder %v2357_v62, 8.507059e+37 }
 0x307   :  { %v2322_v63 = vadd.f32 %v3257_v15, %v2321_v33  ;;  %v2336_v1 = vmul.f32 %v3261_v12, %v2335_v59  ;;  %v2360_v8 = vor.u32 1.1754944e-38, %v2359_v2  ;;  %v5675_v49 = vadd.f32 %v820_v9, %v3886_v22 }
 0x308   :  { %3272 = vrcp.f32 %v5663_v14  ;;  %v2907_v38 = vmul.f32 -1.702, %v5657_v32  ;;  %v2372_v36 = vand.u32 2147483647, %v5645_v5  ;;  %v2374_v56 = vand.u32 2147483648, %v5645_v5 }
 0x309   :  { %v2326_v54 = vsel %vm2325_vm5, %v3257_v15, %v2322_v63  ;;  %v2337_v21 = vadd.f32 %v3261_v12, %v2336_v1  ;;  %vm2368_vm12 = vweird.f32 %v5645_v5  ;;  %v2387_v28 = vand.u32 2147483647, %v5663_v14 }
 0x30a   :  { %v3267_v6 = vpop.eup %3266  ;;  %v2331_v61 = vsel %vm5627_vm3, %v2330_v20, %v2326_v54  ;;  %v2389_v13 = vand.u32 2147483648, %v5663_v14  ;;  %v1247_v20 = vmul.f32 1.442695, %v2907_v38  ;;  %vm5698_vm13 = vcmp.eq.f32.partialorder %v2372_v36, 8.507059e+37 }
 0x30b   :  { %v2608_v30 = vmul.f32 %v2331_v61, %v5549_v26  ;;  %v2349_v29 = vmul.f32 %v3267_v6, %v5623_v52  ;;  %v3269_v25 = vpop.eup %3268  ;;  %vm2354_vm14 = vweird.f32 %v3267_v6  ;;  %v2341_v15 = vsel %vm2340_vm11, %v3261_v12, %v2337_v21 }
 0x30c   :  { %v879_v58 = vpop.f32.mrf.mxu2  ;;  %v5686_v35 = vadd.f32 1.0, %v3269_v25  ;;  %v3271_v48 = vpop.eup %3270  ;;  %v2346_v55 = vsel %vm5652_vm6, %v2345_v4, %v2341_v15  ;;  %v2375_v37 = vor.u32 1.1754944e-38, %v2374_v56  ;;  %vm2383_vm15 = vweird.f32 %v5663_v14  ;;  %vm2355_vm0 = vmor %vm2353_vm9, %vm2354_vm14 }
 0x30d   :  { %2688 = vst [vmem:[%s5891_s5 + $0x208] sm:$0xff] %v2608_v30  ;;  %v2350_v26 = vsub.f32 1.0, %v2349_v29  ;;  %v5689_v16 = vadd.f32 %v879_v58, %v3933_v31  ;;  %v2609_v19 = vmul.f32 %v2346_v55, %v5563_v44  ;;  %v2364_v41 = vmul.f32 %v3271_v48, %v5645_v5  ;;  %v938_v0 = vpop.f32.mrf.mxu3  ;;  %v763_v45 = vpop.f32.mrf.mxu0 }
 0x30e   :  { %3274 = vrcp.f32 %v5686_v35  ;;  %v3273_v24 = vpop.eup %3272  ;;  %v2908_v47 = vmul.f32 -1.702, %v5675_v49  ;;  %vm5712_vm2 = vcmp.eq.f32.partialorder %v2387_v28, 8.507059e+37  ;;  %v2390_v46 = vor.u32 1.1754944e-38, %v2389_v13  ;;  %v822_v61 = vpop.f32.mrf.mxu1 }
 0x30f   :  { %v2351_v57 = vmul.f32 %v3267_v6, %v2350_v26  ;;  %2689 = vst [vmem:[%s5891_s5 + $0x210] sm:$0xff] %v2609_v19  ;;  %v2365_v44 = vsub.f32 1.0, %v2364_v41  ;;  %3276 = vpow2.f32 %v1245_v51  ;;  %v2909_v12 = vmul.f32 -1.702, %v5689_v16 }
 0x310   :  { %v2379_v33 = vmul.f32 %v3273_v24, %v5663_v14  ;;  %vm2369_vm1 = vweird.f32 %v3271_v48  ;;  %3278 = vpow2.f32 %v1247_v20  ;;  %v1249_v2 = vmul.f32 1.442695, %v2908_v47 }
 0x311   :  { %v2352_v7 = vadd.f32 %v3267_v6, %v2351_v57  ;;  %v2366_v10 = vmul.f32 %v3271_v48, %v2365_v44  ;;  %v1251_v3 = vmul.f32 1.442695, %v2909_v12  ;;  %v2402_v4 = vand.u32 2147483647, %v5686_v35  ;;  %vm2370_vm3 = vmor %vm2368_vm12, %vm2369_vm1 }
 0x312   :  { %v2380_v63 = vsub.f32 1.0, %v2379_v33  ;;  %v5721_v54 = vadd.f32 %v938_v0, %v3935_v43  ;;  %v5724_v9 = vadd.f32 %v763_v45, %v3882_v18  ;;  %vm2384_vm4 = vweird.f32 %v3273_v24 }
 0x313   :  { %v2356_v39 = vsel %vm2355_vm0, %v3267_v6, %v2352_v7  ;;  %v2367_v40 = vadd.f32 %v3271_v48, %v2366_v10  ;;  %3280 = vpow2.f32 %v1249_v2  ;;  %vm2385_vm7 = vmor %vm2383_vm15, %vm2384_vm4  ;;  %v2404_v38 = vand.u32 2147483648, %v5686_v35 }
 0x314   :  { %v2361_v52 = vsel %vm5668_vm10, %v2360_v8, %v2356_v39  ;;  %v3275_v59 = vpop.eup %3274  ;;  %3282 = vpow2.f32 %v1251_v3  ;;  %v2910_v30 = vmul.f32 -1.702, %v5721_v54  ;;  %v2911_v18 = vmul.f32 -1.702, %v5724_v9  ;;  %v881_v44 = vpop.f32.mrf.mxu2 }
 0x315   :  { %v2610_v62 = vmul.f32 %v2361_v52, %v5573_v27  ;;  %v2381_v27 = vmul.f32 %v3273_v24, %v2380_v63  ;;  %v2394_v6 = vmul.f32 %v3275_v59, %v5686_v35  ;;  %v3277_v1 = vpop.eup %3276  ;;  %v2371_v50 = vsel %vm2370_vm3, %v3271_v48, %v2367_v40 }
 0x316   :  { %v2376_v29 = vsel %vm5698_vm13, %v2375_v37, %v2371_v50  ;;  %v5736_v5 = vadd.f32 1.0, %v3277_v1  ;;  %v3279_v58 = vpop.eup %3278  ;;  %v1253_v25 = vmul.f32 1.442695, %v2910_v30  ;;  %v5744_v26 = vadd.f32 %v822_v61, %v3886_v22 }
 0x317   :  { %2690 = vst [vmem:[%s5891_s5 + $0x218] sm:$0xff] %v2610_v62  ;;  %v2382_v60 = vadd.f32 %v3273_v24, %v2381_v27  ;;  %v2395_v8 = vsub.f32 1.0, %v2394_v6  ;;  %v2611_v21 = vmul.f32 %v2376_v29, %v5587_v17  ;;  %vm2399_vm5 = vweird.f32 %v3275_v59 }
 0x318   :  { %3284 = vrcp.f32 %v5736_v5  ;;  %v5752_v14 = vadd.f32 1.0, %v3279_v58  ;;  %v1255_v15 = vmul.f32 1.442695, %v2911_v18  ;;  %vm2398_vm6 = vweird.f32 %v5686_v35 }
 0x319   :  { %v2386_v36 = vsel %vm2385_vm7, %v3273_v24, %v2382_v60  ;;  %v2396_v56 = vmul.f32 %v3275_v59, %v2395_v8  ;;  %2691 = vst [vmem:[%s5891_s5 + $0x220] sm:$0xff] %v2611_v21  ;;  %v3281_v51 = vpop.eup %3280  ;;  %3286 = vpow2.f32 %v1253_v25  ;;  %vm2400_vm8 = vmor %vm2398_vm6, %vm2399_vm5  ;;  %vm2403_vm9 = vcmp.eq.f32.partialorder %v2402_v4, 8.507059e+37 }
 0x31a   :  { %v2391_v17 = vsel %vm5712_vm2, %v2390_v46, %v2386_v36  ;;  %v3283_v55 = vpop.eup %3282  ;;  %v2405_v57 = vor.u32 1.1754944e-38, %v2404_v38  ;;  %3288 = vrcp.f32 %v5752_v14  ;;  %v2912_v28 = vmul.f32 -1.702, %v5744_v26 }
 0x31b   :  { %v2612_v48 = vmul.f32 %v2391_v17, %v5600_v23  ;;  %v2397_v22 = vadd.f32 %v3275_v59, %v2396_v56  ;;  %v2417_v19 = vand.u32 2147483647, %v5736_v5  ;;  %v2419_v23 = vand.u32 2147483648, %v5736_v5 }
 0x31c   :  { %v5763_v41 = vadd.f32 1.0, %v3281_v51  ;;  %v5765_v20 = vadd.f32 1.0, %v3283_v55  ;;  %3290 = vpow2.f32 %v1255_v15  ;;  %v2432_v37 = vand.u32 2147483647, %v5752_v14 }
 0x31d   :  { %2692 = vst [vmem:[%s5891_s5 + $0x228] sm:$0xff] %v2612_v48  ;;  %v2401_v13 = vsel %vm2400_vm8, %v3275_v59, %v2397_v22  ;;  %v2434_v24 = vand.u32 2147483648, %v5752_v14  ;;  %vm2413_vm10 = vweird.f32 %v5736_v5  ;;  %v1257_v12 = vmul.f32 1.442695, %v2912_v28 }
 0x31e   :  { %v2406_v35 = vsel %vm2403_vm9, %v2405_v57, %v2401_v13  ;;  %v3285_v7 = vpop.eup %3284  ;;  %3292 = vrcp.f32 %v5763_v41  ;;  %vm5776_vm11 = vcmp.eq.f32.partialorder %v2417_v19, 8.507059e+37  ;;  %vm2428_vm14 = vweird.f32 %v5752_v14 }
 0x31f   :  { %v2613_v34 = vmul.f32 %v2406_v35, %v5620_v11  ;;  %v2409_v47 = vmul.f32 %v3285_v7, %v5736_v5  ;;  %v3287_v39 = vpop.eup %3286  ;;  %v2420_v11 = vor.u32 1.1754944e-38, %v2419_v23  ;;  %3294 = vrcp.f32 %v5765_v20 }
 0x320   :  { %v3289_v42 = vpop.eup %3288  ;;  %v2447_v0 = vand.u32 2147483647, %v5763_v41  ;;  %v5783_v45 = vadd.f32 1.0, %v3287_v39  ;;  %v5786_v52 = vadd.f32 %v881_v44, %v3933_v31  ;;  %vm5789_vm12 = vcmp.eq.f32.partialorder %v2432_v37, 8.507059e+37 }
 0x321   :  { %2693 = vst [vmem:[%s5891_s5 + $0x230] sm:$0xff] %v2613_v34  ;;  %v2410_v46 = vsub.f32 1.0, %v2409_v47  ;;  %v2424_v10 = vmul.f32 %v3289_v42, %v5752_v14  ;;  %v2435_v63 = vor.u32 1.1754944e-38, %v2434_v24  ;;  %v2449_v2 = vand.u32 2147483648, %v5763_v41  ;;  %v940_v47 = vpop.f32.mrf.mxu3 }
 0x322   :  { %v3291_v3 = vpop.eup %3290  ;;  %vm2414_vm13 = vweird.f32 %v3285_v7  ;;  %v2462_v40 = vand.u32 2147483647, %v5765_v20  ;;  %3296 = vrcp.f32 %v5783_v45  ;;  %vm2443_vm15 = vweird.f32 %v5763_v41 }
 0x323   :  { %v2411_v59 = vmul.f32 %v3285_v7, %v2410_v46  ;;  %v2425_v27 = vsub.f32 1.0, %v2424_v10  ;;  %v2464_v31 = vand.u32 2147483648, %v5765_v20  ;;  %v5798_v6 = vadd.f32 1.0, %v3291_v3  ;;  %vm2415_vm1 = vmor %vm2413_vm10, %vm2414_vm13 }
 0x324   :  { %v3293_v4 = vpop.eup %3292  ;;  %vm5801_vm0 = vcmp.eq.f32.partialorder %v2447_v0, 8.507059e+37  ;;  %vm2458_vm2 = vweird.f32 %v5765_v20  ;;  %3298 = vpow2.f32 %v1257_v12  ;;  %vm2429_vm3 = vweird.f32 %v3289_v42 }
 0x325   :  { %v2412_v61 = vadd.f32 %v3285_v7, %v2411_v59  ;;  %v2439_v1 = vmul.f32 %v3293_v4, %v5763_v41  ;;  %v3295_v30 = vpop.eup %3294  ;;  %v2426_v18 = vmul.f32 %v3289_v42, %v2425_v27  ;;  %v2450_v29 = vor.u32 1.1754944e-38, %v2449_v2  ;;  %vm2430_vm7 = vmor %vm2428_vm14, %vm2429_vm3 }
 0x326   :  { %3300 = vrcp.f32 %v5798_v6  ;;  %v2454_v58 = vmul.f32 %v3295_v30, %v5765_v20  ;;  %vm5810_vm4 = vcmp.eq.f32.partialorder %v2462_v40, 8.507059e+37  ;;  %v2465_v36 = vor.u32 1.1754944e-38, %v2464_v31 }
 0x327   :  { %v2416_v60 = vsel %vm2415_vm1, %v3285_v7, %v2412_v61  ;;  %v2440_v8 = vsub.f32 1.0, %v2439_v1  ;;  %v2427_v25 = vadd.f32 %v3289_v42, %v2426_v18  ;;  %v2479_v5 = vand.u32 2147483648, %v5783_v45 }
 0x328   :  { %v2421_v38 = vsel %vm5776_vm11, %v2420_v11, %v2416_v60  ;;  %v3297_v56 = vpop.eup %3296  ;;  %vm2444_vm5 = vweird.f32 %v3293_v4  ;;  %v2455_v51 = vsub.f32 1.0, %v2454_v58  ;;  %vm2473_vm6 = vweird.f32 %v5783_v45 }
 0x329   :  { %v2614_v17 = vmul.f32 %v2421_v38, %v5642_v53  ;;  %v2441_v15 = vmul.f32 %v3293_v4, %v2440_v8  ;;  %v2431_v48 = vsel %vm2430_vm7, %v3289_v42, %v2427_v25  ;;  %v2469_v22 = vmul.f32 %v3297_v56, %v5783_v45  ;;  %vm2445_vm9 = vmor %vm2443_vm15, %vm2444_vm5 }
 0x32a   :  { %v2477_v55 = vand.u32 2147483647, %v5783_v45  ;;  %v3299_v57 = vpop.eup %3298  ;;  %v2436_v53 = vsel %vm5789_vm12, %v2435_v63, %v2431_v48  ;;  %v2456_v28 = vmul.f32 %v3295_v30, %v2455_v51  ;;  %vm2459_vm8 = vweird.f32 %v3295_v30 }
 0x32b   :  { %2694 = vst [vmem:[%s5891_s5 + $0x238] sm:$0xff] %v2614_v17  ;;  %v2442_v14 = vadd.f32 %v3293_v4, %v2441_v15  ;;  %v2615_v19 = vmul.f32 %v2436_v53, %v5657_v32  ;;  %v2470_v23 = vsub.f32 1.0, %v2469_v22  ;;  %v5831_v35 = vadd.f32 1.0, %v3299_v57  ;;  %vm2460_vm10 = vmor %vm2458_vm2, %vm2459_vm8 }
 0x32c   :  { %v3301_v13 = vpop.eup %3300  ;;  %v2913_v7 = vmul.f32 -1.702, %v5786_v52  ;;  %v2457_v37 = vadd.f32 %v3295_v30, %v2456_v28  ;;  %v2480_v24 = vor.u32 1.1754944e-38, %v2479_v5  ;;  %vm2474_vm11 = vweird.f32 %v3297_v56 }
 0x32d   :  { %v2446_v34 = vsel %vm2445_vm9, %v3293_v4, %v2442_v14  ;;  %v2484_v44 = vmul.f32 %v3301_v13, %v5798_v6  ;;  %2695 = vst [vmem:[%s5891_s5 + $0x240] sm:$0xff] %v2615_v19  ;;  %v2471_v41 = vmul.f32 %v3297_v56, %v2470_v23  ;;  %3302 = vrcp.f32 %v5831_v35  ;;  %vm2475_vm14 = vmor %vm2473_vm6, %vm2474_vm11 }
 0x32e   :  { %v2451_v32 = vsel %vm5801_vm0, %v2450_v29, %v2446_v34  ;;  %v2461_v39 = vsel %vm2460_vm10, %v3295_v30, %v2457_v37  ;;  %v2492_v11 = vand.u32 2147483647, %v5798_v6  ;;  %v2494_v0 = vand.u32 2147483648, %v5798_v6 }
 0x32f   :  { %v2616_v12 = vmul.f32 %v2451_v32, %v5675_v49  ;;  %v2485_v33 = vsub.f32 1.0, %v2484_v44  ;;  %v2466_v42 = vsel %vm5810_vm4, %v2465_v36, %v2461_v39  ;;  %v2472_v46 = vadd.f32 %v3297_v56, %v2471_v41 }
 0x330   :  { %v1259_v10 = vmul.f32 1.442695, %v2913_v7  ;;  %v2617_v20 = vmul.f32 %v2466_v42, %v5689_v16  ;;  %vm2489_vm12 = vweird.f32 %v3301_v13  ;;  %v5855_v62 = vadd.f32 %v940_v47, %v3935_v43 }
 0x331   :  { %2696 = vst [vmem:[%s5891_s5 + $0x248] sm:$0xff] %v2616_v12  ;;  %v2486_v49 = vmul.f32 %v3301_v13, %v2485_v33  ;;  %v2476_v63 = vsel %vm2475_vm14, %v3297_v56, %v2472_v46  ;;  %vm2478_vm13 = vcmp.eq.f32.partialorder %v2477_v55, 8.507059e+37  ;;  %vm2488_vm15 = vweird.f32 %v5798_v6 }
 0x332   :  { %3304 = vpow2.f32 %v1259_v10  ;;  %2697 = vst [vmem:[%s5891_s5 + $0x250] sm:$0xff] %v2617_v20  ;;  %v2481_v2 = vsel %vm2478_vm13, %v2480_v24, %v2476_v63  ;;  %v2914_v16 = vmul.f32 -1.702, %v5855_v62  ;;  %vm2490_vm0 = vmor %vm2488_vm15, %vm2489_vm12  ;;  %v2495_v40 = vor.u32 1.1754944e-38, %v2494_v0 }
 0x333   :  { %v2487_v3 = vadd.f32 %v3301_v13, %v2486_v49  ;;  %v3303_v45 = vpop.eup %3302  ;;  %v2618_v59 = vmul.f32 %v2481_v2, %v5721_v54  ;;  %vm2493_vm2 = vcmp.eq.f32.partialorder %v2492_v11, 8.507059e+37  ;;  %v2509_v50 = vand.u32 2147483648, %v5831_v35 }
 0x334   :  { %v2499_v4 = vmul.f32 %v3303_v45, %v5831_v35  ;;  %v1261_v27 = vmul.f32 1.442695, %v2914_v16  ;;  %vm2504_vm1 = vweird.f32 %v3303_v45  ;;  %v2507_v30 = vand.u32 2147483647, %v5831_v35 }
 0x335   :  { %v2491_v43 = vsel %vm2490_vm0, %v3301_v13, %v2487_v3  ;;  %2698 = vst [vmem:[%s5891_s5 + $0x258] sm:$0xff] %v2618_v59  ;;  %vm2503_vm3 = vweird.f32 %v5831_v35 }
 0x336   :  { %v2496_v31 = vsel %vm2493_vm2, %v2495_v40, %v2491_v43  ;;  %v2500_v6 = vsub.f32 1.0, %v2499_v4  ;;  %3306 = vpow2.f32 %v1261_v27  ;;  %vm2505_vm4 = vmor %vm2503_vm3, %vm2504_vm1  ;;  %vm2508_vm7 = vcmp.eq.f32.partialorder %v2507_v30, 8.507059e+37 }
 0x337   :  { %v2619_v61 = vmul.f32 %v2496_v31, %v5724_v9  ;;  %v2510_v9 = vor.u32 1.1754944e-38, %v2509_v50 }
 0x338   :  { %v3305_v1 = vpop.eup %3304  ;;  %v2501_v54 = vmul.f32 %v3303_v45, %v2500_v6 }
 0x339   :  { %2699 = vst [vmem:[%s5891_s5 + $0x260] sm:$0xff] %v2619_v61  ;;  %v1341_v18 = vadd.f32 1.0, %v3305_v1 }
 0x33a   :  { %v2502_v29 = vadd.f32 %v3303_v45, %v2501_v54 }
 0x33b   :  { %3308 = vrcp.f32 %v1341_v18  ;;  %v2524_v56 = vand.u32 2147483648, %v1341_v18  ;;  %v2522_v51 = vand.u32 2147483647, %v1341_v18  ;;  %vm2518_vm6 = vweird.f32 %v1341_v18 }
 0x33c   :  { %v3307_v60 = vpop.eup %3306  ;;  %v2506_v8 = vsel %vm2505_vm4, %v3303_v45, %v2502_v29 }
 0x33d   :  { %v2511_v58 = vsel %vm2508_vm7, %v2510_v9, %v2506_v8  ;;  %v1342_v21 = vadd.f32 1.0, %v3307_v60  ;;  %v2525_v55 = vor.u32 1.1754944e-38, %v2524_v56  ;;  %vm2523_vm9 = vcmp.eq.f32.partialorder %v2522_v51, 8.507059e+37 }
 0x33e   :  { %v2620_v38 = vmul.f32 %v2511_v58, %v5744_v26 }
 0x33f   :  { %3310 = vrcp.f32 %v1342_v21  ;;  %v2539_v53 = vand.u32 2147483648, %v1342_v21  ;;  %v2537_v13 = vand.u32 2147483647, %v1342_v21  ;;  %vm2533_vm11 = vweird.f32 %v1342_v21 }
 0x340   :  { %2700 = vst [vmem:[%s5891_s5 + $0x268] sm:$0xff] %v2620_v38 }
 0x341   :  { %v3309_v25 = vpop.eup %3308  ;;  %v2540_v35 = vor.u32 1.1754944e-38, %v2539_v53  ;;  %vm2538_vm12 = vcmp.eq.f32.partialorder %v2537_v13, 8.507059e+37 }
 0x342   :  { %v2514_v36 = vmul.f32 %v3309_v25, %v1341_v18  ;;  %vm2519_vm5 = vweird.f32 %v3309_v25 }
 0x343   :  { %vm2520_vm8 = vmor %vm2518_vm6, %vm2519_vm5 }
 0x344   :  { %v2515_v5 = vsub.f32 1.0, %v2514_v36 }
 0x345   :  { %v3311_v17 = vpop.eup %3310 }
 0x346   :  { %v2516_v15 = vmul.f32 %v3309_v25, %v2515_v5  ;;  %v2529_v48 = vmul.f32 %v3311_v17, %v1342_v21  ;;  %vm2534_vm10 = vweird.f32 %v3311_v17 }
 0x347   :  { %vm2535_vm14 = vmor %vm2533_vm11, %vm2534_vm10 }
 0x348   :  { %v2517_v22 = vadd.f32 %v3309_v25, %v2516_v15  ;;  %v2530_v57 = vsub.f32 1.0, %v2529_v48 }
 0x34a   :  { %v2521_v26 = vsel %vm2520_vm8, %v3309_v25, %v2517_v22  ;;  %v2531_v28 = vmul.f32 %v3311_v17, %v2530_v57 }
 0x34b   :  { %v2526_v14 = vsel %vm2523_vm9, %v2525_v55, %v2521_v26 }
 0x34c   :  { %v2621_v19 = vmul.f32 %v2526_v14, %v5786_v52  ;;  %v2532_v23 = vadd.f32 %v3311_v17, %v2531_v28 }
 0x34e   :  { %2701 = vst [vmem:[%s5891_s5 + $0x270] sm:$0xff] %v2621_v19  ;;  %v2536_v7 = vsel %vm2535_vm14, %v3311_v17, %v2532_v23 }
 0x34f   :  { %v2541_v34 = vsel %vm2538_vm12, %v2540_v35, %v2536_v7 }
 0x350   :  { %v2622_v37 = vmul.f32 %v2541_v34, %v5855_v62 }
 0x352   :  { %2702 = vst [vmem:[%s5891_s5 + $0x278] sm:$0xff] %v2622_v37 }

</bundles_post_ra>
